<compile_context>
chip_gen: v7x
topology: tpu7x:2x2x1
jax: 0.10.0
libtpu: 0.0.40
codegen_flags: <defaults>
</compile_context>

<pallas_src>
import jax
import jax.numpy as jnp
from jax import lax
from jax.experimental import pallas as pl
from jax.experimental.pallas import tpu as pltpu


def ttm_kernel(traj_ref, lvn_ref,
               wih0_ref, whh0_ref, b0_ref,
               wih1_ref, whh1_ref, b1_ref,
               cw1_ref, cb1_ref, cw2_ref, cb2_ref,
               lng_ref, lnb_ref, mask_ref,
               sel_ref, expt_ref, expn_ref,
               wc1h_ref, wc1c_ref, wc1l_ref, bc1_ref,
               wc2_ref, bc2_ref,
               tf_out_ref, pred_out_ref,
               seq_ref, xp_ref):
    f32 = jnp.float32
    LB, _ = traj_ref.shape
    H = whh0_ref.shape[0]
    Bp = sel_ref.shape[0]            # batch, padded to a full 8-sublane block
    L = LB // Bp

    # ---- zero the conv-padding row-blocks of the time-major slab (aligned stores) -----
    seq_ref[0:2 * Bp, :] = jnp.zeros((2 * Bp, H), f32)
    seq_ref[(L + 2) * Bp:(L + 4) * Bp, :] = jnp.zeros((2 * Bp, H), f32)

    # ---- hoisted layer-1 input projection: one [L*Bp, F] x [F, 4H] MXU matmul ---------
    xp_ref[...] = (jnp.dot(traj_ref[...], wih0_ref[...], preferred_element_type=f32)
                   + b0_ref[...])                                    # [L*Bp, 4H]

    whh0 = whh0_ref[...]
    wih1 = wih1_ref[...]
    whh1 = whh1_ref[...]
    b1 = b1_ref[...]

    # Gate columns are pre-permuted (wrapper) to [i | f | o | g]:
    # one wide sigmoid over 3H lanes + one tanh over H lanes per layer-step.
    def gates(g):
        s = jax.nn.sigmoid(g[:, 0:3 * H])
        return (s[:, 0:H], s[:, H:2 * H], s[:, 2 * H:3 * H],
                jnp.tanh(g[:, 3 * H:4 * H]))

    # ---- 2-layer LSTM recurrence, fully unrolled (L is static & small) ----------------
    h1 = c1 = h2 = c2 = jnp.zeros((Bp, H), f32)
    for t in range(L):
        # h2_{t-1} @ whh1 has no dependence on h1_t -> keep it OFF the dependent chain.
        r2 = jnp.dot(h2, whh1, preferred_element_type=f32)
        g1 = (xp_ref[t * Bp:(t + 1) * Bp, :]
              + jnp.dot(h1, whh0, preferred_element_type=f32))
        i1, f1, o1, gg1 = gates(g1)
        c1 = f1 * c1 + i1 * gg1
        h1 = o1 * jnp.tanh(c1)
        # TODO(synk): nn.LSTM inter-layer Dropout(0.1) is train-only; identity in eval.
        g2 = jnp.dot(h1, wih1, preferred_element_type=f32) + r2 + b1
        i2, f2, o2, gg2 = gates(g2)
        c2 = f2 * c2 + i2 * gg2
        h2 = o2 * jnp.tanh(c2)
        seq_ref[(t + 2) * Bp:(t + 3) * Bp, :] = h2    # aligned full-sublane store

    # forward() returns temporal_features[:, :H], which is exactly h_n[-1].
    tf_out_ref[...] = h2

    # ---- pattern_conv: Conv1d(H,2H,3,p=1) -> ReLU -> Conv1d(2H,H,3,p=1) -> LayerNorm ---
    # Batched over the whole time-major padded slab; conv = 3 shifted matmuls.
    cw1 = cw1_ref[...]                                 # [3, H, 2H]
    cw2 = cw2_ref[...]                                 # [3, 2H, H]
    LBp = (L + 2) * Bp

    # first tap initializes the accumulator; taps kept back-to-back (v7x MRB).
    acc1 = jnp.dot(seq_ref[0:LBp, :], cw1[0], preferred_element_type=f32)
    acc1 = acc1 + jnp.dot(seq_ref[Bp:Bp + LBp, :], cw1[1], preferred_element_type=f32)
    acc1 = acc1 + jnp.dot(seq_ref[2 * Bp:2 * Bp + LBp, :], cw1[2],
                          preferred_element_type=f32)
    # ReLU; mask zeroes the rows that stand in for Conv1d #2's zero padding.
    y1p = jnp.maximum(acc1 + cb1_ref[...], 0.0) * mask_ref[...]     # [(L+2)*Bp, 2H]

    acc2 = jnp.dot(y1p[0:L * Bp, :], cw2[0], preferred_element_type=f32)
    acc2 = acc2 + jnp.dot(y1p[Bp:Bp + L * Bp, :], cw2[1], preferred_element_type=f32)
    acc2 = acc2 + jnp.dot(y1p[2 * Bp:2 * Bp + L * Bp, :], cw2[2],
                          preferred_element_type=f32)
    y2 = acc2 + cb2_ref[...]                                        # [L*Bp, H], time-major

    # LayerNorm over the sequence axis (as written in the module), eps=1e-5, plus the
    # mean over time, via tiny selection matmuls so everything stays 2-D.
    sel = sel_ref[...]                                 # [Bp, L*Bp]: 1/L at matching rows
    expt = expt_ref[...]                               # [L*Bp, Bp]: one-hot broadcast-back
    mu = jnp.dot(sel, y2, preferred_element_type=f32)               # [Bp, H]
    d = y2 - jnp.dot(expt, mu, preferred_element_type=f32)
    var = jnp.dot(sel, d * d, preferred_element_type=f32)           # [Bp, H]
    rstd = lax.rsqrt(var + 1e-5)
    y2n = (d * jnp.dot(expt, rstd, preferred_element_type=f32)
           * lng_ref[...] + lnb_ref[...])
    conv_mean = jnp.dot(sel, y2n, preferred_element_type=f32)       # [Bp, H]

    # ---- interaction classifier, vectorized over all N levels at once -----------------
    part = (jnp.dot(h2, wc1h_ref[...], preferred_element_type=f32)
            + jnp.dot(conv_mean, wc1c_ref[...], preferred_element_type=f32)
            + bc1_ref[...])                                          # [Bp, H]
    hid = jnp.maximum(
        jnp.dot(expn_ref[...], part, preferred_element_type=f32)
        + jnp.dot(lvn_ref[...], wc1l_ref[...], preferred_element_type=f32), 0.0)
    # TODO(synk): classifier nn.Dropout(0.1) is train-only; identity in eval.
    pred_out_ref[...] = (jnp.dot(hid, wc2_ref[...], preferred_element_type=f32)
                         + bc2_ref[...])               # [N*Bp, 128] lane-dense (zero-padded)


@jax.jit
def temporal_tracking_forward(price_trajectory, lvn_embeddings, params):
    """price_trajectory: [B, L, F] (F == hidden_dim), lvn_embeddings: [B, N, H]."""
    B, L, F = price_trajectory.shape
    _, N, H = lvn_embeddings.shape
    if L != H:
        raise ValueError("as-written LayerNorm placement requires seq_len == hidden_dim")
    Bp = ((B + 7) // 8) * 8                                          # pad batch to 8 sublanes

    # Time-/level-major, batch padded with zero rows (done once in the XLA wrapper).
    traj_t = jnp.transpose(price_trajectory, (1, 0, 2))              # [L, B, F]
    traj_2d = jnp.pad(traj_t, ((0, 0), (0, Bp - B), (0, 0))).reshape(L * Bp, F)
    lvn_t = jnp.transpose(lvn_embeddings, (1, 0, 2))                 # [N, B, H]
    lvn_2d = jnp.pad(lvn_t, ((0, 0), (0, Bp - B), (0, 0))).reshape(N * Bp, H)

    def perm(w):  # reorder 4H gate columns from [i|f|g|o] -> [i|f|o|g] (free, in wrapper)
        return jnp.concatenate([w[:, :2 * H], w[:, 3 * H:], w[:, 2 * H:3 * H]], axis=1)

    wih0 = perm(params["wih0"]); whh0 = perm(params["whh0"]); b0 = perm(params["b0"])
    wih1 = perm(params["wih1"]); whh1 = perm(params["whh1"]); b1 = perm(params["b1"])

    # Pre-expanded constants for the padded layout.
    g_exp = jnp.repeat(params["ln_g"], Bp, axis=0)                   # [L*Bp, 1]
    b_exp = jnp.repeat(params["ln_b"], Bp, axis=0)                   # [L*Bp, 1]
    mask = jnp.ones(((L + 2) * Bp, 1), jnp.float32)
    mask = mask.at[:Bp].set(0.0).at[(L + 1) * Bp:].set(0.0)          # conv pad row-blocks
    eye_bp = jnp.eye(Bp, dtype=jnp.float32)
    expand_t = jnp.tile(eye_bp, (L, 1))                              # [L*Bp, Bp]
    sel_mean = expand_t.T / jnp.float32(L)                           # [Bp, L*Bp]
    expand_n = jnp.tile(eye_bp, (N, 1))                              # [N*Bp, Bp]
    wc2p = jnp.pad(params["wc2"], ((0, 0), (0, 128 - params["wc2"].shape[1])))
    bc2p = jnp.pad(params["bc2"], ((0, 0), (0, 128 - params["bc2"].shape[1])))

    args = (traj_2d, lvn_2d,
            wih0, whh0, b0, wih1, whh1, b1,
            params["cw1"], params["cb1"], params["cw2"], params["cb2"],
            g_exp, b_exp, mask,
            sel_mean, expand_t, expand_n,
            params["wc1_h"], params["wc1_c"], params["wc1_l"], params["bc1"],
            wc2p, bc2p)

    vmem = pl.BlockSpec(memory_space=pltpu.MemorySpace.VMEM)
    tf_p, pred_p = pl.pallas_call(
        ttm_kernel,
        out_shape=(jax.ShapeDtypeStruct((Bp, H), jnp.float32),
                   jax.ShapeDtypeStruct((N * Bp, 128), jnp.float32)),
        in_specs=[vmem] * len(args),
        out_specs=(vmem, vmem),
        scratch_shapes=[
            pltpu.VMEM(((L + 4) * Bp, H), jnp.float32),   # time-major LSTM-out slab,
            pltpu.VMEM((L * Bp, 4 * H), jnp.float32),     # 2 zero-pad blocks each end;
        ],                                                # hoisted layer-1 input proj
    )(*args)

    tf = tf_p[:B]
    preds = jnp.transpose(pred_p.reshape(N, Bp, 128)[:, :B, :3], (1, 0, 2))  # [B, N, 3]
    return tf, preds


def init_params(key, H, L):
    ks = jax.random.split(key, 16)

    def u(k, shape, fan):
        return (jax.random.uniform(k, shape, jnp.float32, -1.0, 1.0)
                / jnp.sqrt(jnp.float32(fan)))

    p = {}
    # LSTM (weights stored pre-transposed to [in, 4H]; b = b_ih + b_hh combined).
    p["wih0"] = u(ks[0], (H, 4 * H), H)
    p["whh0"] = u(ks[1], (H, 4 * H), H)
    p["b0"] = u(ks[2], (1, 4 * H), H)
    p["wih1"] = u(ks[3], (H, 4 * H), H)
    p["whh1"] = u(ks[4], (H, 4 * H), H)
    p["b1"] = u(ks[5], (1, 4 * H), H)
    # Conv1d weights stored as [tap, Cin, Cout] (torch: [Cout, Cin, tap]).
    p["cw1"] = u(ks[6], (3, H, 2 * H), 3 * H)
    p["cb1"] = u(ks[7], (1, 2 * H), 3 * H)
    p["cw2"] = u(ks[8], (3, 2 * H, H), 3 * 2 * H)
    p["cb2"] = u(ks[9], (1, H), 3 * 2 * H)
    # LayerNorm (torch default init: weight=1, bias=0); normalized dim has length L.
    p["ln_g"] = jnp.ones((L, 1), jnp.float32)
    p["ln_b"] = jnp.zeros((L, 1), jnp.float32)
    # Classifier first linear: 3H -> H, split into the three H x H blocks
    # acting on [h_n[-1] | conv_mean | lvn_feature].
    p["wc1_h"] = u(ks[10], (H, H), 3 * H)
    p["wc1_c"] = u(ks[11], (H, H), 3 * H)
    p["wc1_l"] = u(ks[12], (H, H), 3 * H)
    p["bc1"] = u(ks[13], (1, H), 3 * H)
    p["wc2"] = u(ks[14], (H, 3), H)
    p["bc2"] = u(ks[15], (1, 3), H)
    return p


def reference_forward(price_trajectory, lvn, p):
    """Pure-JAX reference mirroring the PyTorch forward (eval mode)."""
    B, L, _ = price_trajectory.shape
    H = p["whh0"].shape[0]

    def cell(x, h, c, wih, whh, b):
        g = x @ wih + h @ whh + b
        i = jax.nn.sigmoid(g[:, :H]); f = jax.nn.sigmoid(g[:, H:2 * H])
        gg = jnp.tanh(g[:, 2 * H:3 * H]); o = jax.nn.sigmoid(g[:, 3 * H:])
        c = f * c + i * gg
        return o * jnp.tanh(c), c

    h1 = c1 = h2 = c2 = jnp.zeros((B, H), jnp.float32)
    outs = []
    for t in range(L):
        h1, c1 = cell(price_trajectory[:, t, :], h1, c1, p["wih0"], p["whh0"], p["b0"])
        h2, c2 = cell(h1, h2, c2, p["wih1"], p["whh1"], p["b1"])
        outs.append(h2)
    seq = jnp.stack(outs, axis=1)                     # [B, L, H]

    x = jnp.transpose(seq, (0, 2, 1))                 # [B, H, L] (torch NCL)

    def conv1d(x, w, b):                              # w: [3, Cin, Cout]
        xp = jnp.pad(x, ((0, 0), (0, 0), (1, 1)))
        Lc = x.shape[2]
        y = jnp.zeros((x.shape[0], w.shape[2], Lc), jnp.float32)
        for k in range(3):
            y = y + jnp.einsum("bil,io->bol", xp[:, :, k:k + Lc], w[k])
        return y + b.reshape(1, -1, 1)

    y1 = jax.nn.relu(conv1d(x, p["cw1"], p["cb1"]))
    y2 = conv1d(y1, p["cw2"], p["cb2"])               # [B, H, L]
    mu = y2.mean(-1, keepdims=True)
    var = ((y2 - mu) ** 2).mean(-1, keepdims=True)
    y2n = ((y2 - mu) / jnp.sqrt(var + 1e-5)
           * p["ln_g"].reshape(1, 1, -1) + p["ln_b"].reshape(1, 1, -1))
    traj_conv = jnp.transpose(y2n, (0, 2, 1))         # [B, L, H]
    conv_mean = traj_conv.mean(axis=1)                # [B, H]

    hid = jax.nn.relu((h2 @ p["wc1_h"] + conv_mean @ p["wc1_c"])[:, None, :]
                      + jnp.einsum("bnh,ho->bno", lvn, p["wc1_l"]) + p["bc1"])
    preds = jnp.einsum("bnh,ho->bno", hid, p["wc2"]) + p["bc2"]
    return h2, preds


if __name__ == "__main__":
    # seq_len == hidden_dim is required by the module's as-written LayerNorm placement.
    B, H, L, N = 2, 32, 32, 4

    key = jax.random.PRNGKey(0)
    kp, kt, kl = jax.random.split(key, 3)
    params = init_params(kp, H, L)
    price_trajectory = jax.random.normal(kt, (B, L, H), jnp.float32)
    lvn_embeddings = jax.random.normal(kl, (B, N, H), jnp.float32)

    tf, preds = jax.block_until_ready(
        temporal_tracking_forward(price_trajectory, lvn_embeddings, params))

    tf_ref, preds_ref = reference_forward(price_trajectory, lvn_embeddings, params)
    assert tf.shape == (B, H) and preds.shape == (B, N, 3)
    assert jnp.allclose(tf, tf_ref, atol=2e-3, rtol=2e-3)
    assert jnp.allclose(preds, preds_ref, atol=2e-3, rtol=2e-3)
    print("KERNEL_OK")
</pallas_src>

<mosaic_0001>
module attributes {stable_mosaic.version = 11 : i64} {
  func.func @ttm_kernel(%arg0: memref<256x32xf32, #tpu.memory_space<vmem>>, %arg1: memref<32x32xf32, #tpu.memory_space<vmem>>, %arg2: memref<32x128xf32, #tpu.memory_space<vmem>>, %arg3: memref<32x128xf32, #tpu.memory_space<vmem>>, %arg4: memref<1x128xf32, #tpu.memory_space<vmem>>, %arg5: memref<32x128xf32, #tpu.memory_space<vmem>>, %arg6: memref<32x128xf32, #tpu.memory_space<vmem>>, %arg7: memref<1x128xf32, #tpu.memory_space<vmem>>, %arg8: memref<3x32x64xf32, #tpu.memory_space<vmem>>, %arg9: memref<1x64xf32, #tpu.memory_space<vmem>>, %arg10: memref<3x64x32xf32, #tpu.memory_space<vmem>>, %arg11: memref<1x32xf32, #tpu.memory_space<vmem>>, %arg12: memref<256x1xf32, #tpu.memory_space<vmem>>, %arg13: memref<256x1xf32, #tpu.memory_space<vmem>>, %arg14: memref<272x1xf32, #tpu.memory_space<vmem>>, %arg15: memref<8x256xf32, #tpu.memory_space<vmem>>, %arg16: memref<256x8xf32, #tpu.memory_space<vmem>>, %arg17: memref<32x8xf32, #tpu.memory_space<vmem>>, %arg18: memref<32x32xf32, #tpu.memory_space<vmem>>, %arg19: memref<32x32xf32, #tpu.memory_space<vmem>>, %arg20: memref<32x32xf32, #tpu.memory_space<vmem>>, %arg21: memref<1x32xf32, #tpu.memory_space<vmem>>, %arg22: memref<32x128xf32, #tpu.memory_space<vmem>>, %arg23: memref<1x128xf32, #tpu.memory_space<vmem>>, %arg24: memref<8x32xf32, #tpu.memory_space<vmem>>, %arg25: memref<32x128xf32, #tpu.memory_space<vmem>>, %arg26: memref<288x32xf32, #tpu.memory_space<vmem>>, %arg27: memref<256x128xf32, #tpu.memory_space<vmem>>) attributes {dimension_semantics = [], scalar_prefetch = 0 : i64, scratch_operands = 2 : i64, tpu.core_type = #tpu.core_type<tc>} {
    %cst = arith.constant 0.000000e+00 : f32
    %0 = vector.broadcast %cst : f32 to vector<16x32xf32>
    %c0 = arith.constant 0 : index
    %c0_0 = arith.constant 0 : index
    %1 = vector.load %arg26[%c0, %c0_0] : memref<288x32xf32, #tpu.memory_space<vmem>>, vector<16x32xf32>
    tpu.vector_store %arg26[%c0, %c0_0], %0 {strides = array<i32>} : memref<288x32xf32, #tpu.memory_space<vmem>>, vector<16x32xf32>,
    %cst_1 = arith.constant 0.000000e+00 : f32
    %2 = vector.broadcast %cst_1 : f32 to vector<16x32xf32>
    %c272 = arith.constant 272 : index
    %c0_2 = arith.constant 0 : index
    %3 = vector.load %arg26[%c272, %c0_2] : memref<288x32xf32, #tpu.memory_space<vmem>>, vector<16x32xf32>
    tpu.vector_store %arg26[%c272, %c0_2], %2 {strides = array<i32>} : memref<288x32xf32, #tpu.memory_space<vmem>>, vector<16x32xf32>,
    %c0_3 = arith.constant 0 : index
    %c0_4 = arith.constant 0 : index
    %4 = vector.load %arg0[%c0_3, %c0_4] : memref<256x32xf32, #tpu.memory_space<vmem>>, vector<256x32xf32>
    %c0_5 = arith.constant 0 : index
    %c0_6 = arith.constant 0 : index
    %5 = vector.load %arg2[%c0_5, %c0_6] : memref<32x128xf32, #tpu.memory_space<vmem>>, vector<32x128xf32>
    %cst_7 = arith.constant dense<0.000000e+00> : vector<256x128xf32>
    %6 = tpu.matmul %4, %5, %cst_7 {dimension_numbers = #tpu.dot_dimension_numbers<[1], [0], [0], [1], [0, 0, 1, 1], [], []>} : vector<256x32xf32>, vector<32x128xf32>, vector<256x128xf32> -> vector<256x128xf32>
    %c0_8 = arith.constant 0 : index
    %c0_9 = arith.constant 0 : index
    %7 = vector.load %arg4[%c0_8, %c0_9] : memref<1x128xf32, #tpu.memory_space<vmem>>, vector<1x128xf32>
    %8 = vector.broadcast %7 : vector<1x128xf32> to vector<256x128xf32>
    %9 = arith.addf %6, %8 : vector<256x128xf32>
    %c0_10 = arith.constant 0 : index
    %c0_11 = arith.constant 0 : index
    %10 = vector.load %arg27[%c0_10, %c0_11] : memref<256x128xf32, #tpu.memory_space<vmem>>, vector<256x128xf32>
    tpu.vector_store %arg27[%c0_10, %c0_11], %9 {strides = array<i32>} : memref<256x128xf32, #tpu.memory_space<vmem>>, vector<256x128xf32>,
    %c0_12 = arith.constant 0 : index
    %c0_13 = arith.constant 0 : index
    %11 = vector.load %arg3[%c0_12, %c0_13] : memref<32x128xf32, #tpu.memory_space<vmem>>, vector<32x128xf32>
    %c0_14 = arith.constant 0 : index
    %c0_15 = arith.constant 0 : index
    %12 = vector.load %arg5[%c0_14, %c0_15] : memref<32x128xf32, #tpu.memory_space<vmem>>, vector<32x128xf32>
    %c0_16 = arith.constant 0 : index
    %c0_17 = arith.constant 0 : index
    %13 = vector.load %arg6[%c0_16, %c0_17] : memref<32x128xf32, #tpu.memory_space<vmem>>, vector<32x128xf32>
    %c0_18 = arith.constant 0 : index
    %c0_19 = arith.constant 0 : index
    %14 = vector.load %arg7[%c0_18, %c0_19] : memref<1x128xf32, #tpu.memory_space<vmem>>, vector<1x128xf32>
    %cst_20 = arith.constant 0.000000e+00 : f32
    %15 = vector.broadcast %cst_20 : f32 to vector<8x32xf32>
    %cst_21 = arith.constant dense<0.000000e+00> : vector<8x128xf32>
    %16 = tpu.matmul %15, %13, %cst_21 {dimension_numbers = #tpu.dot_dimension_numbers<[1], [0], [0], [1], [0, 0, 1, 1], [], []>} : vector<8x32xf32>, vector<32x128xf32>, vector<8x128xf32> -> vector<8x128xf32>
    %c0_22 = arith.constant 0 : index
    %c0_23 = arith.constant 0 : index
    %17 = vector.load %arg27[%c0_22, %c0_23] : memref<256x128xf32, #tpu.memory_space<vmem>>, vector<8x128xf32>
    %cst_24 = arith.constant dense<0.000000e+00> : vector<8x128xf32>
    %18 = tpu.matmul %15, %11, %cst_24 {dimension_numbers = #tpu.dot_dimension_numbers<[1], [0], [0], [1], [0, 0, 1, 1], [], []>} : vector<8x32xf32>, vector<32x128xf32>, vector<8x128xf32> -> vector<8x128xf32>
    %19 = arith.addf %17, %18 : vector<8x128xf32>
    %20 = vector.extract_strided_slice %19 {offsets = [0, 0], sizes = [8, 96], strides = [1, 1]} : vector<8x128xf32> to vector<8x96xf32>
    %21 = arith.negf %20 : vector<8x96xf32>
    %22 = math.exp %21 : vector<8x96xf32>
    %cst_25 = arith.constant 1.000000e+00 : f32
    %23 = vector.broadcast %cst_25 : f32 to vector<8x96xf32>
    %24 = arith.addf %23, %22 : vector<8x96xf32>
    %25 = arith.divf %23, %24 : vector<8x96xf32>
    %26 = vector.extract_strided_slice %25 {offsets = [0, 0], sizes = [8, 32], strides = [1, 1]} : vector<8x96xf32> to vector<8x32xf32>
    %27 = vector.extract_strided_slice %25 {offsets = [0, 32], sizes = [8, 32], strides = [1, 1]} : vector<8x96xf32> to vector<8x32xf32>
    %28 = vector.extract_strided_slice %25 {offsets = [0, 64], sizes = [8, 32], strides = [1, 1]} : vector<8x96xf32> to vector<8x32xf32>
    %29 = vector.extract_strided_slice %19 {offsets = [0, 96], sizes = [8, 32], strides = [1, 1]} : vector<8x128xf32> to vector<8x32xf32>
    %30 = math.tanh %29 : vector<8x32xf32>
    %31 = arith.mulf %27, %15 : vector<8x32xf32>
    %32 = arith.mulf %26, %30 : vector<8x32xf32>
    %33 = arith.addf %31, %32 : vector<8x32xf32>
    %34 = math.tanh %33 : vector<8x32xf32>
    %35 = arith.mulf %28, %34 : vector<8x32xf32>
    %cst_26 = arith.constant dense<0.000000e+00> : vector<8x128xf32>
    %36 = tpu.matmul %35, %12, %cst_26 {dimension_numbers = #tpu.dot_dimension_numbers<[1], [0], [0], [1], [0, 0, 1, 1], [], []>} : vector<8x32xf32>, vector<32x128xf32>, vector<8x128xf32> -> vector<8x128xf32>
    %37 = arith.addf %36, %16 : vector<8x128xf32>
    %38 = vector.broadcast %14 : vector<1x128xf32> to vector<8x128xf32>
    %39 = arith.addf %37, %38 : vector<8x128xf32>
    %40 = vector.extract_strided_slice %39 {offsets = [0, 0], sizes = [8, 96], strides = [1, 1]} : vector<8x128xf32> to vector<8x96xf32>
    %41 = arith.negf %40 : vector<8x96xf32>
    %42 = math.exp %41 : vector<8x96xf32>
    %cst_27 = arith.constant 1.000000e+00 : f32
    %43 = vector.broadcast %cst_27 : f32 to vector<8x96xf32>
    %44 = arith.addf %43, %42 : vector<8x96xf32>
    %45 = arith.divf %43, %44 : vector<8x96xf32>
    %46 = vector.extract_strided_slice %45 {offsets = [0, 0], sizes = [8, 32], strides = [1, 1]} : vector<8x96xf32> to vector<8x32xf32>
    %47 = vector.extract_strided_slice %45 {offsets = [0, 32], sizes = [8, 32], strides = [1, 1]} : vector<8x96xf32> to vector<8x32xf32>
    %48 = vector.extract_strided_slice %45 {offsets = [0, 64], sizes = [8, 32], strides = [1, 1]} : vector<8x96xf32> to vector<8x32xf32>
    %49 = vector.extract_strided_slice %39 {offsets = [0, 96], sizes = [8, 32], strides = [1, 1]} : vector<8x128xf32> to vector<8x32xf32>
    %50 = math.tanh %49 : vector<8x32xf32>
    %51 = arith.mulf %47, %15 : vector<8x32xf32>
    %52 = arith.mulf %46, %50 : vector<8x32xf32>
    %53 = arith.addf %51, %52 : vector<8x32xf32>
    %54 = math.tanh %53 : vector<8x32xf32>
    %55 = arith.mulf %48, %54 : vector<8x32xf32>
    %c16 = arith.constant 16 : index
    %c0_28 = arith.constant 0 : index
    %56 = vector.load %arg26[%c16, %c0_28] : memref<288x32xf32, #tpu.memory_space<vmem>>, vector<8x32xf32>
    tpu.vector_store %arg26[%c16, %c0_28], %55 {strides = array<i32>} : memref<288x32xf32, #tpu.memory_space<vmem>>, vector<8x32xf32>,
    %cst_29 = arith.constant dense<0.000000e+00> : vector<8x128xf32>
    %57 = tpu.matmul %55, %13, %cst_29 {dimension_numbers = #tpu.dot_dimension_numbers<[1], [0], [0], [1], [0, 0, 1, 1], [], []>} : vector<8x32xf32>, vector<32x128xf32>, vector<8x128xf32> -> vector<8x128xf32>
    %c8 = arith.constant 8 : index
    %c0_30 = arith.constant 0 : index
    %58 = vector.load %arg27[%c8, %c0_30] : memref<256x128xf32, #tpu.memory_space<vmem>>, vector<8x128xf32>
    %cst_31 = arith.constant dense<0.000000e+00> : vector<8x128xf32>
    %59 = tpu.matmul %35, %11, %cst_31 {dimension_numbers = #tpu.dot_dimension_numbers<[1], [0], [0], [1], [0, 0, 1, 1], [], []>} : vector<8x32xf32>, vector<32x128xf32>, vector<8x128xf32> -> vector<8x128xf32>
    %60 = arith.addf %58, %59 : vector<8x128xf32>
    %61 = vector.extract_strided_slice %60 {offsets = [0, 0], sizes = [8, 96], strides = [1, 1]} : vector<8x128xf32> to vector<8x96xf32>
    %62 = arith.negf %61 : vector<8x96xf32>
    %63 = math.exp %62 : vector<8x96xf32>
    %cst_32 = arith.constant 1.000000e+00 : f32
    %64 = vector.broadcast %cst_32 : f32 to vector<8x96xf32>
    %65 = arith.addf %64, %63 : vector<8x96xf32>
    %66 = arith.divf %64, %65 : vector<8x96xf32>
    %67 = vector.extract_strided_slice %66 {offsets = [0, 0], sizes = [8, 32], strides = [1, 1]} : vector<8x96xf32> to vector<8x32xf32>
    %68 = vector.extract_strided_slice %66 {offsets = [0, 32], sizes = [8, 32], strides = [1, 1]} : vector<8x96xf32> to vector<8x32xf32>
    %69 = vector.extract_strided_slice %66 {offsets = [0, 64], sizes = [8, 32], strides = [1, 1]} : vector<8x96xf32> to vector<8x32xf32>
    %70 = vector.extract_strided_slice %60 {offsets = [0, 96], sizes = [8, 32], strides = [1, 1]} : vector<8x128xf32> to vector<8x32xf32>
    %71 = math.tanh %70 : vector<8x32xf32>
    %72 = arith.mulf %68, %33 : vector<8x32xf32>
    %73 = arith.mulf %67, %71 : vector<8x32xf32>
    %74 = arith.addf %72, %73 : vector<8x32xf32>
    %75 = math.tanh %74 : vector<8x32xf32>
    %76 = arith.mulf %69, %75 : vector<8x32xf32>
    %cst_33 = arith.constant dense<0.000000e+00> : vector<8x128xf32>
    %77 = tpu.matmul %76, %12, %cst_33 {dimension_numbers = #tpu.dot_dimension_numbers<[1], [0], [0], [1], [0, 0, 1, 1], [], []>} : vector<8x32xf32>, vector<32x128xf32>, vector<8x128xf32> -> vector<8x128xf32>
    %78 = arith.addf %77, %57 : vector<8x128xf32>
    %79 = vector.broadcast %14 : vector<1x128xf32> to vector<8x128xf32>
    %80 = arith.addf %78, %79 : vector<8x128xf32>
    %81 = vector.extract_strided_slice %80 {offsets = [0, 0], sizes = [8, 96], strides = [1, 1]} : vector<8x128xf32> to vector<8x96xf32>
    %82 = arith.negf %81 : vector<8x96xf32>
    %83 = math.exp %82 : vector<8x96xf32>
    %cst_34 = arith.constant 1.000000e+00 : f32
    %84 = vector.broadcast %cst_34 : f32 to vector<8x96xf32>
    %85 = arith.addf %84, %83 : vector<8x96xf32>
    %86 = arith.divf %84, %85 : vector<8x96xf32>
    %87 = vector.extract_strided_slice %86 {offsets = [0, 0], sizes = [8, 32], strides = [1, 1]} : vector<8x96xf32> to vector<8x32xf32>
    %88 = vector.extract_strided_slice %86 {offsets = [0, 32], sizes = [8, 32], strides = [1, 1]} : vector<8x96xf32> to vector<8x32xf32>
    %89 = vector.extract_strided_slice %86 {offsets = [0, 64], sizes = [8, 32], strides = [1, 1]} : vector<8x96xf32> to vector<8x32xf32>
    %90 = vector.extract_strided_slice %80 {offsets = [0, 96], sizes = [8, 32], strides = [1, 1]} : vector<8x128xf32> to vector<8x32xf32>
    %91 = math.tanh %90 : vector<8x32xf32>
    %92 = arith.mulf %88, %53 : vector<8x32xf32>
    %93 = arith.mulf %87, %91 : vector<8x32xf32>
    %94 = arith.addf %92, %93 : vector<8x32xf32>
    %95 = math.tanh %94 : vector<8x32xf32>
    %96 = arith.mulf %89, %95 : vector<8x32xf32>
    %c24 = arith.constant 24 : index
    %c0_35 = arith.constant 0 : index
    %97 = vector.load %arg26[%c24, %c0_35] : memref<288x32xf32, #tpu.memory_space<vmem>>, vector<8x32xf32>
    tpu.vector_store %arg26[%c24, %c0_35], %96 {strides = array<i32>} : memref<288x32xf32, #tpu.memory_space<vmem>>, vector<8x32xf32>,
    %cst_36 = arith.constant dense<0.000000e+00> : vector<8x128xf32>
    %98 = tpu.matmul %96, %13, %cst_36 {dimension_numbers = #tpu.dot_dimension_numbers<[1], [0], [0], [1], [0, 0, 1, 1], [], []>} : vector<8x32xf32>, vector<32x128xf32>, vector<8x128xf32> -> vector<8x128xf32>
    %c16_37 = arith.constant 16 : index
    %c0_38 = arith.constant 0 : index
    %99 = vector.load %arg27[%c16_37, %c0_38] : memref<256x128xf32, #tpu.memory_space<vmem>>, vector<8x128xf32>
    %cst_39 = arith.constant dense<0.000000e+00> : vector<8x128xf32>
    %100 = tpu.matmul %76, %11, %cst_39 {dimension_numbers = #tpu.dot_dimension_numbers<[1], [0], [0], [1], [0, 0, 1, 1], [], []>} : vector<8x32xf32>, vector<32x128xf32>, vector<8x128xf32> -> vector<8x128xf32>
    %101 = arith.addf %99, %100 : vector<8x128xf32>
    %102 = vector.extract_strided_slice %101 {offsets = [0, 0], sizes = [8, 96], strides = [1, 1]} : vector<8x128xf32> to vector<8x96xf32>
    %103 = arith.negf %102 : vector<8x96xf32>
    %104 = math.exp %103 : vector<8x96xf32>
    %cst_40 = arith.constant 1.000000e+00 : f32
    %105 = vector.broadcast %cst_40 : f32 to vector<8x96xf32>
    %106 = arith.addf %105, %104 : vector<8x96xf32>
    %107 = arith.divf %105, %106 : vector<8x96xf32>
    %108 = vector.extract_strided_slice %107 {offsets = [0, 0], sizes = [8, 32], strides = [1, 1]} : vector<8x96xf32> to vector<8x32xf32>
    %109 = vector.extract_strided_slice %107 {offsets = [0, 32], sizes = [8, 32], strides = [1, 1]} : vector<8x96xf32> to vector<8x32xf32>
    %110 = vector.extract_strided_slice %107 {offsets = [0, 64], sizes = [8, 32], strides = [1, 1]} : vector<8x96xf32> to vector<8x32xf32>
    %111 = vector.extract_strided_slice %101 {offsets = [0, 96], sizes = [8, 32], strides = [1, 1]} : vector<8x128xf32> to vector<8x32xf32>
    %112 = math.tanh %111 : vector<8x32xf32>
    %113 = arith.mulf %109, %74 : vector<8x32xf32>
    %114 = arith.mulf %108, %112 : vector<8x32xf32>
    %115 = arith.addf %113, %114 : vector<8x32xf32>
    %116 = math.tanh %115 : vector<8x32xf32>
    %117 = arith.mulf %110, %116 : vector<8x32xf32>
    %cst_41 = arith.constant dense<0.000000e+00> : vector<8x128xf32>
    %118 = tpu.matmul %117, %12, %cst_41 {dimension_numbers = #tpu.dot_dimension_numbers<[1], [0], [0], [1], [0, 0, 1, 1], [], []>} : vector<8x32xf32>, vector<32x128xf32>, vector<8x128xf32> -> vector<8x128xf32>
    %119 = arith.addf %118, %98 : vector<8x128xf32>
    %120 = vector.broadcast %14 : vector<1x128xf32> to vector<8x128xf32>
    %121 = arith.addf %119, %120 : vector<8x128xf32>
    %122 = vector.extract_strided_slice %121 {offsets = [0, 0], sizes = [8, 96], strides = [1, 1]} : vector<8x128xf32> to vector<8x96xf32>
    %123 = arith.negf %122 : vector<8x96xf32>
    %124 = math.exp %123 : vector<8x96xf32>
    %cst_42 = arith.constant 1.000000e+00 : f32
    %125 = vector.broadcast %cst_42 : f32 to vector<8x96xf32>
    %126 = arith.addf %125, %124 : vector<8x96xf32>
    %127 = arith.divf %125, %126 : vector<8x96xf32>
    %128 = vector.extract_strided_slice %127 {offsets = [0, 0], sizes = [8, 32], strides = [1, 1]} : vector<8x96xf32> to vector<8x32xf32>
    %129 = vector.extract_strided_slice %127 {offsets = [0, 32], sizes = [8, 32], strides = [1, 1]} : vector<8x96xf32> to vector<8x32xf32>
    %130 = vector.extract_strided_slice %127 {offsets = [0, 64], sizes = [8, 32], strides = [1, 1]} : vector<8x96xf32> to vector<8x32xf32>
    %131 = vector.extract_strided_slice %121 {offsets = [0, 96], sizes = [8, 32], strides = [1, 1]} : vector<8x128xf32> to vector<8x32xf32>
    %132 = math.tanh %131 : vector<8x32xf32>
    %133 = arith.mulf %129, %94 : vector<8x32xf32>
    %134 = arith.mulf %128, %132 : vector<8x32xf32>
    %135 = arith.addf %133, %134 : vector<8x32xf32>
    %136 = math.tanh %135 : vector<8x32xf32>
    %137 = arith.mulf %130, %136 : vector<8x32xf32>
    %c32 = arith.constant 32 : index
    %c0_43 = arith.constant 0 : index
    %138 = vector.load %arg26[%c32, %c0_43] : memref<288x32xf32, #tpu.memory_space<vmem>>, vector<8x32xf32>
    tpu.vector_store %arg26[%c32, %c0_43], %137 {strides = array<i32>} : memref<288x32xf32, #tpu.memory_space<vmem>>, vector<8x32xf32>,
    %cst_44 = arith.constant dense<0.000000e+00> : vector<8x128xf32>
    %139 = tpu.matmul %137, %13, %cst_44 {dimension_numbers = #tpu.dot_dimension_numbers<[1], [0], [0], [1], [0, 0, 1, 1], [], []>} : vector<8x32xf32>, vector<32x128xf32>, vector<8x128xf32> -> vector<8x128xf32>
    %c24_45 = arith.constant 24 : index
    %c0_46 = arith.constant 0 : index
    %140 = vector.load %arg27[%c24_45, %c0_46] : memref<256x128xf32, #tpu.memory_space<vmem>>, vector<8x128xf32>
    %cst_47 = arith.constant dense<0.000000e+00> : vector<8x128xf32>
    %141 = tpu.matmul %117, %11, %cst_47 {dimension_numbers = #tpu.dot_dimension_numbers<[1], [0], [0], [1], [0, 0, 1, 1], [], []>} : vector<8x32xf32>, vector<32x128xf32>, vector<8x128xf32> -> vector<8x128xf32>
    %142 = arith.addf %140, %141 : vector<8x128xf32>
    %143 = vector.extract_strided_slice %142 {offsets = [0, 0], sizes = [8, 96], strides = [1, 1]} : vector<8x128xf32> to vector<8x96xf32>
    %144 = arith.negf %143 : vector<8x96xf32>
    %145 = math.exp %144 : vector<8x96xf32>
    %cst_48 = arith.constant 1.000000e+00 : f32
    %146 = vector.broadcast %cst_48 : f32 to vector<8x96xf32>
    %147 = arith.addf %146, %145 : vector<8x96xf32>
    %148 = arith.divf %146, %147 : vector<8x96xf32>
    %149 = vector.extract_strided_slice %148 {offsets = [0, 0], sizes = [8, 32], strides = [1, 1]} : vector<8x96xf32> to vector<8x32xf32>
    %150 = vector.extract_strided_slice %148 {offsets = [0, 32], sizes = [8, 32], strides = [1, 1]} : vector<8x96xf32> to vector<8x32xf32>
    %151 = vector.extract_strided_slice %148 {offsets = [0, 64], sizes = [8, 32], strides = [1, 1]} : vector<8x96xf32> to vector<8x32xf32>
    %152 = vector.extract_strided_slice %142 {offsets = [0, 96], sizes = [8, 32], strides = [1, 1]} : vector<8x128xf32> to vector<8x32xf32>
    %153 = math.tanh %152 : vector<8x32xf32>
    %154 = arith.mulf %150, %115 : vector<8x32xf32>
    %155 = arith.mulf %149, %153 : vector<8x32xf32>
    %156 = arith.addf %154, %155 : vector<8x32xf32>
    %157 = math.tanh %156 : vector<8x32xf32>
    %158 = arith.mulf %151, %157 : vector<8x32xf32>
    %cst_49 = arith.constant dense<0.000000e+00> : vector<8x128xf32>
    %159 = tpu.matmul %158, %12, %cst_49 {dimension_numbers = #tpu.dot_dimension_numbers<[1], [0], [0], [1], [0, 0, 1, 1], [], []>} : vector<8x32xf32>, vector<32x128xf32>, vector<8x128xf32> -> vector<8x128xf32>
    %160 = arith.addf %159, %139 : vector<8x128xf32>
    %161 = vector.broadcast %14 : vector<1x128xf32> to vector<8x128xf32>
    %162 = arith.addf %160, %161 : vector<8x128xf32>
    %163 = vector.extract_strided_slice %162 {offsets = [0, 0], sizes = [8, 96], strides = [1, 1]} : vector<8x128xf32> to vector<8x96xf32>
    %164 = arith.negf %163 : vector<8x96xf32>
    %165 = math.exp %164 : vector<8x96xf32>
    %cst_50 = arith.constant 1.000000e+00 : f32
    %166 = vector.broadcast %cst_50 : f32 to vector<8x96xf32>
    %167 = arith.addf %166, %165 : vector<8x96xf32>
    %168 = arith.divf %166, %167 : vector<8x96xf32>
    %169 = vector.extract_strided_slice %168 {offsets = [0, 0], sizes = [8, 32], strides = [1, 1]} : vector<8x96xf32> to vector<8x32xf32>
    %170 = vector.extract_strided_slice %168 {offsets = [0, 32], sizes = [8, 32], strides = [1, 1]} : vector<8x96xf32> to vector<8x32xf32>
    %171 = vector.extract_strided_slice %168 {offsets = [0, 64], sizes = [8, 32], strides = [1, 1]} : vector<8x96xf32> to vector<8x32xf32>
    %172 = vector.extract_strided_slice %162 {offsets = [0, 96], sizes = [8, 32], strides = [1, 1]} : vector<8x128xf32> to vector<8x32xf32>
    %173 = math.tanh %172 : vector<8x32xf32>
    %174 = arith.mulf %170, %135 : vector<8x32xf32>
    %175 = arith.mulf %169, %173 : vector<8x32xf32>
    %176 = arith.addf %174, %175 : vector<8x32xf32>
    %177 = math.tanh %176 : vector<8x32xf32>
    %178 = arith.mulf %171, %177 : vector<8x32xf32>
    %c40 = arith.constant 40 : index
    %c0_51 = arith.constant 0 : index
    %179 = vector.load %arg26[%c40, %c0_51] : memref<288x32xf32, #tpu.memory_space<vmem>>, vector<8x32xf32>
    tpu.vector_store %arg26[%c40, %c0_51], %178 {strides = array<i32>} : memref<288x32xf32, #tpu.memory_space<vmem>>, vector<8x32xf32>,
    %cst_52 = arith.constant dense<0.000000e+00> : vector<8x128xf32>
    %180 = tpu.matmul %178, %13, %cst_52 {dimension_numbers = #tpu.dot_dimension_numbers<[1], [0], [0], [1], [0, 0, 1, 1], [], []>} : vector<8x32xf32>, vector<32x128xf32>, vector<8x128xf32> -> vector<8x128xf32>
    %c32_53 = arith.constant 32 : index
    %c0_54 = arith.constant 0 : index
    %181 = vector.load %arg27[%c32_53, %c0_54] : memref<256x128xf32, #tpu.memory_space<vmem>>, vector<8x128xf32>
    %cst_55 = arith.constant dense<0.000000e+00> : vector<8x128xf32>
    %182 = tpu.matmul %158, %11, %cst_55 {dimension_numbers = #tpu.dot_dimension_numbers<[1], [0], [0], [1], [0, 0, 1, 1], [], []>} : vector<8x32xf32>, vector<32x128xf32>, vector<8x128xf32> -> vector<8x128xf32>
    %183 = arith.addf %181, %182 : vector<8x128xf32>
    %184 = vector.extract_strided_slice %183 {offsets = [0, 0], sizes = [8, 96], strides = [1, 1]} : vector<8x128xf32> to vector<8x96xf32>
    %185 = arith.negf %184 : vector<8x96xf32>
    %186 = math.exp %185 : vector<8x96xf32>
    %cst_56 = arith.constant 1.000000e+00 : f32
    %187 = vector.broadcast %cst_56 : f32 to vector<8x96xf32>
    %188 = arith.addf %187, %186 : vector<8x96xf32>
    %189 = arith.divf %187, %188 : vector<8x96xf32>
    %190 = vector.extract_strided_slice %189 {offsets = [0, 0], sizes = [8, 32], strides = [1, 1]} : vector<8x96xf32> to vector<8x32xf32>
    %191 = vector.extract_strided_slice %189 {offsets = [0, 32], sizes = [8, 32], strides = [1, 1]} : vector<8x96xf32> to vector<8x32xf32>
    %192 = vector.extract_strided_slice %189 {offsets = [0, 64], sizes = [8, 32], strides = [1, 1]} : vector<8x96xf32> to vector<8x32xf32>
    %193 = vector.extract_strided_slice %183 {offsets = [0, 96], sizes = [8, 32], strides = [1, 1]} : vector<8x128xf32> to vector<8x32xf32>
    %194 = math.tanh %193 : vector<8x32xf32>
    %195 = arith.mulf %191, %156 : vector<8x32xf32>
    %196 = arith.mulf %190, %194 : vector<8x32xf32>
    %197 = arith.addf %195, %196 : vector<8x32xf32>
    %198 = math.tanh %197 : vector<8x32xf32>
    %199 = arith.mulf %192, %198 : vector<8x32xf32>
    %cst_57 = arith.constant dense<0.000000e+00> : vector<8x128xf32>
    %200 = tpu.matmul %199, %12, %cst_57 {dimension_numbers = #tpu.dot_dimension_numbers<[1], [0], [0], [1], [0, 0, 1, 1], [], []>} : vector<8x32xf32>, vector<32x128xf32>, vector<8x128xf32> -> vector<8x128xf32>
    %201 = arith.addf %200, %180 : vector<8x128xf32>
    %202 = vector.broadcast %14 : vector<1x128xf32> to vector<8x128xf32>
    %203 = arith.addf %201, %202 : vector<8x128xf32>
    %204 = vector.extract_strided_slice %203 {offsets = [0, 0], sizes = [8, 96], strides = [1, 1]} : vector<8x128xf32> to vector<8x96xf32>
    %205 = arith.negf %204 : vector<8x96xf32>
    %206 = math.exp %205 : vector<8x96xf32>
    %cst_58 = arith.constant 1.000000e+00 : f32
    %207 = vector.broadcast %cst_58 : f32 to vector<8x96xf32>
    %208 = arith.addf %207, %206 : vector<8x96xf32>
    %209 = arith.divf %207, %208 : vector<8x96xf32>
    %210 = vector.extract_strided_slice %209 {offsets = [0, 0], sizes = [8, 32], strides = [1, 1]} : vector<8x96xf32> to vector<8x32xf32>
    %211 = vector.extract_strided_slice %209 {offsets = [0, 32], sizes = [8, 32], strides = [1, 1]} : vector<8x96xf32> to vector<8x32xf32>
    %212 = vector.extract_strided_slice %209 {offsets = [0, 64], sizes = [8, 32], strides = [1, 1]} : vector<8x96xf32> to vector<8x32xf32>
    %213 = vector.extract_strided_slice %203 {offsets = [0, 96], sizes = [8, 32], strides = [1, 1]} : vector<8x128xf32> to vector<8x32xf32>
    %214 = math.tanh %213 : vector<8x32xf32>
    %215 = arith.mulf %211, %176 : vector<8x32xf32>
    %216 = arith.mulf %210, %214 : vector<8x32xf32>
    %217 = arith.addf %215, %216 : vector<8x32xf32>
    %218 = math.tanh %217 : vector<8x32xf32>
    %219 = arith.mulf %212, %218 : vector<8x32xf32>
    %c48 = arith.constant 48 : index
    %c0_59 = arith.constant 0 : index
    %220 = vector.load %arg26[%c48, %c0_59] : memref<288x32xf32, #tpu.memory_space<vmem>>, vector<8x32xf32>
    tpu.vector_store %arg26[%c48, %c0_59], %219 {strides = array<i32>} : memref<288x32xf32, #tpu.memory_space<vmem>>, vector<8x32xf32>,
    %cst_60 = arith.constant dense<0.000000e+00> : vector<8x128xf32>
    %221 = tpu.matmul %219, %13, %cst_60 {dimension_numbers = #tpu.dot_dimension_numbers<[1], [0], [0], [1], [0, 0, 1, 1], [], []>} : vector<8x32xf32>, vector<32x128xf32>, vector<8x128xf32> -> vector<8x128xf32>
    %c40_61 = arith.constant 40 : index
    %c0_62 = arith.constant 0 : index
    %222 = vector.load %arg27[%c40_61, %c0_62] : memref<256x128xf32, #tpu.memory_space<vmem>>, vector<8x128xf32>
    %cst_63 = arith.constant dense<0.000000e+00> : vector<8x128xf32>
    %223 = tpu.matmul %199, %11, %cst_63 {dimension_numbers = #tpu.dot_dimension_numbers<[1], [0], [0], [1], [0, 0, 1, 1], [], []>} : vector<8x32xf32>, vector<32x128xf32>, vector<8x128xf32> -> vector<8x128xf32>
    %224 = arith.addf %222, %223 : vector<8x128xf32>
    %225 = vector.extract_strided_slice %224 {offsets = [0, 0], sizes = [8, 96], strides = [1, 1]} : vector<8x128xf32> to vector<8x96xf32>
    %226 = arith.negf %225 : vector<8x96xf32>
    %227 = math.exp %226 : vector<8x96xf32>
    %cst_64 = arith.constant 1.000000e+00 : f32
    %228 = vector.broadcast %cst_64 : f32 to vector<8x96xf32>
    %229 = arith.addf %228, %227 : vector<8x96xf32>
    %230 = arith.divf %228, %229 : vector<8x96xf32>
    %231 = vector.extract_strided_slice %230 {offsets = [0, 0], sizes = [8, 32], strides = [1, 1]} : vector<8x96xf32> to vector<8x32xf32>
    %232 = vector.extract_strided_slice %230 {offsets = [0, 32], sizes = [8, 32], strides = [1, 1]} : vector<8x96xf32> to vector<8x32xf32>
    %233 = vector.extract_strided_slice %230 {offsets = [0, 64], sizes = [8, 32], strides = [1, 1]} : vector<8x96xf32> to vector<8x32xf32>
    %234 = vector.extract_strided_slice %224 {offsets = [0, 96], sizes = [8, 32], strides = [1, 1]} : vector<8x128xf32> to vector<8x32xf32>
    %235 = math.tanh %234 : vector<8x32xf32>
    %236 = arith.mulf %232, %197 : vector<8x32xf32>
    %237 = arith.mulf %231, %235 : vector<8x32xf32>
    %238 = arith.addf %236, %237 : vector<8x32xf32>
    %239 = math.tanh %238 : vector<8x32xf32>
    %240 = arith.mulf %233, %239 : vector<8x32xf32>
    %cst_65 = arith.constant dense<0.000000e+00> : vector<8x128xf32>
    %241 = tpu.matmul %240, %12, %cst_65 {dimension_numbers = #tpu.dot_dimension_numbers<[1], [0], [0], [1], [0, 0, 1, 1], [], []>} : vector<8x32xf32>, vector<32x128xf32>, vector<8x128xf32> -> vector<8x128xf32>
    %242 = arith.addf %241, %221 : vector<8x128xf32>
    %243 = vector.broadcast %14 : vector<1x128xf32> to vector<8x128xf32>
    %244 = arith.addf %242, %243 : vector<8x128xf32>
    %245 = vector.extract_strided_slice %244 {offsets = [0, 0], sizes = [8, 96], strides = [1, 1]} : vector<8x128xf32> to vector<8x96xf32>
    %246 = arith.negf %245 : vector<8x96xf32>
    %247 = math.exp %246 : vector<8x96xf32>
    %cst_66 = arith.constant 1.000000e+00 : f32
    %248 = vector.broadcast %cst_66 : f32 to vector<8x96xf32>
    %249 = arith.addf %248, %247 : vector<8x96xf32>
    %250 = arith.divf %248, %249 : vector<8x96xf32>
    %251 = vector.extract_strided_slice %250 {offsets = [0, 0], sizes = [8, 32], strides = [1, 1]} : vector<8x96xf32> to vector<8x32xf32>
    %252 = vector.extract_strided_slice %250 {offsets = [0, 32], sizes = [8, 32], strides = [1, 1]} : vector<8x96xf32> to vector<8x32xf32>
    %253 = vector.extract_strided_slice %250 {offsets = [0, 64], sizes = [8, 32], strides = [1, 1]} : vector<8x96xf32> to vector<8x32xf32>
    %254 = vector.extract_strided_slice %244 {offsets = [0, 96], sizes = [8, 32], strides = [1, 1]} : vector<8x128xf32> to vector<8x32xf32>
    %255 = math.tanh %254 : vector<8x32xf32>
    %256 = arith.mulf %252, %217 : vector<8x32xf32>
    %257 = arith.mulf %251, %255 : vector<8x32xf32>
    %258 = arith.addf %256, %257 : vector<8x32xf32>
    %259 = math.tanh %258 : vector<8x32xf32>
    %260 = arith.mulf %253, %259 : vector<8x32xf32>
    %c56 = arith.constant 56 : index
    %c0_67 = arith.constant 0 : index
    %261 = vector.load %arg26[%c56, %c0_67] : memref<288x32xf32, #tpu.memory_space<vmem>>, vector<8x32xf32>
    tpu.vector_store %arg26[%c56, %c0_67], %260 {strides = array<i32>} : memref<288x32xf32, #tpu.memory_space<vmem>>, vector<8x32xf32>,
    %cst_68 = arith.constant dense<0.000000e+00> : vector<8x128xf32>
    %262 = tpu.matmul %260, %13, %cst_68 {dimension_numbers = #tpu.dot_dimension_numbers<[1], [0], [0], [1], [0, 0, 1, 1], [], []>} : vector<8x32xf32>, vector<32x128xf32>, vector<8x128xf32> -> vector<8x128xf32>
    %c48_69 = arith.constant 48 : index
    %c0_70 = arith.constant 0 : index
    %263 = vector.load %arg27[%c48_69, %c0_70] : memref<256x128xf32, #tpu.memory_space<vmem>>, vector<8x128xf32>
    %cst_71 = arith.constant dense<0.000000e+00> : vector<8x128xf32>
    %264 = tpu.matmul %240, %11, %cst_71 {dimension_numbers = #tpu.dot_dimension_numbers<[1], [0], [0], [1], [0, 0, 1, 1], [], []>} : vector<8x32xf32>, vector<32x128xf32>, vector<8x128xf32> -> vector<8x128xf32>
    %265 = arith.addf %263, %264 : vector<8x128xf32>
    %266 = vector.extract_strided_slice %265 {offsets = [0, 0], sizes = [8, 96], strides = [1, 1]} : vector<8x128xf32> to vector<8x96xf32>
    %267 = arith.negf %266 : vector<8x96xf32>
    %268 = math.exp %267 : vector<8x96xf32>
    %cst_72 = arith.constant 1.000000e+00 : f32
    %269 = vector.broadcast %cst_72 : f32 to vector<8x96xf32>
    %270 = arith.addf %269, %268 : vector<8x96xf32>
    %271 = arith.divf %269, %270 : vector<8x96xf32>
    %272 = vector.extract_strided_slice %271 {offsets = [0, 0], sizes = [8, 32], strides = [1, 1]} : vector<8x96xf32> to vector<8x32xf32>
    %273 = vector.extract_strided_slice %271 {offsets = [0, 32], sizes = [8, 32], strides = [1, 1]} : vector<8x96xf32> to vector<8x32xf32>
    %274 = vector.extract_strided_slice %271 {offsets = [0, 64], sizes = [8, 32], strides = [1, 1]} : vector<8x96xf32> to vector<8x32xf32>
    %275 = vector.extract_strided_slice %265 {offsets = [0, 96], sizes = [8, 32], strides = [1, 1]} : vector<8x128xf32> to vector<8x32xf32>
    %276 = math.tanh %275 : vector<8x32xf32>
    %277 = arith.mulf %273, %238 : vector<8x32xf32>
    %278 = arith.mulf %272, %276 : vector<8x32xf32>
    %279 = arith.addf %277, %278 : vector<8x32xf32>
    %280 = math.tanh %279 : vector<8x32xf32>
    %281 = arith.mulf %274, %280 : vector<8x32xf32>
    %cst_73 = arith.constant dense<0.000000e+00> : vector<8x128xf32>
    %282 = tpu.matmul %281, %12, %cst_73 {dimension_numbers = #tpu.dot_dimension_numbers<[1], [0], [0], [1], [0, 0, 1, 1], [], []>} : vector<8x32xf32>, vector<32x128xf32>, vector<8x128xf32> -> vector<8x128xf32>
    %283 = arith.addf %282, %262 : vector<8x128xf32>
    %284 = vector.broadcast %14 : vector<1x128xf32> to vector<8x128xf32>
    %285 = arith.addf %283, %284 : vector<8x128xf32>
    %286 = vector.extract_strided_slice %285 {offsets = [0, 0], sizes = [8, 96], strides = [1, 1]} : vector<8x128xf32> to vector<8x96xf32>
    %287 = arith.negf %286 : vector<8x96xf32>
    %288 = math.exp %287 : vector<8x96xf32>
    %cst_74 = arith.constant 1.000000e+00 : f32
    %289 = vector.broadcast %cst_74 : f32 to vector<8x96xf32>
    %290 = arith.addf %289, %288 : vector<8x96xf32>
    %291 = arith.divf %289, %290 : vector<8x96xf32>
    %292 = vector.extract_strided_slice %291 {offsets = [0, 0], sizes = [8, 32], strides = [1, 1]} : vector<8x96xf32> to vector<8x32xf32>
    %293 = vector.extract_strided_slice %291 {offsets = [0, 32], sizes = [8, 32], strides = [1, 1]} : vector<8x96xf32> to vector<8x32xf32>
    %294 = vector.extract_strided_slice %291 {offsets = [0, 64], sizes = [8, 32], strides = [1, 1]} : vector<8x96xf32> to vector<8x32xf32>
    %295 = vector.extract_strided_slice %285 {offsets = [0, 96], sizes = [8, 32], strides = [1, 1]} : vector<8x128xf32> to vector<8x32xf32>
    %296 = math.tanh %295 : vector<8x32xf32>
    %297 = arith.mulf %293, %258 : vector<8x32xf32>
    %298 = arith.mulf %292, %296 : vector<8x32xf32>
    %299 = arith.addf %297, %298 : vector<8x32xf32>
    %300 = math.tanh %299 : vector<8x32xf32>
    %301 = arith.mulf %294, %300 : vector<8x32xf32>
    %c64 = arith.constant 64 : index
    %c0_75 = arith.constant 0 : index
    %302 = vector.load %arg26[%c64, %c0_75] : memref<288x32xf32, #tpu.memory_space<vmem>>, vector<8x32xf32>
    tpu.vector_store %arg26[%c64, %c0_75], %301 {strides = array<i32>} : memref<288x32xf32, #tpu.memory_space<vmem>>, vector<8x32xf32>,
    %cst_76 = arith.constant dense<0.000000e+00> : vector<8x128xf32>
    %303 = tpu.matmul %301, %13, %cst_76 {dimension_numbers = #tpu.dot_dimension_numbers<[1], [0], [0], [1], [0, 0, 1, 1], [], []>} : vector<8x32xf32>, vector<32x128xf32>, vector<8x128xf32> -> vector<8x128xf32>
    %c56_77 = arith.constant 56 : index
    %c0_78 = arith.constant 0 : index
    %304 = vector.load %arg27[%c56_77, %c0_78] : memref<256x128xf32, #tpu.memory_space<vmem>>, vector<8x128xf32>
    %cst_79 = arith.constant dense<0.000000e+00> : vector<8x128xf32>
    %305 = tpu.matmul %281, %11, %cst_79 {dimension_numbers = #tpu.dot_dimension_numbers<[1], [0], [0], [1], [0, 0, 1, 1], [], []>} : vector<8x32xf32>, vector<32x128xf32>, vector<8x128xf32> -> vector<8x128xf32>
    %306 = arith.addf %304, %305 : vector<8x128xf32>
    %307 = vector.extract_strided_slice %306 {offsets = [0, 0], sizes = [8, 96], strides = [1, 1]} : vector<8x128xf32> to vector<8x96xf32>
    %308 = arith.negf %307 : vector<8x96xf32>
    %309 = math.exp %308 : vector<8x96xf32>
    %cst_80 = arith.constant 1.000000e+00 : f32
    %310 = vector.broadcast %cst_80 : f32 to vector<8x96xf32>
    %311 = arith.addf %310, %309 : vector<8x96xf32>
    %312 = arith.divf %310, %311 : vector<8x96xf32>
    %313 = vector.extract_strided_slice %312 {offsets = [0, 0], sizes = [8, 32], strides = [1, 1]} : vector<8x96xf32> to vector<8x32xf32>
    %314 = vector.extract_strided_slice %312 {offsets = [0, 32], sizes = [8, 32], strides = [1, 1]} : vector<8x96xf32> to vector<8x32xf32>
    %315 = vector.extract_strided_slice %312 {offsets = [0, 64], sizes = [8, 32], strides = [1, 1]} : vector<8x96xf32> to vector<8x32xf32>
    %316 = vector.extract_strided_slice %306 {offsets = [0, 96], sizes = [8, 32], strides = [1, 1]} : vector<8x128xf32> to vector<8x32xf32>
    %317 = math.tanh %316 : vector<8x32xf32>
    %318 = arith.mulf %314, %279 : vector<8x32xf32>
    %319 = arith.mulf %313, %317 : vector<8x32xf32>
    %320 = arith.addf %318, %319 : vector<8x32xf32>
    %321 = math.tanh %320 : vector<8x32xf32>
    %322 = arith.mulf %315, %321 : vector<8x32xf32>
    %cst_81 = arith.constant dense<0.000000e+00> : vector<8x128xf32>
    %323 = tpu.matmul %322, %12, %cst_81 {dimension_numbers = #tpu.dot_dimension_numbers<[1], [0], [0], [1], [0, 0, 1, 1], [], []>} : vector<8x32xf32>, vector<32x128xf32>, vector<8x128xf32> -> vector<8x128xf32>
    %324 = arith.addf %323, %303 : vector<8x128xf32>
    %325 = vector.broadcast %14 : vector<1x128xf32> to vector<8x128xf32>
    %326 = arith.addf %324, %325 : vector<8x128xf32>
    %327 = vector.extract_strided_slice %326 {offsets = [0, 0], sizes = [8, 96], strides = [1, 1]} : vector<8x128xf32> to vector<8x96xf32>
    %328 = arith.negf %327 : vector<8x96xf32>
    %329 = math.exp %328 : vector<8x96xf32>
    %cst_82 = arith.constant 1.000000e+00 : f32
    %330 = vector.broadcast %cst_82 : f32 to vector<8x96xf32>
    %331 = arith.addf %330, %329 : vector<8x96xf32>
    %332 = arith.divf %330, %331 : vector<8x96xf32>
    %333 = vector.extract_strided_slice %332 {offsets = [0, 0], sizes = [8, 32], strides = [1, 1]} : vector<8x96xf32> to vector<8x32xf32>
    %334 = vector.extract_strided_slice %332 {offsets = [0, 32], sizes = [8, 32], strides = [1, 1]} : vector<8x96xf32> to vector<8x32xf32>
    %335 = vector.extract_strided_slice %332 {offsets = [0, 64], sizes = [8, 32], strides = [1, 1]} : vector<8x96xf32> to vector<8x32xf32>
    %336 = vector.extract_strided_slice %326 {offsets = [0, 96], sizes = [8, 32], strides = [1, 1]} : vector<8x128xf32> to vector<8x32xf32>
    %337 = math.tanh %336 : vector<8x32xf32>
    %338 = arith.mulf %334, %299 : vector<8x32xf32>
    %339 = arith.mulf %333, %337 : vector<8x32xf32>
    %340 = arith.addf %338, %339 : vector<8x32xf32>
    %341 = math.tanh %340 : vector<8x32xf32>
    %342 = arith.mulf %335, %341 : vector<8x32xf32>
    %c72 = arith.constant 72 : index
    %c0_83 = arith.constant 0 : index
    %343 = vector.load %arg26[%c72, %c0_83] : memref<288x32xf32, #tpu.memory_space<vmem>>, vector<8x32xf32>
    tpu.vector_store %arg26[%c72, %c0_83], %342 {strides = array<i32>} : memref<288x32xf32, #tpu.memory_space<vmem>>, vector<8x32xf32>,
    %cst_84 = arith.constant dense<0.000000e+00> : vector<8x128xf32>
    %344 = tpu.matmul %342, %13, %cst_84 {dimension_numbers = #tpu.dot_dimension_numbers<[1], [0], [0], [1], [0, 0, 1, 1], [], []>} : vector<8x32xf32>, vector<32x128xf32>, vector<8x128xf32> -> vector<8x128xf32>
    %c64_85 = arith.constant 64 : index
    %c0_86 = arith.constant 0 : index
    %345 = vector.load %arg27[%c64_85, %c0_86] : memref<256x128xf32, #tpu.memory_space<vmem>>, vector<8x128xf32>
    %cst_87 = arith.constant dense<0.000000e+00> : vector<8x128xf32>
    %346 = tpu.matmul %322, %11, %cst_87 {dimension_numbers = #tpu.dot_dimension_numbers<[1], [0], [0], [1], [0, 0, 1, 1], [], []>} : vector<8x32xf32>, vector<32x128xf32>, vector<8x128xf32> -> vector<8x128xf32>
    %347 = arith.addf %345, %346 : vector<8x128xf32>
    %348 = vector.extract_strided_slice %347 {offsets = [0, 0], sizes = [8, 96], strides = [1, 1]} : vector<8x128xf32> to vector<8x96xf32>
    %349 = arith.negf %348 : vector<8x96xf32>
    %350 = math.exp %349 : vector<8x96xf32>
    %cst_88 = arith.constant 1.000000e+00 : f32
    %351 = vector.broadcast %cst_88 : f32 to vector<8x96xf32>
    %352 = arith.addf %351, %350 : vector<8x96xf32>
    %353 = arith.divf %351, %352 : vector<8x96xf32>
    %354 = vector.extract_strided_slice %353 {offsets = [0, 0], sizes = [8, 32], strides = [1, 1]} : vector<8x96xf32> to vector<8x32xf32>
    %355 = vector.extract_strided_slice %353 {offsets = [0, 32], sizes = [8, 32], strides = [1, 1]} : vector<8x96xf32> to vector<8x32xf32>
    %356 = vector.extract_strided_slice %353 {offsets = [0, 64], sizes = [8, 32], strides = [1, 1]} : vector<8x96xf32> to vector<8x32xf32>
    %357 = vector.extract_strided_slice %347 {offsets = [0, 96], sizes = [8, 32], strides = [1, 1]} : vector<8x128xf32> to vector<8x32xf32>
    %358 = math.tanh %357 : vector<8x32xf32>
    %359 = arith.mulf %355, %320 : vector<8x32xf32>
    %360 = arith.mulf %354, %358 : vector<8x32xf32>
    %361 = arith.addf %359, %360 : vector<8x32xf32>
    %362 = math.tanh %361 : vector<8x32xf32>
    %363 = arith.mulf %356, %362 : vector<8x32xf32>
    %cst_89 = arith.constant dense<0.000000e+00> : vector<8x128xf32>
    %364 = tpu.matmul %363, %12, %cst_89 {dimension_numbers = #tpu.dot_dimension_numbers<[1], [0], [0], [1], [0, 0, 1, 1], [], []>} : vector<8x32xf32>, vector<32x128xf32>, vector<8x128xf32> -> vector<8x128xf32>
    %365 = arith.addf %364, %344 : vector<8x128xf32>
    %366 = vector.broadcast %14 : vector<1x128xf32> to vector<8x128xf32>
    %367 = arith.addf %365, %366 : vector<8x128xf32>
    %368 = vector.extract_strided_slice %367 {offsets = [0, 0], sizes = [8, 96], strides = [1, 1]} : vector<8x128xf32> to vector<8x96xf32>
    %369 = arith.negf %368 : vector<8x96xf32>
    %370 = math.exp %369 : vector<8x96xf32>
    %cst_90 = arith.constant 1.000000e+00 : f32
    %371 = vector.broadcast %cst_90 : f32 to vector<8x96xf32>
    %372 = arith.addf %371, %370 : vector<8x96xf32>
    %373 = arith.divf %371, %372 : vector<8x96xf32>
    %374 = vector.extract_strided_slice %373 {offsets = [0, 0], sizes = [8, 32], strides = [1, 1]} : vector<8x96xf32> to vector<8x32xf32>
    %375 = vector.extract_strided_slice %373 {offsets = [0, 32], sizes = [8, 32], strides = [1, 1]} : vector<8x96xf32> to vector<8x32xf32>
    %376 = vector.extract_strided_slice %373 {offsets = [0, 64], sizes = [8, 32], strides = [1, 1]} : vector<8x96xf32> to vector<8x32xf32>
    %377 = vector.extract_strided_slice %367 {offsets = [0, 96], sizes = [8, 32], strides = [1, 1]} : vector<8x128xf32> to vector<8x32xf32>
    %378 = math.tanh %377 : vector<8x32xf32>
    %379 = arith.mulf %375, %340 : vector<8x32xf32>
    %380 = arith.mulf %374, %378 : vector<8x32xf32>
    %381 = arith.addf %379, %380 : vector<8x32xf32>
    %382 = math.tanh %381 : vector<8x32xf32>
    %383 = arith.mulf %376, %382 : vector<8x32xf32>
    %c80 = arith.constant 80 : index
    %c0_91 = arith.constant 0 : index
    %384 = vector.load %arg26[%c80, %c0_91] : memref<288x32xf32, #tpu.memory_space<vmem>>, vector<8x32xf32>
    tpu.vector_store %arg26[%c80, %c0_91], %383 {strides = array<i32>} : memref<288x32xf32, #tpu.memory_space<vmem>>, vector<8x32xf32>,
    %cst_92 = arith.constant dense<0.000000e+00> : vector<8x128xf32>
    %385 = tpu.matmul %383, %13, %cst_92 {dimension_numbers = #tpu.dot_dimension_numbers<[1], [0], [0], [1], [0, 0, 1, 1], [], []>} : vector<8x32xf32>, vector<32x128xf32>, vector<8x128xf32> -> vector<8x128xf32>
    %c72_93 = arith.constant 72 : index
    %c0_94 = arith.constant 0 : index
    %386 = vector.load %arg27[%c72_93, %c0_94] : memref<256x128xf32, #tpu.memory_space<vmem>>, vector<8x128xf32>
    %cst_95 = arith.constant dense<0.000000e+00> : vector<8x128xf32>
    %387 = tpu.matmul %363, %11, %cst_95 {dimension_numbers = #tpu.dot_dimension_numbers<[1], [0], [0], [1], [0, 0, 1, 1], [], []>} : vector<8x32xf32>, vector<32x128xf32>, vector<8x128xf32> -> vector<8x128xf32>
    %388 = arith.addf %386, %387 : vector<8x128xf32>
    %389 = vector.extract_strided_slice %388 {offsets = [0, 0], sizes = [8, 96], strides = [1, 1]} : vector<8x128xf32> to vector<8x96xf32>
    %390 = arith.negf %389 : vector<8x96xf32>
    %391 = math.exp %390 : vector<8x96xf32>
    %cst_96 = arith.constant 1.000000e+00 : f32
    %392 = vector.broadcast %cst_96 : f32 to vector<8x96xf32>
    %393 = arith.addf %392, %391 : vector<8x96xf32>
    %394 = arith.divf %392, %393 : vector<8x96xf32>
    %395 = vector.extract_strided_slice %394 {offsets = [0, 0], sizes = [8, 32], strides = [1, 1]} : vector<8x96xf32> to vector<8x32xf32>
    %396 = vector.extract_strided_slice %394 {offsets = [0, 32], sizes = [8, 32], strides = [1, 1]} : vector<8x96xf32> to vector<8x32xf32>
    %397 = vector.extract_strided_slice %394 {offsets = [0, 64], sizes = [8, 32], strides = [1, 1]} : vector<8x96xf32> to vector<8x32xf32>
    %398 = vector.extract_strided_slice %388 {offsets = [0, 96], sizes = [8, 32], strides = [1, 1]} : vector<8x128xf32> to vector<8x32xf32>
    %399 = math.tanh %398 : vector<8x32xf32>
    %400 = arith.mulf %396, %361 : vector<8x32xf32>
    %401 = arith.mulf %395, %399 : vector<8x32xf32>
    %402 = arith.addf %400, %401 : vector<8x32xf32>
    %403 = math.tanh %402 : vector<8x32xf32>
    %404 = arith.mulf %397, %403 : vector<8x32xf32>
    %cst_97 = arith.constant dense<0.000000e+00> : vector<8x128xf32>
    %405 = tpu.matmul %404, %12, %cst_97 {dimension_numbers = #tpu.dot_dimension_numbers<[1], [0], [0], [1], [0, 0, 1, 1], [], []>} : vector<8x32xf32>, vector<32x128xf32>, vector<8x128xf32> -> vector<8x128xf32>
    %406 = arith.addf %405, %385 : vector<8x128xf32>
    %407 = vector.broadcast %14 : vector<1x128xf32> to vector<8x128xf32>
    %408 = arith.addf %406, %407 : vector<8x128xf32>
    %409 = vector.extract_strided_slice %408 {offsets = [0, 0], sizes = [8, 96], strides = [1, 1]} : vector<8x128xf32> to vector<8x96xf32>
    %410 = arith.negf %409 : vector<8x96xf32>
    %411 = math.exp %410 : vector<8x96xf32>
    %cst_98 = arith.constant 1.000000e+00 : f32
    %412 = vector.broadcast %cst_98 : f32 to vector<8x96xf32>
    %413 = arith.addf %412, %411 : vector<8x96xf32>
    %414 = arith.divf %412, %413 : vector<8x96xf32>
    %415 = vector.extract_strided_slice %414 {offsets = [0, 0], sizes = [8, 32], strides = [1, 1]} : vector<8x96xf32> to vector<8x32xf32>
    %416 = vector.extract_strided_slice %414 {offsets = [0, 32], sizes = [8, 32], strides = [1, 1]} : vector<8x96xf32> to vector<8x32xf32>
    %417 = vector.extract_strided_slice %414 {offsets = [0, 64], sizes = [8, 32], strides = [1, 1]} : vector<8x96xf32> to vector<8x32xf32>
    %418 = vector.extract_strided_slice %408 {offsets = [0, 96], sizes = [8, 32], strides = [1, 1]} : vector<8x128xf32> to vector<8x32xf32>
    %419 = math.tanh %418 : vector<8x32xf32>
    %420 = arith.mulf %416, %381 : vector<8x32xf32>
    %421 = arith.mulf %415, %419 : vector<8x32xf32>
    %422 = arith.addf %420, %421 : vector<8x32xf32>
    %423 = math.tanh %422 : vector<8x32xf32>
    %424 = arith.mulf %417, %423 : vector<8x32xf32>
    %c88 = arith.constant 88 : index
    %c0_99 = arith.constant 0 : index
    %425 = vector.load %arg26[%c88, %c0_99] : memref<288x32xf32, #tpu.memory_space<vmem>>, vector<8x32xf32>
    tpu.vector_store %arg26[%c88, %c0_99], %424 {strides = array<i32>} : memref<288x32xf32, #tpu.memory_space<vmem>>, vector<8x32xf32>,
    %cst_100 = arith.constant dense<0.000000e+00> : vector<8x128xf32>
    %426 = tpu.matmul %424, %13, %cst_100 {dimension_numbers = #tpu.dot_dimension_numbers<[1], [0], [0], [1], [0, 0, 1, 1], [], []>} : vector<8x32xf32>, vector<32x128xf32>, vector<8x128xf32> -> vector<8x128xf32>
    %c80_101 = arith.constant 80 : index
    %c0_102 = arith.constant 0 : index
    %427 = vector.load %arg27[%c80_101, %c0_102] : memref<256x128xf32, #tpu.memory_space<vmem>>, vector<8x128xf32>
    %cst_103 = arith.constant dense<0.000000e+00> : vector<8x128xf32>
    %428 = tpu.matmul %404, %11, %cst_103 {dimension_numbers = #tpu.dot_dimension_numbers<[1], [0], [0], [1], [0, 0, 1, 1], [], []>} : vector<8x32xf32>, vector<32x128xf32>, vector<8x128xf32> -> vector<8x128xf32>
    %429 = arith.addf %427, %428 : vector<8x128xf32>
    %430 = vector.extract_strided_slice %429 {offsets = [0, 0], sizes = [8, 96], strides = [1, 1]} : vector<8x128xf32> to vector<8x96xf32>
    %431 = arith.negf %430 : vector<8x96xf32>
    %432 = math.exp %431 : vector<8x96xf32>
    %cst_104 = arith.constant 1.000000e+00 : f32
    %433 = vector.broadcast %cst_104 : f32 to vector<8x96xf32>
    %434 = arith.addf %433, %432 : vector<8x96xf32>
    %435 = arith.divf %433, %434 : vector<8x96xf32>
    %436 = vector.extract_strided_slice %435 {offsets = [0, 0], sizes = [8, 32], strides = [1, 1]} : vector<8x96xf32> to vector<8x32xf32>
    %437 = vector.extract_strided_slice %435 {offsets = [0, 32], sizes = [8, 32], strides = [1, 1]} : vector<8x96xf32> to vector<8x32xf32>
    %438 = vector.extract_strided_slice %435 {offsets = [0, 64], sizes = [8, 32], strides = [1, 1]} : vector<8x96xf32> to vector<8x32xf32>
    %439 = vector.extract_strided_slice %429 {offsets = [0, 96], sizes = [8, 32], strides = [1, 1]} : vector<8x128xf32> to vector<8x32xf32>
    %440 = math.tanh %439 : vector<8x32xf32>
    %441 = arith.mulf %437, %402 : vector<8x32xf32>
    %442 = arith.mulf %436, %440 : vector<8x32xf32>
    %443 = arith.addf %441, %442 : vector<8x32xf32>
    %444 = math.tanh %443 : vector<8x32xf32>
    %445 = arith.mulf %438, %444 : vector<8x32xf32>
    %cst_105 = arith.constant dense<0.000000e+00> : vector<8x128xf32>
    %446 = tpu.matmul %445, %12, %cst_105 {dimension_numbers = #tpu.dot_dimension_numbers<[1], [0], [0], [1], [0, 0, 1, 1], [], []>} : vector<8x32xf32>, vector<32x128xf32>, vector<8x128xf32> -> vector<8x128xf32>
    %447 = arith.addf %446, %426 : vector<8x128xf32>
    %448 = vector.broadcast %14 : vector<1x128xf32> to vector<8x128xf32>
    %449 = arith.addf %447, %448 : vector<8x128xf32>
    %450 = vector.extract_strided_slice %449 {offsets = [0, 0], sizes = [8, 96], strides = [1, 1]} : vector<8x128xf32> to vector<8x96xf32>
    %451 = arith.negf %450 : vector<8x96xf32>
    %452 = math.exp %451 : vector<8x96xf32>
    %cst_106 = arith.constant 1.000000e+00 : f32
    %453 = vector.broadcast %cst_106 : f32 to vector<8x96xf32>
    %454 = arith.addf %453, %452 : vector<8x96xf32>
    %455 = arith.divf %453, %454 : vector<8x96xf32>
    %456 = vector.extract_strided_slice %455 {offsets = [0, 0], sizes = [8, 32], strides = [1, 1]} : vector<8x96xf32> to vector<8x32xf32>
    %457 = vector.extract_strided_slice %455 {offsets = [0, 32], sizes = [8, 32], strides = [1, 1]} : vector<8x96xf32> to vector<8x32xf32>
    %458 = vector.extract_strided_slice %455 {offsets = [0, 64], sizes = [8, 32], strides = [1, 1]} : vector<8x96xf32> to vector<8x32xf32>
    %459 = vector.extract_strided_slice %449 {offsets = [0, 96], sizes = [8, 32], strides = [1, 1]} : vector<8x128xf32> to vector<8x32xf32>
    %460 = math.tanh %459 : vector<8x32xf32>
    %461 = arith.mulf %457, %422 : vector<8x32xf32>
    %462 = arith.mulf %456, %460 : vector<8x32xf32>
    %463 = arith.addf %461, %462 : vector<8x32xf32>
    %464 = math.tanh %463 : vector<8x32xf32>
    %465 = arith.mulf %458, %464 : vector<8x32xf32>
    %c96 = arith.constant 96 : index
    %c0_107 = arith.constant 0 : index
    %466 = vector.load %arg26[%c96, %c0_107] : memref<288x32xf32, #tpu.memory_space<vmem>>, vector<8x32xf32>
    tpu.vector_store %arg26[%c96, %c0_107], %465 {strides = array<i32>} : memref<288x32xf32, #tpu.memory_space<vmem>>, vector<8x32xf32>,
    %cst_108 = arith.constant dense<0.000000e+00> : vector<8x128xf32>
    %467 = tpu.matmul %465, %13, %cst_108 {dimension_numbers = #tpu.dot_dimension_numbers<[1], [0], [0], [1], [0, 0, 1, 1], [], []>} : vector<8x32xf32>, vector<32x128xf32>, vector<8x128xf32> -> vector<8x128xf32>
    %c88_109 = arith.constant 88 : index
    %c0_110 = arith.constant 0 : index
    %468 = vector.load %arg27[%c88_109, %c0_110] : memref<256x128xf32, #tpu.memory_space<vmem>>, vector<8x128xf32>
    %cst_111 = arith.constant dense<0.000000e+00> : vector<8x128xf32>
    %469 = tpu.matmul %445, %11, %cst_111 {dimension_numbers = #tpu.dot_dimension_numbers<[1], [0], [0], [1], [0, 0, 1, 1], [], []>} : vector<8x32xf32>, vector<32x128xf32>, vector<8x128xf32> -> vector<8x128xf32>
    %470 = arith.addf %468, %469 : vector<8x128xf32>
    %471 = vector.extract_strided_slice %470 {offsets = [0, 0], sizes = [8, 96], strides = [1, 1]} : vector<8x128xf32> to vector<8x96xf32>
    %472 = arith.negf %471 : vector<8x96xf32>
    %473 = math.exp %472 : vector<8x96xf32>
    %cst_112 = arith.constant 1.000000e+00 : f32
    %474 = vector.broadcast %cst_112 : f32 to vector<8x96xf32>
    %475 = arith.addf %474, %473 : vector<8x96xf32>
    %476 = arith.divf %474, %475 : vector<8x96xf32>
    %477 = vector.extract_strided_slice %476 {offsets = [0, 0], sizes = [8, 32], strides = [1, 1]} : vector<8x96xf32> to vector<8x32xf32>
    %478 = vector.extract_strided_slice %476 {offsets = [0, 32], sizes = [8, 32], strides = [1, 1]} : vector<8x96xf32> to vector<8x32xf32>
    %479 = vector.extract_strided_slice %476 {offsets = [0, 64], sizes = [8, 32], strides = [1, 1]} : vector<8x96xf32> to vector<8x32xf32>
    %480 = vector.extract_strided_slice %470 {offsets = [0, 96], sizes = [8, 32], strides = [1, 1]} : vector<8x128xf32> to vector<8x32xf32>
    %481 = math.tanh %480 : vector<8x32xf32>
    %482 = arith.mulf %478, %443 : vector<8x32xf32>
    %483 = arith.mulf %477, %481 : vector<8x32xf32>
    %484 = arith.addf %482, %483 : vector<8x32xf32>
    %485 = math.tanh %484 : vector<8x32xf32>
    %486 = arith.mulf %479, %485 : vector<8x32xf32>
    %cst_113 = arith.constant dense<0.000000e+00> : vector<8x128xf32>
    %487 = tpu.matmul %486, %12, %cst_113 {dimension_numbers = #tpu.dot_dimension_numbers<[1], [0], [0], [1], [0, 0, 1, 1], [], []>} : vector<8x32xf32>, vector<32x128xf32>, vector<8x128xf32> -> vector<8x128xf32>
    %488 = arith.addf %487, %467 : vector<8x128xf32>
    %489 = vector.broadcast %14 : vector<1x128xf32> to vector<8x128xf32>
    %490 = arith.addf %488, %489 : vector<8x128xf32>
    %491 = vector.extract_strided_slice %490 {offsets = [0, 0], sizes = [8, 96], strides = [1, 1]} : vector<8x128xf32> to vector<8x96xf32>
    %492 = arith.negf %491 : vector<8x96xf32>
    %493 = math.exp %492 : vector<8x96xf32>
    %cst_114 = arith.constant 1.000000e+00 : f32
    %494 = vector.broadcast %cst_114 : f32 to vector<8x96xf32>
    %495 = arith.addf %494, %493 : vector<8x96xf32>
    %496 = arith.divf %494, %495 : vector<8x96xf32>
    %497 = vector.extract_strided_slice %496 {offsets = [0, 0], sizes = [8, 32], strides = [1, 1]} : vector<8x96xf32> to vector<8x32xf32>
    %498 = vector.extract_strided_slice %496 {offsets = [0, 32], sizes = [8, 32], strides = [1, 1]} : vector<8x96xf32> to vector<8x32xf32>
    %499 = vector.extract_strided_slice %496 {offsets = [0, 64], sizes = [8, 32], strides = [1, 1]} : vector<8x96xf32> to vector<8x32xf32>
    %500 = vector.extract_strided_slice %490 {offsets = [0, 96], sizes = [8, 32], strides = [1, 1]} : vector<8x128xf32> to vector<8x32xf32>
    %501 = math.tanh %500 : vector<8x32xf32>
    %502 = arith.mulf %498, %463 : vector<8x32xf32>
    %503 = arith.mulf %497, %501 : vector<8x32xf32>
    %504 = arith.addf %502, %503 : vector<8x32xf32>
    %505 = math.tanh %504 : vector<8x32xf32>
    %506 = arith.mulf %499, %505 : vector<8x32xf32>
    %c104 = arith.constant 104 : index
    %c0_115 = arith.constant 0 : index
    %507 = vector.load %arg26[%c104, %c0_115] : memref<288x32xf32, #tpu.memory_space<vmem>>, vector<8x32xf32>
    tpu.vector_store %arg26[%c104, %c0_115], %506 {strides = array<i32>} : memref<288x32xf32, #tpu.memory_space<vmem>>, vector<8x32xf32>,
    %cst_116 = arith.constant dense<0.000000e+00> : vector<8x128xf32>
    %508 = tpu.matmul %506, %13, %cst_116 {dimension_numbers = #tpu.dot_dimension_numbers<[1], [0], [0], [1], [0, 0, 1, 1], [], []>} : vector<8x32xf32>, vector<32x128xf32>, vector<8x128xf32> -> vector<8x128xf32>
    %c96_117 = arith.constant 96 : index
    %c0_118 = arith.constant 0 : index
    %509 = vector.load %arg27[%c96_117, %c0_118] : memref<256x128xf32, #tpu.memory_space<vmem>>, vector<8x128xf32>
    %cst_119 = arith.constant dense<0.000000e+00> : vector<8x128xf32>
    %510 = tpu.matmul %486, %11, %cst_119 {dimension_numbers = #tpu.dot_dimension_numbers<[1], [0], [0], [1], [0, 0, 1, 1], [], []>} : vector<8x32xf32>, vector<32x128xf32>, vector<8x128xf32> -> vector<8x128xf32>
    %511 = arith.addf %509, %510 : vector<8x128xf32>
    %512 = vector.extract_strided_slice %511 {offsets = [0, 0], sizes = [8, 96], strides = [1, 1]} : vector<8x128xf32> to vector<8x96xf32>
    %513 = arith.negf %512 : vector<8x96xf32>
    %514 = math.exp %513 : vector<8x96xf32>
    %cst_120 = arith.constant 1.000000e+00 : f32
    %515 = vector.broadcast %cst_120 : f32 to vector<8x96xf32>
    %516 = arith.addf %515, %514 : vector<8x96xf32>
    %517 = arith.divf %515, %516 : vector<8x96xf32>
    %518 = vector.extract_strided_slice %517 {offsets = [0, 0], sizes = [8, 32], strides = [1, 1]} : vector<8x96xf32> to vector<8x32xf32>
    %519 = vector.extract_strided_slice %517 {offsets = [0, 32], sizes = [8, 32], strides = [1, 1]} : vector<8x96xf32> to vector<8x32xf32>
    %520 = vector.extract_strided_slice %517 {offsets = [0, 64], sizes = [8, 32], strides = [1, 1]} : vector<8x96xf32> to vector<8x32xf32>
    %521 = vector.extract_strided_slice %511 {offsets = [0, 96], sizes = [8, 32], strides = [1, 1]} : vector<8x128xf32> to vector<8x32xf32>
    %522 = math.tanh %521 : vector<8x32xf32>
    %523 = arith.mulf %519, %484 : vector<8x32xf32>
    %524 = arith.mulf %518, %522 : vector<8x32xf32>
    %525 = arith.addf %523, %524 : vector<8x32xf32>
    %526 = math.tanh %525 : vector<8x32xf32>
    %527 = arith.mulf %520, %526 : vector<8x32xf32>
    %cst_121 = arith.constant dense<0.000000e+00> : vector<8x128xf32>
    %528 = tpu.matmul %527, %12, %cst_121 {dimension_numbers = #tpu.dot_dimension_numbers<[1], [0], [0], [1], [0, 0, 1, 1], [], []>} : vector<8x32xf32>, vector<32x128xf32>, vector<8x128xf32> -> vector<8x128xf32>
    %529 = arith.addf %528, %508 : vector<8x128xf32>
    %530 = vector.broadcast %14 : vector<1x128xf32> to vector<8x128xf32>
    %531 = arith.addf %529, %530 : vector<8x128xf32>
    %532 = vector.extract_strided_slice %531 {offsets = [0, 0], sizes = [8, 96], strides = [1, 1]} : vector<8x128xf32> to vector<8x96xf32>
    %533 = arith.negf %532 : vector<8x96xf32>
    %534 = math.exp %533 : vector<8x96xf32>
    %cst_122 = arith.constant 1.000000e+00 : f32
    %535 = vector.broadcast %cst_122 : f32 to vector<8x96xf32>
    %536 = arith.addf %535, %534 : vector<8x96xf32>
    %537 = arith.divf %535, %536 : vector<8x96xf32>
    %538 = vector.extract_strided_slice %537 {offsets = [0, 0], sizes = [8, 32], strides = [1, 1]} : vector<8x96xf32> to vector<8x32xf32>
    %539 = vector.extract_strided_slice %537 {offsets = [0, 32], sizes = [8, 32], strides = [1, 1]} : vector<8x96xf32> to vector<8x32xf32>
    %540 = vector.extract_strided_slice %537 {offsets = [0, 64], sizes = [8, 32], strides = [1, 1]} : vector<8x96xf32> to vector<8x32xf32>
    %541 = vector.extract_strided_slice %531 {offsets = [0, 96], sizes = [8, 32], strides = [1, 1]} : vector<8x128xf32> to vector<8x32xf32>
    %542 = math.tanh %541 : vector<8x32xf32>
    %543 = arith.mulf %539, %504 : vector<8x32xf32>
    %544 = arith.mulf %538, %542 : vector<8x32xf32>
    %545 = arith.addf %543, %544 : vector<8x32xf32>
    %546 = math.tanh %545 : vector<8x32xf32>
    %547 = arith.mulf %540, %546 : vector<8x32xf32>
    %c112 = arith.constant 112 : index
    %c0_123 = arith.constant 0 : index
    %548 = vector.load %arg26[%c112, %c0_123] : memref<288x32xf32, #tpu.memory_space<vmem>>, vector<8x32xf32>
    tpu.vector_store %arg26[%c112, %c0_123], %547 {strides = array<i32>} : memref<288x32xf32, #tpu.memory_space<vmem>>, vector<8x32xf32>,
    %cst_124 = arith.constant dense<0.000000e+00> : vector<8x128xf32>
    %549 = tpu.matmul %547, %13, %cst_124 {dimension_numbers = #tpu.dot_dimension_numbers<[1], [0], [0], [1], [0, 0, 1, 1], [], []>} : vector<8x32xf32>, vector<32x128xf32>, vector<8x128xf32> -> vector<8x128xf32>
    %c104_125 = arith.constant 104 : index
    %c0_126 = arith.constant 0 : index
    %550 = vector.load %arg27[%c104_125, %c0_126] : memref<256x128xf32, #tpu.memory_space<vmem>>, vector<8x128xf32>
    %cst_127 = arith.constant dense<0.000000e+00> : vector<8x128xf32>
    %551 = tpu.matmul %527, %11, %cst_127 {dimension_numbers = #tpu.dot_dimension_numbers<[1], [0], [0], [1], [0, 0, 1, 1], [], []>} : vector<8x32xf32>, vector<32x128xf32>, vector<8x128xf32> -> vector<8x128xf32>
    %552 = arith.addf %550, %551 : vector<8x128xf32>
    %553 = vector.extract_strided_slice %552 {offsets = [0, 0], sizes = [8, 96], strides = [1, 1]} : vector<8x128xf32> to vector<8x96xf32>
    %554 = arith.negf %553 : vector<8x96xf32>
    %555 = math.exp %554 : vector<8x96xf32>
    %cst_128 = arith.constant 1.000000e+00 : f32
    %556 = vector.broadcast %cst_128 : f32 to vector<8x96xf32>
    %557 = arith.addf %556, %555 : vector<8x96xf32>
    %558 = arith.divf %556, %557 : vector<8x96xf32>
    %559 = vector.extract_strided_slice %558 {offsets = [0, 0], sizes = [8, 32], strides = [1, 1]} : vector<8x96xf32> to vector<8x32xf32>
    %560 = vector.extract_strided_slice %558 {offsets = [0, 32], sizes = [8, 32], strides = [1, 1]} : vector<8x96xf32> to vector<8x32xf32>
    %561 = vector.extract_strided_slice %558 {offsets = [0, 64], sizes = [8, 32], strides = [1, 1]} : vector<8x96xf32> to vector<8x32xf32>
    %562 = vector.extract_strided_slice %552 {offsets = [0, 96], sizes = [8, 32], strides = [1, 1]} : vector<8x128xf32> to vector<8x32xf32>
    %563 = math.tanh %562 : vector<8x32xf32>
    %564 = arith.mulf %560, %525 : vector<8x32xf32>
    %565 = arith.mulf %559, %563 : vector<8x32xf32>
    %566 = arith.addf %564, %565 : vector<8x32xf32>
    %567 = math.tanh %566 : vector<8x32xf32>
    %568 = arith.mulf %561, %567 : vector<8x32xf32>
    %cst_129 = arith.constant dense<0.000000e+00> : vector<8x128xf32>
    %569 = tpu.matmul %568, %12, %cst_129 {dimension_numbers = #tpu.dot_dimension_numbers<[1], [0], [0], [1], [0, 0, 1, 1], [], []>} : vector<8x32xf32>, vector<32x128xf32>, vector<8x128xf32> -> vector<8x128xf32>
    %570 = arith.addf %569, %549 : vector<8x128xf32>
    %571 = vector.broadcast %14 : vector<1x128xf32> to vector<8x128xf32>
    %572 = arith.addf %570, %571 : vector<8x128xf32>
    %573 = vector.extract_strided_slice %572 {offsets = [0, 0], sizes = [8, 96], strides = [1, 1]} : vector<8x128xf32> to vector<8x96xf32>
    %574 = arith.negf %573 : vector<8x96xf32>
    %575 = math.exp %574 : vector<8x96xf32>
    %cst_130 = arith.constant 1.000000e+00 : f32
    %576 = vector.broadcast %cst_130 : f32 to vector<8x96xf32>
    %577 = arith.addf %576, %575 : vector<8x96xf32>
    %578 = arith.divf %576, %577 : vector<8x96xf32>
    %579 = vector.extract_strided_slice %578 {offsets = [0, 0], sizes = [8, 32], strides = [1, 1]} : vector<8x96xf32> to vector<8x32xf32>
    %580 = vector.extract_strided_slice %578 {offsets = [0, 32], sizes = [8, 32], strides = [1, 1]} : vector<8x96xf32> to vector<8x32xf32>
    %581 = vector.extract_strided_slice %578 {offsets = [0, 64], sizes = [8, 32], strides = [1, 1]} : vector<8x96xf32> to vector<8x32xf32>
    %582 = vector.extract_strided_slice %572 {offsets = [0, 96], sizes = [8, 32], strides = [1, 1]} : vector<8x128xf32> to vector<8x32xf32>
    %583 = math.tanh %582 : vector<8x32xf32>
    %584 = arith.mulf %580, %545 : vector<8x32xf32>
    %585 = arith.mulf %579, %583 : vector<8x32xf32>
    %586 = arith.addf %584, %585 : vector<8x32xf32>
    %587 = math.tanh %586 : vector<8x32xf32>
    %588 = arith.mulf %581, %587 : vector<8x32xf32>
    %c120 = arith.constant 120 : index
    %c0_131 = arith.constant 0 : index
    %589 = vector.load %arg26[%c120, %c0_131] : memref<288x32xf32, #tpu.memory_space<vmem>>, vector<8x32xf32>
    tpu.vector_store %arg26[%c120, %c0_131], %588 {strides = array<i32>} : memref<288x32xf32, #tpu.memory_space<vmem>>, vector<8x32xf32>,
    %cst_132 = arith.constant dense<0.000000e+00> : vector<8x128xf32>
    %590 = tpu.matmul %588, %13, %cst_132 {dimension_numbers = #tpu.dot_dimension_numbers<[1], [0], [0], [1], [0, 0, 1, 1], [], []>} : vector<8x32xf32>, vector<32x128xf32>, vector<8x128xf32> -> vector<8x128xf32>
    %c112_133 = arith.constant 112 : index
    %c0_134 = arith.constant 0 : index
    %591 = vector.load %arg27[%c112_133, %c0_134] : memref<256x128xf32, #tpu.memory_space<vmem>>, vector<8x128xf32>
    %cst_135 = arith.constant dense<0.000000e+00> : vector<8x128xf32>
    %592 = tpu.matmul %568, %11, %cst_135 {dimension_numbers = #tpu.dot_dimension_numbers<[1], [0], [0], [1], [0, 0, 1, 1], [], []>} : vector<8x32xf32>, vector<32x128xf32>, vector<8x128xf32> -> vector<8x128xf32>
    %593 = arith.addf %591, %592 : vector<8x128xf32>
    %594 = vector.extract_strided_slice %593 {offsets = [0, 0], sizes = [8, 96], strides = [1, 1]} : vector<8x128xf32> to vector<8x96xf32>
    %595 = arith.negf %594 : vector<8x96xf32>
    %596 = math.exp %595 : vector<8x96xf32>
    %cst_136 = arith.constant 1.000000e+00 : f32
    %597 = vector.broadcast %cst_136 : f32 to vector<8x96xf32>
    %598 = arith.addf %597, %596 : vector<8x96xf32>
    %599 = arith.divf %597, %598 : vector<8x96xf32>
    %600 = vector.extract_strided_slice %599 {offsets = [0, 0], sizes = [8, 32], strides = [1, 1]} : vector<8x96xf32> to vector<8x32xf32>
    %601 = vector.extract_strided_slice %599 {offsets = [0, 32], sizes = [8, 32], strides = [1, 1]} : vector<8x96xf32> to vector<8x32xf32>
    %602 = vector.extract_strided_slice %599 {offsets = [0, 64], sizes = [8, 32], strides = [1, 1]} : vector<8x96xf32> to vector<8x32xf32>
    %603 = vector.extract_strided_slice %593 {offsets = [0, 96], sizes = [8, 32], strides = [1, 1]} : vector<8x128xf32> to vector<8x32xf32>
    %604 = math.tanh %603 : vector<8x32xf32>
    %605 = arith.mulf %601, %566 : vector<8x32xf32>
    %606 = arith.mulf %600, %604 : vector<8x32xf32>
    %607 = arith.addf %605, %606 : vector<8x32xf32>
    %608 = math.tanh %607 : vector<8x32xf32>
    %609 = arith.mulf %602, %608 : vector<8x32xf32>
    %cst_137 = arith.constant dense<0.000000e+00> : vector<8x128xf32>
    %610 = tpu.matmul %609, %12, %cst_137 {dimension_numbers = #tpu.dot_dimension_numbers<[1], [0], [0], [1], [0, 0, 1, 1], [], []>} : vector<8x32xf32>, vector<32x128xf32>, vector<8x128xf32> -> vector<8x128xf32>
    %611 = arith.addf %610, %590 : vector<8x128xf32>
    %612 = vector.broadcast %14 : vector<1x128xf32> to vector<8x128xf32>
    %613 = arith.addf %611, %612 : vector<8x128xf32>
    %614 = vector.extract_strided_slice %613 {offsets = [0, 0], sizes = [8, 96], strides = [1, 1]} : vector<8x128xf32> to vector<8x96xf32>
    %615 = arith.negf %614 : vector<8x96xf32>
    %616 = math.exp %615 : vector<8x96xf32>
    %cst_138 = arith.constant 1.000000e+00 : f32
    %617 = vector.broadcast %cst_138 : f32 to vector<8x96xf32>
    %618 = arith.addf %617, %616 : vector<8x96xf32>
    %619 = arith.divf %617, %618 : vector<8x96xf32>
    %620 = vector.extract_strided_slice %619 {offsets = [0, 0], sizes = [8, 32], strides = [1, 1]} : vector<8x96xf32> to vector<8x32xf32>
    %621 = vector.extract_strided_slice %619 {offsets = [0, 32], sizes = [8, 32], strides = [1, 1]} : vector<8x96xf32> to vector<8x32xf32>
    %622 = vector.extract_strided_slice %619 {offsets = [0, 64], sizes = [8, 32], strides = [1, 1]} : vector<8x96xf32> to vector<8x32xf32>
    %623 = vector.extract_strided_slice %613 {offsets = [0, 96], sizes = [8, 32], strides = [1, 1]} : vector<8x128xf32> to vector<8x32xf32>
    %624 = math.tanh %623 : vector<8x32xf32>
    %625 = arith.mulf %621, %586 : vector<8x32xf32>
    %626 = arith.mulf %620, %624 : vector<8x32xf32>
    %627 = arith.addf %625, %626 : vector<8x32xf32>
    %628 = math.tanh %627 : vector<8x32xf32>
    %629 = arith.mulf %622, %628 : vector<8x32xf32>
    %c128 = arith.constant 128 : index
    %c0_139 = arith.constant 0 : index
    %630 = vector.load %arg26[%c128, %c0_139] : memref<288x32xf32, #tpu.memory_space<vmem>>, vector<8x32xf32>
    tpu.vector_store %arg26[%c128, %c0_139], %629 {strides = array<i32>} : memref<288x32xf32, #tpu.memory_space<vmem>>, vector<8x32xf32>,
    %cst_140 = arith.constant dense<0.000000e+00> : vector<8x128xf32>
    %631 = tpu.matmul %629, %13, %cst_140 {dimension_numbers = #tpu.dot_dimension_numbers<[1], [0], [0], [1], [0, 0, 1, 1], [], []>} : vector<8x32xf32>, vector<32x128xf32>, vector<8x128xf32> -> vector<8x128xf32>
    %c120_141 = arith.constant 120 : index
    %c0_142 = arith.constant 0 : index
    %632 = vector.load %arg27[%c120_141, %c0_142] : memref<256x128xf32, #tpu.memory_space<vmem>>, vector<8x128xf32>
    %cst_143 = arith.constant dense<0.000000e+00> : vector<8x128xf32>
    %633 = tpu.matmul %609, %11, %cst_143 {dimension_numbers = #tpu.dot_dimension_numbers<[1], [0], [0], [1], [0, 0, 1, 1], [], []>} : vector<8x32xf32>, vector<32x128xf32>, vector<8x128xf32> -> vector<8x128xf32>
    %634 = arith.addf %632, %633 : vector<8x128xf32>
    %635 = vector.extract_strided_slice %634 {offsets = [0, 0], sizes = [8, 96], strides = [1, 1]} : vector<8x128xf32> to vector<8x96xf32>
    %636 = arith.negf %635 : vector<8x96xf32>
    %637 = math.exp %636 : vector<8x96xf32>
    %cst_144 = arith.constant 1.000000e+00 : f32
    %638 = vector.broadcast %cst_144 : f32 to vector<8x96xf32>
    %639 = arith.addf %638, %637 : vector<8x96xf32>
    %640 = arith.divf %638, %639 : vector<8x96xf32>
    %641 = vector.extract_strided_slice %640 {offsets = [0, 0], sizes = [8, 32], strides = [1, 1]} : vector<8x96xf32> to vector<8x32xf32>
    %642 = vector.extract_strided_slice %640 {offsets = [0, 32], sizes = [8, 32], strides = [1, 1]} : vector<8x96xf32> to vector<8x32xf32>
    %643 = vector.extract_strided_slice %640 {offsets = [0, 64], sizes = [8, 32], strides = [1, 1]} : vector<8x96xf32> to vector<8x32xf32>
    %644 = vector.extract_strided_slice %634 {offsets = [0, 96], sizes = [8, 32], strides = [1, 1]} : vector<8x128xf32> to vector<8x32xf32>
    %645 = math.tanh %644 : vector<8x32xf32>
    %646 = arith.mulf %642, %607 : vector<8x32xf32>
    %647 = arith.mulf %641, %645 : vector<8x32xf32>
    %648 = arith.addf %646, %647 : vector<8x32xf32>
    %649 = math.tanh %648 : vector<8x32xf32>
    %650 = arith.mulf %643, %649 : vector<8x32xf32>
    %cst_145 = arith.constant dense<0.000000e+00> : vector<8x128xf32>
    %651 = tpu.matmul %650, %12, %cst_145 {dimension_numbers = #tpu.dot_dimension_numbers<[1], [0], [0], [1], [0, 0, 1, 1], [], []>} : vector<8x32xf32>, vector<32x128xf32>, vector<8x128xf32> -> vector<8x128xf32>
    %652 = arith.addf %651, %631 : vector<8x128xf32>
    %653 = vector.broadcast %14 : vector<1x128xf32> to vector<8x128xf32>
    %654 = arith.addf %652, %653 : vector<8x128xf32>
    %655 = vector.extract_strided_slice %654 {offsets = [0, 0], sizes = [8, 96], strides = [1, 1]} : vector<8x128xf32> to vector<8x96xf32>
    %656 = arith.negf %655 : vector<8x96xf32>
    %657 = math.exp %656 : vector<8x96xf32>
    %cst_146 = arith.constant 1.000000e+00 : f32
    %658 = vector.broadcast %cst_146 : f32 to vector<8x96xf32>
    %659 = arith.addf %658, %657 : vector<8x96xf32>
    %660 = arith.divf %658, %659 : vector<8x96xf32>
    %661 = vector.extract_strided_slice %660 {offsets = [0, 0], sizes = [8, 32], strides = [1, 1]} : vector<8x96xf32> to vector<8x32xf32>
    %662 = vector.extract_strided_slice %660 {offsets = [0, 32], sizes = [8, 32], strides = [1, 1]} : vector<8x96xf32> to vector<8x32xf32>
    %663 = vector.extract_strided_slice %660 {offsets = [0, 64], sizes = [8, 32], strides = [1, 1]} : vector<8x96xf32> to vector<8x32xf32>
    %664 = vector.extract_strided_slice %654 {offsets = [0, 96], sizes = [8, 32], strides = [1, 1]} : vector<8x128xf32> to vector<8x32xf32>
    %665 = math.tanh %664 : vector<8x32xf32>
    %666 = arith.mulf %662, %627 : vector<8x32xf32>
    %667 = arith.mulf %661, %665 : vector<8x32xf32>
    %668 = arith.addf %666, %667 : vector<8x32xf32>
    %669 = math.tanh %668 : vector<8x32xf32>
    %670 = arith.mulf %663, %669 : vector<8x32xf32>
    %c136 = arith.constant 136 : index
    %c0_147 = arith.constant 0 : index
    %671 = vector.load %arg26[%c136, %c0_147] : memref<288x32xf32, #tpu.memory_space<vmem>>, vector<8x32xf32>
    tpu.vector_store %arg26[%c136, %c0_147], %670 {strides = array<i32>} : memref<288x32xf32, #tpu.memory_space<vmem>>, vector<8x32xf32>,
    %cst_148 = arith.constant dense<0.000000e+00> : vector<8x128xf32>
    %672 = tpu.matmul %670, %13, %cst_148 {dimension_numbers = #tpu.dot_dimension_numbers<[1], [0], [0], [1], [0, 0, 1, 1], [], []>} : vector<8x32xf32>, vector<32x128xf32>, vector<8x128xf32> -> vector<8x128xf32>
    %c128_149 = arith.constant 128 : index
    %c0_150 = arith.constant 0 : index
    %673 = vector.load %arg27[%c128_149, %c0_150] : memref<256x128xf32, #tpu.memory_space<vmem>>, vector<8x128xf32>
    %cst_151 = arith.constant dense<0.000000e+00> : vector<8x128xf32>
    %674 = tpu.matmul %650, %11, %cst_151 {dimension_numbers = #tpu.dot_dimension_numbers<[1], [0], [0], [1], [0, 0, 1, 1], [], []>} : vector<8x32xf32>, vector<32x128xf32>, vector<8x128xf32> -> vector<8x128xf32>
    %675 = arith.addf %673, %674 : vector<8x128xf32>
    %676 = vector.extract_strided_slice %675 {offsets = [0, 0], sizes = [8, 96], strides = [1, 1]} : vector<8x128xf32> to vector<8x96xf32>
    %677 = arith.negf %676 : vector<8x96xf32>
    %678 = math.exp %677 : vector<8x96xf32>
    %cst_152 = arith.constant 1.000000e+00 : f32
    %679 = vector.broadcast %cst_152 : f32 to vector<8x96xf32>
    %680 = arith.addf %679, %678 : vector<8x96xf32>
    %681 = arith.divf %679, %680 : vector<8x96xf32>
    %682 = vector.extract_strided_slice %681 {offsets = [0, 0], sizes = [8, 32], strides = [1, 1]} : vector<8x96xf32> to vector<8x32xf32>
    %683 = vector.extract_strided_slice %681 {offsets = [0, 32], sizes = [8, 32], strides = [1, 1]} : vector<8x96xf32> to vector<8x32xf32>
    %684 = vector.extract_strided_slice %681 {offsets = [0, 64], sizes = [8, 32], strides = [1, 1]} : vector<8x96xf32> to vector<8x32xf32>
    %685 = vector.extract_strided_slice %675 {offsets = [0, 96], sizes = [8, 32], strides = [1, 1]} : vector<8x128xf32> to vector<8x32xf32>
    %686 = math.tanh %685 : vector<8x32xf32>
    %687 = arith.mulf %683, %648 : vector<8x32xf32>
    %688 = arith.mulf %682, %686 : vector<8x32xf32>
    %689 = arith.addf %687, %688 : vector<8x32xf32>
    %690 = math.tanh %689 : vector<8x32xf32>
    %691 = arith.mulf %684, %690 : vector<8x32xf32>
    %cst_153 = arith.constant dense<0.000000e+00> : vector<8x128xf32>
    %692 = tpu.matmul %691, %12, %cst_153 {dimension_numbers = #tpu.dot_dimension_numbers<[1], [0], [0], [1], [0, 0, 1, 1], [], []>} : vector<8x32xf32>, vector<32x128xf32>, vector<8x128xf32> -> vector<8x128xf32>
    %693 = arith.addf %692, %672 : vector<8x128xf32>
    %694 = vector.broadcast %14 : vector<1x128xf32> to vector<8x128xf32>
    %695 = arith.addf %693, %694 : vector<8x128xf32>
    %696 = vector.extract_strided_slice %695 {offsets = [0, 0], sizes = [8, 96], strides = [1, 1]} : vector<8x128xf32> to vector<8x96xf32>
    %697 = arith.negf %696 : vector<8x96xf32>
    %698 = math.exp %697 : vector<8x96xf32>
    %cst_154 = arith.constant 1.000000e+00 : f32
    %699 = vector.broadcast %cst_154 : f32 to vector<8x96xf32>
    %700 = arith.addf %699, %698 : vector<8x96xf32>
    %701 = arith.divf %699, %700 : vector<8x96xf32>
    %702 = vector.extract_strided_slice %701 {offsets = [0, 0], sizes = [8, 32], strides = [1, 1]} : vector<8x96xf32> to vector<8x32xf32>
    %703 = vector.extract_strided_slice %701 {offsets = [0, 32], sizes = [8, 32], strides = [1, 1]} : vector<8x96xf32> to vector<8x32xf32>
    %704 = vector.extract_strided_slice %701 {offsets = [0, 64], sizes = [8, 32], strides = [1, 1]} : vector<8x96xf32> to vector<8x32xf32>
    %705 = vector.extract_strided_slice %695 {offsets = [0, 96], sizes = [8, 32], strides = [1, 1]} : vector<8x128xf32> to vector<8x32xf32>
    %706 = math.tanh %705 : vector<8x32xf32>
    %707 = arith.mulf %703, %668 : vector<8x32xf32>
    %708 = arith.mulf %702, %706 : vector<8x32xf32>
    %709 = arith.addf %707, %708 : vector<8x32xf32>
    %710 = math.tanh %709 : vector<8x32xf32>
    %711 = arith.mulf %704, %710 : vector<8x32xf32>
    %c144 = arith.constant 144 : index
    %c0_155 = arith.constant 0 : index
    %712 = vector.load %arg26[%c144, %c0_155] : memref<288x32xf32, #tpu.memory_space<vmem>>, vector<8x32xf32>
    tpu.vector_store %arg26[%c144, %c0_155], %711 {strides = array<i32>} : memref<288x32xf32, #tpu.memory_space<vmem>>, vector<8x32xf32>,
    %cst_156 = arith.constant dense<0.000000e+00> : vector<8x128xf32>
    %713 = tpu.matmul %711, %13, %cst_156 {dimension_numbers = #tpu.dot_dimension_numbers<[1], [0], [0], [1], [0, 0, 1, 1], [], []>} : vector<8x32xf32>, vector<32x128xf32>, vector<8x128xf32> -> vector<8x128xf32>
    %c136_157 = arith.constant 136 : index
    %c0_158 = arith.constant 0 : index
    %714 = vector.load %arg27[%c136_157, %c0_158] : memref<256x128xf32, #tpu.memory_space<vmem>>, vector<8x128xf32>
    %cst_159 = arith.constant dense<0.000000e+00> : vector<8x128xf32>
    %715 = tpu.matmul %691, %11, %cst_159 {dimension_numbers = #tpu.dot_dimension_numbers<[1], [0], [0], [1], [0, 0, 1, 1], [], []>} : vector<8x32xf32>, vector<32x128xf32>, vector<8x128xf32> -> vector<8x128xf32>
    %716 = arith.addf %714, %715 : vector<8x128xf32>
    %717 = vector.extract_strided_slice %716 {offsets = [0, 0], sizes = [8, 96], strides = [1, 1]} : vector<8x128xf32> to vector<8x96xf32>
    %718 = arith.negf %717 : vector<8x96xf32>
    %719 = math.exp %718 : vector<8x96xf32>
    %cst_160 = arith.constant 1.000000e+00 : f32
    %720 = vector.broadcast %cst_160 : f32 to vector<8x96xf32>
    %721 = arith.addf %720, %719 : vector<8x96xf32>
    %722 = arith.divf %720, %721 : vector<8x96xf32>
    %723 = vector.extract_strided_slice %722 {offsets = [0, 0], sizes = [8, 32], strides = [1, 1]} : vector<8x96xf32> to vector<8x32xf32>
    %724 = vector.extract_strided_slice %722 {offsets = [0, 32], sizes = [8, 32], strides = [1, 1]} : vector<8x96xf32> to vector<8x32xf32>
    %725 = vector.extract_strided_slice %722 {offsets = [0, 64], sizes = [8, 32], strides = [1, 1]} : vector<8x96xf32> to vector<8x32xf32>
    %726 = vector.extract_strided_slice %716 {offsets = [0, 96], sizes = [8, 32], strides = [1, 1]} : vector<8x128xf32> to vector<8x32xf32>
    %727 = math.tanh %726 : vector<8x32xf32>
    %728 = arith.mulf %724, %689 : vector<8x32xf32>
    %729 = arith.mulf %723, %727 : vector<8x32xf32>
    %730 = arith.addf %728, %729 : vector<8x32xf32>
    %731 = math.tanh %730 : vector<8x32xf32>
    %732 = arith.mulf %725, %731 : vector<8x32xf32>
    %cst_161 = arith.constant dense<0.000000e+00> : vector<8x128xf32>
    %733 = tpu.matmul %732, %12, %cst_161 {dimension_numbers = #tpu.dot_dimension_numbers<[1], [0], [0], [1], [0, 0, 1, 1], [], []>} : vector<8x32xf32>, vector<32x128xf32>, vector<8x128xf32> -> vector<8x128xf32>
    %734 = arith.addf %733, %713 : vector<8x128xf32>
    %735 = vector.broadcast %14 : vector<1x128xf32> to vector<8x128xf32>
    %736 = arith.addf %734, %735 : vector<8x128xf32>
    %737 = vector.extract_strided_slice %736 {offsets = [0, 0], sizes = [8, 96], strides = [1, 1]} : vector<8x128xf32> to vector<8x96xf32>
    %738 = arith.negf %737 : vector<8x96xf32>
    %739 = math.exp %738 : vector<8x96xf32>
    %cst_162 = arith.constant 1.000000e+00 : f32
    %740 = vector.broadcast %cst_162 : f32 to vector<8x96xf32>
    %741 = arith.addf %740, %739 : vector<8x96xf32>
    %742 = arith.divf %740, %741 : vector<8x96xf32>
    %743 = vector.extract_strided_slice %742 {offsets = [0, 0], sizes = [8, 32], strides = [1, 1]} : vector<8x96xf32> to vector<8x32xf32>
    %744 = vector.extract_strided_slice %742 {offsets = [0, 32], sizes = [8, 32], strides = [1, 1]} : vector<8x96xf32> to vector<8x32xf32>
    %745 = vector.extract_strided_slice %742 {offsets = [0, 64], sizes = [8, 32], strides = [1, 1]} : vector<8x96xf32> to vector<8x32xf32>
    %746 = vector.extract_strided_slice %736 {offsets = [0, 96], sizes = [8, 32], strides = [1, 1]} : vector<8x128xf32> to vector<8x32xf32>
    %747 = math.tanh %746 : vector<8x32xf32>
    %748 = arith.mulf %744, %709 : vector<8x32xf32>
    %749 = arith.mulf %743, %747 : vector<8x32xf32>
    %750 = arith.addf %748, %749 : vector<8x32xf32>
    %751 = math.tanh %750 : vector<8x32xf32>
    %752 = arith.mulf %745, %751 : vector<8x32xf32>
    %c152 = arith.constant 152 : index
    %c0_163 = arith.constant 0 : index
    %753 = vector.load %arg26[%c152, %c0_163] : memref<288x32xf32, #tpu.memory_space<vmem>>, vector<8x32xf32>
    tpu.vector_store %arg26[%c152, %c0_163], %752 {strides = array<i32>} : memref<288x32xf32, #tpu.memory_space<vmem>>, vector<8x32xf32>,
    %cst_164 = arith.constant dense<0.000000e+00> : vector<8x128xf32>
    %754 = tpu.matmul %752, %13, %cst_164 {dimension_numbers = #tpu.dot_dimension_numbers<[1], [0], [0], [1], [0, 0, 1, 1], [], []>} : vector<8x32xf32>, vector<32x128xf32>, vector<8x128xf32> -> vector<8x128xf32>
    %c144_165 = arith.constant 144 : index
    %c0_166 = arith.constant 0 : index
    %755 = vector.load %arg27[%c144_165, %c0_166] : memref<256x128xf32, #tpu.memory_space<vmem>>, vector<8x128xf32>
    %cst_167 = arith.constant dense<0.000000e+00> : vector<8x128xf32>
    %756 = tpu.matmul %732, %11, %cst_167 {dimension_numbers = #tpu.dot_dimension_numbers<[1], [0], [0], [1], [0, 0, 1, 1], [], []>} : vector<8x32xf32>, vector<32x128xf32>, vector<8x128xf32> -> vector<8x128xf32>
    %757 = arith.addf %755, %756 : vector<8x128xf32>
    %758 = vector.extract_strided_slice %757 {offsets = [0, 0], sizes = [8, 96], strides = [1, 1]} : vector<8x128xf32> to vector<8x96xf32>
    %759 = arith.negf %758 : vector<8x96xf32>
    %760 = math.exp %759 : vector<8x96xf32>
    %cst_168 = arith.constant 1.000000e+00 : f32
    %761 = vector.broadcast %cst_168 : f32 to vector<8x96xf32>
    %762 = arith.addf %761, %760 : vector<8x96xf32>
    %763 = arith.divf %761, %762 : vector<8x96xf32>
    %764 = vector.extract_strided_slice %763 {offsets = [0, 0], sizes = [8, 32], strides = [1, 1]} : vector<8x96xf32> to vector<8x32xf32>
    %765 = vector.extract_strided_slice %763 {offsets = [0, 32], sizes = [8, 32], strides = [1, 1]} : vector<8x96xf32> to vector<8x32xf32>
    %766 = vector.extract_strided_slice %763 {offsets = [0, 64], sizes = [8, 32], strides = [1, 1]} : vector<8x96xf32> to vector<8x32xf32>
    %767 = vector.extract_strided_slice %757 {offsets = [0, 96], sizes = [8, 32], strides = [1, 1]} : vector<8x128xf32> to vector<8x32xf32>
    %768 = math.tanh %767 : vector<8x32xf32>
    %769 = arith.mulf %765, %730 : vector<8x32xf32>
    %770 = arith.mulf %764, %768 : vector<8x32xf32>
    %771 = arith.addf %769, %770 : vector<8x32xf32>
    %772 = math.tanh %771 : vector<8x32xf32>
    %773 = arith.mulf %766, %772 : vector<8x32xf32>
    %cst_169 = arith.constant dense<0.000000e+00> : vector<8x128xf32>
    %774 = tpu.matmul %773, %12, %cst_169 {dimension_numbers = #tpu.dot_dimension_numbers<[1], [0], [0], [1], [0, 0, 1, 1], [], []>} : vector<8x32xf32>, vector<32x128xf32>, vector<8x128xf32> -> vector<8x128xf32>
    %775 = arith.addf %774, %754 : vector<8x128xf32>
    %776 = vector.broadcast %14 : vector<1x128xf32> to vector<8x128xf32>
    %777 = arith.addf %775, %776 : vector<8x128xf32>
    %778 = vector.extract_strided_slice %777 {offsets = [0, 0], sizes = [8, 96], strides = [1, 1]} : vector<8x128xf32> to vector<8x96xf32>
    %779 = arith.negf %778 : vector<8x96xf32>
    %780 = math.exp %779 : vector<8x96xf32>
    %cst_170 = arith.constant 1.000000e+00 : f32
    %781 = vector.broadcast %cst_170 : f32 to vector<8x96xf32>
    %782 = arith.addf %781, %780 : vector<8x96xf32>
    %783 = arith.divf %781, %782 : vector<8x96xf32>
    %784 = vector.extract_strided_slice %783 {offsets = [0, 0], sizes = [8, 32], strides = [1, 1]} : vector<8x96xf32> to vector<8x32xf32>
    %785 = vector.extract_strided_slice %783 {offsets = [0, 32], sizes = [8, 32], strides = [1, 1]} : vector<8x96xf32> to vector<8x32xf32>
    %786 = vector.extract_strided_slice %783 {offsets = [0, 64], sizes = [8, 32], strides = [1, 1]} : vector<8x96xf32> to vector<8x32xf32>
    %787 = vector.extract_strided_slice %777 {offsets = [0, 96], sizes = [8, 32], strides = [1, 1]} : vector<8x128xf32> to vector<8x32xf32>
    %788 = math.tanh %787 : vector<8x32xf32>
    %789 = arith.mulf %785, %750 : vector<8x32xf32>
    %790 = arith.mulf %784, %788 : vector<8x32xf32>
    %791 = arith.addf %789, %790 : vector<8x32xf32>
    %792 = math.tanh %791 : vector<8x32xf32>
    %793 = arith.mulf %786, %792 : vector<8x32xf32>
    %c160 = arith.constant 160 : index
    %c0_171 = arith.constant 0 : index
    %794 = vector.load %arg26[%c160, %c0_171] : memref<288x32xf32, #tpu.memory_space<vmem>>, vector<8x32xf32>
    tpu.vector_store %arg26[%c160, %c0_171], %793 {strides = array<i32>} : memref<288x32xf32, #tpu.memory_space<vmem>>, vector<8x32xf32>,
    %cst_172 = arith.constant dense<0.000000e+00> : vector<8x128xf32>
    %795 = tpu.matmul %793, %13, %cst_172 {dimension_numbers = #tpu.dot_dimension_numbers<[1], [0], [0], [1], [0, 0, 1, 1], [], []>} : vector<8x32xf32>, vector<32x128xf32>, vector<8x128xf32> -> vector<8x128xf32>
    %c152_173 = arith.constant 152 : index
    %c0_174 = arith.constant 0 : index
    %796 = vector.load %arg27[%c152_173, %c0_174] : memref<256x128xf32, #tpu.memory_space<vmem>>, vector<8x128xf32>
    %cst_175 = arith.constant dense<0.000000e+00> : vector<8x128xf32>
    %797 = tpu.matmul %773, %11, %cst_175 {dimension_numbers = #tpu.dot_dimension_numbers<[1], [0], [0], [1], [0, 0, 1, 1], [], []>} : vector<8x32xf32>, vector<32x128xf32>, vector<8x128xf32> -> vector<8x128xf32>
    %798 = arith.addf %796, %797 : vector<8x128xf32>
    %799 = vector.extract_strided_slice %798 {offsets = [0, 0], sizes = [8, 96], strides = [1, 1]} : vector<8x128xf32> to vector<8x96xf32>
    %800 = arith.negf %799 : vector<8x96xf32>
    %801 = math.exp %800 : vector<8x96xf32>
    %cst_176 = arith.constant 1.000000e+00 : f32
    %802 = vector.broadcast %cst_176 : f32 to vector<8x96xf32>
    %803 = arith.addf %802, %801 : vector<8x96xf32>
    %804 = arith.divf %802, %803 : vector<8x96xf32>
    %805 = vector.extract_strided_slice %804 {offsets = [0, 0], sizes = [8, 32], strides = [1, 1]} : vector<8x96xf32> to vector<8x32xf32>
    %806 = vector.extract_strided_slice %804 {offsets = [0, 32], sizes = [8, 32], strides = [1, 1]} : vector<8x96xf32> to vector<8x32xf32>
    %807 = vector.extract_strided_slice %804 {offsets = [0, 64], sizes = [8, 32], strides = [1, 1]} : vector<8x96xf32> to vector<8x32xf32>
    %808 = vector.extract_strided_slice %798 {offsets = [0, 96], sizes = [8, 32], strides = [1, 1]} : vector<8x128xf32> to vector<8x32xf32>
    %809 = math.tanh %808 : vector<8x32xf32>
    %810 = arith.mulf %806, %771 : vector<8x32xf32>
    %811 = arith.mulf %805, %809 : vector<8x32xf32>
    %812 = arith.addf %810, %811 : vector<8x32xf32>
    %813 = math.tanh %812 : vector<8x32xf32>
    %814 = arith.mulf %807, %813 : vector<8x32xf32>
    %cst_177 = arith.constant dense<0.000000e+00> : vector<8x128xf32>
    %815 = tpu.matmul %814, %12, %cst_177 {dimension_numbers = #tpu.dot_dimension_numbers<[1], [0], [0], [1], [0, 0, 1, 1], [], []>} : vector<8x32xf32>, vector<32x128xf32>, vector<8x128xf32> -> vector<8x128xf32>
    %816 = arith.addf %815, %795 : vector<8x128xf32>
    %817 = vector.broadcast %14 : vector<1x128xf32> to vector<8x128xf32>
    %818 = arith.addf %816, %817 : vector<8x128xf32>
    %819 = vector.extract_strided_slice %818 {offsets = [0, 0], sizes = [8, 96], strides = [1, 1]} : vector<8x128xf32> to vector<8x96xf32>
    %820 = arith.negf %819 : vector<8x96xf32>
    %821 = math.exp %820 : vector<8x96xf32>
    %cst_178 = arith.constant 1.000000e+00 : f32
    %822 = vector.broadcast %cst_178 : f32 to vector<8x96xf32>
    %823 = arith.addf %822, %821 : vector<8x96xf32>
    %824 = arith.divf %822, %823 : vector<8x96xf32>
    %825 = vector.extract_strided_slice %824 {offsets = [0, 0], sizes = [8, 32], strides = [1, 1]} : vector<8x96xf32> to vector<8x32xf32>
    %826 = vector.extract_strided_slice %824 {offsets = [0, 32], sizes = [8, 32], strides = [1, 1]} : vector<8x96xf32> to vector<8x32xf32>
    %827 = vector.extract_strided_slice %824 {offsets = [0, 64], sizes = [8, 32], strides = [1, 1]} : vector<8x96xf32> to vector<8x32xf32>
    %828 = vector.extract_strided_slice %818 {offsets = [0, 96], sizes = [8, 32], strides = [1, 1]} : vector<8x128xf32> to vector<8x32xf32>
    %829 = math.tanh %828 : vector<8x32xf32>
    %830 = arith.mulf %826, %791 : vector<8x32xf32>
    %831 = arith.mulf %825, %829 : vector<8x32xf32>
    %832 = arith.addf %830, %831 : vector<8x32xf32>
    %833 = math.tanh %832 : vector<8x32xf32>
    %834 = arith.mulf %827, %833 : vector<8x32xf32>
    %c168 = arith.constant 168 : index
    %c0_179 = arith.constant 0 : index
    %835 = vector.load %arg26[%c168, %c0_179] : memref<288x32xf32, #tpu.memory_space<vmem>>, vector<8x32xf32>
    tpu.vector_store %arg26[%c168, %c0_179], %834 {strides = array<i32>} : memref<288x32xf32, #tpu.memory_space<vmem>>, vector<8x32xf32>,
    %cst_180 = arith.constant dense<0.000000e+00> : vector<8x128xf32>
    %836 = tpu.matmul %834, %13, %cst_180 {dimension_numbers = #tpu.dot_dimension_numbers<[1], [0], [0], [1], [0, 0, 1, 1], [], []>} : vector<8x32xf32>, vector<32x128xf32>, vector<8x128xf32> -> vector<8x128xf32>
    %c160_181 = arith.constant 160 : index
    %c0_182 = arith.constant 0 : index
    %837 = vector.load %arg27[%c160_181, %c0_182] : memref<256x128xf32, #tpu.memory_space<vmem>>, vector<8x128xf32>
    %cst_183 = arith.constant dense<0.000000e+00> : vector<8x128xf32>
    %838 = tpu.matmul %814, %11, %cst_183 {dimension_numbers = #tpu.dot_dimension_numbers<[1], [0], [0], [1], [0, 0, 1, 1], [], []>} : vector<8x32xf32>, vector<32x128xf32>, vector<8x128xf32> -> vector<8x128xf32>
    %839 = arith.addf %837, %838 : vector<8x128xf32>
    %840 = vector.extract_strided_slice %839 {offsets = [0, 0], sizes = [8, 96], strides = [1, 1]} : vector<8x128xf32> to vector<8x96xf32>
    %841 = arith.negf %840 : vector<8x96xf32>
    %842 = math.exp %841 : vector<8x96xf32>
    %cst_184 = arith.constant 1.000000e+00 : f32
    %843 = vector.broadcast %cst_184 : f32 to vector<8x96xf32>
    %844 = arith.addf %843, %842 : vector<8x96xf32>
    %845 = arith.divf %843, %844 : vector<8x96xf32>
    %846 = vector.extract_strided_slice %845 {offsets = [0, 0], sizes = [8, 32], strides = [1, 1]} : vector<8x96xf32> to vector<8x32xf32>
    %847 = vector.extract_strided_slice %845 {offsets = [0, 32], sizes = [8, 32], strides = [1, 1]} : vector<8x96xf32> to vector<8x32xf32>
    %848 = vector.extract_strided_slice %845 {offsets = [0, 64], sizes = [8, 32], strides = [1, 1]} : vector<8x96xf32> to vector<8x32xf32>
    %849 = vector.extract_strided_slice %839 {offsets = [0, 96], sizes = [8, 32], strides = [1, 1]} : vector<8x128xf32> to vector<8x32xf32>
    %850 = math.tanh %849 : vector<8x32xf32>
    %851 = arith.mulf %847, %812 : vector<8x32xf32>
    %852 = arith.mulf %846, %850 : vector<8x32xf32>
    %853 = arith.addf %851, %852 : vector<8x32xf32>
    %854 = math.tanh %853 : vector<8x32xf32>
    %855 = arith.mulf %848, %854 : vector<8x32xf32>
    %cst_185 = arith.constant dense<0.000000e+00> : vector<8x128xf32>
    %856 = tpu.matmul %855, %12, %cst_185 {dimension_numbers = #tpu.dot_dimension_numbers<[1], [0], [0], [1], [0, 0, 1, 1], [], []>} : vector<8x32xf32>, vector<32x128xf32>, vector<8x128xf32> -> vector<8x128xf32>
    %857 = arith.addf %856, %836 : vector<8x128xf32>
    %858 = vector.broadcast %14 : vector<1x128xf32> to vector<8x128xf32>
    %859 = arith.addf %857, %858 : vector<8x128xf32>
    %860 = vector.extract_strided_slice %859 {offsets = [0, 0], sizes = [8, 96], strides = [1, 1]} : vector<8x128xf32> to vector<8x96xf32>
    %861 = arith.negf %860 : vector<8x96xf32>
    %862 = math.exp %861 : vector<8x96xf32>
    %cst_186 = arith.constant 1.000000e+00 : f32
    %863 = vector.broadcast %cst_186 : f32 to vector<8x96xf32>
    %864 = arith.addf %863, %862 : vector<8x96xf32>
    %865 = arith.divf %863, %864 : vector<8x96xf32>
    %866 = vector.extract_strided_slice %865 {offsets = [0, 0], sizes = [8, 32], strides = [1, 1]} : vector<8x96xf32> to vector<8x32xf32>
    %867 = vector.extract_strided_slice %865 {offsets = [0, 32], sizes = [8, 32], strides = [1, 1]} : vector<8x96xf32> to vector<8x32xf32>
    %868 = vector.extract_strided_slice %865 {offsets = [0, 64], sizes = [8, 32], strides = [1, 1]} : vector<8x96xf32> to vector<8x32xf32>
    %869 = vector.extract_strided_slice %859 {offsets = [0, 96], sizes = [8, 32], strides = [1, 1]} : vector<8x128xf32> to vector<8x32xf32>
    %870 = math.tanh %869 : vector<8x32xf32>
    %871 = arith.mulf %867, %832 : vector<8x32xf32>
    %872 = arith.mulf %866, %870 : vector<8x32xf32>
    %873 = arith.addf %871, %872 : vector<8x32xf32>
    %874 = math.tanh %873 : vector<8x32xf32>
    %875 = arith.mulf %868, %874 : vector<8x32xf32>
    %c176 = arith.constant 176 : index
    %c0_187 = arith.constant 0 : index
    %876 = vector.load %arg26[%c176, %c0_187] : memref<288x32xf32, #tpu.memory_space<vmem>>, vector<8x32xf32>
    tpu.vector_store %arg26[%c176, %c0_187], %875 {strides = array<i32>} : memref<288x32xf32, #tpu.memory_space<vmem>>, vector<8x32xf32>,
    %cst_188 = arith.constant dense<0.000000e+00> : vector<8x128xf32>
    %877 = tpu.matmul %875, %13, %cst_188 {dimension_numbers = #tpu.dot_dimension_numbers<[1], [0], [0], [1], [0, 0, 1, 1], [], []>} : vector<8x32xf32>, vector<32x128xf32>, vector<8x128xf32> -> vector<8x128xf32>
    %c168_189 = arith.constant 168 : index
    %c0_190 = arith.constant 0 : index
    %878 = vector.load %arg27[%c168_189, %c0_190] : memref<256x128xf32, #tpu.memory_space<vmem>>, vector<8x128xf32>
    %cst_191 = arith.constant dense<0.000000e+00> : vector<8x128xf32>
    %879 = tpu.matmul %855, %11, %cst_191 {dimension_numbers = #tpu.dot_dimension_numbers<[1], [0], [0], [1], [0, 0, 1, 1], [], []>} : vector<8x32xf32>, vector<32x128xf32>, vector<8x128xf32> -> vector<8x128xf32>
    %880 = arith.addf %878, %879 : vector<8x128xf32>
    %881 = vector.extract_strided_slice %880 {offsets = [0, 0], sizes = [8, 96], strides = [1, 1]} : vector<8x128xf32> to vector<8x96xf32>
    %882 = arith.negf %881 : vector<8x96xf32>
    %883 = math.exp %882 : vector<8x96xf32>
    %cst_192 = arith.constant 1.000000e+00 : f32
    %884 = vector.broadcast %cst_192 : f32 to vector<8x96xf32>
    %885 = arith.addf %884, %883 : vector<8x96xf32>
    %886 = arith.divf %884, %885 : vector<8x96xf32>
    %887 = vector.extract_strided_slice %886 {offsets = [0, 0], sizes = [8, 32], strides = [1, 1]} : vector<8x96xf32> to vector<8x32xf32>
    %888 = vector.extract_strided_slice %886 {offsets = [0, 32], sizes = [8, 32], strides = [1, 1]} : vector<8x96xf32> to vector<8x32xf32>
    %889 = vector.extract_strided_slice %886 {offsets = [0, 64], sizes = [8, 32], strides = [1, 1]} : vector<8x96xf32> to vector<8x32xf32>
    %890 = vector.extract_strided_slice %880 {offsets = [0, 96], sizes = [8, 32], strides = [1, 1]} : vector<8x128xf32> to vector<8x32xf32>
    %891 = math.tanh %890 : vector<8x32xf32>
    %892 = arith.mulf %888, %853 : vector<8x32xf32>
    %893 = arith.mulf %887, %891 : vector<8x32xf32>
    %894 = arith.addf %892, %893 : vector<8x32xf32>
    %895 = math.tanh %894 : vector<8x32xf32>
    %896 = arith.mulf %889, %895 : vector<8x32xf32>
    %cst_193 = arith.constant dense<0.000000e+00> : vector<8x128xf32>
    %897 = tpu.matmul %896, %12, %cst_193 {dimension_numbers = #tpu.dot_dimension_numbers<[1], [0], [0], [1], [0, 0, 1, 1], [], []>} : vector<8x32xf32>, vector<32x128xf32>, vector<8x128xf32> -> vector<8x128xf32>
    %898 = arith.addf %897, %877 : vector<8x128xf32>
    %899 = vector.broadcast %14 : vector<1x128xf32> to vector<8x128xf32>
    %900 = arith.addf %898, %899 : vector<8x128xf32>
    %901 = vector.extract_strided_slice %900 {offsets = [0, 0], sizes = [8, 96], strides = [1, 1]} : vector<8x128xf32> to vector<8x96xf32>
    %902 = arith.negf %901 : vector<8x96xf32>
    %903 = math.exp %902 : vector<8x96xf32>
    %cst_194 = arith.constant 1.000000e+00 : f32
    %904 = vector.broadcast %cst_194 : f32 to vector<8x96xf32>
    %905 = arith.addf %904, %903 : vector<8x96xf32>
    %906 = arith.divf %904, %905 : vector<8x96xf32>
    %907 = vector.extract_strided_slice %906 {offsets = [0, 0], sizes = [8, 32], strides = [1, 1]} : vector<8x96xf32> to vector<8x32xf32>
    %908 = vector.extract_strided_slice %906 {offsets = [0, 32], sizes = [8, 32], strides = [1, 1]} : vector<8x96xf32> to vector<8x32xf32>
    %909 = vector.extract_strided_slice %906 {offsets = [0, 64], sizes = [8, 32], strides = [1, 1]} : vector<8x96xf32> to vector<8x32xf32>
    %910 = vector.extract_strided_slice %900 {offsets = [0, 96], sizes = [8, 32], strides = [1, 1]} : vector<8x128xf32> to vector<8x32xf32>
    %911 = math.tanh %910 : vector<8x32xf32>
    %912 = arith.mulf %908, %873 : vector<8x32xf32>
    %913 = arith.mulf %907, %911 : vector<8x32xf32>
    %914 = arith.addf %912, %913 : vector<8x32xf32>
    %915 = math.tanh %914 : vector<8x32xf32>
    %916 = arith.mulf %909, %915 : vector<8x32xf32>
    %c184 = arith.constant 184 : index
    %c0_195 = arith.constant 0 : index
    %917 = vector.load %arg26[%c184, %c0_195] : memref<288x32xf32, #tpu.memory_space<vmem>>, vector<8x32xf32>
    tpu.vector_store %arg26[%c184, %c0_195], %916 {strides = array<i32>} : memref<288x32xf32, #tpu.memory_space<vmem>>, vector<8x32xf32>,
    %cst_196 = arith.constant dense<0.000000e+00> : vector<8x128xf32>
    %918 = tpu.matmul %916, %13, %cst_196 {dimension_numbers = #tpu.dot_dimension_numbers<[1], [0], [0], [1], [0, 0, 1, 1], [], []>} : vector<8x32xf32>, vector<32x128xf32>, vector<8x128xf32> -> vector<8x128xf32>
    %c176_197 = arith.constant 176 : index
    %c0_198 = arith.constant 0 : index
    %919 = vector.load %arg27[%c176_197, %c0_198] : memref<256x128xf32, #tpu.memory_space<vmem>>, vector<8x128xf32>
    %cst_199 = arith.constant dense<0.000000e+00> : vector<8x128xf32>
    %920 = tpu.matmul %896, %11, %cst_199 {dimension_numbers = #tpu.dot_dimension_numbers<[1], [0], [0], [1], [0, 0, 1, 1], [], []>} : vector<8x32xf32>, vector<32x128xf32>, vector<8x128xf32> -> vector<8x128xf32>
    %921 = arith.addf %919, %920 : vector<8x128xf32>
    %922 = vector.extract_strided_slice %921 {offsets = [0, 0], sizes = [8, 96], strides = [1, 1]} : vector<8x128xf32> to vector<8x96xf32>
    %923 = arith.negf %922 : vector<8x96xf32>
    %924 = math.exp %923 : vector<8x96xf32>
    %cst_200 = arith.constant 1.000000e+00 : f32
    %925 = vector.broadcast %cst_200 : f32 to vector<8x96xf32>
    %926 = arith.addf %925, %924 : vector<8x96xf32>
    %927 = arith.divf %925, %926 : vector<8x96xf32>
    %928 = vector.extract_strided_slice %927 {offsets = [0, 0], sizes = [8, 32], strides = [1, 1]} : vector<8x96xf32> to vector<8x32xf32>
    %929 = vector.extract_strided_slice %927 {offsets = [0, 32], sizes = [8, 32], strides = [1, 1]} : vector<8x96xf32> to vector<8x32xf32>
    %930 = vector.extract_strided_slice %927 {offsets = [0, 64], sizes = [8, 32], strides = [1, 1]} : vector<8x96xf32> to vector<8x32xf32>
    %931 = vector.extract_strided_slice %921 {offsets = [0, 96], sizes = [8, 32], strides = [1, 1]} : vector<8x128xf32> to vector<8x32xf32>
    %932 = math.tanh %931 : vector<8x32xf32>
    %933 = arith.mulf %929, %894 : vector<8x32xf32>
    %934 = arith.mulf %928, %932 : vector<8x32xf32>
    %935 = arith.addf %933, %934 : vector<8x32xf32>
    %936 = math.tanh %935 : vector<8x32xf32>
    %937 = arith.mulf %930, %936 : vector<8x32xf32>
    %cst_201 = arith.constant dense<0.000000e+00> : vector<8x128xf32>
    %938 = tpu.matmul %937, %12, %cst_201 {dimension_numbers = #tpu.dot_dimension_numbers<[1], [0], [0], [1], [0, 0, 1, 1], [], []>} : vector<8x32xf32>, vector<32x128xf32>, vector<8x128xf32> -> vector<8x128xf32>
    %939 = arith.addf %938, %918 : vector<8x128xf32>
    %940 = vector.broadcast %14 : vector<1x128xf32> to vector<8x128xf32>
    %941 = arith.addf %939, %940 : vector<8x128xf32>
    %942 = vector.extract_strided_slice %941 {offsets = [0, 0], sizes = [8, 96], strides = [1, 1]} : vector<8x128xf32> to vector<8x96xf32>
    %943 = arith.negf %942 : vector<8x96xf32>
    %944 = math.exp %943 : vector<8x96xf32>
    %cst_202 = arith.constant 1.000000e+00 : f32
    %945 = vector.broadcast %cst_202 : f32 to vector<8x96xf32>
    %946 = arith.addf %945, %944 : vector<8x96xf32>
    %947 = arith.divf %945, %946 : vector<8x96xf32>
    %948 = vector.extract_strided_slice %947 {offsets = [0, 0], sizes = [8, 32], strides = [1, 1]} : vector<8x96xf32> to vector<8x32xf32>
    %949 = vector.extract_strided_slice %947 {offsets = [0, 32], sizes = [8, 32], strides = [1, 1]} : vector<8x96xf32> to vector<8x32xf32>
    %950 = vector.extract_strided_slice %947 {offsets = [0, 64], sizes = [8, 32], strides = [1, 1]} : vector<8x96xf32> to vector<8x32xf32>
    %951 = vector.extract_strided_slice %941 {offsets = [0, 96], sizes = [8, 32], strides = [1, 1]} : vector<8x128xf32> to vector<8x32xf32>
    %952 = math.tanh %951 : vector<8x32xf32>
    %953 = arith.mulf %949, %914 : vector<8x32xf32>
    %954 = arith.mulf %948, %952 : vector<8x32xf32>
    %955 = arith.addf %953, %954 : vector<8x32xf32>
    %956 = math.tanh %955 : vector<8x32xf32>
    %957 = arith.mulf %950, %956 : vector<8x32xf32>
    %c192 = arith.constant 192 : index
    %c0_203 = arith.constant 0 : index
    %958 = vector.load %arg26[%c192, %c0_203] : memref<288x32xf32, #tpu.memory_space<vmem>>, vector<8x32xf32>
    tpu.vector_store %arg26[%c192, %c0_203], %957 {strides = array<i32>} : memref<288x32xf32, #tpu.memory_space<vmem>>, vector<8x32xf32>,
    %cst_204 = arith.constant dense<0.000000e+00> : vector<8x128xf32>
    %959 = tpu.matmul %957, %13, %cst_204 {dimension_numbers = #tpu.dot_dimension_numbers<[1], [0], [0], [1], [0, 0, 1, 1], [], []>} : vector<8x32xf32>, vector<32x128xf32>, vector<8x128xf32> -> vector<8x128xf32>
    %c184_205 = arith.constant 184 : index
    %c0_206 = arith.constant 0 : index
    %960 = vector.load %arg27[%c184_205, %c0_206] : memref<256x128xf32, #tpu.memory_space<vmem>>, vector<8x128xf32>
    %cst_207 = arith.constant dense<0.000000e+00> : vector<8x128xf32>
    %961 = tpu.matmul %937, %11, %cst_207 {dimension_numbers = #tpu.dot_dimension_numbers<[1], [0], [0], [1], [0, 0, 1, 1], [], []>} : vector<8x32xf32>, vector<32x128xf32>, vector<8x128xf32> -> vector<8x128xf32>
    %962 = arith.addf %960, %961 : vector<8x128xf32>
    %963 = vector.extract_strided_slice %962 {offsets = [0, 0], sizes = [8, 96], strides = [1, 1]} : vector<8x128xf32> to vector<8x96xf32>
    %964 = arith.negf %963 : vector<8x96xf32>
    %965 = math.exp %964 : vector<8x96xf32>
    %cst_208 = arith.constant 1.000000e+00 : f32
    %966 = vector.broadcast %cst_208 : f32 to vector<8x96xf32>
    %967 = arith.addf %966, %965 : vector<8x96xf32>
    %968 = arith.divf %966, %967 : vector<8x96xf32>
    %969 = vector.extract_strided_slice %968 {offsets = [0, 0], sizes = [8, 32], strides = [1, 1]} : vector<8x96xf32> to vector<8x32xf32>
    %970 = vector.extract_strided_slice %968 {offsets = [0, 32], sizes = [8, 32], strides = [1, 1]} : vector<8x96xf32> to vector<8x32xf32>
    %971 = vector.extract_strided_slice %968 {offsets = [0, 64], sizes = [8, 32], strides = [1, 1]} : vector<8x96xf32> to vector<8x32xf32>
    %972 = vector.extract_strided_slice %962 {offsets = [0, 96], sizes = [8, 32], strides = [1, 1]} : vector<8x128xf32> to vector<8x32xf32>
    %973 = math.tanh %972 : vector<8x32xf32>
    %974 = arith.mulf %970, %935 : vector<8x32xf32>
    %975 = arith.mulf %969, %973 : vector<8x32xf32>
    %976 = arith.addf %974, %975 : vector<8x32xf32>
    %977 = math.tanh %976 : vector<8x32xf32>
    %978 = arith.mulf %971, %977 : vector<8x32xf32>
    %cst_209 = arith.constant dense<0.000000e+00> : vector<8x128xf32>
    %979 = tpu.matmul %978, %12, %cst_209 {dimension_numbers = #tpu.dot_dimension_numbers<[1], [0], [0], [1], [0, 0, 1, 1], [], []>} : vector<8x32xf32>, vector<32x128xf32>, vector<8x128xf32> -> vector<8x128xf32>
    %980 = arith.addf %979, %959 : vector<8x128xf32>
    %981 = vector.broadcast %14 : vector<1x128xf32> to vector<8x128xf32>
    %982 = arith.addf %980, %981 : vector<8x128xf32>
    %983 = vector.extract_strided_slice %982 {offsets = [0, 0], sizes = [8, 96], strides = [1, 1]} : vector<8x128xf32> to vector<8x96xf32>
    %984 = arith.negf %983 : vector<8x96xf32>
    %985 = math.exp %984 : vector<8x96xf32>
    %cst_210 = arith.constant 1.000000e+00 : f32
    %986 = vector.broadcast %cst_210 : f32 to vector<8x96xf32>
    %987 = arith.addf %986, %985 : vector<8x96xf32>
    %988 = arith.divf %986, %987 : vector<8x96xf32>
    %989 = vector.extract_strided_slice %988 {offsets = [0, 0], sizes = [8, 32], strides = [1, 1]} : vector<8x96xf32> to vector<8x32xf32>
    %990 = vector.extract_strided_slice %988 {offsets = [0, 32], sizes = [8, 32], strides = [1, 1]} : vector<8x96xf32> to vector<8x32xf32>
    %991 = vector.extract_strided_slice %988 {offsets = [0, 64], sizes = [8, 32], strides = [1, 1]} : vector<8x96xf32> to vector<8x32xf32>
    %992 = vector.extract_strided_slice %982 {offsets = [0, 96], sizes = [8, 32], strides = [1, 1]} : vector<8x128xf32> to vector<8x32xf32>
    %993 = math.tanh %992 : vector<8x32xf32>
    %994 = arith.mulf %990, %955 : vector<8x32xf32>
    %995 = arith.mulf %989, %993 : vector<8x32xf32>
    %996 = arith.addf %994, %995 : vector<8x32xf32>
    %997 = math.tanh %996 : vector<8x32xf32>
    %998 = arith.mulf %991, %997 : vector<8x32xf32>
    %c200 = arith.constant 200 : index
    %c0_211 = arith.constant 0 : index
    %999 = vector.load %arg26[%c200, %c0_211] : memref<288x32xf32, #tpu.memory_space<vmem>>, vector<8x32xf32>
    tpu.vector_store %arg26[%c200, %c0_211], %998 {strides = array<i32>} : memref<288x32xf32, #tpu.memory_space<vmem>>, vector<8x32xf32>,
    %cst_212 = arith.constant dense<0.000000e+00> : vector<8x128xf32>
    %1000 = tpu.matmul %998, %13, %cst_212 {dimension_numbers = #tpu.dot_dimension_numbers<[1], [0], [0], [1], [0, 0, 1, 1], [], []>} : vector<8x32xf32>, vector<32x128xf32>, vector<8x128xf32> -> vector<8x128xf32>
    %c192_213 = arith.constant 192 : index
    %c0_214 = arith.constant 0 : index
    %1001 = vector.load %arg27[%c192_213, %c0_214] : memref<256x128xf32, #tpu.memory_space<vmem>>, vector<8x128xf32>
    %cst_215 = arith.constant dense<0.000000e+00> : vector<8x128xf32>
    %1002 = tpu.matmul %978, %11, %cst_215 {dimension_numbers = #tpu.dot_dimension_numbers<[1], [0], [0], [1], [0, 0, 1, 1], [], []>} : vector<8x32xf32>, vector<32x128xf32>, vector<8x128xf32> -> vector<8x128xf32>
    %1003 = arith.addf %1001, %1002 : vector<8x128xf32>
    %1004 = vector.extract_strided_slice %1003 {offsets = [0, 0], sizes = [8, 96], strides = [1, 1]} : vector<8x128xf32> to vector<8x96xf32>
    %1005 = arith.negf %1004 : vector<8x96xf32>
    %1006 = math.exp %1005 : vector<8x96xf32>
    %cst_216 = arith.constant 1.000000e+00 : f32
    %1007 = vector.broadcast %cst_216 : f32 to vector<8x96xf32>
    %1008 = arith.addf %1007, %1006 : vector<8x96xf32>
    %1009 = arith.divf %1007, %1008 : vector<8x96xf32>
    %1010 = vector.extract_strided_slice %1009 {offsets = [0, 0], sizes = [8, 32], strides = [1, 1]} : vector<8x96xf32> to vector<8x32xf32>
    %1011 = vector.extract_strided_slice %1009 {offsets = [0, 32], sizes = [8, 32], strides = [1, 1]} : vector<8x96xf32> to vector<8x32xf32>
    %1012 = vector.extract_strided_slice %1009 {offsets = [0, 64], sizes = [8, 32], strides = [1, 1]} : vector<8x96xf32> to vector<8x32xf32>
    %1013 = vector.extract_strided_slice %1003 {offsets = [0, 96], sizes = [8, 32], strides = [1, 1]} : vector<8x128xf32> to vector<8x32xf32>
    %1014 = math.tanh %1013 : vector<8x32xf32>
    %1015 = arith.mulf %1011, %976 : vector<8x32xf32>
    %1016 = arith.mulf %1010, %1014 : vector<8x32xf32>
    %1017 = arith.addf %1015, %1016 : vector<8x32xf32>
    %1018 = math.tanh %1017 : vector<8x32xf32>
    %1019 = arith.mulf %1012, %1018 : vector<8x32xf32>
    %cst_217 = arith.constant dense<0.000000e+00> : vector<8x128xf32>
    %1020 = tpu.matmul %1019, %12, %cst_217 {dimension_numbers = #tpu.dot_dimension_numbers<[1], [0], [0], [1], [0, 0, 1, 1], [], []>} : vector<8x32xf32>, vector<32x128xf32>, vector<8x128xf32> -> vector<8x128xf32>
    %1021 = arith.addf %1020, %1000 : vector<8x128xf32>
    %1022 = vector.broadcast %14 : vector<1x128xf32> to vector<8x128xf32>
    %1023 = arith.addf %1021, %1022 : vector<8x128xf32>
    %1024 = vector.extract_strided_slice %1023 {offsets = [0, 0], sizes = [8, 96], strides = [1, 1]} : vector<8x128xf32> to vector<8x96xf32>
    %1025 = arith.negf %1024 : vector<8x96xf32>
    %1026 = math.exp %1025 : vector<8x96xf32>
    %cst_218 = arith.constant 1.000000e+00 : f32
    %1027 = vector.broadcast %cst_218 : f32 to vector<8x96xf32>
    %1028 = arith.addf %1027, %1026 : vector<8x96xf32>
    %1029 = arith.divf %1027, %1028 : vector<8x96xf32>
    %1030 = vector.extract_strided_slice %1029 {offsets = [0, 0], sizes = [8, 32], strides = [1, 1]} : vector<8x96xf32> to vector<8x32xf32>
    %1031 = vector.extract_strided_slice %1029 {offsets = [0, 32], sizes = [8, 32], strides = [1, 1]} : vector<8x96xf32> to vector<8x32xf32>
    %1032 = vector.extract_strided_slice %1029 {offsets = [0, 64], sizes = [8, 32], strides = [1, 1]} : vector<8x96xf32> to vector<8x32xf32>
    %1033 = vector.extract_strided_slice %1023 {offsets = [0, 96], sizes = [8, 32], strides = [1, 1]} : vector<8x128xf32> to vector<8x32xf32>
    %1034 = math.tanh %1033 : vector<8x32xf32>
    %1035 = arith.mulf %1031, %996 : vector<8x32xf32>
    %1036 = arith.mulf %1030, %1034 : vector<8x32xf32>
    %1037 = arith.addf %1035, %1036 : vector<8x32xf32>
    %1038 = math.tanh %1037 : vector<8x32xf32>
    %1039 = arith.mulf %1032, %1038 : vector<8x32xf32>
    %c208 = arith.constant 208 : index
    %c0_219 = arith.constant 0 : index
    %1040 = vector.load %arg26[%c208, %c0_219] : memref<288x32xf32, #tpu.memory_space<vmem>>, vector<8x32xf32>
    tpu.vector_store %arg26[%c208, %c0_219], %1039 {strides = array<i32>} : memref<288x32xf32, #tpu.memory_space<vmem>>, vector<8x32xf32>,
    %cst_220 = arith.constant dense<0.000000e+00> : vector<8x128xf32>
    %1041 = tpu.matmul %1039, %13, %cst_220 {dimension_numbers = #tpu.dot_dimension_numbers<[1], [0], [0], [1], [0, 0, 1, 1], [], []>} : vector<8x32xf32>, vector<32x128xf32>, vector<8x128xf32> -> vector<8x128xf32>
    %c200_221 = arith.constant 200 : index
    %c0_222 = arith.constant 0 : index
    %1042 = vector.load %arg27[%c200_221, %c0_222] : memref<256x128xf32, #tpu.memory_space<vmem>>, vector<8x128xf32>
    %cst_223 = arith.constant dense<0.000000e+00> : vector<8x128xf32>
    %1043 = tpu.matmul %1019, %11, %cst_223 {dimension_numbers = #tpu.dot_dimension_numbers<[1], [0], [0], [1], [0, 0, 1, 1], [], []>} : vector<8x32xf32>, vector<32x128xf32>, vector<8x128xf32> -> vector<8x128xf32>
    %1044 = arith.addf %1042, %1043 : vector<8x128xf32>
    %1045 = vector.extract_strided_slice %1044 {offsets = [0, 0], sizes = [8, 96], strides = [1, 1]} : vector<8x128xf32> to vector<8x96xf32>
    %1046 = arith.negf %1045 : vector<8x96xf32>
    %1047 = math.exp %1046 : vector<8x96xf32>
    %cst_224 = arith.constant 1.000000e+00 : f32
    %1048 = vector.broadcast %cst_224 : f32 to vector<8x96xf32>
    %1049 = arith.addf %1048, %1047 : vector<8x96xf32>
    %1050 = arith.divf %1048, %1049 : vector<8x96xf32>
    %1051 = vector.extract_strided_slice %1050 {offsets = [0, 0], sizes = [8, 32], strides = [1, 1]} : vector<8x96xf32> to vector<8x32xf32>
    %1052 = vector.extract_strided_slice %1050 {offsets = [0, 32], sizes = [8, 32], strides = [1, 1]} : vector<8x96xf32> to vector<8x32xf32>
    %1053 = vector.extract_strided_slice %1050 {offsets = [0, 64], sizes = [8, 32], strides = [1, 1]} : vector<8x96xf32> to vector<8x32xf32>
    %1054 = vector.extract_strided_slice %1044 {offsets = [0, 96], sizes = [8, 32], strides = [1, 1]} : vector<8x128xf32> to vector<8x32xf32>
    %1055 = math.tanh %1054 : vector<8x32xf32>
    %1056 = arith.mulf %1052, %1017 : vector<8x32xf32>
    %1057 = arith.mulf %1051, %1055 : vector<8x32xf32>
    %1058 = arith.addf %1056, %1057 : vector<8x32xf32>
    %1059 = math.tanh %1058 : vector<8x32xf32>
    %1060 = arith.mulf %1053, %1059 : vector<8x32xf32>
    %cst_225 = arith.constant dense<0.000000e+00> : vector<8x128xf32>
    %1061 = tpu.matmul %1060, %12, %cst_225 {dimension_numbers = #tpu.dot_dimension_numbers<[1], [0], [0], [1], [0, 0, 1, 1], [], []>} : vector<8x32xf32>, vector<32x128xf32>, vector<8x128xf32> -> vector<8x128xf32>
    %1062 = arith.addf %1061, %1041 : vector<8x128xf32>
    %1063 = vector.broadcast %14 : vector<1x128xf32> to vector<8x128xf32>
    %1064 = arith.addf %1062, %1063 : vector<8x128xf32>
    %1065 = vector.extract_strided_slice %1064 {offsets = [0, 0], sizes = [8, 96], strides = [1, 1]} : vector<8x128xf32> to vector<8x96xf32>
    %1066 = arith.negf %1065 : vector<8x96xf32>
    %1067 = math.exp %1066 : vector<8x96xf32>
    %cst_226 = arith.constant 1.000000e+00 : f32
    %1068 = vector.broadcast %cst_226 : f32 to vector<8x96xf32>
    %1069 = arith.addf %1068, %1067 : vector<8x96xf32>
    %1070 = arith.divf %1068, %1069 : vector<8x96xf32>
    %1071 = vector.extract_strided_slice %1070 {offsets = [0, 0], sizes = [8, 32], strides = [1, 1]} : vector<8x96xf32> to vector<8x32xf32>
    %1072 = vector.extract_strided_slice %1070 {offsets = [0, 32], sizes = [8, 32], strides = [1, 1]} : vector<8x96xf32> to vector<8x32xf32>
    %1073 = vector.extract_strided_slice %1070 {offsets = [0, 64], sizes = [8, 32], strides = [1, 1]} : vector<8x96xf32> to vector<8x32xf32>
    %1074 = vector.extract_strided_slice %1064 {offsets = [0, 96], sizes = [8, 32], strides = [1, 1]} : vector<8x128xf32> to vector<8x32xf32>
    %1075 = math.tanh %1074 : vector<8x32xf32>
    %1076 = arith.mulf %1072, %1037 : vector<8x32xf32>
    %1077 = arith.mulf %1071, %1075 : vector<8x32xf32>
    %1078 = arith.addf %1076, %1077 : vector<8x32xf32>
    %1079 = math.tanh %1078 : vector<8x32xf32>
    %1080 = arith.mulf %1073, %1079 : vector<8x32xf32>
    %c216 = arith.constant 216 : index
    %c0_227 = arith.constant 0 : index
    %1081 = vector.load %arg26[%c216, %c0_227] : memref<288x32xf32, #tpu.memory_space<vmem>>, vector<8x32xf32>
    tpu.vector_store %arg26[%c216, %c0_227], %1080 {strides = array<i32>} : memref<288x32xf32, #tpu.memory_space<vmem>>, vector<8x32xf32>,
    %cst_228 = arith.constant dense<0.000000e+00> : vector<8x128xf32>
    %1082 = tpu.matmul %1080, %13, %cst_228 {dimension_numbers = #tpu.dot_dimension_numbers<[1], [0], [0], [1], [0, 0, 1, 1], [], []>} : vector<8x32xf32>, vector<32x128xf32>, vector<8x128xf32> -> vector<8x128xf32>
    %c208_229 = arith.constant 208 : index
    %c0_230 = arith.constant 0 : index
    %1083 = vector.load %arg27[%c208_229, %c0_230] : memref<256x128xf32, #tpu.memory_space<vmem>>, vector<8x128xf32>
    %cst_231 = arith.constant dense<0.000000e+00> : vector<8x128xf32>
    %1084 = tpu.matmul %1060, %11, %cst_231 {dimension_numbers = #tpu.dot_dimension_numbers<[1], [0], [0], [1], [0, 0, 1, 1], [], []>} : vector<8x32xf32>, vector<32x128xf32>, vector<8x128xf32> -> vector<8x128xf32>
    %1085 = arith.addf %1083, %1084 : vector<8x128xf32>
    %1086 = vector.extract_strided_slice %1085 {offsets = [0, 0], sizes = [8, 96], strides = [1, 1]} : vector<8x128xf32> to vector<8x96xf32>
    %1087 = arith.negf %1086 : vector<8x96xf32>
    %1088 = math.exp %1087 : vector<8x96xf32>
    %cst_232 = arith.constant 1.000000e+00 : f32
    %1089 = vector.broadcast %cst_232 : f32 to vector<8x96xf32>
    %1090 = arith.addf %1089, %1088 : vector<8x96xf32>
    %1091 = arith.divf %1089, %1090 : vector<8x96xf32>
    %1092 = vector.extract_strided_slice %1091 {offsets = [0, 0], sizes = [8, 32], strides = [1, 1]} : vector<8x96xf32> to vector<8x32xf32>
    %1093 = vector.extract_strided_slice %1091 {offsets = [0, 32], sizes = [8, 32], strides = [1, 1]} : vector<8x96xf32> to vector<8x32xf32>
    %1094 = vector.extract_strided_slice %1091 {offsets = [0, 64], sizes = [8, 32], strides = [1, 1]} : vector<8x96xf32> to vector<8x32xf32>
    %1095 = vector.extract_strided_slice %1085 {offsets = [0, 96], sizes = [8, 32], strides = [1, 1]} : vector<8x128xf32> to vector<8x32xf32>
    %1096 = math.tanh %1095 : vector<8x32xf32>
    %1097 = arith.mulf %1093, %1058 : vector<8x32xf32>
    %1098 = arith.mulf %1092, %1096 : vector<8x32xf32>
    %1099 = arith.addf %1097, %1098 : vector<8x32xf32>
    %1100 = math.tanh %1099 : vector<8x32xf32>
    %1101 = arith.mulf %1094, %1100 : vector<8x32xf32>
    %cst_233 = arith.constant dense<0.000000e+00> : vector<8x128xf32>
    %1102 = tpu.matmul %1101, %12, %cst_233 {dimension_numbers = #tpu.dot_dimension_numbers<[1], [0], [0], [1], [0, 0, 1, 1], [], []>} : vector<8x32xf32>, vector<32x128xf32>, vector<8x128xf32> -> vector<8x128xf32>
    %1103 = arith.addf %1102, %1082 : vector<8x128xf32>
    %1104 = vector.broadcast %14 : vector<1x128xf32> to vector<8x128xf32>
    %1105 = arith.addf %1103, %1104 : vector<8x128xf32>
    %1106 = vector.extract_strided_slice %1105 {offsets = [0, 0], sizes = [8, 96], strides = [1, 1]} : vector<8x128xf32> to vector<8x96xf32>
    %1107 = arith.negf %1106 : vector<8x96xf32>
    %1108 = math.exp %1107 : vector<8x96xf32>
    %cst_234 = arith.constant 1.000000e+00 : f32
    %1109 = vector.broadcast %cst_234 : f32 to vector<8x96xf32>
    %1110 = arith.addf %1109, %1108 : vector<8x96xf32>
    %1111 = arith.divf %1109, %1110 : vector<8x96xf32>
    %1112 = vector.extract_strided_slice %1111 {offsets = [0, 0], sizes = [8, 32], strides = [1, 1]} : vector<8x96xf32> to vector<8x32xf32>
    %1113 = vector.extract_strided_slice %1111 {offsets = [0, 32], sizes = [8, 32], strides = [1, 1]} : vector<8x96xf32> to vector<8x32xf32>
    %1114 = vector.extract_strided_slice %1111 {offsets = [0, 64], sizes = [8, 32], strides = [1, 1]} : vector<8x96xf32> to vector<8x32xf32>
    %1115 = vector.extract_strided_slice %1105 {offsets = [0, 96], sizes = [8, 32], strides = [1, 1]} : vector<8x128xf32> to vector<8x32xf32>
    %1116 = math.tanh %1115 : vector<8x32xf32>
    %1117 = arith.mulf %1113, %1078 : vector<8x32xf32>
    %1118 = arith.mulf %1112, %1116 : vector<8x32xf32>
    %1119 = arith.addf %1117, %1118 : vector<8x32xf32>
    %1120 = math.tanh %1119 : vector<8x32xf32>
    %1121 = arith.mulf %1114, %1120 : vector<8x32xf32>
    %c224 = arith.constant 224 : index
    %c0_235 = arith.constant 0 : index
    %1122 = vector.load %arg26[%c224, %c0_235] : memref<288x32xf32, #tpu.memory_space<vmem>>, vector<8x32xf32>
    tpu.vector_store %arg26[%c224, %c0_235], %1121 {strides = array<i32>} : memref<288x32xf32, #tpu.memory_space<vmem>>, vector<8x32xf32>,
    %cst_236 = arith.constant dense<0.000000e+00> : vector<8x128xf32>
    %1123 = tpu.matmul %1121, %13, %cst_236 {dimension_numbers = #tpu.dot_dimension_numbers<[1], [0], [0], [1], [0, 0, 1, 1], [], []>} : vector<8x32xf32>, vector<32x128xf32>, vector<8x128xf32> -> vector<8x128xf32>
    %c216_237 = arith.constant 216 : index
    %c0_238 = arith.constant 0 : index
    %1124 = vector.load %arg27[%c216_237, %c0_238] : memref<256x128xf32, #tpu.memory_space<vmem>>, vector<8x128xf32>
    %cst_239 = arith.constant dense<0.000000e+00> : vector<8x128xf32>
    %1125 = tpu.matmul %1101, %11, %cst_239 {dimension_numbers = #tpu.dot_dimension_numbers<[1], [0], [0], [1], [0, 0, 1, 1], [], []>} : vector<8x32xf32>, vector<32x128xf32>, vector<8x128xf32> -> vector<8x128xf32>
    %1126 = arith.addf %1124, %1125 : vector<8x128xf32>
    %1127 = vector.extract_strided_slice %1126 {offsets = [0, 0], sizes = [8, 96], strides = [1, 1]} : vector<8x128xf32> to vector<8x96xf32>
    %1128 = arith.negf %1127 : vector<8x96xf32>
    %1129 = math.exp %1128 : vector<8x96xf32>
    %cst_240 = arith.constant 1.000000e+00 : f32
    %1130 = vector.broadcast %cst_240 : f32 to vector<8x96xf32>
    %1131 = arith.addf %1130, %1129 : vector<8x96xf32>
    %1132 = arith.divf %1130, %1131 : vector<8x96xf32>
    %1133 = vector.extract_strided_slice %1132 {offsets = [0, 0], sizes = [8, 32], strides = [1, 1]} : vector<8x96xf32> to vector<8x32xf32>
    %1134 = vector.extract_strided_slice %1132 {offsets = [0, 32], sizes = [8, 32], strides = [1, 1]} : vector<8x96xf32> to vector<8x32xf32>
    %1135 = vector.extract_strided_slice %1132 {offsets = [0, 64], sizes = [8, 32], strides = [1, 1]} : vector<8x96xf32> to vector<8x32xf32>
    %1136 = vector.extract_strided_slice %1126 {offsets = [0, 96], sizes = [8, 32], strides = [1, 1]} : vector<8x128xf32> to vector<8x32xf32>
    %1137 = math.tanh %1136 : vector<8x32xf32>
    %1138 = arith.mulf %1134, %1099 : vector<8x32xf32>
    %1139 = arith.mulf %1133, %1137 : vector<8x32xf32>
    %1140 = arith.addf %1138, %1139 : vector<8x32xf32>
    %1141 = math.tanh %1140 : vector<8x32xf32>
    %1142 = arith.mulf %1135, %1141 : vector<8x32xf32>
    %cst_241 = arith.constant dense<0.000000e+00> : vector<8x128xf32>
    %1143 = tpu.matmul %1142, %12, %cst_241 {dimension_numbers = #tpu.dot_dimension_numbers<[1], [0], [0], [1], [0, 0, 1, 1], [], []>} : vector<8x32xf32>, vector<32x128xf32>, vector<8x128xf32> -> vector<8x128xf32>
    %1144 = arith.addf %1143, %1123 : vector<8x128xf32>
    %1145 = vector.broadcast %14 : vector<1x128xf32> to vector<8x128xf32>
    %1146 = arith.addf %1144, %1145 : vector<8x128xf32>
    %1147 = vector.extract_strided_slice %1146 {offsets = [0, 0], sizes = [8, 96], strides = [1, 1]} : vector<8x128xf32> to vector<8x96xf32>
    %1148 = arith.negf %1147 : vector<8x96xf32>
    %1149 = math.exp %1148 : vector<8x96xf32>
    %cst_242 = arith.constant 1.000000e+00 : f32
    %1150 = vector.broadcast %cst_242 : f32 to vector<8x96xf32>
    %1151 = arith.addf %1150, %1149 : vector<8x96xf32>
    %1152 = arith.divf %1150, %1151 : vector<8x96xf32>
    %1153 = vector.extract_strided_slice %1152 {offsets = [0, 0], sizes = [8, 32], strides = [1, 1]} : vector<8x96xf32> to vector<8x32xf32>
    %1154 = vector.extract_strided_slice %1152 {offsets = [0, 32], sizes = [8, 32], strides = [1, 1]} : vector<8x96xf32> to vector<8x32xf32>
    %1155 = vector.extract_strided_slice %1152 {offsets = [0, 64], sizes = [8, 32], strides = [1, 1]} : vector<8x96xf32> to vector<8x32xf32>
    %1156 = vector.extract_strided_slice %1146 {offsets = [0, 96], sizes = [8, 32], strides = [1, 1]} : vector<8x128xf32> to vector<8x32xf32>
    %1157 = math.tanh %1156 : vector<8x32xf32>
    %1158 = arith.mulf %1154, %1119 : vector<8x32xf32>
    %1159 = arith.mulf %1153, %1157 : vector<8x32xf32>
    %1160 = arith.addf %1158, %1159 : vector<8x32xf32>
    %1161 = math.tanh %1160 : vector<8x32xf32>
    %1162 = arith.mulf %1155, %1161 : vector<8x32xf32>
    %c232 = arith.constant 232 : index
    %c0_243 = arith.constant 0 : index
    %1163 = vector.load %arg26[%c232, %c0_243] : memref<288x32xf32, #tpu.memory_space<vmem>>, vector<8x32xf32>
    tpu.vector_store %arg26[%c232, %c0_243], %1162 {strides = array<i32>} : memref<288x32xf32, #tpu.memory_space<vmem>>, vector<8x32xf32>,
    %cst_244 = arith.constant dense<0.000000e+00> : vector<8x128xf32>
    %1164 = tpu.matmul %1162, %13, %cst_244 {dimension_numbers = #tpu.dot_dimension_numbers<[1], [0], [0], [1], [0, 0, 1, 1], [], []>} : vector<8x32xf32>, vector<32x128xf32>, vector<8x128xf32> -> vector<8x128xf32>
    %c224_245 = arith.constant 224 : index
    %c0_246 = arith.constant 0 : index
    %1165 = vector.load %arg27[%c224_245, %c0_246] : memref<256x128xf32, #tpu.memory_space<vmem>>, vector<8x128xf32>
    %cst_247 = arith.constant dense<0.000000e+00> : vector<8x128xf32>
    %1166 = tpu.matmul %1142, %11, %cst_247 {dimension_numbers = #tpu.dot_dimension_numbers<[1], [0], [0], [1], [0, 0, 1, 1], [], []>} : vector<8x32xf32>, vector<32x128xf32>, vector<8x128xf32> -> vector<8x128xf32>
    %1167 = arith.addf %1165, %1166 : vector<8x128xf32>
    %1168 = vector.extract_strided_slice %1167 {offsets = [0, 0], sizes = [8, 96], strides = [1, 1]} : vector<8x128xf32> to vector<8x96xf32>
    %1169 = arith.negf %1168 : vector<8x96xf32>
    %1170 = math.exp %1169 : vector<8x96xf32>
    %cst_248 = arith.constant 1.000000e+00 : f32
    %1171 = vector.broadcast %cst_248 : f32 to vector<8x96xf32>
    %1172 = arith.addf %1171, %1170 : vector<8x96xf32>
    %1173 = arith.divf %1171, %1172 : vector<8x96xf32>
    %1174 = vector.extract_strided_slice %1173 {offsets = [0, 0], sizes = [8, 32], strides = [1, 1]} : vector<8x96xf32> to vector<8x32xf32>
    %1175 = vector.extract_strided_slice %1173 {offsets = [0, 32], sizes = [8, 32], strides = [1, 1]} : vector<8x96xf32> to vector<8x32xf32>
    %1176 = vector.extract_strided_slice %1173 {offsets = [0, 64], sizes = [8, 32], strides = [1, 1]} : vector<8x96xf32> to vector<8x32xf32>
    %1177 = vector.extract_strided_slice %1167 {offsets = [0, 96], sizes = [8, 32], strides = [1, 1]} : vector<8x128xf32> to vector<8x32xf32>
    %1178 = math.tanh %1177 : vector<8x32xf32>
    %1179 = arith.mulf %1175, %1140 : vector<8x32xf32>
    %1180 = arith.mulf %1174, %1178 : vector<8x32xf32>
    %1181 = arith.addf %1179, %1180 : vector<8x32xf32>
    %1182 = math.tanh %1181 : vector<8x32xf32>
    %1183 = arith.mulf %1176, %1182 : vector<8x32xf32>
    %cst_249 = arith.constant dense<0.000000e+00> : vector<8x128xf32>
    %1184 = tpu.matmul %1183, %12, %cst_249 {dimension_numbers = #tpu.dot_dimension_numbers<[1], [0], [0], [1], [0, 0, 1, 1], [], []>} : vector<8x32xf32>, vector<32x128xf32>, vector<8x128xf32> -> vector<8x128xf32>
    %1185 = arith.addf %1184, %1164 : vector<8x128xf32>
    %1186 = vector.broadcast %14 : vector<1x128xf32> to vector<8x128xf32>
    %1187 = arith.addf %1185, %1186 : vector<8x128xf32>
    %1188 = vector.extract_strided_slice %1187 {offsets = [0, 0], sizes = [8, 96], strides = [1, 1]} : vector<8x128xf32> to vector<8x96xf32>
    %1189 = arith.negf %1188 : vector<8x96xf32>
    %1190 = math.exp %1189 : vector<8x96xf32>
    %cst_250 = arith.constant 1.000000e+00 : f32
    %1191 = vector.broadcast %cst_250 : f32 to vector<8x96xf32>
    %1192 = arith.addf %1191, %1190 : vector<8x96xf32>
    %1193 = arith.divf %1191, %1192 : vector<8x96xf32>
    %1194 = vector.extract_strided_slice %1193 {offsets = [0, 0], sizes = [8, 32], strides = [1, 1]} : vector<8x96xf32> to vector<8x32xf32>
    %1195 = vector.extract_strided_slice %1193 {offsets = [0, 32], sizes = [8, 32], strides = [1, 1]} : vector<8x96xf32> to vector<8x32xf32>
    %1196 = vector.extract_strided_slice %1193 {offsets = [0, 64], sizes = [8, 32], strides = [1, 1]} : vector<8x96xf32> to vector<8x32xf32>
    %1197 = vector.extract_strided_slice %1187 {offsets = [0, 96], sizes = [8, 32], strides = [1, 1]} : vector<8x128xf32> to vector<8x32xf32>
    %1198 = math.tanh %1197 : vector<8x32xf32>
    %1199 = arith.mulf %1195, %1160 : vector<8x32xf32>
    %1200 = arith.mulf %1194, %1198 : vector<8x32xf32>
    %1201 = arith.addf %1199, %1200 : vector<8x32xf32>
    %1202 = math.tanh %1201 : vector<8x32xf32>
    %1203 = arith.mulf %1196, %1202 : vector<8x32xf32>
    %c240 = arith.constant 240 : index
    %c0_251 = arith.constant 0 : index
    %1204 = vector.load %arg26[%c240, %c0_251] : memref<288x32xf32, #tpu.memory_space<vmem>>, vector<8x32xf32>
    tpu.vector_store %arg26[%c240, %c0_251], %1203 {strides = array<i32>} : memref<288x32xf32, #tpu.memory_space<vmem>>, vector<8x32xf32>,
    %cst_252 = arith.constant dense<0.000000e+00> : vector<8x128xf32>
    %1205 = tpu.matmul %1203, %13, %cst_252 {dimension_numbers = #tpu.dot_dimension_numbers<[1], [0], [0], [1], [0, 0, 1, 1], [], []>} : vector<8x32xf32>, vector<32x128xf32>, vector<8x128xf32> -> vector<8x128xf32>
    %c232_253 = arith.constant 232 : index
    %c0_254 = arith.constant 0 : index
    %1206 = vector.load %arg27[%c232_253, %c0_254] : memref<256x128xf32, #tpu.memory_space<vmem>>, vector<8x128xf32>
    %cst_255 = arith.constant dense<0.000000e+00> : vector<8x128xf32>
    %1207 = tpu.matmul %1183, %11, %cst_255 {dimension_numbers = #tpu.dot_dimension_numbers<[1], [0], [0], [1], [0, 0, 1, 1], [], []>} : vector<8x32xf32>, vector<32x128xf32>, vector<8x128xf32> -> vector<8x128xf32>
    %1208 = arith.addf %1206, %1207 : vector<8x128xf32>
    %1209 = vector.extract_strided_slice %1208 {offsets = [0, 0], sizes = [8, 96], strides = [1, 1]} : vector<8x128xf32> to vector<8x96xf32>
    %1210 = arith.negf %1209 : vector<8x96xf32>
    %1211 = math.exp %1210 : vector<8x96xf32>
    %cst_256 = arith.constant 1.000000e+00 : f32
    %1212 = vector.broadcast %cst_256 : f32 to vector<8x96xf32>
    %1213 = arith.addf %1212, %1211 : vector<8x96xf32>
    %1214 = arith.divf %1212, %1213 : vector<8x96xf32>
    %1215 = vector.extract_strided_slice %1214 {offsets = [0, 0], sizes = [8, 32], strides = [1, 1]} : vector<8x96xf32> to vector<8x32xf32>
    %1216 = vector.extract_strided_slice %1214 {offsets = [0, 32], sizes = [8, 32], strides = [1, 1]} : vector<8x96xf32> to vector<8x32xf32>
    %1217 = vector.extract_strided_slice %1214 {offsets = [0, 64], sizes = [8, 32], strides = [1, 1]} : vector<8x96xf32> to vector<8x32xf32>
    %1218 = vector.extract_strided_slice %1208 {offsets = [0, 96], sizes = [8, 32], strides = [1, 1]} : vector<8x128xf32> to vector<8x32xf32>
    %1219 = math.tanh %1218 : vector<8x32xf32>
    %1220 = arith.mulf %1216, %1181 : vector<8x32xf32>
    %1221 = arith.mulf %1215, %1219 : vector<8x32xf32>
    %1222 = arith.addf %1220, %1221 : vector<8x32xf32>
    %1223 = math.tanh %1222 : vector<8x32xf32>
    %1224 = arith.mulf %1217, %1223 : vector<8x32xf32>
    %cst_257 = arith.constant dense<0.000000e+00> : vector<8x128xf32>
    %1225 = tpu.matmul %1224, %12, %cst_257 {dimension_numbers = #tpu.dot_dimension_numbers<[1], [0], [0], [1], [0, 0, 1, 1], [], []>} : vector<8x32xf32>, vector<32x128xf32>, vector<8x128xf32> -> vector<8x128xf32>
    %1226 = arith.addf %1225, %1205 : vector<8x128xf32>
    %1227 = vector.broadcast %14 : vector<1x128xf32> to vector<8x128xf32>
    %1228 = arith.addf %1226, %1227 : vector<8x128xf32>
    %1229 = vector.extract_strided_slice %1228 {offsets = [0, 0], sizes = [8, 96], strides = [1, 1]} : vector<8x128xf32> to vector<8x96xf32>
    %1230 = arith.negf %1229 : vector<8x96xf32>
    %1231 = math.exp %1230 : vector<8x96xf32>
    %cst_258 = arith.constant 1.000000e+00 : f32
    %1232 = vector.broadcast %cst_258 : f32 to vector<8x96xf32>
    %1233 = arith.addf %1232, %1231 : vector<8x96xf32>
    %1234 = arith.divf %1232, %1233 : vector<8x96xf32>
    %1235 = vector.extract_strided_slice %1234 {offsets = [0, 0], sizes = [8, 32], strides = [1, 1]} : vector<8x96xf32> to vector<8x32xf32>
    %1236 = vector.extract_strided_slice %1234 {offsets = [0, 32], sizes = [8, 32], strides = [1, 1]} : vector<8x96xf32> to vector<8x32xf32>
    %1237 = vector.extract_strided_slice %1234 {offsets = [0, 64], sizes = [8, 32], strides = [1, 1]} : vector<8x96xf32> to vector<8x32xf32>
    %1238 = vector.extract_strided_slice %1228 {offsets = [0, 96], sizes = [8, 32], strides = [1, 1]} : vector<8x128xf32> to vector<8x32xf32>
    %1239 = math.tanh %1238 : vector<8x32xf32>
    %1240 = arith.mulf %1236, %1201 : vector<8x32xf32>
    %1241 = arith.mulf %1235, %1239 : vector<8x32xf32>
    %1242 = arith.addf %1240, %1241 : vector<8x32xf32>
    %1243 = math.tanh %1242 : vector<8x32xf32>
    %1244 = arith.mulf %1237, %1243 : vector<8x32xf32>
    %c248 = arith.constant 248 : index
    %c0_259 = arith.constant 0 : index
    %1245 = vector.load %arg26[%c248, %c0_259] : memref<288x32xf32, #tpu.memory_space<vmem>>, vector<8x32xf32>
    tpu.vector_store %arg26[%c248, %c0_259], %1244 {strides = array<i32>} : memref<288x32xf32, #tpu.memory_space<vmem>>, vector<8x32xf32>,
    %cst_260 = arith.constant dense<0.000000e+00> : vector<8x128xf32>
    %1246 = tpu.matmul %1244, %13, %cst_260 {dimension_numbers = #tpu.dot_dimension_numbers<[1], [0], [0], [1], [0, 0, 1, 1], [], []>} : vector<8x32xf32>, vector<32x128xf32>, vector<8x128xf32> -> vector<8x128xf32>
    %c240_261 = arith.constant 240 : index
    %c0_262 = arith.constant 0 : index
    %1247 = vector.load %arg27[%c240_261, %c0_262] : memref<256x128xf32, #tpu.memory_space<vmem>>, vector<8x128xf32>
    %cst_263 = arith.constant dense<0.000000e+00> : vector<8x128xf32>
    %1248 = tpu.matmul %1224, %11, %cst_263 {dimension_numbers = #tpu.dot_dimension_numbers<[1], [0], [0], [1], [0, 0, 1, 1], [], []>} : vector<8x32xf32>, vector<32x128xf32>, vector<8x128xf32> -> vector<8x128xf32>
    %1249 = arith.addf %1247, %1248 : vector<8x128xf32>
    %1250 = vector.extract_strided_slice %1249 {offsets = [0, 0], sizes = [8, 96], strides = [1, 1]} : vector<8x128xf32> to vector<8x96xf32>
    %1251 = arith.negf %1250 : vector<8x96xf32>
    %1252 = math.exp %1251 : vector<8x96xf32>
    %cst_264 = arith.constant 1.000000e+00 : f32
    %1253 = vector.broadcast %cst_264 : f32 to vector<8x96xf32>
    %1254 = arith.addf %1253, %1252 : vector<8x96xf32>
    %1255 = arith.divf %1253, %1254 : vector<8x96xf32>
    %1256 = vector.extract_strided_slice %1255 {offsets = [0, 0], sizes = [8, 32], strides = [1, 1]} : vector<8x96xf32> to vector<8x32xf32>
    %1257 = vector.extract_strided_slice %1255 {offsets = [0, 32], sizes = [8, 32], strides = [1, 1]} : vector<8x96xf32> to vector<8x32xf32>
    %1258 = vector.extract_strided_slice %1255 {offsets = [0, 64], sizes = [8, 32], strides = [1, 1]} : vector<8x96xf32> to vector<8x32xf32>
    %1259 = vector.extract_strided_slice %1249 {offsets = [0, 96], sizes = [8, 32], strides = [1, 1]} : vector<8x128xf32> to vector<8x32xf32>
    %1260 = math.tanh %1259 : vector<8x32xf32>
    %1261 = arith.mulf %1257, %1222 : vector<8x32xf32>
    %1262 = arith.mulf %1256, %1260 : vector<8x32xf32>
    %1263 = arith.addf %1261, %1262 : vector<8x32xf32>
    %1264 = math.tanh %1263 : vector<8x32xf32>
    %1265 = arith.mulf %1258, %1264 : vector<8x32xf32>
    %cst_265 = arith.constant dense<0.000000e+00> : vector<8x128xf32>
    %1266 = tpu.matmul %1265, %12, %cst_265 {dimension_numbers = #tpu.dot_dimension_numbers<[1], [0], [0], [1], [0, 0, 1, 1], [], []>} : vector<8x32xf32>, vector<32x128xf32>, vector<8x128xf32> -> vector<8x128xf32>
    %1267 = arith.addf %1266, %1246 : vector<8x128xf32>
    %1268 = vector.broadcast %14 : vector<1x128xf32> to vector<8x128xf32>
    %1269 = arith.addf %1267, %1268 : vector<8x128xf32>
    %1270 = vector.extract_strided_slice %1269 {offsets = [0, 0], sizes = [8, 96], strides = [1, 1]} : vector<8x128xf32> to vector<8x96xf32>
    %1271 = arith.negf %1270 : vector<8x96xf32>
    %1272 = math.exp %1271 : vector<8x96xf32>
    %cst_266 = arith.constant 1.000000e+00 : f32
    %1273 = vector.broadcast %cst_266 : f32 to vector<8x96xf32>
    %1274 = arith.addf %1273, %1272 : vector<8x96xf32>
    %1275 = arith.divf %1273, %1274 : vector<8x96xf32>
    %1276 = vector.extract_strided_slice %1275 {offsets = [0, 0], sizes = [8, 32], strides = [1, 1]} : vector<8x96xf32> to vector<8x32xf32>
    %1277 = vector.extract_strided_slice %1275 {offsets = [0, 32], sizes = [8, 32], strides = [1, 1]} : vector<8x96xf32> to vector<8x32xf32>
    %1278 = vector.extract_strided_slice %1275 {offsets = [0, 64], sizes = [8, 32], strides = [1, 1]} : vector<8x96xf32> to vector<8x32xf32>
    %1279 = vector.extract_strided_slice %1269 {offsets = [0, 96], sizes = [8, 32], strides = [1, 1]} : vector<8x128xf32> to vector<8x32xf32>
    %1280 = math.tanh %1279 : vector<8x32xf32>
    %1281 = arith.mulf %1277, %1242 : vector<8x32xf32>
    %1282 = arith.mulf %1276, %1280 : vector<8x32xf32>
    %1283 = arith.addf %1281, %1282 : vector<8x32xf32>
    %1284 = math.tanh %1283 : vector<8x32xf32>
    %1285 = arith.mulf %1278, %1284 : vector<8x32xf32>
    %c256 = arith.constant 256 : index
    %c0_267 = arith.constant 0 : index
    %1286 = vector.load %arg26[%c256, %c0_267] : memref<288x32xf32, #tpu.memory_space<vmem>>, vector<8x32xf32>
    tpu.vector_store %arg26[%c256, %c0_267], %1285 {strides = array<i32>} : memref<288x32xf32, #tpu.memory_space<vmem>>, vector<8x32xf32>,
    %cst_268 = arith.constant dense<0.000000e+00> : vector<8x128xf32>
    %1287 = tpu.matmul %1285, %13, %cst_268 {dimension_numbers = #tpu.dot_dimension_numbers<[1], [0], [0], [1], [0, 0, 1, 1], [], []>} : vector<8x32xf32>, vector<32x128xf32>, vector<8x128xf32> -> vector<8x128xf32>
    %c248_269 = arith.constant 248 : index
    %c0_270 = arith.constant 0 : index
    %1288 = vector.load %arg27[%c248_269, %c0_270] : memref<256x128xf32, #tpu.memory_space<vmem>>, vector<8x128xf32>
    %cst_271 = arith.constant dense<0.000000e+00> : vector<8x128xf32>
    %1289 = tpu.matmul %1265, %11, %cst_271 {dimension_numbers = #tpu.dot_dimension_numbers<[1], [0], [0], [1], [0, 0, 1, 1], [], []>} : vector<8x32xf32>, vector<32x128xf32>, vector<8x128xf32> -> vector<8x128xf32>
    %1290 = arith.addf %1288, %1289 : vector<8x128xf32>
    %1291 = vector.extract_strided_slice %1290 {offsets = [0, 0], sizes = [8, 96], strides = [1, 1]} : vector<8x128xf32> to vector<8x96xf32>
    %1292 = arith.negf %1291 : vector<8x96xf32>
    %1293 = math.exp %1292 : vector<8x96xf32>
    %cst_272 = arith.constant 1.000000e+00 : f32
    %1294 = vector.broadcast %cst_272 : f32 to vector<8x96xf32>
    %1295 = arith.addf %1294, %1293 : vector<8x96xf32>
    %1296 = arith.divf %1294, %1295 : vector<8x96xf32>
    %1297 = vector.extract_strided_slice %1296 {offsets = [0, 0], sizes = [8, 32], strides = [1, 1]} : vector<8x96xf32> to vector<8x32xf32>
    %1298 = vector.extract_strided_slice %1296 {offsets = [0, 32], sizes = [8, 32], strides = [1, 1]} : vector<8x96xf32> to vector<8x32xf32>
    %1299 = vector.extract_strided_slice %1296 {offsets = [0, 64], sizes = [8, 32], strides = [1, 1]} : vector<8x96xf32> to vector<8x32xf32>
    %1300 = vector.extract_strided_slice %1290 {offsets = [0, 96], sizes = [8, 32], strides = [1, 1]} : vector<8x128xf32> to vector<8x32xf32>
    %1301 = math.tanh %1300 : vector<8x32xf32>
    %1302 = arith.mulf %1298, %1263 : vector<8x32xf32>
    %1303 = arith.mulf %1297, %1301 : vector<8x32xf32>
    %1304 = arith.addf %1302, %1303 : vector<8x32xf32>
    %1305 = math.tanh %1304 : vector<8x32xf32>
    %1306 = arith.mulf %1299, %1305 : vector<8x32xf32>
    %cst_273 = arith.constant dense<0.000000e+00> : vector<8x128xf32>
    %1307 = tpu.matmul %1306, %12, %cst_273 {dimension_numbers = #tpu.dot_dimension_numbers<[1], [0], [0], [1], [0, 0, 1, 1], [], []>} : vector<8x32xf32>, vector<32x128xf32>, vector<8x128xf32> -> vector<8x128xf32>
    %1308 = arith.addf %1307, %1287 : vector<8x128xf32>
    %1309 = vector.broadcast %14 : vector<1x128xf32> to vector<8x128xf32>
    %1310 = arith.addf %1308, %1309 : vector<8x128xf32>
    %1311 = vector.extract_strided_slice %1310 {offsets = [0, 0], sizes = [8, 96], strides = [1, 1]} : vector<8x128xf32> to vector<8x96xf32>
    %1312 = arith.negf %1311 : vector<8x96xf32>
    %1313 = math.exp %1312 : vector<8x96xf32>
    %cst_274 = arith.constant 1.000000e+00 : f32
    %1314 = vector.broadcast %cst_274 : f32 to vector<8x96xf32>
    %1315 = arith.addf %1314, %1313 : vector<8x96xf32>
    %1316 = arith.divf %1314, %1315 : vector<8x96xf32>
    %1317 = vector.extract_strided_slice %1316 {offsets = [0, 0], sizes = [8, 32], strides = [1, 1]} : vector<8x96xf32> to vector<8x32xf32>
    %1318 = vector.extract_strided_slice %1316 {offsets = [0, 32], sizes = [8, 32], strides = [1, 1]} : vector<8x96xf32> to vector<8x32xf32>
    %1319 = vector.extract_strided_slice %1316 {offsets = [0, 64], sizes = [8, 32], strides = [1, 1]} : vector<8x96xf32> to vector<8x32xf32>
    %1320 = vector.extract_strided_slice %1310 {offsets = [0, 96], sizes = [8, 32], strides = [1, 1]} : vector<8x128xf32> to vector<8x32xf32>
    %1321 = math.tanh %1320 : vector<8x32xf32>
    %1322 = arith.mulf %1318, %1283 : vector<8x32xf32>
    %1323 = arith.mulf %1317, %1321 : vector<8x32xf32>
    %1324 = arith.addf %1322, %1323 : vector<8x32xf32>
    %1325 = math.tanh %1324 : vector<8x32xf32>
    %1326 = arith.mulf %1319, %1325 : vector<8x32xf32>
    %c264 = arith.constant 264 : index
    %c0_275 = arith.constant 0 : index
    %1327 = vector.load %arg26[%c264, %c0_275] : memref<288x32xf32, #tpu.memory_space<vmem>>, vector<8x32xf32>
    tpu.vector_store %arg26[%c264, %c0_275], %1326 {strides = array<i32>} : memref<288x32xf32, #tpu.memory_space<vmem>>, vector<8x32xf32>,
    %c0_276 = arith.constant 0 : index
    %c0_277 = arith.constant 0 : index
    %1328 = vector.load %arg24[%c0_276, %c0_277] : memref<8x32xf32, #tpu.memory_space<vmem>>, vector<8x32xf32>
    tpu.vector_store %arg24[%c0_276, %c0_277], %1326 {strides = array<i32>} : memref<8x32xf32, #tpu.memory_space<vmem>>, vector<8x32xf32>,
    %c0_278 = arith.constant 0 : index
    %c0_279 = arith.constant 0 : index
    %c0_280 = arith.constant 0 : index
    %1329 = vector.load %arg8[%c0_278, %c0_279, %c0_280] : memref<3x32x64xf32, #tpu.memory_space<vmem>>, vector<3x32x64xf32>
    %c0_281 = arith.constant 0 : index
    %c0_282 = arith.constant 0 : index
    %c0_283 = arith.constant 0 : index
    %1330 = vector.load %arg10[%c0_281, %c0_282, %c0_283] : memref<3x64x32xf32, #tpu.memory_space<vmem>>, vector<3x64x32xf32>
    %c0_284 = arith.constant 0 : index
    %c0_285 = arith.constant 0 : index
    %1331 = vector.load %arg26[%c0_284, %c0_285] : memref<288x32xf32, #tpu.memory_space<vmem>>, vector<272x32xf32>
    %1332 = vector.extract_strided_slice %1329 {offsets = [0, 0, 0], sizes = [1, 32, 64], strides = [1, 1, 1]} : vector<3x32x64xf32> to vector<1x32x64xf32>
    %1333 = vector.shape_cast %1332 : vector<1x32x64xf32> to vector<32x64xf32>
    %cst_286 = arith.constant dense<0.000000e+00> : vector<272x64xf32>
    %1334 = tpu.matmul %1331, %1333, %cst_286 {dimension_numbers = #tpu.dot_dimension_numbers<[1], [0], [0], [1], [0, 0, 1, 1], [], []>} : vector<272x32xf32>, vector<32x64xf32>, vector<272x64xf32> -> vector<272x64xf32>
    %c8_287 = arith.constant 8 : index
    %c0_288 = arith.constant 0 : index
    %1335 = vector.load %arg26[%c8_287, %c0_288] : memref<288x32xf32, #tpu.memory_space<vmem>>, vector<272x32xf32>
    %1336 = vector.extract_strided_slice %1329 {offsets = [1, 0, 0], sizes = [1, 32, 64], strides = [1, 1, 1]} : vector<3x32x64xf32> to vector<1x32x64xf32>
    %1337 = vector.shape_cast %1336 : vector<1x32x64xf32> to vector<32x64xf32>
    %cst_289 = arith.constant dense<0.000000e+00> : vector<272x64xf32>
    %1338 = tpu.matmul %1335, %1337, %cst_289 {dimension_numbers = #tpu.dot_dimension_numbers<[1], [0], [0], [1], [0, 0, 1, 1], [], []>} : vector<272x32xf32>, vector<32x64xf32>, vector<272x64xf32> -> vector<272x64xf32>
    %1339 = arith.addf %1334, %1338 : vector<272x64xf32>
    %c16_290 = arith.constant 16 : index
    %c0_291 = arith.constant 0 : index
    %1340 = vector.load %arg26[%c16_290, %c0_291] : memref<288x32xf32, #tpu.memory_space<vmem>>, vector<272x32xf32>
    %1341 = vector.extract_strided_slice %1329 {offsets = [2, 0, 0], sizes = [1, 32, 64], strides = [1, 1, 1]} : vector<3x32x64xf32> to vector<1x32x64xf32>
    %1342 = vector.shape_cast %1341 : vector<1x32x64xf32> to vector<32x64xf32>
    %cst_292 = arith.constant dense<0.000000e+00> : vector<272x64xf32>
    %1343 = tpu.matmul %1340, %1342, %cst_292 {dimension_numbers = #tpu.dot_dimension_numbers<[1], [0], [0], [1], [0, 0, 1, 1], [], []>} : vector<272x32xf32>, vector<32x64xf32>, vector<272x64xf32> -> vector<272x64xf32>
    %1344 = arith.addf %1339, %1343 : vector<272x64xf32>
    %c0_293 = arith.constant 0 : index
    %c0_294 = arith.constant 0 : index
    %1345 = vector.load %arg9[%c0_293, %c0_294] : memref<1x64xf32, #tpu.memory_space<vmem>>, vector<1x64xf32>
    %1346 = vector.broadcast %1345 : vector<1x64xf32> to vector<272x64xf32>
    %1347 = arith.addf %1344, %1346 : vector<272x64xf32>
    %cst_295 = arith.constant 0.000000e+00 : f32
    %1348 = vector.broadcast %cst_295 : f32 to vector<272x64xf32>
    %1349 = arith.maximumf %1347, %1348 : vector<272x64xf32>
    %c0_296 = arith.constant 0 : index
    %c0_297 = arith.constant 0 : index
    %1350 = vector.load %arg14[%c0_296, %c0_297] : memref<272x1xf32, #tpu.memory_space<vmem>>, vector<272x1xf32>
    %1351 = vector.broadcast %1350 : vector<272x1xf32> to vector<272x64xf32>
    %1352 = arith.mulf %1349, %1351 : vector<272x64xf32>
    %1353 = vector.extract_strided_slice %1352 {offsets = [0, 0], sizes = [256, 64], strides = [1, 1]} : vector<272x64xf32> to vector<256x64xf32>
    %1354 = vector.extract_strided_slice %1330 {offsets = [0, 0, 0], sizes = [1, 64, 32], strides = [1, 1, 1]} : vector<3x64x32xf32> to vector<1x64x32xf32>
    %1355 = vector.shape_cast %1354 : vector<1x64x32xf32> to vector<64x32xf32>
    %cst_298 = arith.constant dense<0.000000e+00> : vector<256x32xf32>
    %1356 = tpu.matmul %1353, %1355, %cst_298 {dimension_numbers = #tpu.dot_dimension_numbers<[1], [0], [0], [1], [0, 0, 1, 1], [], []>} : vector<256x64xf32>, vector<64x32xf32>, vector<256x32xf32> -> vector<256x32xf32>
    %1357 = vector.extract_strided_slice %1352 {offsets = [8, 0], sizes = [256, 64], strides = [1, 1]} : vector<272x64xf32> to vector<256x64xf32>
    %1358 = vector.extract_strided_slice %1330 {offsets = [1, 0, 0], sizes = [1, 64, 32], strides = [1, 1, 1]} : vector<3x64x32xf32> to vector<1x64x32xf32>
    %1359 = vector.shape_cast %1358 : vector<1x64x32xf32> to vector<64x32xf32>
    %cst_299 = arith.constant dense<0.000000e+00> : vector<256x32xf32>
    %1360 = tpu.matmul %1357, %1359, %cst_299 {dimension_numbers = #tpu.dot_dimension_numbers<[1], [0], [0], [1], [0, 0, 1, 1], [], []>} : vector<256x64xf32>, vector<64x32xf32>, vector<256x32xf32> -> vector<256x32xf32>
    %1361 = arith.addf %1356, %1360 : vector<256x32xf32>
    %1362 = vector.extract_strided_slice %1352 {offsets = [16, 0], sizes = [256, 64], strides = [1, 1]} : vector<272x64xf32> to vector<256x64xf32>
    %1363 = vector.extract_strided_slice %1330 {offsets = [2, 0, 0], sizes = [1, 64, 32], strides = [1, 1, 1]} : vector<3x64x32xf32> to vector<1x64x32xf32>
    %1364 = vector.shape_cast %1363 : vector<1x64x32xf32> to vector<64x32xf32>
    %cst_300 = arith.constant dense<0.000000e+00> : vector<256x32xf32>
    %1365 = tpu.matmul %1362, %1364, %cst_300 {dimension_numbers = #tpu.dot_dimension_numbers<[1], [0], [0], [1], [0, 0, 1, 1], [], []>} : vector<256x64xf32>, vector<64x32xf32>, vector<256x32xf32> -> vector<256x32xf32>
    %1366 = arith.addf %1361, %1365 : vector<256x32xf32>
    %c0_301 = arith.constant 0 : index
    %c0_302 = arith.constant 0 : index
    %1367 = vector.load %arg11[%c0_301, %c0_302] : memref<1x32xf32, #tpu.memory_space<vmem>>, vector<1x32xf32>
    %1368 = vector.broadcast %1367 : vector<1x32xf32> to vector<256x32xf32>
    %1369 = arith.addf %1366, %1368 : vector<256x32xf32>
    %c0_303 = arith.constant 0 : index
    %c0_304 = arith.constant 0 : index
    %1370 = vector.load %arg15[%c0_303, %c0_304] : memref<8x256xf32, #tpu.memory_space<vmem>>, vector<8x256xf32>
    %c0_305 = arith.constant 0 : index
    %c0_306 = arith.constant 0 : index
    %1371 = vector.load %arg16[%c0_305, %c0_306] : memref<256x8xf32, #tpu.memory_space<vmem>>, vector<256x8xf32>
    %cst_307 = arith.constant dense<0.000000e+00> : vector<8x32xf32>
    %1372 = tpu.matmul %1370, %1369, %cst_307 {dimension_numbers = #tpu.dot_dimension_numbers<[1], [0], [0], [1], [0, 0, 1, 1], [], []>} : vector<8x256xf32>, vector<256x32xf32>, vector<8x32xf32> -> vector<8x32xf32>
    %cst_308 = arith.constant dense<0.000000e+00> : vector<256x32xf32>
    %1373 = tpu.matmul %1371, %1372, %cst_308 {dimension_numbers = #tpu.dot_dimension_numbers<[1], [0], [0], [1], [0, 0, 1, 1], [], []>} : vector<256x8xf32>, vector<8x32xf32>, vector<256x32xf32> -> vector<256x32xf32>
    %1374 = arith.subf %1369, %1373 : vector<256x32xf32>
    %1375 = arith.mulf %1374, %1374 : vector<256x32xf32>
    %cst_309 = arith.constant dense<0.000000e+00> : vector<8x32xf32>
    %1376 = tpu.matmul %1370, %1375, %cst_309 {dimension_numbers = #tpu.dot_dimension_numbers<[1], [0], [0], [1], [0, 0, 1, 1], [], []>} : vector<8x256xf32>, vector<256x32xf32>, vector<8x32xf32> -> vector<8x32xf32>
    %cst_310 = arith.constant 9.99999974E-6 : f32
    %1377 = vector.broadcast %cst_310 : f32 to vector<8x32xf32>
    %1378 = arith.addf %1376, %1377 : vector<8x32xf32>
    %1379 = math.rsqrt %1378 : vector<8x32xf32>
    %cst_311 = arith.constant dense<0.000000e+00> : vector<256x32xf32>
    %1380 = tpu.matmul %1371, %1379, %cst_311 {dimension_numbers = #tpu.dot_dimension_numbers<[1], [0], [0], [1], [0, 0, 1, 1], [], []>} : vector<256x8xf32>, vector<8x32xf32>, vector<256x32xf32> -> vector<256x32xf32>
    %1381 = arith.mulf %1374, %1380 : vector<256x32xf32>
    %c0_312 = arith.constant 0 : index
    %c0_313 = arith.constant 0 : index
    %1382 = vector.load %arg12[%c0_312, %c0_313] : memref<256x1xf32, #tpu.memory_space<vmem>>, vector<256x1xf32>
    %1383 = vector.broadcast %1382 : vector<256x1xf32> to vector<256x32xf32>
    %1384 = arith.mulf %1381, %1383 : vector<256x32xf32>
    %c0_314 = arith.constant 0 : index
    %c0_315 = arith.constant 0 : index
    %1385 = vector.load %arg13[%c0_314, %c0_315] : memref<256x1xf32, #tpu.memory_space<vmem>>, vector<256x1xf32>
    %1386 = vector.broadcast %1385 : vector<256x1xf32> to vector<256x32xf32>
    %1387 = arith.addf %1384, %1386 : vector<256x32xf32>
    %cst_316 = arith.constant dense<0.000000e+00> : vector<8x32xf32>
    %1388 = tpu.matmul %1370, %1387, %cst_316 {dimension_numbers = #tpu.dot_dimension_numbers<[1], [0], [0], [1], [0, 0, 1, 1], [], []>} : vector<8x256xf32>, vector<256x32xf32>, vector<8x32xf32> -> vector<8x32xf32>
    %c0_317 = arith.constant 0 : index
    %c0_318 = arith.constant 0 : index
    %1389 = vector.load %arg18[%c0_317, %c0_318] : memref<32x32xf32, #tpu.memory_space<vmem>>, vector<32x32xf32>
    %cst_319 = arith.constant dense<0.000000e+00> : vector<8x32xf32>
    %1390 = tpu.matmul %1326, %1389, %cst_319 {dimension_numbers = #tpu.dot_dimension_numbers<[1], [0], [0], [1], [0, 0, 1, 1], [], []>} : vector<8x32xf32>, vector<32x32xf32>, vector<8x32xf32> -> vector<8x32xf32>
    %c0_320 = arith.constant 0 : index
    %c0_321 = arith.constant 0 : index
    %1391 = vector.load %arg19[%c0_320, %c0_321] : memref<32x32xf32, #tpu.memory_space<vmem>>, vector<32x32xf32>
    %cst_322 = arith.constant dense<0.000000e+00> : vector<8x32xf32>
    %1392 = tpu.matmul %1388, %1391, %cst_322 {dimension_numbers = #tpu.dot_dimension_numbers<[1], [0], [0], [1], [0, 0, 1, 1], [], []>} : vector<8x32xf32>, vector<32x32xf32>, vector<8x32xf32> -> vector<8x32xf32>
    %1393 = arith.addf %1390, %1392 : vector<8x32xf32>
    %c0_323 = arith.constant 0 : index
    %c0_324 = arith.constant 0 : index
    %1394 = vector.load %arg21[%c0_323, %c0_324] : memref<1x32xf32, #tpu.memory_space<vmem>>, vector<1x32xf32>
    %1395 = vector.broadcast %1394 : vector<1x32xf32> to vector<8x32xf32>
    %1396 = arith.addf %1393, %1395 : vector<8x32xf32>
    %c0_325 = arith.constant 0 : index
    %c0_326 = arith.constant 0 : index
    %1397 = vector.load %arg17[%c0_325, %c0_326] : memref<32x8xf32, #tpu.memory_space<vmem>>, vector<32x8xf32>
    %cst_327 = arith.constant dense<0.000000e+00> : vector<32x32xf32>
    %1398 = tpu.matmul %1397, %1396, %cst_327 {dimension_numbers = #tpu.dot_dimension_numbers<[1], [0], [0], [1], [0, 0, 1, 1], [], []>} : vector<32x8xf32>, vector<8x32xf32>, vector<32x32xf32> -> vector<32x32xf32>
    %c0_328 = arith.constant 0 : index
    %c0_329 = arith.constant 0 : index
    %1399 = vector.load %arg1[%c0_328, %c0_329] : memref<32x32xf32, #tpu.memory_space<vmem>>, vector<32x32xf32>
    %c0_330 = arith.constant 0 : index
    %c0_331 = arith.constant 0 : index
    %1400 = vector.load %arg20[%c0_330, %c0_331] : memref<32x32xf32, #tpu.memory_space<vmem>>, vector<32x32xf32>
    %cst_332 = arith.constant dense<0.000000e+00> : vector<32x32xf32>
    %1401 = tpu.matmul %1399, %1400, %cst_332 {dimension_numbers = #tpu.dot_dimension_numbers<[1], [0], [0], [1], [0, 0, 1, 1], [], []>} : vector<32x32xf32>, vector<32x32xf32>, vector<32x32xf32> -> vector<32x32xf32>
    %1402 = arith.addf %1398, %1401 : vector<32x32xf32>
    %cst_333 = arith.constant 0.000000e+00 : f32
    %1403 = vector.broadcast %cst_333 : f32 to vector<32x32xf32>
    %1404 = arith.maximumf %1402, %1403 : vector<32x32xf32>
    %c0_334 = arith.constant 0 : index
    %c0_335 = arith.constant 0 : index
    %1405 = vector.load %arg22[%c0_334, %c0_335] : memref<32x128xf32, #tpu.memory_space<vmem>>, vector<32x128xf32>
    %cst_336 = arith.constant dense<0.000000e+00> : vector<32x128xf32>
    %1406 = tpu.matmul %1404, %1405, %cst_336 {dimension_numbers = #tpu.dot_dimension_numbers<[1], [0], [0], [1], [0, 0, 1, 1], [], []>} : vector<32x32xf32>, vector<32x128xf32>, vector<32x128xf32> -> vector<32x128xf32>
    %c0_337 = arith.constant 0 : index
    %c0_338 = arith.constant 0 : index
    %1407 = vector.load %arg23[%c0_337, %c0_338] : memref<1x128xf32, #tpu.memory_space<vmem>>, vector<1x128xf32>
    %1408 = vector.broadcast %1407 : vector<1x128xf32> to vector<32x128xf32>
    %1409 = arith.addf %1406, %1408 : vector<32x128xf32>
    %c0_339 = arith.constant 0 : index
    %c0_340 = arith.constant 0 : index
    %1410 = vector.load %arg25[%c0_339, %c0_340] : memref<32x128xf32, #tpu.memory_space<vmem>>, vector<32x128xf32>
    tpu.vector_store %arg25[%c0_339, %c0_340], %1409 {strides = array<i32>} : memref<32x128xf32, #tpu.memory_space<vmem>>, vector<32x128xf32>,
    return
  }
}

</mosaic_0001>

<bundles_post_ra>
// kernel: temporal_tracking_forward.1
= control target key start
LH: loop header
LB: loop body
LE: loop exit
PB: predicated region body
PF: predicated region fallthrough
CT: control target
= control target key end

     0   :  { %vm79_vm0 = vcmask 261120   ;;  %v21556_v0 = vmov 0.0|0.0   ;;  %vm17787_vm1 = vmmov 0   ;;  %v21554_v4 = vmov 0.0   ;;  %s21518_s6 = inlined_call_operand.vmem [shape: f32[32,128], index: 6, kind: input, shape index: {}]   ;;  %s21519_s2 = inlined_call_operand.vmem [shape: f32[32,128], index: 2, kind: input, shape index: {}]   ;;  %s21520_s0 = inlined_call_operand.vmem [shape: f32[256,32], index: 0, kind: input, shape index: {}]   ;;  %s21521_s3 = inlined_call_operand.vmem [shape: f32[32,128], index: 3, kind: input, shape index: {}]   ;;  %s21522_s4 = inlined_call_operand.vmem [shape: f32[1,128], index: 4, kind: input, shape index: {}]   ;;  %s21523_s5 = inlined_call_operand.vmem [shape: f32[32,128], index: 5, kind: input, shape index: {}]   ;;  %s21524_s7 = inlined_call_operand.vmem [shape: f32[1,128], index: 7, kind: input, shape index: {}]   ;;  %s21525_s8 = inlined_call_operand.vmem [shape: f32[3,32,64], index: 8, kind: input, shape index: {}]   ;;  %s21526_s14 = inlined_call_operand.vmem [shape: f32[272,1], index: 14, kind: input, shape index: {}]   ;;  %s21527_s12 = inlined_call_operand.vmem [shape: f32[256,1], index: 12, kind: input, shape index: {}]   ;;  %s21528_s13 = inlined_call_operand.vmem [shape: f32[256,1], index: 13, kind: input, shape index: {}]   ;;  %s21529_s24 = inlined_call_operand.vmem [shape: f32[8,32], index: 24, kind: output, shape index: {0}]   ;;  %s21530_s10 = inlined_call_operand.vmem [shape: f32[3,64,32], index: 10, kind: input, shape index: {}]   ;;  %s21531_s9 = inlined_call_operand.vmem [shape: f32[1,64], index: 9, kind: input, shape index: {}]   ;;  %s21532_s15 = inlined_call_operand.vmem [shape: f32[8,256], index: 15, kind: input, shape index: {}]   ;;  %s21533_s11 = inlined_call_operand.vmem [shape: f32[1,32], index: 11, kind: input, shape index: {}]   ;;  %s21534_s16 = inlined_call_operand.vmem [shape: f32[256,8], index: 16, kind: input, shape index: {}]   ;;  %s21535_s19 = inlined_call_operand.vmem [shape: f32[32,32], index: 19, kind: input, shape index: {}]   ;;  %s21536_s18 = inlined_call_operand.vmem [shape: f32[32,32], index: 18, kind: input, shape index: {}]   ;;  %s21537_s20 = inlined_call_operand.vmem [shape: f32[32,32], index: 20, kind: input, shape index: {}]   ;;  %s21538_s1 = inlined_call_operand.vmem [shape: f32[32,32], index: 1, kind: input, shape index: {}]   ;;  %s21539_s17 = inlined_call_operand.vmem [shape: f32[32,8], index: 17, kind: input, shape index: {}]   ;;  %s21540_s22 = inlined_call_operand.vmem [shape: f32[32,128], index: 22, kind: input, shape index: {}]   ;;  %s21541_s21 = inlined_call_operand.vmem [shape: f32[1,32], index: 21, kind: input, shape index: {}]   ;;  %s21542_s23 = inlined_call_operand.vmem [shape: f32[1,128], index: 23, kind: input, shape index: {}]   ;;  %s21543_s25 = inlined_call_operand.vmem [shape: f32[32,128], index: 25, kind: output, shape index: {1}]  }
   0x1   :  { %21599 = sst [smem:[#allocation45_spill]] %s21518_s6  ;;  %16348 = vmatprep.subr.bf16.mxu1 %v21556_v0  ;;  %14765 = vmatprep.mubr.msk.f32.mxu1 %vm17787_vm1, %v21554_v4  ;;  %80 = vst.msk [vmem:[#allocation2] sm:$0xff] %vm79_vm0, %v21554_v4  ;;  %81 = vst.msk [vmem:[#allocation2 + $0x8] sm:$0xff] %vm79_vm0, %v21554_v4  ;;  %s17790_s6 = smov 64   ;;  %vm10601_vm2 = vcmask 523264   ;;  %vm11554_vm3 = vcmask 64512  }
   0x2   :  { %21600 = sst [smem:[#allocation46_spill]] %s21519_s2  ;;  %82 = vst.msk [vmem:[#allocation2 + $0x110] sm:$0xff] %vm79_vm0, %v21554_v4  ;;  %83 = vst.msk [vmem:[#allocation2 + $0x118] sm:$0xff] %vm79_vm0, %v21554_v4 }
   0x3   :  { %21601 = sst [smem:[#allocation47_spill]] %s21520_s0  ;;  %s21610_s2 = sld [smem:[#allocation46_spill]] }
   0x4   :  { %21602 = sst [smem:[#allocation48_spill]] %s21521_s3  ;;  %s21611_s26 = sld [smem:[#allocation47_spill]] }
   0x5   :  { %21603 = sst [smem:[#allocation49_spill]] %s21522_s4  ;;  %s21612_s27 = sld [smem:[#allocation48_spill]] }
   0x6   :  { %21604 = sst [smem:[#allocation50_spill]] %s21523_s5  ;;  %s21613_s3 = sld [smem:[#allocation49_spill]] }
   0x7   :  { %21605 = sst [smem:[#allocation51_spill]] %s21524_s7  ;;  %s21609_s7 = sld [smem:[#allocation45_spill]] }
   0x8   :  { %21606 = sst [smem:[#allocation52_spill]] %s21525_s8  ;;  %s21614_s4 = sld [smem:[#allocation50_spill]] }
   0x9   :  { %21607 = sst [smem:[#allocation53_spill]] %s21526_s14  ;;  %v116_v3 = vld [vmem:[%s21610_s2] sm:$0xff]  ;;  %v117_v6 = vld [vmem:[%s21610_s2 + $0x8] sm:$0xff]  ;;  %v118_v10 = vld [vmem:[%s21610_s2 + $0x10] sm:$0xff]  ;;  %s21615_s14 = sld [smem:[#allocation51_spill]] }
   0xa   :  { %21608 = sst [smem:[#allocation54_spill]] %s21527_s12  ;;  %v16340_v9 = vpack.c.bf16 %v117_v6, %v116_v3  ;;  %v119_v11 = vld [vmem:[%s21610_s2 + $0x18] sm:$0xff]  ;;  %v84_v14 = vld [vmem:[%s21611_s26] sm:$0xff]  ;;  %v85_v20 = vld [vmem:[%s21611_s26 + $0x8] sm:$0xff]  ;;  %s21616_s2 = sld [smem:[#allocation52_spill]] }
   0xb   :  { %v16344_v13 = vpack.c.bf16 %v119_v11, %v118_v10  ;;  %v480_v15 = vld [vmem:[%s21612_s27] sm:$0xff]  ;;  %v481_v16 = vld [vmem:[%s21612_s27 + $0x8] sm:$0xff]  ;;  %14709 = vmatprep.mubr.msk.f32.mxu0 %vm79_vm0, %v84_v14  ;;  %v482_v18 = vld [vmem:[%s21612_s27 + $0x10] sm:$0xff] }
   0xc   :  { %16341 = vmatprep.subr.bf16.mxu0 %v16340_v9  ;;  %v17974_v17 = vpack.c.bf16 %v481_v16, %v480_v15  ;;  %v483_v19 = vld [vmem:[%s21612_s27 + $0x18] sm:$0xff]  ;;  %v18005_v25 = vld [vmem:[%s21613_s3] ss:$0 sm:$0xff]  ;;  %s21618_s27 = sld [smem:[#allocation54_spill]] }
   0xd   :  { %v488_v1 = vld [vmem:[%s21609_s7] sm:$0xff]  ;;  %v489_v2 = vld [vmem:[%s21609_s7 + $0x8] sm:$0xff]  ;;  %v490_v7 = vld [vmem:[%s21609_s7 + $0x10] sm:$0xff]  ;;  %16343 = vmatpush3.bf16.msra.mxu0 %v16340_v9  ;;  %v17989_v21 = vpack.c.bf16 %v483_v19, %v482_v18 }
   0xe   :  { %v17942_v5 = vpack.c.bf16 %v489_v2, %v488_v1  ;;  %v491_v8 = vld [vmem:[%s21609_s7 + $0x18] sm:$0xff]  ;;  %16345 = vmatprep.subr.bf16.mxu0 %v16344_v13  ;;  %s17789_s7 = smov 32   ;;  %v484_v41 = vld [vmem:[%s21614_s4] sm:$0xff]  ;;  %v485_v42 = vld [vmem:[%s21614_s4 + $0x8] sm:$0xff] }
   0xf   :  { %v17960_v12 = vpack.c.bf16 %v491_v8, %v490_v7  ;;  %v486_v43 = vld [vmem:[%s21614_s4 + $0x10] sm:$0xff]  ;;  %v18022_v44 = vpack.c.bf16 %v485_v42, %v484_v41  ;;  %v487_v45 = vld [vmem:[%s21614_s4 + $0x18] sm:$0xff]  ;;  %v18049_v51 = vld [vmem:[%s21615_s14] ss:$0 sm:$0xff] }
  0x10   :  { %16350 = vmatpush3.bf16.msra.mxu1 %v17942_v5  ;;  %v18028_v46 = vpack.c.bf16 %v487_v45, %v486_v43 }
  0x11   :  { %16351 = vmatprep.subr.bf16.mxu1 %v21556_v0  ;;  %16347 = vmatpush3.bf16.msra.mxu0 %v16344_v13 }
  0x12   :  { %16396 = vmatprep.subr.bf16.mxu0 %v21556_v0 }
  0x14   :  { %16353 = vmatpush3.bf16.msra.mxu1 %v17960_v12  ;;  %14710 = vmatmul.mubr.msk.f32.vlgmr.msra.gmra.mrb[0].mxu0 %vm79_vm0, %v85_v20 }
  0x15   :  { %16354 = vmatprep.subr.bf16.mxu1 %v21556_v0  ;;  %16398 = vmatpush3.bf16.msra.mxu0 %v18022_v44 }
  0x16   :  { %16399 = vmatprep.subr.bf16.mxu0 %v21556_v0 }
  0x17   :  { %14766 = vmatmul.mubr.f32.vlgmr.msra.gmra.mrb[0].mxu1 %v21554_v4 }
  0x18   :  { %16356 = vmatpush3.bf16.msra.mxu1 %v17974_v17  ;;  %14776 = vmatprep.mubr.msk.f32.mxu1 %vm17787_vm1, %v21554_v4 }
  0x19   :  { %16357 = vmatprep.subr.bf16.mxu1 %v21556_v0  ;;  %16401 = vmatpush3.bf16.msra.mxu0 %v18028_v46 }
  0x1a   :  { %16408 = vmatprep.subr.bf16.mxu0 %v21556_v0 }
  0x1c   :  { %16359 = vmatpush3.bf16.msra.mxu1 %v17989_v21 }
  0x1d   :  { %16360 = vmatprep.subr.bf16.mxu1 %v21556_v0 }
  0x1f   :  { %14777 = vmatmul.mubr.f32.vlgmr.msra.gmra.mrb[2].mxu1 %v21554_v4 }
  0x20   :  { %14787 = vmatprep.mubr.msk.f32.mxu1 %vm17787_vm1, %v21554_v4  ;;  %16362 = vmatpush3.bf16.msra.mxu1 %v18022_v44 }
  0x21   :  { %16363 = vmatprep.subr.bf16.mxu1 %v21556_v0 }
  0x24   :  { %16365 = vmatpush3.bf16.msra.mxu1 %v18028_v46 }
  0x25   :  { %16366 = vmatprep.subr.bf16.mxu1 %v21556_v0 }
  0xe7   :  { %v18000_v24 = vpop.f32.mrb[0].mxu0 }
  0xe8   :  { %v289_v26 = vpop.f32.mrb[1].mxu0  ;;  %v295_v11 = vadd.f32 %v18000_v24, %v18005_v25 }
  0xe9   :  { %v290_v27 = vadd.f32 %v18005_v25, %v289_v26 }
  0xea   :  { %v562_v22 = vpop.f32.mrb[0].mxu1 }
  0xeb   :  { %v14767_v23 = vpop.f32.mrb[1].mxu1 }
  0xf2   :  { %v633_v28 = vpop.f32.mrb[2].mxu1 }
  0xf3   :  { %v637_v29 = vadd.f32 %v633_v28, %v290_v27  ;;  %v14778_v30 = vpop.f32.mrb[3].mxu1 }
  0xf5   :  { %17264 = vtanh.f32 %v637_v29  ;;  %v13310_v32 = vmul.f32 -1.442695, %v637_v29 }
  0xf7   :  { %17266 = vpow2.f32 %v13310_v32 }
  0xff   :  { %v17265_v31 = vpop.eup %17264 }
 0x100   :  { %647 = vrot.lane.b32.xlu0 %v17265_v31, %s17789_s7 }
 0x101   :  { %v17267_v33 = vpop.eup %17266 }
 0x102   :  { %v641_v34 = vadd.f32 1.0, %v17267_v33 }
 0x104   :  { %17268 = vrcp.f32 %v641_v34 }
 0x10e   :  { %v17269_v35 = vpop.eup %17268 }
 0x10f   :  { %v645_v38 = vmul.f32 0.0, %v17269_v35 }
 0x172   :  { %v648_v36 = vpop.permute.xlu0 %647 }
 0x173   :  { %v650_v37 = vmul.f32 %v17269_v35, %v648_v36 }
 0x175   :  { %652 = vrot.lane.b32.xlu0 %v650_v37, %s17789_s7 }
 0x1e7   :  { %v653_v39 = vpop.permute.xlu0 %652 }
 0x1e8   :  { %v18010_v40 = vadd.f32 %v653_v39, %v645_v38 }
 0x1ea   :  { %17270 = vtanh.f32 %v18010_v40 }
 0x1f4   :  { %v17271_v47 = vpop.eup %17270 }
 0x1f5   :  { %658 = vrot.lane.b32.xlu1 %v17271_v47, %s17789_s7 }
 0x267   :  { %v659_v48 = vpop.permute.xlu1 %658 }
 0x268   :  { %v661_v49 = vmul.f32 %v17269_v35, %v659_v48 }
 0x26a   :  { %663 = vrot.lane.b32.xlu1 %v661_v49, %s17790_s6 }
 0x2dc   :  { %v664_v50 = vpop.permute.xlu1 %663 }
 0x2dd   :  { %14788 = vmatmul.mubr.msk.f32.vlgmr.msra.gmra.mrb[4].mxu1 %vm79_vm0, %v664_v50 }
 0x2de   :  { %16368 = vmatpush3.bf16.msra.mxu1 %v17942_v5  ;;  %14798 = vmatprep.mubr.msk.f32.mxu1 %vm17787_vm1, %v21554_v4 }
 0x2df   :  { %16369 = vmatprep.subr.bf16.mxu1 %v21556_v0 }
 0x2e2   :  { %16371 = vmatpush3.bf16.msra.mxu1 %v17960_v12 }
 0x2e3   :  { %16372 = vmatprep.subr.bf16.mxu1 %v21556_v0 }
 0x3b0   :  { %v733_v52 = vpop.f32.mrb[4].mxu1 }
 0x3b1   :  { %v734_v53 = vadd.f32 %v733_v52, %v562_v22  ;;  %v14789_v54 = vpop.f32.mrb[5].mxu1  ;;  %v87_v52 = vld [vmem:[%s21611_s26 + $0x18] sm:$0xff] }
 0x3b3   :  { %v743_v55 = vadd.f32 %v18049_v51, %v734_v53 }
 0x3b5   :  { %17272 = vtanh.f32 %v743_v55  ;;  %v13313_v57 = vmul.f32 -1.442695, %v743_v55 }
 0x3b7   :  { %17274 = vpow2.f32 %v13313_v57 }
 0x3bf   :  { %v17273_v56 = vpop.eup %17272 }
 0x3c0   :  { %753 = vrot.lane.b32.xlu0 %v17273_v56, %s17789_s7 }
 0x3c1   :  { %v17275_v58 = vpop.eup %17274 }
 0x3c2   :  { %v747_v59 = vadd.f32 1.0, %v17275_v58 }
 0x3c4   :  { %17276 = vrcp.f32 %v747_v59 }
 0x3ce   :  { %v17277_v60 = vpop.eup %17276 }
 0x3cf   :  { %v751_v63 = vmul.f32 0.0, %v17277_v60 }
 0x432   :  { %v754_v61 = vpop.permute.xlu0 %753 }
 0x433   :  { %v756_v62 = vmul.f32 %v17277_v60, %v754_v61 }
 0x435   :  { %758 = vrot.lane.b32.xlu1 %v756_v62, %s17789_s7 }
 0x4a7   :  { %v759_v1 = vpop.permute.xlu1 %758 }
 0x4a8   :  { %v18054_v2 = vadd.f32 %v759_v1, %v751_v63 }
 0x4aa   :  { %17278 = vtanh.f32 %v18054_v2 }
 0x4b4   :  { %v17279_v3 = vpop.eup %17278 }
 0x4b5   :  { %764 = vrot.lane.b32.xlu0 %v17279_v3, %s17789_s7 }
 0x527   :  { %v765_v6 = vpop.permute.xlu0 %764 }
 0x528   :  { %v767_v7 = vmul.f32 %v17277_v60, %v765_v6 }
 0x52a   :  { %769 = vrot.lane.b32.xlu1 %v767_v7, %s17790_s6 }
 0x59c   :  { %v770_v8 = vpop.permute.xlu1 %769 }
 0x59d   :  { %772 = vst.msk [vmem:[#allocation2 + $0x10] sm:$0xff] %vm79_vm0, %v770_v8  ;;  %14799 = vmatmul.mubr.msk.f32.vlgmr.msra.gmra.mrb[6].mxu1 %vm79_vm0, %v770_v8 }
 0x59e   :  { %16374 = vmatpush3.bf16.msra.mxu1 %v17974_v17  ;;  %14809 = vmatprep.mubr.msk.f32.mxu1 %vm17787_vm1, %v21554_v4 }
 0x59f   :  { %16375 = vmatprep.subr.bf16.mxu1 %v21556_v0 }
 0x5a2   :  { %16377 = vmatpush3.bf16.msra.mxu1 %v17989_v21 }
 0x5a3   :  { %16378 = vmatprep.subr.bf16.mxu1 %v21556_v0 }
 0x5a5   :  { %14810 = vmatmul.mubr.msk.f32.vlgmr.msra.gmra.mrb[8].mxu1 %vm79_vm0, %v664_v50  ;;  %v86_v50 = vld [vmem:[%s21611_s26 + $0x10] sm:$0xff] }
 0x5a6   :  { %16380 = vmatpush3.bf16.msra.mxu1 %v18022_v44  ;;  %14820 = vmatprep.mubr.msk.f32.mxu1 %vm17787_vm1, %v21554_v4 }
 0x5a7   :  { %16381 = vmatprep.subr.bf16.mxu1 %v21556_v0  ;;  %14712 = vmatprep.mubr.msk.f32.mxu0 %vm79_vm0, %v86_v50 }
 0x5a8   :  { %14713 = vmatmul.mubr.msk.f32.gmra.mrb[2].mxu0 %vm79_vm0, %v87_v52 }
 0x5aa   :  { %16383 = vmatpush3.bf16.msra.mxu1 %v18028_v46 }
 0x5ab   :  { %16384 = vmatprep.subr.bf16.mxu1 %v21556_v0 }
 0x670   :  { %v841_v9 = vpop.f32.mrb[6].mxu1 }
 0x671   :  { %v14800_v10 = vpop.f32.mrb[7].mxu1 }
 0x678   :  { %v912_v13 = vpop.f32.mrb[8].mxu1 }
 0x679   :  { %v916_v14 = vadd.f32 %v912_v13, %v295_v11  ;;  %v14811_v15 = vpop.f32.mrb[9].mxu1 }
 0x67a   :  { %v89_v15 = vld [vmem:[%s21611_s26 + $0x28] sm:$0xff] }
 0x67b   :  { %17280 = vtanh.f32 %v916_v14  ;;  %v13316_v18 = vmul.f32 -1.442695, %v916_v14  ;;  %v18123_v56 = vpop.f32.mrb[2].mxu0  ;;  %v88_v14 = vld [vmem:[%s21611_s26 + $0x20] sm:$0xff] }
 0x67c   :  { %v299_v57 = vpop.f32.mrb[3].mxu0  ;;  %14715 = vmatprep.mubr.msk.f32.mxu0 %vm79_vm0, %v88_v14 }
 0x67d   :  { %17282 = vpow2.f32 %v13316_v18  ;;  %v300_v60 = vadd.f32 %v18005_v25, %v299_v57  ;;  %14716 = vmatmul.mubr.msk.f32.gmra.mrb[4].mxu0 %vm79_vm0, %v89_v15  ;;  %v91_v18 = vld [vmem:[%s21611_s26 + $0x38] sm:$0xff] }
 0x685   :  { %v17281_v16 = vpop.eup %17280 }
 0x686   :  { %926 = vrot.lane.b32.xlu0 %v17281_v16, %s17789_s7  ;;  %v90_v16 = vld [vmem:[%s21611_s26 + $0x30] sm:$0xff] }
 0x687   :  { %v17283_v19 = vpop.eup %17282  ;;  %14718 = vmatprep.mubr.msk.f32.mxu0 %vm79_vm0, %v90_v16 }
 0x688   :  { %v920_v20 = vadd.f32 1.0, %v17283_v19  ;;  %v92_v19 = vld [vmem:[%s21611_s26 + $0x40] sm:$0xff]  ;;  %14719 = vmatmul.mubr.msk.f32.gmra.mrb[6].mxu0 %vm79_vm0, %v91_v18 }
 0x689   :  { %14721 = vmatprep.mubr.msk.f32.mxu0 %vm79_vm0, %v92_v19 }
 0x68a   :  { %17284 = vrcp.f32 %v920_v20  ;;  %v93_v20 = vld [vmem:[%s21611_s26 + $0x48] sm:$0xff] }
 0x68c   :  { %14722 = vmatmul.mubr.msk.f32.gmra.mrb[8].mxu0 %vm79_vm0, %v93_v20 }
 0x694   :  { %v17285_v22 = vpop.eup %17284 }
 0x695   :  { %v924_v27 = vmul.f32 %v17285_v22, %v18010_v40 }
 0x6f8   :  { %v927_v23 = vpop.permute.xlu0 %926 }
 0x6f9   :  { %v929_v26 = vmul.f32 %v17285_v22, %v927_v23 }
 0x6fb   :  { %931 = vrot.lane.b32.xlu1 %v929_v26, %s17789_s7  ;;  %v95_v26 = vld [vmem:[%s21611_s26 + $0x58] sm:$0xff] }
 0x750   :  { %v18255_v52 = vpop.f32.mrb[4].mxu0 }
 0x76d   :  { %v932_v24 = vpop.permute.xlu1 %931 }
 0x76e   :  { %v18079_v28 = vadd.f32 %v932_v24, %v924_v27  ;;  %v96_v27 = vld [vmem:[%s21611_s26 + $0x60] sm:$0xff]  ;;  %v97_v24 = vld [vmem:[%s21611_s26 + $0x68] sm:$0xff] }
 0x770   :  { %17286 = vtanh.f32 %v18079_v28 }
 0x77a   :  { %v17287_v29 = vpop.eup %17286 }
 0x77b   :  { %937 = vrot.lane.b32.xlu0 %v17287_v29, %s17789_s7  ;;  %v99_v29 = vld [vmem:[%s21611_s26 + $0x78] sm:$0xff] }
 0x7ed   :  { %v938_v30 = vpop.permute.xlu0 %937 }
 0x7ee   :  { %v940_v31 = vmul.f32 %v17285_v22, %v938_v30  ;;  %v94_v22 = vld [vmem:[%s21611_s26 + $0x50] sm:$0xff]  ;;  %v100_v30 = vld [vmem:[%s21611_s26 + $0x80] sm:$0xff] }
 0x7ef   :  { %14724 = vmatprep.mubr.msk.f32.mxu0 %vm79_vm0, %v94_v22 }
 0x7f0   :  { %942 = vrot.lane.b32.xlu1 %v940_v31, %s17790_s6  ;;  %14725 = vmatmul.mubr.msk.f32.gmra.mrb[10].mxu0 %vm79_vm0, %v95_v26  ;;  %v101_v31 = vld [vmem:[%s21611_s26 + $0x88] sm:$0xff] }
 0x7f1   :  { %14727 = vmatprep.mubr.msk.f32.mxu0 %vm79_vm0, %v96_v27 }
 0x7f4   :  { %14728 = vmatmul.mubr.msk.f32.gmra.mrb[12].mxu0 %vm79_vm0, %v97_v24 }
 0x862   :  { %v943_v32 = vpop.permute.xlu1 %942 }
 0x863   :  { %14821 = vmatmul.mubr.msk.f32.vlgmr.msra.gmra.mrb[10].mxu1 %vm79_vm0, %v943_v32 }
 0x864   :  { %16386 = vmatpush3.bf16.msra.mxu1 %v17942_v5  ;;  %14831 = vmatprep.mubr.msk.f32.mxu1 %vm17787_vm1, %v21554_v4 }
 0x865   :  { %16387 = vmatprep.subr.bf16.mxu1 %v21556_v0 }
 0x868   :  { %16389 = vmatpush3.bf16.msra.mxu1 %v17960_v12 }
 0x869   :  { %16390 = vmatprep.subr.bf16.mxu1 %v21556_v0 }
 0x936   :  { %v1012_v33 = vpop.f32.mrb[10].mxu1 }
 0x937   :  { %v1013_v34 = vadd.f32 %v1012_v33, %v841_v9  ;;  %v14822_v35 = vpop.f32.mrb[11].mxu1  ;;  %v103_v33 = vld [vmem:[%s21611_s26 + $0x98] sm:$0xff] }
 0x938   :  { %v105_v35 = vld [vmem:[%s21611_s26 + $0xa8] sm:$0xff] }
 0x939   :  { %v1016_v36 = vadd.f32 %v18049_v51, %v1013_v34  ;;  %v104_v34 = vld [vmem:[%s21611_s26 + $0xa0] sm:$0xff] }
 0x93b   :  { %17288 = vtanh.f32 %v1016_v36  ;;  %v13318_v38 = vmul.f32 -1.442695, %v1016_v36  ;;  %v106_v36 = vld [vmem:[%s21611_s26 + $0xb0] sm:$0xff] }
 0x93d   :  { %17290 = vpow2.f32 %v13318_v38  ;;  %v108_v38 = vld [vmem:[%s21611_s26 + $0xc0] sm:$0xff] }
 0x945   :  { %v17289_v37 = vpop.eup %17288 }
 0x946   :  { %1026 = vrot.lane.b32.xlu0 %v17289_v37, %s17789_s7  ;;  %v107_v37 = vld [vmem:[%s21611_s26 + $0xb8] sm:$0xff] }
 0x947   :  { %v17291_v39 = vpop.eup %17290 }
 0x948   :  { %v1020_v40 = vadd.f32 1.0, %v17291_v39  ;;  %v109_v39 = vld [vmem:[%s21611_s26 + $0xc8] sm:$0xff] }
 0x94a   :  { %17292 = vrcp.f32 %v1020_v40  ;;  %v110_v40 = vld [vmem:[%s21611_s26 + $0xd0] sm:$0xff] }
 0x954   :  { %v17293_v41 = vpop.eup %17292 }
 0x955   :  { %v1024_v45 = vmul.f32 %v17293_v41, %v18054_v2 }
 0x9b8   :  { %v1027_v42 = vpop.permute.xlu0 %1026 }
 0x9b9   :  { %v1029_v43 = vmul.f32 %v17293_v41, %v1027_v42  ;;  %v112_v42 = vld [vmem:[%s21611_s26 + $0xe0] sm:$0xff] }
 0x9bb   :  { %1031 = vrot.lane.b32.xlu1 %v1029_v43, %s17789_s7  ;;  %v113_v43 = vld [vmem:[%s21611_s26 + $0xe8] sm:$0xff] }
 0xa2d   :  { %v1032_v47 = vpop.permute.xlu1 %1031 }
 0xa2e   :  { %v18095_v48 = vadd.f32 %v1032_v47, %v1024_v45  ;;  %v114_v45 = vld [vmem:[%s21611_s26 + $0xf0] sm:$0xff]  ;;  %v115_v47 = vld [vmem:[%s21611_s26 + $0xf8] sm:$0xff] }
 0xa30   :  { %17294 = vtanh.f32 %v18095_v48 }
 0xa3a   :  { %v17295_v49 = vpop.eup %17294 }
 0xa3b   :  { %1037 = vrot.lane.b32.xlu0 %v17295_v49, %s17789_s7 }
 0xaad   :  { %v1038_v53 = vpop.permute.xlu0 %1037 }
 0xaae   :  { %v1040_v54 = vmul.f32 %v17293_v41, %v1038_v53  ;;  %v111_v41 = vld [vmem:[%s21611_s26 + $0xd8] sm:$0xff]  ;;  %v18257_v53 = vpop.f32.mrb[5].mxu0 }
 0xab0   :  { %1042 = vrot.lane.b32.xlu1 %v1040_v54, %s17790_s6  ;;  %v18259_v54 = vpop.f32.mrb[6].mxu0 }
 0xb22   :  { %v1043_v55 = vpop.permute.xlu1 %1042 }
 0xb23   :  { %1045 = vst.msk [vmem:[#allocation2 + $0x18] sm:$0xff] %vm79_vm0, %v1043_v55  ;;  %14832 = vmatmul.mubr.msk.f32.vlgmr.msra.gmra.mrb[12].mxu1 %vm79_vm0, %v1043_v55  ;;  %v18261_v55 = vpop.f32.mrb[7].mxu0 }
 0xb24   :  { %16392 = vmatpush3.bf16.msra.mxu1 %v17974_v17  ;;  %14842 = vmatprep.mubr.msk.f32.mxu1 %vm17787_vm1, %v21554_v4  ;;  %v18263_v57 = vpop.f32.mrb[8].mxu0 }
 0xb25   :  { %16393 = vmatprep.subr.bf16.mxu1 %v21556_v0 }
 0xb28   :  { %16395 = vmatpush3.bf16.msra.mxu1 %v17989_v21 }
 0xb29   :  { %16402 = vmatprep.subr.bf16.mxu1 %v21556_v0 }
 0xb2b   :  { %14843 = vmatmul.mubr.msk.f32.vlgmr.msra.gmra.mrb[14].mxu1 %vm79_vm0, %v943_v32  ;;  %v102_v32 = vld [vmem:[%s21611_s26 + $0x90] sm:$0xff] }
 0xb2c   :  { %16404 = vmatpush3.bf16.msra.mxu1 %v17942_v5  ;;  %14864 = vmatprep.mubr.msk.f32.mxu1 %vm17787_vm1, %v21554_v4 }
 0xb2d   :  { %16405 = vmatprep.subr.bf16.mxu1 %v21556_v0 }
 0xb30   :  { %16407 = vmatpush3.bf16.msra.mxu1 %v17960_v12 }
 0xb31   :  { %16414 = vmatprep.subr.bf16.mxu1 %v21556_v0 }
 0xbf6   :  { %v18125_v58 = vpop.f32.mrb[12].mxu1 }
 0xbf7   :  { %v14833_v59 = vpop.f32.mrb[13].mxu1 }
 0xbf8   :  { %v18265_v59 = vpop.f32.mrb[9].mxu0 }
 0xbfe   :  { %v1185_v61 = vpop.f32.mrb[14].mxu1 }
 0xbff   :  { %v1189_v62 = vadd.f32 %v1185_v61, %v300_v60  ;;  %v14844_v63 = vpop.f32.mrb[15].mxu1  ;;  %v18267_v60 = vpop.f32.mrb[10].mxu0 }
 0xc00   :  { %v18269_v61 = vpop.f32.mrb[11].mxu0 }
 0xc01   :  { %17296 = vtanh.f32 %v1189_v62  ;;  %v13321_v2 = vmul.f32 -1.442695, %v1189_v62  ;;  %v18271_v62 = vpop.f32.mrb[12].mxu0 }
 0xc02   :  { %v18273_v63 = vpop.f32.mrb[13].mxu0 }
 0xc03   :  { %17298 = vpow2.f32 %v13321_v2 }
 0xc0b   :  { %v17297_v1 = vpop.eup %17296 }
 0xc0c   :  { %1199 = vrot.lane.b32.xlu0 %v17297_v1, %s17789_s7 }
 0xc0d   :  { %v17299_v3 = vpop.eup %17298 }
 0xc0e   :  { %v1193_v6 = vadd.f32 1.0, %v17299_v3 }
 0xc10   :  { %17300 = vrcp.f32 %v1193_v6 }
 0xc1a   :  { %v18129_v7 = vpop.eup %17300 }
 0xc1b   :  { %v1197_v10 = vmul.f32 %v18129_v7, %v18079_v28  ;;  %v98_v28 = vld [vmem:[%s21611_s26 + $0x70] sm:$0xff] }
 0xc1c   :  { %14730 = vmatprep.mubr.msk.f32.mxu0 %vm79_vm0, %v98_v28 }
 0xc1d   :  { %14731 = vmatmul.mubr.msk.f32.gmra.mrb[14].mxu0 %vm79_vm0, %v99_v29 }
 0xc1e   :  { %14733 = vmatprep.mubr.msk.f32.mxu0 %vm79_vm0, %v100_v30 }
 0xc21   :  { %14734 = vmatmul.mubr.msk.f32.gmra.mrb[16].mxu0 %vm79_vm0, %v101_v31  ;;  %v305_v31 = vadd.f32 %v18123_v56, %v18005_v25 }
 0xc22   :  { %14736 = vmatprep.mubr.msk.f32.mxu0 %vm79_vm0, %v102_v32 }
 0xc25   :  { %14737 = vmatmul.mubr.msk.f32.gmra.mrb[18].mxu0 %vm79_vm0, %v103_v33 }
 0xc26   :  { %14739 = vmatprep.mubr.msk.f32.mxu0 %vm79_vm0, %v104_v34 }
 0xc29   :  { %14740 = vmatmul.mubr.msk.f32.gmra.mrb[20].mxu0 %vm79_vm0, %v105_v35 }
 0xc2a   :  { %14742 = vmatprep.mubr.msk.f32.mxu0 %vm79_vm0, %v106_v36 }
 0xc2d   :  { %14743 = vmatmul.mubr.msk.f32.gmra.mrb[22].mxu0 %vm79_vm0, %v107_v37 }
 0xc2e   :  { %14745 = vmatprep.mubr.msk.f32.mxu0 %vm79_vm0, %v108_v38 }
 0xc31   :  { %14746 = vmatmul.mubr.msk.f32.gmra.mrb[24].mxu0 %vm79_vm0, %v109_v39 }
 0xc32   :  { %14748 = vmatprep.mubr.msk.f32.mxu0 %vm79_vm0, %v110_v40 }
 0xc35   :  { %14749 = vmatmul.mubr.msk.f32.gmra.mrb[26].mxu0 %vm79_vm0, %v111_v41 }
 0xc36   :  { %14751 = vmatprep.mubr.msk.f32.mxu0 %vm79_vm0, %v112_v42 }
 0xc39   :  { %14752 = vmatmul.mubr.msk.f32.gmra.mrb[28].mxu0 %vm79_vm0, %v113_v43 }
 0xc3a   :  { %14754 = vmatprep.mubr.msk.f32.mxu0 %vm79_vm0, %v114_v45 }
 0xc3d   :  { %14755 = vmatmul.mubr.msk.f32.gmra.mrb[30].mxu0 %vm79_vm0, %v115_v47 }
 0xc3e   :  { %14853 = vmatprep.mubr.msk.f32.mxu0 %vm17787_vm1, %v21554_v4 }
 0xc7e   :  { %v1200_v8 = vpop.permute.xlu0 %1199 }
 0xc7f   :  { %v1202_v9 = vmul.f32 %v18129_v7, %v1200_v8 }
 0xc81   :  { %1204 = vrot.lane.b32.xlu1 %v1202_v9, %s17789_s7 }
 0xcf0   :  { %v18275_v1 = vpop.f32.mrb[14].mxu0 }
 0xcf1   :  { %v18277_v2 = vpop.f32.mrb[15].mxu0 }
 0xcf3   :  { %v1205_v11 = vpop.permute.xlu1 %1204 }
 0xcf4   :  { %v18135_v13 = vadd.f32 %v1205_v11, %v1197_v10  ;;  %v18279_v3 = vpop.f32.mrb[16].mxu0 }
 0xcf5   :  { %v18281_v6 = vpop.f32.mrb[17].mxu0 }
 0xcf6   :  { %17302 = vtanh.f32 %v18135_v13 }
 0xd00   :  { %v17303_v23 = vpop.eup %17302 }
 0xd01   :  { %1210 = vrot.lane.b32.xlu0 %v17303_v23, %s17789_s7 }
 0xd73   :  { %v1211_v49 = vpop.permute.xlu0 %1210 }
 0xd74   :  { %v1213_v50 = vmul.f32 %v18129_v7, %v1211_v49  ;;  %v18283_v7 = vpop.f32.mrb[18].mxu0 }
 0xd75   :  { %v18285_v9 = vpop.f32.mrb[19].mxu0 }
 0xd76   :  { %1215 = vrot.lane.b32.xlu1 %v1213_v50, %s17790_s6  ;;  %v18292_v10 = vpop.f32.mrb[20].mxu0 }
 0xd77   :  { %v18294_v11 = vpop.f32.mrb[21].mxu0 }
 0xd78   :  { %v18297_v14 = vpop.f32.mrb[22].mxu0 }
 0xd79   :  { %v18300_v15 = vpop.f32.mrb[23].mxu0 }
 0xd7a   :  { %v18306_v16 = vpop.f32.mrb[24].mxu0 }
 0xd7b   :  { %v18309_v18 = vpop.f32.mrb[25].mxu0 }
 0xd7c   :  { %v18312_v19 = vpop.f32.mrb[26].mxu0 }
 0xd7d   :  { %v18315_v20 = vpop.f32.mrb[27].mxu0 }
 0xd7e   :  { %v18317_v22 = vpop.f32.mrb[28].mxu0 }
 0xd7f   :  { %v18319_v23 = vpop.f32.mrb[29].mxu0 }
 0xd80   :  { %v18321_v26 = vpop.f32.mrb[30].mxu0 }
 0xd81   :  { %v18323_v27 = vpop.f32.mrb[31].mxu0 }
 0xde8   :  { %v1216_v8 = vpop.permute.xlu1 %1215 }
 0xde9   :  { %14854 = vmatmul.mubr.msk.f32.vlgmr.msra.gmra.mrb[32].mxu0 %vm79_vm0, %v1216_v8 }
 0xdea   :  { %16410 = vmatpush3.bf16.msra.mxu0 %v17974_v17  ;;  %14875 = vmatprep.mubr.msk.f32.mxu0 %vm17787_vm1, %v21554_v4 }
 0xdeb   :  { %16411 = vmatprep.subr.bf16.mxu0 %v21556_v0 }
 0xdee   :  { %16413 = vmatpush3.bf16.msra.mxu0 %v17989_v21 }
 0xdef   :  { %16420 = vmatprep.subr.bf16.mxu0 %v21556_v0 }
 0xdf1   :  { %14876 = vmatmul.mubr.msk.f32.vlgmr.msra.gmra.mrb[34].mxu0 %vm79_vm0, %v1216_v8 }
 0xdf2   :  { %16422 = vmatpush3.bf16.msra.mxu0 %v17942_v5  ;;  %14897 = vmatprep.mubr.msk.f32.mxu0 %vm17787_vm1, %v21554_v4 }
 0xdf3   :  { %16423 = vmatprep.subr.bf16.mxu0 %v21556_v0 }
 0xdf6   :  { %16425 = vmatpush3.bf16.msra.mxu0 %v17960_v12 }
 0xdf7   :  { %16432 = vmatprep.subr.bf16.mxu0 %v21556_v0 }
 0xebc   :  { %v1285_v24 = vpop.f32.mrb[32].mxu0 }
 0xebd   :  { %v1286_v28 = vadd.f32 %v1285_v24, %v18125_v58  ;;  %v14855_v29 = vpop.f32.mrb[33].mxu0 }
 0xebf   :  { %v1289_v30 = vadd.f32 %v18049_v51, %v1286_v28 }
 0xec1   :  { %17304 = vtanh.f32 %v1289_v30  ;;  %v13323_v37 = vmul.f32 -1.442695, %v1289_v30 }
 0xec4   :  { %v1458_v32 = vpop.f32.mrb[34].mxu0 }
 0xec5   :  { %v1462_v33 = vadd.f32 %v1458_v32, %v305_v31  ;;  %v14877_v34 = vpop.f32.mrb[35].mxu0 }
 0xec7   :  { %17306 = vtanh.f32 %v1462_v33  ;;  %v13326_v58 = vmul.f32 -1.442695, %v1462_v33 }
 0xec8   :  { %17308 = vpow2.f32 %v13323_v37 }
 0xec9   :  { %17310 = vpow2.f32 %v13326_v58 }
 0xecb   :  { %v17305_v35 = vpop.eup %17304 }
 0xecc   :  { %1299 = vrot.lane.b32.xlu0 %v17305_v35, %s17789_s7 }
 0xed1   :  { %v17307_v36 = vpop.eup %17306 }
 0xed2   :  { %1472 = vrot.lane.b32.xlu1 %v17307_v36, %s17789_s7  ;;  %v17309_v38 = vpop.eup %17308 }
 0xed3   :  { %v1293_v39 = vadd.f32 1.0, %v17309_v38  ;;  %v17311_v40 = vpop.eup %17310 }
 0xed4   :  { %v1466_v41 = vadd.f32 1.0, %v17311_v40 }
 0xed5   :  { %17312 = vrcp.f32 %v1293_v39 }
 0xed6   :  { %17314 = vrcp.f32 %v1466_v41 }
 0xedf   :  { %v17313_v56 = vpop.eup %17312 }
 0xee0   :  { %v17315_v45 = vpop.eup %17314  ;;  %v1297_v50 = vmul.f32 %v17313_v56, %v18095_v48 }
 0xee1   :  { %v1470_v28 = vmul.f32 %v17315_v45, %v18135_v13 }
 0xf3e   :  { %v1300_v42 = vpop.permute.xlu0 %1299 }
 0xf3f   :  { %v1302_v43 = vmul.f32 %v17313_v56, %v1300_v42 }
 0xf41   :  { %1304 = vrot.lane.b32.xlu0 %v1302_v43, %s17789_s7 }
 0xf44   :  { %v1473_v47 = vpop.permute.xlu1 %1472 }
 0xf45   :  { %v1475_v49 = vmul.f32 %v17315_v45, %v1473_v47 }
 0xf47   :  { %1477 = vrot.lane.b32.xlu1 %v1475_v49, %s17789_s7 }
 0xfb3   :  { %v1305_v8 = vpop.permute.xlu0 %1304 }
 0xfb4   :  { %v18334_v24 = vadd.f32 %v1305_v8, %v1297_v50 }
 0xfb6   :  { %17316 = vtanh.f32 %v18334_v24 }
 0xfb9   :  { %v1478_v29 = vpop.permute.xlu1 %1477 }
 0xfba   :  { %v18338_v30 = vadd.f32 %v1478_v29, %v1470_v28 }
 0xfbc   :  { %17318 = vtanh.f32 %v18338_v30 }
 0xfc0   :  { %v17317_v31 = vpop.eup %17316 }
 0xfc1   :  { %1310 = vrot.lane.b32.xlu0 %v17317_v31, %s17789_s7 }
 0xfc6   :  { %v17319_v32 = vpop.eup %17318 }
 0xfc7   :  { %1483 = vrot.lane.b32.xlu1 %v17319_v32, %s17789_s7 }
0x1033   :  { %v1311_v33 = vpop.permute.xlu0 %1310 }
0x1034   :  { %v1313_v48 = vmul.f32 %v17313_v56, %v1311_v33  ;;  %v310_v56 = vadd.f32 %v18005_v25, %v18257_v53 }
0x1036   :  { %1315 = vrot.lane.b32.xlu0 %v1313_v48, %s17790_s6 }
0x1039   :  { %v1484_v34 = vpop.permute.xlu1 %1483 }
0x103a   :  { %v1486_v35 = vmul.f32 %v17315_v45, %v1484_v34 }
0x103c   :  { %1488 = vrot.lane.b32.xlu1 %v1486_v35, %s17790_s6 }
0x10a8   :  { %v1316_v13 = vpop.permute.xlu0 %1315 }
0x10a9   :  { %1318 = vst.msk [vmem:[#allocation2 + $0x20] sm:$0xff] %vm79_vm0, %v1316_v13  ;;  %14865 = vmatmul.mubr.msk.f32.vlgmr.msra.gmra.mrb[16].mxu1 %vm79_vm0, %v1316_v13 }
0x10aa   :  { %16416 = vmatpush3.bf16.msra.mxu1 %v18022_v44  ;;  %14886 = vmatprep.mubr.msk.f32.mxu1 %vm17787_vm1, %v21554_v4 }
0x10ab   :  { %16417 = vmatprep.subr.bf16.mxu1 %v21556_v0 }
0x10ae   :  { %16419 = vmatpush3.bf16.msra.mxu1 %v18028_v46  ;;  %v1489_v36 = vpop.permute.xlu1 %1488 }
0x10af   :  { %16426 = vmatprep.subr.bf16.mxu1 %v21556_v0 }
0x10b1   :  { %14887 = vmatmul.mubr.msk.f32.vlgmr.msra.gmra.mrb[18].mxu1 %vm79_vm0, %v1489_v36 }
0x10b2   :  { %16428 = vmatpush3.bf16.msra.mxu1 %v17974_v17  ;;  %14908 = vmatprep.mubr.msk.f32.mxu1 %vm17787_vm1, %v21554_v4 }
0x10b3   :  { %16429 = vmatprep.subr.bf16.mxu1 %v21556_v0 }
0x10b6   :  { %16431 = vmatpush3.bf16.msra.mxu1 %v17989_v21 }
0x10b7   :  { %16438 = vmatprep.subr.bf16.mxu1 %v21556_v0 }
0x10b9   :  { %14909 = vmatmul.mubr.msk.f32.vlgmr.msra.gmra.mrb[20].mxu1 %vm79_vm0, %v1489_v36 }
0x10ba   :  { %16440 = vmatpush3.bf16.msra.mxu1 %v17942_v5  ;;  %14930 = vmatprep.mubr.msk.f32.mxu1 %vm17787_vm1, %v21554_v4 }
0x10bb   :  { %16441 = vmatprep.subr.bf16.mxu1 %v21556_v0 }
0x10be   :  { %16443 = vmatpush3.bf16.msra.mxu1 %v17960_v12 }
0x10bf   :  { %16450 = vmatprep.subr.bf16.mxu1 %v21556_v0 }
0x117c   :  { %v1387_v37 = vpop.f32.mrb[16].mxu1 }
0x117d   :  { %v14866_v58 = vpop.f32.mrb[17].mxu1 }
0x1184   :  { %v1558_v38 = vpop.f32.mrb[18].mxu1 }
0x1185   :  { %v1559_v39 = vadd.f32 %v1558_v38, %v1387_v37  ;;  %v14888_v40 = vpop.f32.mrb[19].mxu1 }
0x1187   :  { %v1562_v41 = vadd.f32 %v18049_v51, %v1559_v39 }
0x1189   :  { %17320 = vtanh.f32 %v1562_v41  ;;  %v13328_v50 = vmul.f32 -1.442695, %v1562_v41 }
0x118c   :  { %v1731_v42 = vpop.f32.mrb[20].mxu1 }
0x118d   :  { %v1735_v43 = vadd.f32 %v1731_v42, %v310_v56  ;;  %v14910_v45 = vpop.f32.mrb[21].mxu1 }
0x118f   :  { %17322 = vtanh.f32 %v1735_v43  ;;  %v13331_v8 = vmul.f32 -1.442695, %v1735_v43 }
0x1190   :  { %17324 = vpow2.f32 %v13328_v50 }
0x1191   :  { %17326 = vpow2.f32 %v13331_v8 }
0x1193   :  { %v17321_v47 = vpop.eup %17320 }
0x1194   :  { %1572 = vrot.lane.b32.xlu0 %v17321_v47, %s17789_s7 }
0x1199   :  { %v17323_v49 = vpop.eup %17322 }
0x119a   :  { %1745 = vrot.lane.b32.xlu1 %v17323_v49, %s17789_s7  ;;  %v17325_v28 = vpop.eup %17324 }
0x119b   :  { %v1566_v29 = vadd.f32 1.0, %v17325_v28  ;;  %v17327_v31 = vpop.eup %17326 }
0x119c   :  { %v1739_v32 = vadd.f32 1.0, %v17327_v31 }
0x119d   :  { %17328 = vrcp.f32 %v1566_v29 }
0x119e   :  { %17330 = vrcp.f32 %v1739_v32  ;;  %v315_v32 = vadd.f32 %v18255_v52, %v18005_v25 }
0x11a7   :  { %v17329_v53 = vpop.eup %17328 }
0x11a8   :  { %v17331_v34 = vpop.eup %17330  ;;  %v1570_v36 = vmul.f32 %v17329_v53, %v18334_v24 }
0x11a9   :  { %v1743_v38 = vmul.f32 %v17331_v34, %v18338_v30 }
0x1206   :  { %v1573_v33 = vpop.permute.xlu0 %1572 }
0x1207   :  { %v1575_v48 = vmul.f32 %v17329_v53, %v1573_v33 }
0x1209   :  { %1577 = vrot.lane.b32.xlu0 %v1575_v48, %s17789_s7 }
0x120c   :  { %v1746_v35 = vpop.permute.xlu1 %1745 }
0x120d   :  { %v1748_v13 = vmul.f32 %v17331_v34, %v1746_v35 }
0x120f   :  { %1750 = vrot.lane.b32.xlu1 %v1748_v13, %s17789_s7 }
0x127b   :  { %v1578_v37 = vpop.permute.xlu0 %1577 }
0x127c   :  { %v18375_v58 = vadd.f32 %v1578_v37, %v1570_v36 }
0x127e   :  { %17332 = vtanh.f32 %v18375_v58 }
0x1281   :  { %v1751_v39 = vpop.permute.xlu1 %1750 }
0x1282   :  { %v18379_v40 = vadd.f32 %v1751_v39, %v1743_v38 }
0x1284   :  { %17334 = vtanh.f32 %v18379_v40 }
0x1288   :  { %v17333_v41 = vpop.eup %17332 }
0x1289   :  { %1583 = vrot.lane.b32.xlu0 %v17333_v41, %s17789_s7 }
0x128e   :  { %v17335_v56 = vpop.eup %17334 }
0x128f   :  { %1756 = vrot.lane.b32.xlu1 %v17335_v56, %s17789_s7 }
0x12fb   :  { %v1584_v42 = vpop.permute.xlu0 %1583 }
0x12fc   :  { %v1586_v24 = vmul.f32 %v17329_v53, %v1584_v42 }
0x12fe   :  { %1588 = vrot.lane.b32.xlu0 %v1586_v24, %s17790_s6 }
0x1301   :  { %v1757_v43 = vpop.permute.xlu1 %1756 }
0x1302   :  { %v1759_v45 = vmul.f32 %v17331_v34, %v1757_v43 }
0x1304   :  { %1761 = vrot.lane.b32.xlu1 %v1759_v45, %s17790_s6 }
0x1370   :  { %v1589_v30 = vpop.permute.xlu0 %1588 }
0x1371   :  { %1591 = vst.msk [vmem:[#allocation2 + $0x28] sm:$0xff] %vm79_vm0, %v1589_v30  ;;  %14898 = vmatmul.mubr.msk.f32.vlgmr.msra.gmra.mrb[36].mxu0 %vm79_vm0, %v1589_v30 }
0x1372   :  { %16434 = vmatpush3.bf16.msra.mxu0 %v18022_v44  ;;  %14919 = vmatprep.mubr.msk.f32.mxu0 %vm17787_vm1, %v21554_v4 }
0x1373   :  { %16435 = vmatprep.subr.bf16.mxu0 %v21556_v0 }
0x1376   :  { %16437 = vmatpush3.bf16.msra.mxu0 %v18028_v46  ;;  %v1762_v47 = vpop.permute.xlu1 %1761 }
0x1377   :  { %16444 = vmatprep.subr.bf16.mxu0 %v21556_v0 }
0x1379   :  { %14920 = vmatmul.mubr.msk.f32.vlgmr.msra.gmra.mrb[38].mxu0 %vm79_vm0, %v1762_v47 }
0x137a   :  { %16446 = vmatpush3.bf16.msra.mxu0 %v17974_v17  ;;  %14941 = vmatprep.mubr.msk.f32.mxu0 %vm17787_vm1, %v21554_v4 }
0x137b   :  { %16447 = vmatprep.subr.bf16.mxu0 %v21556_v0 }
0x137e   :  { %16449 = vmatpush3.bf16.msra.mxu0 %v17989_v21 }
0x137f   :  { %16456 = vmatprep.subr.bf16.mxu0 %v21556_v0 }
0x1381   :  { %14942 = vmatmul.mubr.msk.f32.vlgmr.msra.gmra.mrb[40].mxu0 %vm79_vm0, %v1762_v47 }
0x1382   :  { %16458 = vmatpush3.bf16.msra.mxu0 %v17942_v5  ;;  %14963 = vmatprep.mubr.msk.f32.mxu0 %vm17787_vm1, %v21554_v4 }
0x1383   :  { %16459 = vmatprep.subr.bf16.mxu0 %v21556_v0 }
0x1386   :  { %16461 = vmatpush3.bf16.msra.mxu0 %v17960_v12 }
0x1387   :  { %16468 = vmatprep.subr.bf16.mxu0 %v21556_v0 }
0x1444   :  { %v1660_v49 = vpop.f32.mrb[36].mxu0 }
0x1445   :  { %v14899_v50 = vpop.f32.mrb[37].mxu0 }
0x144c   :  { %v1831_v8 = vpop.f32.mrb[38].mxu0 }
0x144d   :  { %v1832_v28 = vadd.f32 %v1831_v8, %v1660_v49  ;;  %v14921_v29 = vpop.f32.mrb[39].mxu0 }
0x144f   :  { %v1835_v31 = vadd.f32 %v18049_v51, %v1832_v28 }
0x1451   :  { %17336 = vtanh.f32 %v1835_v31  ;;  %v13333_v13 = vmul.f32 -1.442695, %v1835_v31 }
0x1454   :  { %v2004_v53 = vpop.f32.mrb[40].mxu0 }
0x1455   :  { %v2008_v33 = vadd.f32 %v2004_v53, %v315_v32  ;;  %v14943_v48 = vpop.f32.mrb[41].mxu0 }
0x1457   :  { %17338 = vtanh.f32 %v2008_v33  ;;  %v13336_v36 = vmul.f32 -1.442695, %v2008_v33 }
0x1458   :  { %17340 = vpow2.f32 %v13333_v13 }
0x1459   :  { %17342 = vpow2.f32 %v13336_v36 }
0x145b   :  { %v17337_v34 = vpop.eup %17336 }
0x145c   :  { %1845 = vrot.lane.b32.xlu0 %v17337_v34, %s17789_s7 }
0x1461   :  { %v17339_v35 = vpop.eup %17338 }
0x1462   :  { %2018 = vrot.lane.b32.xlu1 %v17339_v35, %s17789_s7  ;;  %v17341_v37 = vpop.eup %17340 }
0x1463   :  { %v1839_v38 = vadd.f32 1.0, %v17341_v37  ;;  %v17343_v39 = vpop.eup %17342 }
0x1464   :  { %v2012_v41 = vadd.f32 1.0, %v17343_v39 }
0x1465   :  { %17344 = vrcp.f32 %v1839_v38  ;;  %v18453_v38 = vld [vmem:[%s21613_s3] ss:$0 sm:$0xff] }
0x1466   :  { %17346 = vrcp.f32 %v2012_v41  ;;  %v320_v39 = vadd.f32 %v18453_v38, %v18261_v55 }
0x146f   :  { %v17345_v25 = vpop.eup %17344 }
0x1470   :  { %v17347_v42 = vpop.eup %17346  ;;  %v1843_v45 = vmul.f32 %v17345_v25, %v18375_v58 }
0x1471   :  { %v2016_v49 = vmul.f32 %v17347_v42, %v18379_v40 }
0x14ce   :  { %v1846_v52 = vpop.permute.xlu0 %1845 }
0x14cf   :  { %v1848_v56 = vmul.f32 %v17345_v25, %v1846_v52 }
0x14d1   :  { %1850 = vrot.lane.b32.xlu0 %v1848_v56, %s17789_s7 }
0x14d4   :  { %v2019_v24 = vpop.permute.xlu1 %2018 }
0x14d5   :  { %v2021_v43 = vmul.f32 %v17347_v42, %v2019_v24 }
0x14d7   :  { %2023 = vrot.lane.b32.xlu1 %v2021_v43, %s17789_s7 }
0x1543   :  { %v1851_v30 = vpop.permute.xlu0 %1850 }
0x1544   :  { %v18416_v47 = vadd.f32 %v1851_v30, %v1843_v45 }
0x1546   :  { %17348 = vtanh.f32 %v18416_v47 }
0x1549   :  { %v2024_v50 = vpop.permute.xlu1 %2023 }
0x154a   :  { %v18420_v8 = vadd.f32 %v2024_v50, %v2016_v49 }
0x154c   :  { %17350 = vtanh.f32 %v18420_v8 }
0x1550   :  { %v17349_v28 = vpop.eup %17348 }
0x1551   :  { %1856 = vrot.lane.b32.xlu0 %v17349_v28, %s17789_s7 }
0x1556   :  { %v17351_v29 = vpop.eup %17350 }
0x1557   :  { %2029 = vrot.lane.b32.xlu1 %v17351_v29, %s17789_s7 }
0x15c3   :  { %v1857_v31 = vpop.permute.xlu0 %1856 }
0x15c4   :  { %v1859_v58 = vmul.f32 %v17345_v25, %v1857_v31 }
0x15c6   :  { %1861 = vrot.lane.b32.xlu0 %v1859_v58, %s17790_s6 }
0x15c9   :  { %v2030_v32 = vpop.permute.xlu1 %2029 }
0x15ca   :  { %v2032_v53 = vmul.f32 %v17347_v42, %v2030_v32 }
0x15cc   :  { %2034 = vrot.lane.b32.xlu1 %v2032_v53, %s17790_s6 }
0x1638   :  { %v1862_v40 = vpop.permute.xlu0 %1861 }
0x1639   :  { %1864 = vst.msk [vmem:[#allocation2 + $0x30] sm:$0xff] %vm79_vm0, %v1862_v40  ;;  %14931 = vmatmul.mubr.msk.f32.vlgmr.msra.gmra.mrb[22].mxu1 %vm79_vm0, %v1862_v40 }
0x163a   :  { %16452 = vmatpush3.bf16.msra.mxu1 %v18022_v44  ;;  %14952 = vmatprep.mubr.msk.f32.mxu1 %vm17787_vm1, %v21554_v4 }
0x163b   :  { %16453 = vmatprep.subr.bf16.mxu1 %v21556_v0 }
0x163e   :  { %16455 = vmatpush3.bf16.msra.mxu1 %v18028_v46  ;;  %v2035_v33 = vpop.permute.xlu1 %2034 }
0x163f   :  { %16462 = vmatprep.subr.bf16.mxu1 %v21556_v0 }
0x1641   :  { %14953 = vmatmul.mubr.msk.f32.vlgmr.msra.gmra.mrb[24].mxu1 %vm79_vm0, %v2035_v33 }
0x1642   :  { %16464 = vmatpush3.bf16.msra.mxu1 %v17974_v17  ;;  %14974 = vmatprep.mubr.msk.f32.mxu1 %vm17787_vm1, %v21554_v4 }
0x1643   :  { %16465 = vmatprep.subr.bf16.mxu1 %v21556_v0 }
0x1646   :  { %16467 = vmatpush3.bf16.msra.mxu1 %v17989_v21 }
0x1647   :  { %16474 = vmatprep.subr.bf16.mxu1 %v21556_v0 }
0x1649   :  { %14975 = vmatmul.mubr.msk.f32.vlgmr.msra.gmra.mrb[26].mxu1 %vm79_vm0, %v2035_v33 }
0x164a   :  { %16476 = vmatpush3.bf16.msra.mxu1 %v17942_v5  ;;  %14996 = vmatprep.mubr.msk.f32.mxu1 %vm17787_vm1, %v21554_v4 }
0x164b   :  { %16477 = vmatprep.subr.bf16.mxu1 %v21556_v0 }
0x164e   :  { %16479 = vmatpush3.bf16.msra.mxu1 %v17960_v12 }
0x164f   :  { %16486 = vmatprep.subr.bf16.mxu1 %v21556_v0 }
0x170c   :  { %v1933_v48 = vpop.f32.mrb[22].mxu1 }
0x170d   :  { %v14932_v34 = vpop.f32.mrb[23].mxu1 }
0x1714   :  { %v2104_v35 = vpop.f32.mrb[24].mxu1 }
0x1715   :  { %v2105_v13 = vadd.f32 %v2104_v35, %v1933_v48  ;;  %v14954_v36 = vpop.f32.mrb[25].mxu1 }
0x1717   :  { %v2108_v37 = vadd.f32 %v18049_v51, %v2105_v13 }
0x1719   :  { %17352 = vtanh.f32 %v2108_v37  ;;  %v13338_v51 = vmul.f32 -1.442695, %v2108_v37 }
0x171c   :  { %v2277_v41 = vpop.f32.mrb[26].mxu1 }
0x171d   :  { %v2281_v25 = vadd.f32 %v2277_v41, %v320_v39  ;;  %v14976_v52 = vpop.f32.mrb[27].mxu1 }
0x171f   :  { %17354 = vtanh.f32 %v2281_v25  ;;  %v13341_v24 = vmul.f32 -1.442695, %v2281_v25 }
0x1720   :  { %17356 = vpow2.f32 %v13338_v51 }
0x1721   :  { %17358 = vpow2.f32 %v13341_v24  ;;  %v18498_v24 = vld [vmem:[%s21615_s14] ss:$0 sm:$0xff] }
0x1723   :  { %v17353_v56 = vpop.eup %17352 }
0x1724   :  { %2118 = vrot.lane.b32.xlu0 %v17353_v56, %s17789_s7 }
0x1729   :  { %v17355_v42 = vpop.eup %17354 }
0x172a   :  { %2291 = vrot.lane.b32.xlu1 %v17355_v42, %s17789_s7  ;;  %v17357_v43 = vpop.eup %17356 }
0x172b   :  { %v2112_v45 = vadd.f32 1.0, %v17357_v43  ;;  %v17359_v30 = vpop.eup %17358 }
0x172c   :  { %v2285_v49 = vadd.f32 1.0, %v17359_v30 }
0x172d   :  { %17360 = vrcp.f32 %v2112_v45  ;;  %v325_v45 = vadd.f32 %v18453_v38, %v18259_v54 }
0x172e   :  { %17362 = vrcp.f32 %v2285_v49 }
0x1737   :  { %v17361_v55 = vpop.eup %17360 }
0x1738   :  { %v17363_v29 = vpop.eup %17362  ;;  %v2116_v32 = vmul.f32 %v17361_v55, %v18416_v47 }
0x1739   :  { %v2289_v33 = vmul.f32 %v17363_v29, %v18420_v8 }
0x1796   :  { %v2119_v50 = vpop.permute.xlu0 %2118 }
0x1797   :  { %v2121_v28 = vmul.f32 %v17361_v55, %v2119_v50 }
0x1799   :  { %2123 = vrot.lane.b32.xlu0 %v2121_v28, %s17789_s7 }
0x179c   :  { %v2292_v31 = vpop.permute.xlu1 %2291 }
0x179d   :  { %v2294_v58 = vmul.f32 %v17363_v29, %v2292_v31 }
0x179f   :  { %2296 = vrot.lane.b32.xlu1 %v2294_v58, %s17789_s7 }
0x180b   :  { %v2124_v53 = vpop.permute.xlu0 %2123 }
0x180c   :  { %v18462_v40 = vadd.f32 %v2124_v53, %v2116_v32 }
0x180e   :  { %17364 = vtanh.f32 %v18462_v40 }
0x1811   :  { %v2297_v48 = vpop.permute.xlu1 %2296 }
0x1812   :  { %v18466_v34 = vadd.f32 %v2297_v48, %v2289_v33 }
0x1814   :  { %17366 = vtanh.f32 %v18466_v34 }
0x1818   :  { %v17365_v35 = vpop.eup %17364 }
0x1819   :  { %2129 = vrot.lane.b32.xlu0 %v17365_v35, %s17789_s7 }
0x181e   :  { %v17367_v13 = vpop.eup %17366 }
0x181f   :  { %2302 = vrot.lane.b32.xlu1 %v17367_v13, %s17789_s7 }
0x188b   :  { %v2130_v36 = vpop.permute.xlu0 %2129 }
0x188c   :  { %v2132_v47 = vmul.f32 %v17361_v55, %v2130_v36 }
0x188e   :  { %2134 = vrot.lane.b32.xlu0 %v2132_v47, %s17790_s6 }
0x1891   :  { %v2303_v37 = vpop.permute.xlu1 %2302 }
0x1892   :  { %v2305_v39 = vmul.f32 %v17363_v29, %v2303_v37 }
0x1894   :  { %2307 = vrot.lane.b32.xlu1 %v2305_v39, %s17790_s6 }
0x1900   :  { %v2135_v8 = vpop.permute.xlu0 %2134 }
0x1901   :  { %2137 = vst.msk [vmem:[#allocation2 + $0x38] sm:$0xff] %vm79_vm0, %v2135_v8  ;;  %14964 = vmatmul.mubr.msk.f32.vlgmr.msra.gmra.mrb[42].mxu0 %vm79_vm0, %v2135_v8 }
0x1902   :  { %16470 = vmatpush3.bf16.msra.mxu0 %v18022_v44  ;;  %14985 = vmatprep.mubr.msk.f32.mxu0 %vm17787_vm1, %v21554_v4 }
0x1903   :  { %16471 = vmatprep.subr.bf16.mxu0 %v21556_v0 }
0x1906   :  { %16473 = vmatpush3.bf16.msra.mxu0 %v18028_v46  ;;  %v2308_v41 = vpop.permute.xlu1 %2307 }
0x1907   :  { %16480 = vmatprep.subr.bf16.mxu0 %v21556_v0 }
0x1909   :  { %14986 = vmatmul.mubr.msk.f32.vlgmr.msra.gmra.mrb[44].mxu0 %vm79_vm0, %v2308_v41 }
0x190a   :  { %16482 = vmatpush3.bf16.msra.mxu0 %v17974_v17  ;;  %15007 = vmatprep.mubr.msk.f32.mxu0 %vm17787_vm1, %v21554_v4 }
0x190b   :  { %16483 = vmatprep.subr.bf16.mxu0 %v21556_v0 }
0x190e   :  { %16485 = vmatpush3.bf16.msra.mxu0 %v17989_v21 }
0x190f   :  { %16492 = vmatprep.subr.bf16.mxu0 %v21556_v0 }
0x1911   :  { %15008 = vmatmul.mubr.msk.f32.vlgmr.msra.gmra.mrb[46].mxu0 %vm79_vm0, %v2308_v41 }
0x1912   :  { %16494 = vmatpush3.bf16.msra.mxu0 %v17942_v5  ;;  %15029 = vmatprep.mubr.msk.f32.mxu0 %vm17787_vm1, %v21554_v4 }
0x1913   :  { %16495 = vmatprep.subr.bf16.mxu0 %v21556_v0 }
0x1916   :  { %16497 = vmatpush3.bf16.msra.mxu0 %v17960_v12 }
0x1917   :  { %16504 = vmatprep.subr.bf16.mxu0 %v21556_v0 }
0x19d4   :  { %v2206_v25 = vpop.f32.mrb[42].mxu0 }
0x19d5   :  { %v14965_v52 = vpop.f32.mrb[43].mxu0 }
0x19dc   :  { %v2377_v56 = vpop.f32.mrb[44].mxu0 }
0x19dd   :  { %v2378_v42 = vadd.f32 %v2377_v56, %v2206_v25  ;;  %v14987_v51 = vpop.f32.mrb[45].mxu0 }
0x19df   :  { %v2381_v43 = vadd.f32 %v18498_v24, %v2378_v42 }
0x19e1   :  { %17368 = vtanh.f32 %v2381_v43  ;;  %v13343_v29 = vmul.f32 -1.442695, %v2381_v43 }
0x19e4   :  { %v2550_v30 = vpop.f32.mrb[46].mxu0 }
0x19e5   :  { %v2554_v49 = vadd.f32 %v2550_v30, %v325_v45  ;;  %v15009_v55 = vpop.f32.mrb[47].mxu0 }
0x19e7   :  { %17370 = vtanh.f32 %v2554_v49  ;;  %v13346_v31 = vmul.f32 -1.442695, %v2554_v49 }
0x19e8   :  { %17372 = vpow2.f32 %v13343_v29 }
0x19e9   :  { %17374 = vpow2.f32 %v13346_v31 }
0x19eb   :  { %v17369_v50 = vpop.eup %17368 }
0x19ec   :  { %2391 = vrot.lane.b32.xlu0 %v17369_v50, %s17789_s7 }
0x19f1   :  { %v17371_v28 = vpop.eup %17370 }
0x19f2   :  { %2564 = vrot.lane.b32.xlu1 %v17371_v28, %s17789_s7  ;;  %v17373_v58 = vpop.eup %17372 }
0x19f3   :  { %v2385_v32 = vadd.f32 1.0, %v17373_v58  ;;  %v17375_v53 = vpop.eup %17374  ;;  %v330_v58 = vadd.f32 %v18453_v38, %v18265_v59 }
0x19f4   :  { %v2558_v33 = vadd.f32 1.0, %v17375_v53 }
0x19f5   :  { %17376 = vrcp.f32 %v2385_v32 }
0x19f6   :  { %17378 = vrcp.f32 %v2558_v33 }
0x19ff   :  { %v17377_v54 = vpop.eup %17376 }
0x1a00   :  { %v17379_v13 = vpop.eup %17378  ;;  %v2389_v37 = vmul.f32 %v17377_v54, %v18462_v40 }
0x1a01   :  { %v2562_v41 = vmul.f32 %v17379_v13, %v18466_v34 }
0x1a5e   :  { %v2392_v48 = vpop.permute.xlu0 %2391 }
0x1a5f   :  { %v2394_v35 = vmul.f32 %v17377_v54, %v2392_v48 }
0x1a61   :  { %2396 = vrot.lane.b32.xlu0 %v2394_v35, %s17789_s7 }
0x1a64   :  { %v2565_v36 = vpop.permute.xlu1 %2564 }
0x1a65   :  { %v2567_v47 = vmul.f32 %v17379_v13, %v2565_v36 }
0x1a67   :  { %2569 = vrot.lane.b32.xlu1 %v2567_v47, %s17789_s7 }
0x1ad3   :  { %v2397_v39 = vpop.permute.xlu0 %2396 }
0x1ad4   :  { %v18508_v8 = vadd.f32 %v2397_v39, %v2389_v37 }
0x1ad6   :  { %17380 = vtanh.f32 %v18508_v8 }
0x1ad9   :  { %v2570_v25 = vpop.permute.xlu1 %2569 }
0x1ada   :  { %v18512_v52 = vadd.f32 %v2570_v25, %v2562_v41 }
0x1adc   :  { %17382 = vtanh.f32 %v18512_v52 }
0x1ae0   :  { %v17381_v56 = vpop.eup %17380 }
0x1ae1   :  { %2402 = vrot.lane.b32.xlu0 %v17381_v56, %s17789_s7 }
0x1ae6   :  { %v17383_v42 = vpop.eup %17382 }
0x1ae7   :  { %2575 = vrot.lane.b32.xlu1 %v17383_v42, %s17789_s7 }
0x1b53   :  { %v2403_v51 = vpop.permute.xlu0 %2402 }
0x1b54   :  { %v2405_v40 = vmul.f32 %v17377_v54, %v2403_v51 }
0x1b56   :  { %2407 = vrot.lane.b32.xlu0 %v2405_v40, %s17790_s6 }
0x1b59   :  { %v2576_v43 = vpop.permute.xlu1 %2575 }
0x1b5a   :  { %v2578_v45 = vmul.f32 %v17379_v13, %v2576_v43 }
0x1b5c   :  { %2580 = vrot.lane.b32.xlu1 %v2578_v45, %s17790_s6 }
0x1bc8   :  { %v2408_v34 = vpop.permute.xlu0 %2407 }
0x1bc9   :  { %2410 = vst.msk [vmem:[#allocation2 + $0x40] sm:$0xff] %vm79_vm0, %v2408_v34  ;;  %14997 = vmatmul.mubr.msk.f32.vlgmr.msra.gmra.mrb[28].mxu1 %vm79_vm0, %v2408_v34 }
0x1bca   :  { %16488 = vmatpush3.bf16.msra.mxu1 %v18022_v44  ;;  %15018 = vmatprep.mubr.msk.f32.mxu1 %vm17787_vm1, %v21554_v4 }
0x1bcb   :  { %16489 = vmatprep.subr.bf16.mxu1 %v21556_v0 }
0x1bce   :  { %16491 = vmatpush3.bf16.msra.mxu1 %v18028_v46  ;;  %v2581_v30 = vpop.permute.xlu1 %2580 }
0x1bcf   :  { %16498 = vmatprep.subr.bf16.mxu1 %v21556_v0 }
0x1bd1   :  { %15019 = vmatmul.mubr.msk.f32.vlgmr.msra.gmra.mrb[30].mxu1 %vm79_vm0, %v2581_v30 }
0x1bd2   :  { %16500 = vmatpush3.bf16.msra.mxu1 %v17974_v17  ;;  %15040 = vmatprep.mubr.msk.f32.mxu1 %vm17787_vm1, %v21554_v4 }
0x1bd3   :  { %16501 = vmatprep.subr.bf16.mxu1 %v21556_v0 }
0x1bd6   :  { %16503 = vmatpush3.bf16.msra.mxu1 %v17989_v21 }
0x1bd7   :  { %16510 = vmatprep.subr.bf16.mxu1 %v21556_v0 }
0x1bd9   :  { %15041 = vmatmul.mubr.msk.f32.vlgmr.msra.gmra.mrb[32].mxu1 %vm79_vm0, %v2581_v30 }
0x1bda   :  { %16512 = vmatpush3.bf16.msra.mxu1 %v17942_v5  ;;  %15062 = vmatprep.mubr.msk.f32.mxu1 %vm17787_vm1, %v21554_v4 }
0x1bdb   :  { %16513 = vmatprep.subr.bf16.mxu1 %v21556_v0 }
0x1bde   :  { %16515 = vmatpush3.bf16.msra.mxu1 %v17960_v12 }
0x1bdf   :  { %16522 = vmatprep.subr.bf16.mxu1 %v21556_v0 }
0x1c9c   :  { %v2479_v49 = vpop.f32.mrb[28].mxu1 }
0x1c9d   :  { %v14998_v55 = vpop.f32.mrb[29].mxu1 }
0x1ca4   :  { %v2650_v50 = vpop.f32.mrb[30].mxu1 }
0x1ca5   :  { %v2651_v28 = vadd.f32 %v2650_v50, %v2479_v49  ;;  %v15020_v29 = vpop.f32.mrb[31].mxu1 }
0x1ca7   :  { %v2654_v31 = vadd.f32 %v18498_v24, %v2651_v28 }
0x1ca9   :  { %17384 = vtanh.f32 %v2654_v31  ;;  %v13348_v35 = vmul.f32 -1.442695, %v2654_v31 }
0x1cac   :  { %v2823_v32 = vpop.f32.mrb[32].mxu1 }
0x1cad   :  { %v2827_v53 = vadd.f32 %v2823_v32, %v330_v58  ;;  %v15042_v33 = vpop.f32.mrb[33].mxu1 }
0x1caf   :  { %17386 = vtanh.f32 %v2827_v53  ;;  %v13351_v13 = vmul.f32 -1.442695, %v2827_v53 }
0x1cb0   :  { %17388 = vpow2.f32 %v13348_v35 }
0x1cb1   :  { %17390 = vpow2.f32 %v13351_v13  ;;  %v335_v13 = vadd.f32 %v18453_v38, %v18263_v57 }
0x1cb3   :  { %v17385_v54 = vpop.eup %17384 }
0x1cb4   :  { %2664 = vrot.lane.b32.xlu0 %v17385_v54, %s17789_s7 }
0x1cb9   :  { %v17387_v48 = vpop.eup %17386 }
0x1cba   :  { %2837 = vrot.lane.b32.xlu1 %v17387_v48, %s17789_s7  ;;  %v17389_v36 = vpop.eup %17388 }
0x1cbb   :  { %v2658_v47 = vadd.f32 1.0, %v17389_v36  ;;  %v17391_v37 = vpop.eup %17390 }
0x1cbc   :  { %v2831_v39 = vadd.f32 1.0, %v17391_v37 }
0x1cbd   :  { %17392 = vrcp.f32 %v2658_v47 }
0x1cbe   :  { %17394 = vrcp.f32 %v2831_v39 }
0x1cc7   :  { %v17393_v59 = vpop.eup %17392 }
0x1cc8   :  { %v17395_v56 = vpop.eup %17394  ;;  %v2662_v40 = vmul.f32 %v17393_v59, %v18508_v8 }
0x1cc9   :  { %v2835_v34 = vmul.f32 %v17395_v56, %v18512_v52 }
0x1d26   :  { %v2665_v41 = vpop.permute.xlu0 %2664 }
0x1d27   :  { %v2667_v25 = vmul.f32 %v17393_v59, %v2665_v41 }
0x1d29   :  { %2669 = vrot.lane.b32.xlu0 %v2667_v25, %s17789_s7 }
0x1d2c   :  { %v2838_v42 = vpop.permute.xlu1 %2837 }
0x1d2d   :  { %v2840_v51 = vmul.f32 %v17395_v56, %v2838_v42 }
0x1d2f   :  { %2842 = vrot.lane.b32.xlu1 %v2840_v51, %s17789_s7 }
0x1d9b   :  { %v2670_v43 = vpop.permute.xlu0 %2669 }
0x1d9c   :  { %v18549_v45 = vadd.f32 %v2670_v43, %v2662_v40 }
0x1d9e   :  { %17396 = vtanh.f32 %v18549_v45 }
0x1da1   :  { %v2843_v30 = vpop.permute.xlu1 %2842 }
0x1da2   :  { %v18553_v49 = vadd.f32 %v2843_v30, %v2835_v34 }
0x1da4   :  { %17398 = vtanh.f32 %v18553_v49 }
0x1da8   :  { %v17397_v55 = vpop.eup %17396 }
0x1da9   :  { %2675 = vrot.lane.b32.xlu0 %v17397_v55, %s17789_s7 }
0x1dae   :  { %v17399_v50 = vpop.eup %17398 }
0x1daf   :  { %2848 = vrot.lane.b32.xlu1 %v17399_v50, %s17789_s7 }
0x1e1b   :  { %v2676_v28 = vpop.permute.xlu0 %2675 }
0x1e1c   :  { %v2678_v8 = vmul.f32 %v17393_v59, %v2676_v28 }
0x1e1e   :  { %2680 = vrot.lane.b32.xlu0 %v2678_v8, %s17790_s6 }
0x1e21   :  { %v2849_v29 = vpop.permute.xlu1 %2848 }
0x1e22   :  { %v2851_v31 = vmul.f32 %v17395_v56, %v2849_v29 }
0x1e24   :  { %2853 = vrot.lane.b32.xlu1 %v2851_v31, %s17790_s6 }
0x1e90   :  { %v2681_v52 = vpop.permute.xlu0 %2680 }
0x1e91   :  { %2683 = vst.msk [vmem:[#allocation2 + $0x48] sm:$0xff] %vm79_vm0, %v2681_v52  ;;  %15030 = vmatmul.mubr.msk.f32.vlgmr.msra.gmra.mrb[48].mxu0 %vm79_vm0, %v2681_v52 }
0x1e92   :  { %16506 = vmatpush3.bf16.msra.mxu0 %v18022_v44  ;;  %15051 = vmatprep.mubr.msk.f32.mxu0 %vm17787_vm1, %v21554_v4 }
0x1e93   :  { %16507 = vmatprep.subr.bf16.mxu0 %v21556_v0 }
0x1e96   :  { %16509 = vmatpush3.bf16.msra.mxu0 %v18028_v46  ;;  %v2854_v58 = vpop.permute.xlu1 %2853 }
0x1e97   :  { %16516 = vmatprep.subr.bf16.mxu0 %v21556_v0 }
0x1e99   :  { %15052 = vmatmul.mubr.msk.f32.vlgmr.msra.gmra.mrb[50].mxu0 %vm79_vm0, %v2854_v58 }
0x1e9a   :  { %16518 = vmatpush3.bf16.msra.mxu0 %v17974_v17  ;;  %15073 = vmatprep.mubr.msk.f32.mxu0 %vm17787_vm1, %v21554_v4 }
0x1e9b   :  { %16519 = vmatprep.subr.bf16.mxu0 %v21556_v0 }
0x1e9e   :  { %16521 = vmatpush3.bf16.msra.mxu0 %v17989_v21 }
0x1e9f   :  { %16528 = vmatprep.subr.bf16.mxu0 %v21556_v0 }
0x1ea1   :  { %15074 = vmatmul.mubr.msk.f32.vlgmr.msra.gmra.mrb[52].mxu0 %vm79_vm0, %v2854_v58 }
0x1ea2   :  { %16530 = vmatpush3.bf16.msra.mxu0 %v17942_v5  ;;  %15095 = vmatprep.mubr.msk.f32.mxu0 %vm17787_vm1, %v21554_v4 }
0x1ea3   :  { %16531 = vmatprep.subr.bf16.mxu0 %v21556_v0 }
0x1ea6   :  { %16533 = vmatpush3.bf16.msra.mxu0 %v17960_v12 }
0x1ea7   :  { %16540 = vmatprep.subr.bf16.mxu0 %v21556_v0 }
0x1f64   :  { %v2752_v32 = vpop.f32.mrb[48].mxu0 }
0x1f65   :  { %v15031_v53 = vpop.f32.mrb[49].mxu0 }
0x1f6c   :  { %v2923_v33 = vpop.f32.mrb[50].mxu0 }
0x1f6d   :  { %v2924_v54 = vadd.f32 %v2923_v33, %v2752_v32  ;;  %v15053_v48 = vpop.f32.mrb[51].mxu0 }
0x1f6f   :  { %v2927_v35 = vadd.f32 %v18498_v24, %v2924_v54 }
0x1f71   :  { %17400 = vtanh.f32 %v2927_v35  ;;  %v13353_v41 = vmul.f32 -1.442695, %v2927_v35 }
0x1f74   :  { %v3096_v36 = vpop.f32.mrb[52].mxu0 }
0x1f75   :  { %v3100_v47 = vadd.f32 %v3096_v36, %v335_v13  ;;  %v15075_v37 = vpop.f32.mrb[53].mxu0 }
0x1f77   :  { %17402 = vtanh.f32 %v3100_v47  ;;  %v13356_v25 = vmul.f32 -1.442695, %v3100_v47 }
0x1f78   :  { %17404 = vpow2.f32 %v13353_v41  ;;  %v340_v41 = vadd.f32 %v18453_v38, %v18269_v61 }
0x1f79   :  { %17406 = vpow2.f32 %v13356_v25 }
0x1f7b   :  { %v17401_v39 = vpop.eup %17400 }
0x1f7c   :  { %2937 = vrot.lane.b32.xlu0 %v17401_v39, %s17789_s7 }
0x1f81   :  { %v17403_v59 = vpop.eup %17402 }
0x1f82   :  { %3110 = vrot.lane.b32.xlu1 %v17403_v59, %s17789_s7  ;;  %v17405_v56 = vpop.eup %17404 }
0x1f83   :  { %v2931_v42 = vadd.f32 1.0, %v17405_v56  ;;  %v17407_v51 = vpop.eup %17406 }
0x1f84   :  { %v3104_v40 = vadd.f32 1.0, %v17407_v51 }
0x1f85   :  { %17408 = vrcp.f32 %v2931_v42 }
0x1f86   :  { %17410 = vrcp.f32 %v3104_v40 }
0x1f8f   :  { %v17409_v57 = vpop.eup %17408 }
0x1f90   :  { %v17411_v30 = vpop.eup %17410  ;;  %v2935_v28 = vmul.f32 %v17409_v57, %v18549_v45 }
0x1f91   :  { %v3108_v31 = vmul.f32 %v17411_v30, %v18553_v49 }
0x1fee   :  { %v2938_v43 = vpop.permute.xlu0 %2937 }
0x1fef   :  { %v2940_v34 = vmul.f32 %v17409_v57, %v2938_v43 }
0x1ff1   :  { %2942 = vrot.lane.b32.xlu0 %v2940_v34, %s17789_s7 }
0x1ff4   :  { %v3111_v55 = vpop.permute.xlu1 %3110 }
0x1ff5   :  { %v3113_v50 = vmul.f32 %v17411_v30, %v3111_v55 }
0x1ff7   :  { %3115 = vrot.lane.b32.xlu1 %v3113_v50, %s17789_s7 }
0x2063   :  { %v2943_v8 = vpop.permute.xlu0 %2942 }
0x2064   :  { %v18590_v29 = vadd.f32 %v2943_v8, %v2935_v28 }
0x2066   :  { %17412 = vtanh.f32 %v18590_v29 }
0x2069   :  { %v3116_v52 = vpop.permute.xlu1 %3115 }
0x206a   :  { %v18594_v58 = vadd.f32 %v3116_v52, %v3108_v31 }
0x206c   :  { %17414 = vtanh.f32 %v18594_v58 }
0x2070   :  { %v17413_v32 = vpop.eup %17412 }
0x2071   :  { %2948 = vrot.lane.b32.xlu0 %v17413_v32, %s17789_s7 }
0x2076   :  { %v17415_v53 = vpop.eup %17414 }
0x2077   :  { %3121 = vrot.lane.b32.xlu1 %v17415_v53, %s17789_s7 }
0x20e3   :  { %v2949_v33 = vpop.permute.xlu0 %2948 }
0x20e4   :  { %v2951_v45 = vmul.f32 %v17409_v57, %v2949_v33 }
0x20e6   :  { %2953 = vrot.lane.b32.xlu0 %v2951_v45, %s17790_s6 }
0x20e9   :  { %v3122_v54 = vpop.permute.xlu1 %3121 }
0x20ea   :  { %v3124_v48 = vmul.f32 %v17411_v30, %v3122_v54 }
0x20ec   :  { %3126 = vrot.lane.b32.xlu1 %v3124_v48, %s17790_s6 }
0x2158   :  { %v2954_v49 = vpop.permute.xlu0 %2953 }
0x2159   :  { %2956 = vst.msk [vmem:[#allocation2 + $0x50] sm:$0xff] %vm79_vm0, %v2954_v49  ;;  %15063 = vmatmul.mubr.msk.f32.vlgmr.msra.gmra.mrb[34].mxu1 %vm79_vm0, %v2954_v49 }
0x215a   :  { %16524 = vmatpush3.bf16.msra.mxu1 %v18022_v44  ;;  %15084 = vmatprep.mubr.msk.f32.mxu1 %vm17787_vm1, %v21554_v4 }
0x215b   :  { %16525 = vmatprep.subr.bf16.mxu1 %v21556_v0 }
0x215e   :  { %16527 = vmatpush3.bf16.msra.mxu1 %v18028_v46  ;;  %v3127_v35 = vpop.permute.xlu1 %3126 }
0x215f   :  { %16534 = vmatprep.subr.bf16.mxu1 %v21556_v0 }
0x2161   :  { %15085 = vmatmul.mubr.msk.f32.vlgmr.msra.gmra.mrb[36].mxu1 %vm79_vm0, %v3127_v35 }
0x2162   :  { %16536 = vmatpush3.bf16.msra.mxu1 %v17974_v17  ;;  %15106 = vmatprep.mubr.msk.f32.mxu1 %vm17787_vm1, %v21554_v4 }
0x2163   :  { %16537 = vmatprep.subr.bf16.mxu1 %v21556_v0 }
0x2166   :  { %16539 = vmatpush3.bf16.msra.mxu1 %v17989_v21 }
0x2167   :  { %16546 = vmatprep.subr.bf16.mxu1 %v21556_v0 }
0x2169   :  { %15107 = vmatmul.mubr.msk.f32.vlgmr.msra.gmra.mrb[38].mxu1 %vm79_vm0, %v3127_v35 }
0x216a   :  { %16548 = vmatpush3.bf16.msra.mxu1 %v17942_v5  ;;  %15128 = vmatprep.mubr.msk.f32.mxu1 %vm17787_vm1, %v21554_v4 }
0x216b   :  { %16549 = vmatprep.subr.bf16.mxu1 %v21556_v0 }
0x216e   :  { %16551 = vmatpush3.bf16.msra.mxu1 %v17960_v12 }
0x216f   :  { %16558 = vmatprep.subr.bf16.mxu1 %v21556_v0 }
0x222c   :  { %v3025_v13 = vpop.f32.mrb[34].mxu1 }
0x222d   :  { %v15064_v36 = vpop.f32.mrb[35].mxu1 }
0x2234   :  { %v3196_v47 = vpop.f32.mrb[36].mxu1 }
0x2235   :  { %v3197_v37 = vadd.f32 %v3196_v47, %v3025_v13  ;;  %v15086_v39 = vpop.f32.mrb[37].mxu1 }
0x2237   :  { %v3200_v59 = vadd.f32 %v18498_v24, %v3197_v37 }
0x2239   :  { %17416 = vtanh.f32 %v3200_v59  ;;  %v13358_v57 = vmul.f32 -1.442695, %v3200_v59 }
0x223c   :  { %v3369_v25 = vpop.f32.mrb[38].mxu1 }
0x223d   :  { %v3373_v56 = vadd.f32 %v3369_v25, %v340_v41  ;;  %v15108_v42 = vpop.f32.mrb[39].mxu1 }
0x223f   :  { %17418 = vtanh.f32 %v3373_v56  ;;  %v13361_v43 = vmul.f32 -1.442695, %v3373_v56 }
0x2240   :  { %17420 = vpow2.f32 %v13358_v57 }
0x2241   :  { %17422 = vpow2.f32 %v13361_v43 }
0x2243   :  { %v17417_v51 = vpop.eup %17416 }
0x2244   :  { %3210 = vrot.lane.b32.xlu0 %v17417_v51, %s17789_s7 }
0x2249   :  { %v17419_v40 = vpop.eup %17418 }
0x224a   :  { %3383 = vrot.lane.b32.xlu1 %v17419_v40, %s17789_s7  ;;  %v17421_v34 = vpop.eup %17420  ;;  %v345_v40 = vadd.f32 %v18453_v38, %v18267_v60 }
0x224b   :  { %v3204_v30 = vadd.f32 1.0, %v17421_v34  ;;  %v17423_v55 = vpop.eup %17422 }
0x224c   :  { %v3377_v50 = vadd.f32 1.0, %v17423_v55 }
0x224d   :  { %17424 = vrcp.f32 %v3204_v30 }
0x224e   :  { %17426 = vrcp.f32 %v3377_v50 }
0x2257   :  { %v17425_v61 = vpop.eup %17424 }
0x2258   :  { %v17427_v31 = vpop.eup %17426  ;;  %v3208_v53 = vmul.f32 %v17425_v61, %v18590_v29 }
0x2259   :  { %v3381_v54 = vmul.f32 %v17427_v31, %v18594_v58 }
0x22b6   :  { %v3211_v28 = vpop.permute.xlu0 %3210 }
0x22b7   :  { %v3213_v8 = vmul.f32 %v17425_v61, %v3211_v28 }
0x22b9   :  { %3215 = vrot.lane.b32.xlu0 %v3213_v8, %s17789_s7 }
0x22bc   :  { %v3384_v52 = vpop.permute.xlu1 %3383 }
0x22bd   :  { %v3386_v32 = vmul.f32 %v17427_v31, %v3384_v52 }
0x22bf   :  { %3388 = vrot.lane.b32.xlu1 %v3386_v32, %s17789_s7 }
0x232b   :  { %v3216_v33 = vpop.permute.xlu0 %3215 }
0x232c   :  { %v18631_v45 = vadd.f32 %v3216_v33, %v3208_v53 }
0x232e   :  { %17428 = vtanh.f32 %v18631_v45 }
0x2331   :  { %v3389_v48 = vpop.permute.xlu1 %3388 }
0x2332   :  { %v18635_v49 = vadd.f32 %v3389_v48, %v3381_v54 }
0x2334   :  { %17430 = vtanh.f32 %v18635_v49 }
0x2338   :  { %v17429_v35 = vpop.eup %17428 }
0x2339   :  { %3221 = vrot.lane.b32.xlu0 %v17429_v35, %s17789_s7 }
0x233e   :  { %v17431_v13 = vpop.eup %17430 }
0x233f   :  { %3394 = vrot.lane.b32.xlu1 %v17431_v13, %s17789_s7 }
0x23ab   :  { %v3222_v36 = vpop.permute.xlu0 %3221 }
0x23ac   :  { %v3224_v29 = vmul.f32 %v17425_v61, %v3222_v36 }
0x23ae   :  { %3226 = vrot.lane.b32.xlu0 %v3224_v29, %s17790_s6 }
0x23b1   :  { %v3395_v47 = vpop.permute.xlu1 %3394 }
0x23b2   :  { %v3397_v37 = vmul.f32 %v17427_v31, %v3395_v47 }
0x23b4   :  { %3399 = vrot.lane.b32.xlu1 %v3397_v37, %s17790_s6 }
0x2420   :  { %v3227_v58 = vpop.permute.xlu0 %3226 }
0x2421   :  { %3229 = vst.msk [vmem:[#allocation2 + $0x58] sm:$0xff] %vm79_vm0, %v3227_v58  ;;  %15096 = vmatmul.mubr.msk.f32.vlgmr.msra.gmra.mrb[54].mxu0 %vm79_vm0, %v3227_v58 }
0x2422   :  { %16542 = vmatpush3.bf16.msra.mxu0 %v18022_v44  ;;  %15117 = vmatprep.mubr.msk.f32.mxu0 %vm17787_vm1, %v21554_v4 }
0x2423   :  { %16543 = vmatprep.subr.bf16.mxu0 %v21556_v0 }
0x2426   :  { %16545 = vmatpush3.bf16.msra.mxu0 %v18028_v46  ;;  %v3400_v39 = vpop.permute.xlu1 %3399 }
0x2427   :  { %16552 = vmatprep.subr.bf16.mxu0 %v21556_v0 }
0x2429   :  { %15118 = vmatmul.mubr.msk.f32.vlgmr.msra.gmra.mrb[56].mxu0 %vm79_vm0, %v3400_v39 }
0x242a   :  { %16554 = vmatpush3.bf16.msra.mxu0 %v17974_v17  ;;  %15139 = vmatprep.mubr.msk.f32.mxu0 %vm17787_vm1, %v21554_v4 }
0x242b   :  { %16555 = vmatprep.subr.bf16.mxu0 %v21556_v0 }
0x242e   :  { %16557 = vmatpush3.bf16.msra.mxu0 %v17989_v21 }
0x242f   :  { %16564 = vmatprep.subr.bf16.mxu0 %v21556_v0 }
0x2431   :  { %15140 = vmatmul.mubr.msk.f32.vlgmr.msra.gmra.mrb[58].mxu0 %vm79_vm0, %v3400_v39 }
0x2432   :  { %16566 = vmatpush3.bf16.msra.mxu0 %v17942_v5  ;;  %15161 = vmatprep.mubr.msk.f32.mxu0 %vm17787_vm1, %v21554_v4 }
0x2433   :  { %16567 = vmatprep.subr.bf16.mxu0 %v21556_v0 }
0x2436   :  { %16569 = vmatpush3.bf16.msra.mxu0 %v17960_v12 }
0x2437   :  { %16576 = vmatprep.subr.bf16.mxu0 %v21556_v0 }
0x24f4   :  { %v3298_v59 = vpop.f32.mrb[54].mxu0 }
0x24f5   :  { %v15097_v41 = vpop.f32.mrb[55].mxu0 }
0x24fc   :  { %v3469_v25 = vpop.f32.mrb[56].mxu0 }
0x24fd   :  { %v3470_v56 = vadd.f32 %v3469_v25, %v3298_v59  ;;  %v15119_v42 = vpop.f32.mrb[57].mxu0 }
0x24ff   :  { %v3473_v51 = vadd.f32 %v18498_v24, %v3470_v56 }
0x2501   :  { %17432 = vtanh.f32 %v3473_v51  ;;  %v13363_v50 = vmul.f32 -1.442695, %v3473_v51 }
0x2504   :  { %v3642_v57 = vpop.f32.mrb[58].mxu0 }
0x2505   :  { %v3646_v43 = vadd.f32 %v3642_v57, %v345_v40  ;;  %v15141_v34 = vpop.f32.mrb[59].mxu0 }
0x2507   :  { %17434 = vtanh.f32 %v3646_v43  ;;  %v13366_v61 = vmul.f32 -1.442695, %v3646_v43 }
0x2508   :  { %17436 = vpow2.f32 %v13363_v50 }
0x2509   :  { %17438 = vpow2.f32 %v13366_v61 }
0x250b   :  { %v17433_v30 = vpop.eup %17432 }
0x250c   :  { %3483 = vrot.lane.b32.xlu0 %v17433_v30, %s17789_s7  ;;  %v350_v30 = vadd.f32 %v18453_v38, %v18273_v63 }
0x2511   :  { %v17435_v55 = vpop.eup %17434 }
0x2512   :  { %3656 = vrot.lane.b32.xlu1 %v17435_v55, %s17789_s7  ;;  %v17437_v28 = vpop.eup %17436 }
0x2513   :  { %v3477_v8 = vadd.f32 1.0, %v17437_v28  ;;  %v17439_v31 = vpop.eup %17438 }
0x2514   :  { %v3650_v52 = vadd.f32 1.0, %v17439_v31 }
0x2515   :  { %17440 = vrcp.f32 %v3477_v8 }
0x2516   :  { %17442 = vrcp.f32 %v3650_v52 }
0x251f   :  { %v17441_v60 = vpop.eup %17440 }
0x2520   :  { %v17443_v33 = vpop.eup %17442  ;;  %v3481_v35 = vmul.f32 %v17441_v60, %v18631_v45 }
0x2521   :  { %v3654_v29 = vmul.f32 %v17443_v33, %v18635_v49 }
0x257e   :  { %v3484_v32 = vpop.permute.xlu0 %3483 }
0x257f   :  { %v3486_v53 = vmul.f32 %v17441_v60, %v3484_v32 }
0x2581   :  { %3488 = vrot.lane.b32.xlu0 %v3486_v53, %s17789_s7 }
0x2584   :  { %v3657_v54 = vpop.permute.xlu1 %3656 }
0x2585   :  { %v3659_v48 = vmul.f32 %v17443_v33, %v3657_v54 }
0x2587   :  { %3661 = vrot.lane.b32.xlu1 %v3659_v48, %s17789_s7 }
0x25f3   :  { %v3489_v13 = vpop.permute.xlu0 %3488 }
0x25f4   :  { %v18672_v36 = vadd.f32 %v3489_v13, %v3481_v35 }
0x25f6   :  { %17444 = vtanh.f32 %v18672_v36 }
0x25f9   :  { %v3662_v47 = vpop.permute.xlu1 %3661 }
0x25fa   :  { %v18676_v37 = vadd.f32 %v3662_v47, %v3654_v29 }
0x25fc   :  { %17446 = vtanh.f32 %v18676_v37 }
0x2600   :  { %v17445_v58 = vpop.eup %17444 }
0x2601   :  { %3494 = vrot.lane.b32.xlu0 %v17445_v58, %s17789_s7 }
0x2606   :  { %v17447_v39 = vpop.eup %17446 }
0x2607   :  { %3667 = vrot.lane.b32.xlu1 %v17447_v39, %s17789_s7 }
0x2673   :  { %v3495_v59 = vpop.permute.xlu0 %3494 }
0x2674   :  { %v3497_v45 = vmul.f32 %v17441_v60, %v3495_v59 }
0x2676   :  { %3499 = vrot.lane.b32.xlu0 %v3497_v45, %s17790_s6 }
0x2679   :  { %v3668_v41 = vpop.permute.xlu1 %3667 }
0x267a   :  { %v3670_v25 = vmul.f32 %v17443_v33, %v3668_v41 }
0x267c   :  { %3672 = vrot.lane.b32.xlu1 %v3670_v25, %s17790_s6 }
0x26e8   :  { %v3500_v49 = vpop.permute.xlu0 %3499 }
0x26e9   :  { %3502 = vst.msk [vmem:[#allocation2 + $0x60] sm:$0xff] %vm79_vm0, %v3500_v49  ;;  %15129 = vmatmul.mubr.msk.f32.vlgmr.msra.gmra.mrb[40].mxu1 %vm79_vm0, %v3500_v49 }
0x26ea   :  { %16560 = vmatpush3.bf16.msra.mxu1 %v18022_v44  ;;  %15150 = vmatprep.mubr.msk.f32.mxu1 %vm17787_vm1, %v21554_v4 }
0x26eb   :  { %16561 = vmatprep.subr.bf16.mxu1 %v21556_v0 }
0x26ee   :  { %16563 = vmatpush3.bf16.msra.mxu1 %v18028_v46  ;;  %v3673_v56 = vpop.permute.xlu1 %3672 }
0x26ef   :  { %16570 = vmatprep.subr.bf16.mxu1 %v21556_v0 }
0x26f1   :  { %15151 = vmatmul.mubr.msk.f32.vlgmr.msra.gmra.mrb[42].mxu1 %vm79_vm0, %v3673_v56 }
0x26f2   :  { %16572 = vmatpush3.bf16.msra.mxu1 %v17974_v17  ;;  %15172 = vmatprep.mubr.msk.f32.mxu1 %vm17787_vm1, %v21554_v4 }
0x26f3   :  { %16573 = vmatprep.subr.bf16.mxu1 %v21556_v0 }
0x26f6   :  { %16575 = vmatpush3.bf16.msra.mxu1 %v17989_v21 }
0x26f7   :  { %16582 = vmatprep.subr.bf16.mxu1 %v21556_v0 }
0x26f9   :  { %15173 = vmatmul.mubr.msk.f32.vlgmr.msra.gmra.mrb[44].mxu1 %vm79_vm0, %v3673_v56 }
0x26fa   :  { %16584 = vmatpush3.bf16.msra.mxu1 %v17942_v5  ;;  %15194 = vmatprep.mubr.msk.f32.mxu1 %vm17787_vm1, %v21554_v4 }
0x26fb   :  { %16585 = vmatprep.subr.bf16.mxu1 %v21556_v0 }
0x26fe   :  { %16587 = vmatpush3.bf16.msra.mxu1 %v17960_v12 }
0x26ff   :  { %16594 = vmatprep.subr.bf16.mxu1 %v21556_v0 }
0x27bc   :  { %v3571_v42 = vpop.f32.mrb[40].mxu1 }
0x27bd   :  { %v15130_v51 = vpop.f32.mrb[41].mxu1 }
0x27c4   :  { %v3742_v40 = vpop.f32.mrb[42].mxu1 }
0x27c5   :  { %v3743_v57 = vadd.f32 %v3742_v40, %v3571_v42  ;;  %v15152_v43 = vpop.f32.mrb[43].mxu1 }
0x27c7   :  { %v3746_v34 = vadd.f32 %v18498_v24, %v3743_v57 }
0x27c9   :  { %17448 = vtanh.f32 %v3746_v34  ;;  %v13368_v31 = vmul.f32 -1.442695, %v3746_v34 }
0x27cc   :  { %v3915_v55 = vpop.f32.mrb[44].mxu1 }
0x27cd   :  { %v3919_v50 = vadd.f32 %v3915_v55, %v350_v30  ;;  %v15174_v61 = vpop.f32.mrb[45].mxu1 }
0x27ce   :  { %v355_v61 = vadd.f32 %v18453_v38, %v18271_v62 }
0x27cf   :  { %17450 = vtanh.f32 %v3919_v50  ;;  %v13371_v52 = vmul.f32 -1.442695, %v3919_v50 }
0x27d0   :  { %17452 = vpow2.f32 %v13368_v31 }
0x27d1   :  { %17454 = vpow2.f32 %v13371_v52 }
0x27d3   :  { %v17449_v28 = vpop.eup %17448 }
0x27d4   :  { %3756 = vrot.lane.b32.xlu0 %v17449_v28, %s17789_s7 }
0x27d9   :  { %v17451_v8 = vpop.eup %17450 }
0x27da   :  { %3929 = vrot.lane.b32.xlu1 %v17451_v8, %s17789_s7  ;;  %v17453_v60 = vpop.eup %17452 }
0x27db   :  { %v3750_v32 = vadd.f32 1.0, %v17453_v60  ;;  %v17455_v53 = vpop.eup %17454 }
0x27dc   :  { %v3923_v33 = vadd.f32 1.0, %v17455_v53 }
0x27dd   :  { %17456 = vrcp.f32 %v3750_v32 }
0x27de   :  { %17458 = vrcp.f32 %v3923_v33 }
0x27e7   :  { %v17457_v63 = vpop.eup %17456 }
0x27e8   :  { %v17459_v35 = vpop.eup %17458  ;;  %v3754_v47 = vmul.f32 %v17457_v63, %v18672_v36 }
0x27e9   :  { %v3927_v59 = vmul.f32 %v17459_v35, %v18676_v37 }
0x2846   :  { %v3757_v54 = vpop.permute.xlu0 %3756 }
0x2847   :  { %v3759_v48 = vmul.f32 %v17457_v63, %v3757_v54 }
0x2849   :  { %3761 = vrot.lane.b32.xlu0 %v3759_v48, %s17789_s7 }
0x284c   :  { %v3930_v13 = vpop.permute.xlu1 %3929 }
0x284d   :  { %v3932_v29 = vmul.f32 %v17459_v35, %v3930_v13 }
0x284f   :  { %3934 = vrot.lane.b32.xlu1 %v3932_v29, %s17789_s7 }
0x28bb   :  { %v3762_v58 = vpop.permute.xlu0 %3761 }
0x28bc   :  { %v18713_v39 = vadd.f32 %v3762_v58, %v3754_v47 }
0x28be   :  { %17460 = vtanh.f32 %v18713_v39 }
0x28c1   :  { %v3935_v45 = vpop.permute.xlu1 %3934 }
0x28c2   :  { %v18717_v41 = vadd.f32 %v3935_v45, %v3927_v59 }
0x28c4   :  { %17462 = vtanh.f32 %v18717_v41 }
0x28c8   :  { %v17461_v25 = vpop.eup %17460 }
0x28c9   :  { %3767 = vrot.lane.b32.xlu0 %v17461_v25, %s17789_s7 }
0x28ce   :  { %v17463_v49 = vpop.eup %17462 }
0x28cf   :  { %3940 = vrot.lane.b32.xlu1 %v17463_v49, %s17789_s7 }
0x293b   :  { %v3768_v56 = vpop.permute.xlu0 %3767 }
0x293c   :  { %v3770_v36 = vmul.f32 %v17457_v63, %v3768_v56 }
0x293e   :  { %3772 = vrot.lane.b32.xlu0 %v3770_v36, %s17790_s6 }
0x2941   :  { %v3941_v42 = vpop.permute.xlu1 %3940 }
0x2942   :  { %v3943_v51 = vmul.f32 %v17459_v35, %v3941_v42 }
0x2944   :  { %3945 = vrot.lane.b32.xlu1 %v3943_v51, %s17790_s6 }
0x29b0   :  { %v3773_v37 = vpop.permute.xlu0 %3772 }
0x29b1   :  { %3775 = vst.msk [vmem:[#allocation2 + $0x68] sm:$0xff] %vm79_vm0, %v3773_v37  ;;  %15162 = vmatmul.mubr.msk.f32.vlgmr.msra.gmra.mrb[60].mxu0 %vm79_vm0, %v3773_v37 }
0x29b2   :  { %16578 = vmatpush3.bf16.msra.mxu0 %v18022_v44  ;;  %15183 = vmatprep.mubr.msk.f32.mxu0 %vm17787_vm1, %v21554_v4 }
0x29b3   :  { %16579 = vmatprep.subr.bf16.mxu0 %v21556_v0 }
0x29b6   :  { %16581 = vmatpush3.bf16.msra.mxu0 %v18028_v46  ;;  %v3946_v40 = vpop.permute.xlu1 %3945 }
0x29b7   :  { %16588 = vmatprep.subr.bf16.mxu0 %v21556_v0 }
0x29b9   :  { %15184 = vmatmul.mubr.msk.f32.vlgmr.msra.gmra.mrb[62].mxu0 %vm79_vm0, %v3946_v40 }
0x29ba   :  { %16590 = vmatpush3.bf16.msra.mxu0 %v17974_v17  ;;  %15205 = vmatprep.mubr.msk.f32.mxu0 %vm17787_vm1, %v21554_v4 }
0x29bb   :  { %16591 = vmatprep.subr.bf16.mxu0 %v21556_v0 }
0x29be   :  { %16593 = vmatpush3.bf16.msra.mxu0 %v17989_v21 }
0x29bf   :  { %16600 = vmatprep.subr.bf16.mxu0 %v21556_v0 }
0x29c1   :  { %15206 = vmatmul.mubr.msk.f32.vlgmr.msra.gmra.mrb[64].mxu0 %vm79_vm0, %v3946_v40 }
0x29c2   :  { %16602 = vmatpush3.bf16.msra.mxu0 %v17942_v5  ;;  %15227 = vmatprep.mubr.msk.f32.mxu0 %vm17787_vm1, %v21554_v4 }
0x29c3   :  { %16603 = vmatprep.subr.bf16.mxu0 %v21556_v0 }
0x29c6   :  { %16605 = vmatpush3.bf16.msra.mxu0 %v17960_v12 }
0x29c7   :  { %16612 = vmatprep.subr.bf16.mxu0 %v21556_v0 }
0x2a84   :  { %v3844_v57 = vpop.f32.mrb[60].mxu0 }
0x2a85   :  { %v15163_v43 = vpop.f32.mrb[61].mxu0 }
0x2a8c   :  { %v4015_v34 = vpop.f32.mrb[62].mxu0 }
0x2a8d   :  { %v4016_v30 = vadd.f32 %v4015_v34, %v3844_v57  ;;  %v15185_v55 = vpop.f32.mrb[63].mxu0 }
0x2a8f   :  { %v4019_v50 = vadd.f32 %v18498_v24, %v4016_v30 }
0x2a91   :  { %17464 = vtanh.f32 %v4019_v50  ;;  %v13373_v32 = vmul.f32 -1.442695, %v4019_v50 }
0x2a94   :  { %v4188_v28 = vpop.f32.mrb[64].mxu0 }
0x2a95   :  { %v4192_v8 = vadd.f32 %v4188_v28, %v355_v61  ;;  %v15207_v31 = vpop.f32.mrb[65].mxu0  ;;  %v18791_v28 = vld [vmem:[%s21613_s3] ss:$0 sm:$0xff] }
0x2a97   :  { %17466 = vtanh.f32 %v4192_v8  ;;  %v13376_v53 = vmul.f32 -1.442695, %v4192_v8  ;;  %v360_v8 = vadd.f32 %v18791_v28, %v18277_v2 }
0x2a98   :  { %17468 = vpow2.f32 %v13373_v32 }
0x2a99   :  { %17470 = vpow2.f32 %v13376_v53 }
0x2a9b   :  { %v17465_v52 = vpop.eup %17464 }
0x2a9c   :  { %4029 = vrot.lane.b32.xlu0 %v17465_v52, %s17789_s7 }
0x2aa1   :  { %v17467_v60 = vpop.eup %17466 }
0x2aa2   :  { %4202 = vrot.lane.b32.xlu1 %v17467_v60, %s17789_s7  ;;  %v17469_v33 = vpop.eup %17468 }
0x2aa3   :  { %v4023_v63 = vadd.f32 1.0, %v17469_v33  ;;  %v17471_v54 = vpop.eup %17470 }
0x2aa4   :  { %v4196_v48 = vadd.f32 1.0, %v17471_v54 }
0x2aa5   :  { %17472 = vrcp.f32 %v4023_v63 }
0x2aa6   :  { %17474 = vrcp.f32 %v4196_v48 }
0x2aaf   :  { %v17473_v62 = vpop.eup %17472 }
0x2ab0   :  { %v17475_v13 = vpop.eup %17474  ;;  %v4027_v58 = vmul.f32 %v17473_v62, %v18713_v39 }
0x2ab1   :  { %v4200_v25 = vmul.f32 %v17475_v13, %v18717_v41 }
0x2b0e   :  { %v4030_v38 = vpop.permute.xlu0 %4029 }
0x2b0f   :  { %v4032_v35 = vmul.f32 %v17473_v62, %v4030_v38 }
0x2b11   :  { %4034 = vrot.lane.b32.xlu0 %v4032_v35, %s17789_s7 }
0x2b14   :  { %v4203_v29 = vpop.permute.xlu1 %4202 }
0x2b15   :  { %v4205_v47 = vmul.f32 %v17475_v13, %v4203_v29 }
0x2b17   :  { %4207 = vrot.lane.b32.xlu1 %v4205_v47, %s17789_s7 }
0x2b83   :  { %v4035_v59 = vpop.permute.xlu0 %4034 }
0x2b84   :  { %v18754_v45 = vadd.f32 %v4035_v59, %v4027_v58 }
0x2b86   :  { %17476 = vtanh.f32 %v18754_v45 }
0x2b89   :  { %v4208_v49 = vpop.permute.xlu1 %4207 }
0x2b8a   :  { %v18758_v56 = vadd.f32 %v4208_v49, %v4200_v25 }
0x2b8c   :  { %17478 = vtanh.f32 %v18758_v56 }
0x2b90   :  { %v17477_v36 = vpop.eup %17476 }
0x2b91   :  { %4040 = vrot.lane.b32.xlu0 %v17477_v36, %s17789_s7 }
0x2b96   :  { %v17479_v42 = vpop.eup %17478 }
0x2b97   :  { %4213 = vrot.lane.b32.xlu1 %v17479_v42, %s17789_s7 }
0x2c03   :  { %v4041_v51 = vpop.permute.xlu0 %4040 }
0x2c04   :  { %v4043_v39 = vmul.f32 %v17473_v62, %v4041_v51 }
0x2c06   :  { %4045 = vrot.lane.b32.xlu0 %v4043_v39, %s17790_s6 }
0x2c09   :  { %v4214_v37 = vpop.permute.xlu1 %4213 }
0x2c0a   :  { %v4216_v40 = vmul.f32 %v17475_v13, %v4214_v37 }
0x2c0c   :  { %4218 = vrot.lane.b32.xlu1 %v4216_v40, %s17790_s6 }
0x2c78   :  { %v4046_v41 = vpop.permute.xlu0 %4045 }
0x2c79   :  { %4048 = vst.msk [vmem:[#allocation2 + $0x70] sm:$0xff] %vm79_vm0, %v4046_v41  ;;  %15195 = vmatmul.mubr.msk.f32.vlgmr.msra.gmra.mrb[46].mxu1 %vm79_vm0, %v4046_v41 }
0x2c7a   :  { %16596 = vmatpush3.bf16.msra.mxu1 %v18022_v44  ;;  %15216 = vmatprep.mubr.msk.f32.mxu1 %vm17787_vm1, %v21554_v4 }
0x2c7b   :  { %16597 = vmatprep.subr.bf16.mxu1 %v21556_v0 }
0x2c7e   :  { %16599 = vmatpush3.bf16.msra.mxu1 %v18028_v46  ;;  %v4219_v57 = vpop.permute.xlu1 %4218 }
0x2c7f   :  { %16606 = vmatprep.subr.bf16.mxu1 %v21556_v0 }
0x2c81   :  { %15217 = vmatmul.mubr.msk.f32.vlgmr.msra.gmra.mrb[48].mxu1 %vm79_vm0, %v4219_v57 }
0x2c82   :  { %16608 = vmatpush3.bf16.msra.mxu1 %v17974_v17  ;;  %15238 = vmatprep.mubr.msk.f32.mxu1 %vm17787_vm1, %v21554_v4 }
0x2c83   :  { %16609 = vmatprep.subr.bf16.mxu1 %v21556_v0 }
0x2c86   :  { %16611 = vmatpush3.bf16.msra.mxu1 %v17989_v21 }
0x2c87   :  { %16618 = vmatprep.subr.bf16.mxu1 %v21556_v0 }
0x2c89   :  { %15239 = vmatmul.mubr.msk.f32.vlgmr.msra.gmra.mrb[50].mxu1 %vm79_vm0, %v4219_v57 }
0x2c8a   :  { %16620 = vmatpush3.bf16.msra.mxu1 %v17942_v5  ;;  %15260 = vmatprep.mubr.msk.f32.mxu1 %vm17787_vm1, %v21554_v4 }
0x2c8b   :  { %16621 = vmatprep.subr.bf16.mxu1 %v21556_v0 }
0x2c8e   :  { %16623 = vmatpush3.bf16.msra.mxu1 %v17960_v12 }
0x2c8f   :  { %16630 = vmatprep.subr.bf16.mxu1 %v21556_v0 }
0x2d4c   :  { %v4117_v43 = vpop.f32.mrb[46].mxu1 }
0x2d4d   :  { %v15196_v34 = vpop.f32.mrb[47].mxu1 }
0x2d54   :  { %v4288_v30 = vpop.f32.mrb[48].mxu1 }
0x2d55   :  { %v4289_v55 = vadd.f32 %v4288_v30, %v4117_v43  ;;  %v15218_v50 = vpop.f32.mrb[49].mxu1 }
0x2d57   :  { %v4292_v61 = vadd.f32 %v18498_v24, %v4289_v55 }
0x2d59   :  { %17480 = vtanh.f32 %v4292_v61  ;;  %v13378_v24 = vmul.f32 -1.442695, %v4292_v61  ;;  %v18836_v61 = vld [vmem:[%s21615_s14] ss:$0 sm:$0xff] }
0x2d5c   :  { %v4461_v31 = vpop.f32.mrb[50].mxu1 }
0x2d5d   :  { %v4465_v52 = vadd.f32 %v4461_v31, %v360_v8  ;;  %v15240_v60 = vpop.f32.mrb[51].mxu1  ;;  %v365_v31 = vadd.f32 %v18791_v28, %v18275_v1 }
0x2d5f   :  { %17482 = vtanh.f32 %v4465_v52  ;;  %v13381_v33 = vmul.f32 -1.442695, %v4465_v52 }
0x2d60   :  { %17484 = vpow2.f32 %v13378_v24 }
0x2d61   :  { %17486 = vpow2.f32 %v13381_v33 }
0x2d63   :  { %v17481_v32 = vpop.eup %17480 }
0x2d64   :  { %4302 = vrot.lane.b32.xlu0 %v17481_v32, %s17789_s7 }
0x2d69   :  { %v17483_v53 = vpop.eup %17482 }
0x2d6a   :  { %4475 = vrot.lane.b32.xlu1 %v17483_v53, %s17789_s7  ;;  %v17485_v63 = vpop.eup %17484 }
0x2d6b   :  { %v4296_v54 = vadd.f32 1.0, %v17485_v63  ;;  %v17487_v48 = vpop.eup %17486 }
0x2d6c   :  { %v4469_v62 = vadd.f32 1.0, %v17487_v48 }
0x2d6d   :  { %17488 = vrcp.f32 %v4296_v54 }
0x2d6e   :  { %17490 = vrcp.f32 %v4469_v62 }
0x2d77   :  { %v17489_v2 = vpop.eup %17488 }
0x2d78   :  { %v17491_v13 = vpop.eup %17490  ;;  %v4300_v58 = vmul.f32 %v17489_v2, %v18754_v45 }
0x2d79   :  { %v4473_v49 = vmul.f32 %v17491_v13, %v18758_v56 }
0x2dd6   :  { %v4303_v38 = vpop.permute.xlu0 %4302 }
0x2dd7   :  { %v4305_v35 = vmul.f32 %v17489_v2, %v4303_v38 }
0x2dd9   :  { %4307 = vrot.lane.b32.xlu0 %v4305_v35, %s17789_s7 }
0x2ddc   :  { %v4476_v29 = vpop.permute.xlu1 %4475 }
0x2ddd   :  { %v4478_v47 = vmul.f32 %v17491_v13, %v4476_v29 }
0x2ddf   :  { %4480 = vrot.lane.b32.xlu1 %v4478_v47, %s17789_s7 }
0x2e4b   :  { %v4308_v59 = vpop.permute.xlu0 %4307 }
0x2e4c   :  { %v18800_v25 = vadd.f32 %v4308_v59, %v4300_v58 }
0x2e4e   :  { %17492 = vtanh.f32 %v18800_v25 }
0x2e51   :  { %v4481_v36 = vpop.permute.xlu1 %4480 }
0x2e52   :  { %v18804_v42 = vadd.f32 %v4481_v36, %v4473_v49 }
0x2e54   :  { %17494 = vtanh.f32 %v18804_v42 }
0x2e58   :  { %v17493_v51 = vpop.eup %17492 }
0x2e59   :  { %4313 = vrot.lane.b32.xlu0 %v17493_v51, %s17789_s7 }
0x2e5e   :  { %v17495_v39 = vpop.eup %17494 }
0x2e5f   :  { %4486 = vrot.lane.b32.xlu1 %v17495_v39, %s17789_s7 }
0x2ecb   :  { %v4314_v37 = vpop.permute.xlu0 %4313 }
0x2ecc   :  { %v4316_v45 = vmul.f32 %v17489_v2, %v4314_v37 }
0x2ece   :  { %4318 = vrot.lane.b32.xlu0 %v4316_v45, %s17790_s6 }
0x2ed1   :  { %v4487_v40 = vpop.permute.xlu1 %4486 }
0x2ed2   :  { %v4489_v41 = vmul.f32 %v17491_v13, %v4487_v40 }
0x2ed4   :  { %4491 = vrot.lane.b32.xlu1 %v4489_v41, %s17790_s6 }
0x2f40   :  { %v4319_v56 = vpop.permute.xlu0 %4318 }
0x2f41   :  { %4321 = vst.msk [vmem:[#allocation2 + $0x78] sm:$0xff] %vm79_vm0, %v4319_v56  ;;  %15228 = vmatmul.mubr.msk.f32.vlgmr.msra.gmra.mrb[66].mxu0 %vm79_vm0, %v4319_v56 }
0x2f42   :  { %16614 = vmatpush3.bf16.msra.mxu0 %v18022_v44  ;;  %15249 = vmatprep.mubr.msk.f32.mxu0 %vm17787_vm1, %v21554_v4 }
0x2f43   :  { %16615 = vmatprep.subr.bf16.mxu0 %v21556_v0 }
0x2f46   :  { %16617 = vmatpush3.bf16.msra.mxu0 %v18028_v46  ;;  %v4492_v57 = vpop.permute.xlu1 %4491 }
0x2f47   :  { %16624 = vmatprep.subr.bf16.mxu0 %v21556_v0 }
0x2f49   :  { %15250 = vmatmul.mubr.msk.f32.vlgmr.msra.gmra.mrb[68].mxu0 %vm79_vm0, %v4492_v57 }
0x2f4a   :  { %16626 = vmatpush3.bf16.msra.mxu0 %v17974_v17  ;;  %15271 = vmatprep.mubr.msk.f32.mxu0 %vm17787_vm1, %v21554_v4 }
0x2f4b   :  { %16627 = vmatprep.subr.bf16.mxu0 %v21556_v0 }
0x2f4e   :  { %16629 = vmatpush3.bf16.msra.mxu0 %v17989_v21 }
0x2f4f   :  { %16636 = vmatprep.subr.bf16.mxu0 %v21556_v0 }
0x2f51   :  { %15272 = vmatmul.mubr.msk.f32.vlgmr.msra.gmra.mrb[70].mxu0 %vm79_vm0, %v4492_v57 }
0x2f52   :  { %16638 = vmatpush3.bf16.msra.mxu0 %v17942_v5  ;;  %15293 = vmatprep.mubr.msk.f32.mxu0 %vm17787_vm1, %v21554_v4 }
0x2f53   :  { %16639 = vmatprep.subr.bf16.mxu0 %v21556_v0 }
0x2f56   :  { %16641 = vmatpush3.bf16.msra.mxu0 %v17960_v12 }
0x2f57   :  { %16648 = vmatprep.subr.bf16.mxu0 %v21556_v0 }
0x3014   :  { %v4390_v43 = vpop.f32.mrb[66].mxu0 }
0x3015   :  { %v15229_v34 = vpop.f32.mrb[67].mxu0 }
0x301c   :  { %v4561_v30 = vpop.f32.mrb[68].mxu0 }
0x301d   :  { %v4562_v55 = vadd.f32 %v4561_v30, %v4390_v43  ;;  %v15251_v50 = vpop.f32.mrb[69].mxu0 }
0x301f   :  { %v4565_v8 = vadd.f32 %v18836_v61, %v4562_v55 }
0x3021   :  { %17496 = vtanh.f32 %v4565_v8  ;;  %v13383_v33 = vmul.f32 -1.442695, %v4565_v8 }
0x3024   :  { %v4734_v52 = vpop.f32.mrb[70].mxu0 }
0x3025   :  { %v4738_v60 = vadd.f32 %v4734_v52, %v365_v31  ;;  %v15273_v32 = vpop.f32.mrb[71].mxu0  ;;  %v370_v31 = vadd.f32 %v18791_v28, %v18281_v6 }
0x3027   :  { %17498 = vtanh.f32 %v4738_v60  ;;  %v13386_v63 = vmul.f32 -1.442695, %v4738_v60 }
0x3028   :  { %17500 = vpow2.f32 %v13383_v33 }
0x3029   :  { %17502 = vpow2.f32 %v13386_v63 }
0x302b   :  { %v17497_v53 = vpop.eup %17496 }
0x302c   :  { %4575 = vrot.lane.b32.xlu0 %v17497_v53, %s17789_s7 }
0x3031   :  { %v17499_v24 = vpop.eup %17498 }
0x3032   :  { %4748 = vrot.lane.b32.xlu1 %v17499_v24, %s17789_s7  ;;  %v17501_v54 = vpop.eup %17500 }
0x3033   :  { %v4569_v48 = vadd.f32 1.0, %v17501_v54  ;;  %v17503_v62 = vpop.eup %17502 }
0x3034   :  { %v4742_v2 = vadd.f32 1.0, %v17503_v62 }
0x3035   :  { %17504 = vrcp.f32 %v4569_v48 }
0x3036   :  { %17506 = vrcp.f32 %v4742_v2 }
0x303f   :  { %v17505_v1 = vpop.eup %17504 }
0x3040   :  { %v17507_v13 = vpop.eup %17506  ;;  %v4573_v58 = vmul.f32 %v17505_v1, %v18800_v25 }
0x3041   :  { %v4746_v36 = vmul.f32 %v17507_v13, %v18804_v42 }
0x309e   :  { %v4576_v38 = vpop.permute.xlu0 %4575 }
0x309f   :  { %v4578_v35 = vmul.f32 %v17505_v1, %v4576_v38 }
0x30a1   :  { %4580 = vrot.lane.b32.xlu0 %v4578_v35, %s17789_s7 }
0x30a4   :  { %v4749_v29 = vpop.permute.xlu1 %4748 }
0x30a5   :  { %v4751_v47 = vmul.f32 %v17507_v13, %v4749_v29 }
0x30a7   :  { %4753 = vrot.lane.b32.xlu1 %v4751_v47, %s17789_s7 }
0x3113   :  { %v4581_v59 = vpop.permute.xlu0 %4580 }
0x3114   :  { %v18846_v49 = vadd.f32 %v4581_v59, %v4573_v58 }
0x3116   :  { %17508 = vtanh.f32 %v18846_v49 }
0x3119   :  { %v4754_v51 = vpop.permute.xlu1 %4753 }
0x311a   :  { %v18850_v39 = vadd.f32 %v4754_v51, %v4746_v36 }
0x311c   :  { %17510 = vtanh.f32 %v18850_v39 }
0x3120   :  { %v17509_v37 = vpop.eup %17508 }
0x3121   :  { %4586 = vrot.lane.b32.xlu0 %v17509_v37, %s17789_s7 }
0x3126   :  { %v17511_v45 = vpop.eup %17510 }
0x3127   :  { %4759 = vrot.lane.b32.xlu1 %v17511_v45, %s17789_s7 }
0x3193   :  { %v4587_v40 = vpop.permute.xlu0 %4586 }
0x3194   :  { %v4589_v25 = vmul.f32 %v17505_v1, %v4587_v40 }
0x3196   :  { %4591 = vrot.lane.b32.xlu0 %v4589_v25, %s17790_s6 }
0x3199   :  { %v4760_v41 = vpop.permute.xlu1 %4759 }
0x319a   :  { %v4762_v56 = vmul.f32 %v17507_v13, %v4760_v41 }
0x319c   :  { %4764 = vrot.lane.b32.xlu1 %v4762_v56, %s17790_s6 }
0x3208   :  { %v4592_v42 = vpop.permute.xlu0 %4591 }
0x3209   :  { %4594 = vst.msk [vmem:[#allocation2 + $0x80] sm:$0xff] %vm79_vm0, %v4592_v42  ;;  %15261 = vmatmul.mubr.msk.f32.vlgmr.msra.gmra.mrb[52].mxu1 %vm79_vm0, %v4592_v42 }
0x320a   :  { %16632 = vmatpush3.bf16.msra.mxu1 %v18022_v44  ;;  %15282 = vmatprep.mubr.msk.f32.mxu1 %vm17787_vm1, %v21554_v4 }
0x320b   :  { %16633 = vmatprep.subr.bf16.mxu1 %v21556_v0 }
0x320e   :  { %16635 = vmatpush3.bf16.msra.mxu1 %v18028_v46  ;;  %v4765_v57 = vpop.permute.xlu1 %4764 }
0x320f   :  { %16642 = vmatprep.subr.bf16.mxu1 %v21556_v0 }
0x3211   :  { %15283 = vmatmul.mubr.msk.f32.vlgmr.msra.gmra.mrb[54].mxu1 %vm79_vm0, %v4765_v57 }
0x3212   :  { %16644 = vmatpush3.bf16.msra.mxu1 %v17974_v17  ;;  %15304 = vmatprep.mubr.msk.f32.mxu1 %vm17787_vm1, %v21554_v4 }
0x3213   :  { %16645 = vmatprep.subr.bf16.mxu1 %v21556_v0 }
0x3216   :  { %16647 = vmatpush3.bf16.msra.mxu1 %v17989_v21 }
0x3217   :  { %16654 = vmatprep.subr.bf16.mxu1 %v21556_v0 }
0x3219   :  { %15305 = vmatmul.mubr.msk.f32.vlgmr.msra.gmra.mrb[56].mxu1 %vm79_vm0, %v4765_v57 }
0x321a   :  { %16656 = vmatpush3.bf16.msra.mxu1 %v17942_v5  ;;  %15326 = vmatprep.mubr.msk.f32.mxu1 %vm17787_vm1, %v21554_v4 }
0x321b   :  { %16657 = vmatprep.subr.bf16.mxu1 %v21556_v0 }
0x321e   :  { %16659 = vmatpush3.bf16.msra.mxu1 %v17960_v12 }
0x321f   :  { %16666 = vmatprep.subr.bf16.mxu1 %v21556_v0 }
0x32dc   :  { %v4663_v43 = vpop.f32.mrb[52].mxu1 }
0x32dd   :  { %v15262_v34 = vpop.f32.mrb[53].mxu1 }
0x32e4   :  { %v4834_v30 = vpop.f32.mrb[54].mxu1 }
0x32e5   :  { %v4835_v55 = vadd.f32 %v4834_v30, %v4663_v43  ;;  %v15284_v50 = vpop.f32.mrb[55].mxu1 }
0x32e7   :  { %v4838_v8 = vadd.f32 %v18836_v61, %v4835_v55 }
0x32e9   :  { %17512 = vtanh.f32 %v4838_v8  ;;  %v13388_v33 = vmul.f32 -1.442695, %v4838_v8  ;;  %v375_v8 = vadd.f32 %v18791_v28, %v18279_v3 }
0x32ec   :  { %v5007_v52 = vpop.f32.mrb[56].mxu1 }
0x32ed   :  { %v5011_v60 = vadd.f32 %v5007_v52, %v370_v31  ;;  %v15306_v32 = vpop.f32.mrb[57].mxu1 }
0x32ef   :  { %17514 = vtanh.f32 %v5011_v60  ;;  %v13391_v63 = vmul.f32 -1.442695, %v5011_v60 }
0x32f0   :  { %17516 = vpow2.f32 %v13388_v33 }
0x32f1   :  { %17518 = vpow2.f32 %v13391_v63 }
0x32f3   :  { %v17513_v53 = vpop.eup %17512 }
0x32f4   :  { %4848 = vrot.lane.b32.xlu0 %v17513_v53, %s17789_s7 }
0x32f9   :  { %v17515_v24 = vpop.eup %17514 }
0x32fa   :  { %5021 = vrot.lane.b32.xlu1 %v17515_v24, %s17789_s7  ;;  %v17517_v54 = vpop.eup %17516 }
0x32fb   :  { %v4842_v48 = vadd.f32 1.0, %v17517_v54  ;;  %v17519_v62 = vpop.eup %17518 }
0x32fc   :  { %v5015_v2 = vadd.f32 1.0, %v17519_v62 }
0x32fd   :  { %17520 = vrcp.f32 %v4842_v48 }
0x32fe   :  { %17522 = vrcp.f32 %v5015_v2 }
0x3307   :  { %v17521_v6 = vpop.eup %17520 }
0x3308   :  { %v17523_v35 = vpop.eup %17522  ;;  %v4846_v47 = vmul.f32 %v17521_v6, %v18846_v49 }
0x3309   :  { %v5019_v36 = vmul.f32 %v17523_v35, %v18850_v39 }
0x3366   :  { %v4849_v1 = vpop.permute.xlu0 %4848 }
0x3367   :  { %v4851_v38 = vmul.f32 %v17521_v6, %v4849_v1 }
0x3369   :  { %4853 = vrot.lane.b32.xlu0 %v4851_v38, %s17789_s7 }
0x336c   :  { %v5022_v13 = vpop.permute.xlu1 %5021 }
0x336d   :  { %v5024_v29 = vmul.f32 %v17523_v35, %v5022_v13 }
0x336f   :  { %5026 = vrot.lane.b32.xlu1 %v5024_v29, %s17789_s7 }
0x33db   :  { %v4854_v58 = vpop.permute.xlu0 %4853 }
0x33dc   :  { %v18887_v59 = vadd.f32 %v4854_v58, %v4846_v47 }
0x33de   :  { %17524 = vtanh.f32 %v18887_v59 }
0x33e1   :  { %v5027_v51 = vpop.permute.xlu1 %5026 }
0x33e2   :  { %v18891_v37 = vadd.f32 %v5027_v51, %v5019_v36 }
0x33e4   :  { %17526 = vtanh.f32 %v18891_v37 }
0x33e8   :  { %v17525_v45 = vpop.eup %17524 }
0x33e9   :  { %4859 = vrot.lane.b32.xlu0 %v17525_v45, %s17789_s7 }
0x33ee   :  { %v17527_v40 = vpop.eup %17526 }
0x33ef   :  { %5032 = vrot.lane.b32.xlu1 %v17527_v40, %s17789_s7 }
0x345b   :  { %v4860_v25 = vpop.permute.xlu0 %4859 }
0x345c   :  { %v4862_v49 = vmul.f32 %v17521_v6, %v4860_v25 }
0x345e   :  { %4864 = vrot.lane.b32.xlu0 %v4862_v49, %s17790_s6 }
0x3461   :  { %v5033_v41 = vpop.permute.xlu1 %5032 }
0x3462   :  { %v5035_v56 = vmul.f32 %v17523_v35, %v5033_v41 }
0x3464   :  { %5037 = vrot.lane.b32.xlu1 %v5035_v56, %s17790_s6 }
0x34d0   :  { %v4865_v39 = vpop.permute.xlu0 %4864 }
0x34d1   :  { %4867 = vst.msk [vmem:[#allocation2 + $0x88] sm:$0xff] %vm79_vm0, %v4865_v39  ;;  %15294 = vmatmul.mubr.msk.f32.vlgmr.msra.gmra.mrb[72].mxu0 %vm79_vm0, %v4865_v39 }
0x34d2   :  { %16650 = vmatpush3.bf16.msra.mxu0 %v18022_v44  ;;  %15315 = vmatprep.mubr.msk.f32.mxu0 %vm17787_vm1, %v21554_v4 }
0x34d3   :  { %16651 = vmatprep.subr.bf16.mxu0 %v21556_v0 }
0x34d6   :  { %16653 = vmatpush3.bf16.msra.mxu0 %v18028_v46  ;;  %v5038_v42 = vpop.permute.xlu1 %5037 }
0x34d7   :  { %16660 = vmatprep.subr.bf16.mxu0 %v21556_v0 }
0x34d9   :  { %15316 = vmatmul.mubr.msk.f32.vlgmr.msra.gmra.mrb[74].mxu0 %vm79_vm0, %v5038_v42 }
0x34da   :  { %16662 = vmatpush3.bf16.msra.mxu0 %v17974_v17  ;;  %15337 = vmatprep.mubr.msk.f32.mxu0 %vm17787_vm1, %v21554_v4 }
0x34db   :  { %16663 = vmatprep.subr.bf16.mxu0 %v21556_v0 }
0x34de   :  { %16665 = vmatpush3.bf16.msra.mxu0 %v17989_v21 }
0x34df   :  { %16672 = vmatprep.subr.bf16.mxu0 %v21556_v0 }
0x34e1   :  { %15338 = vmatmul.mubr.msk.f32.vlgmr.msra.gmra.mrb[76].mxu0 %vm79_vm0, %v5038_v42 }
0x34e2   :  { %16674 = vmatpush3.bf16.msra.mxu0 %v17942_v5  ;;  %15359 = vmatprep.mubr.msk.f32.mxu0 %vm17787_vm1, %v21554_v4 }
0x34e3   :  { %16675 = vmatprep.subr.bf16.mxu0 %v21556_v0 }
0x34e6   :  { %16677 = vmatpush3.bf16.msra.mxu0 %v17960_v12 }
0x34e7   :  { %16684 = vmatprep.subr.bf16.mxu0 %v21556_v0 }
0x35a4   :  { %v4936_v57 = vpop.f32.mrb[72].mxu0 }
0x35a5   :  { %v15295_v43 = vpop.f32.mrb[73].mxu0 }
0x35ac   :  { %v5107_v34 = vpop.f32.mrb[74].mxu0 }
0x35ad   :  { %v5108_v30 = vadd.f32 %v5107_v34, %v4936_v57  ;;  %v15317_v55 = vpop.f32.mrb[75].mxu0 }
0x35ae   :  { %v380_v55 = vadd.f32 %v18791_v28, %v18285_v9 }
0x35af   :  { %v5111_v50 = vadd.f32 %v18836_v61, %v5108_v30 }
0x35b1   :  { %17528 = vtanh.f32 %v5111_v50  ;;  %v13393_v24 = vmul.f32 -1.442695, %v5111_v50 }
0x35b4   :  { %v5280_v31 = vpop.f32.mrb[76].mxu0 }
0x35b5   :  { %v5284_v52 = vadd.f32 %v5280_v31, %v375_v8  ;;  %v15339_v60 = vpop.f32.mrb[77].mxu0 }
0x35b7   :  { %17530 = vtanh.f32 %v5284_v52  ;;  %v13396_v33 = vmul.f32 -1.442695, %v5284_v52 }
0x35b8   :  { %17532 = vpow2.f32 %v13393_v24 }
0x35b9   :  { %17534 = vpow2.f32 %v13396_v33 }
0x35bb   :  { %v17529_v32 = vpop.eup %17528 }
0x35bc   :  { %5121 = vrot.lane.b32.xlu0 %v17529_v32, %s17789_s7 }
0x35c1   :  { %v17531_v53 = vpop.eup %17530 }
0x35c2   :  { %5294 = vrot.lane.b32.xlu1 %v17531_v53, %s17789_s7  ;;  %v17533_v63 = vpop.eup %17532 }
0x35c3   :  { %v5115_v54 = vadd.f32 1.0, %v17533_v63  ;;  %v17535_v48 = vpop.eup %17534 }
0x35c4   :  { %v5288_v62 = vadd.f32 1.0, %v17535_v48 }
0x35c5   :  { %17536 = vrcp.f32 %v5115_v54 }
0x35c6   :  { %17538 = vrcp.f32 %v5288_v62 }
0x35cf   :  { %v17537_v3 = vpop.eup %17536 }
0x35d0   :  { %v17539_v1 = vpop.eup %17538  ;;  %v5119_v13 = vmul.f32 %v17537_v3, %v18887_v59 }
0x35d1   :  { %v5292_v58 = vmul.f32 %v17539_v1, %v18891_v37 }
0x362e   :  { %v5122_v2 = vpop.permute.xlu0 %5121 }
0x362f   :  { %v5124_v6 = vmul.f32 %v17537_v3, %v5122_v2 }
0x3631   :  { %5126 = vrot.lane.b32.xlu0 %v5124_v6, %s17789_s7 }
0x3634   :  { %v5295_v38 = vpop.permute.xlu1 %5294 }
0x3635   :  { %v5297_v35 = vmul.f32 %v17539_v1, %v5295_v38 }
0x3637   :  { %5299 = vrot.lane.b32.xlu1 %v5297_v35, %s17789_s7 }
0x36a3   :  { %v5127_v29 = vpop.permute.xlu0 %5126 }
0x36a4   :  { %v18928_v47 = vadd.f32 %v5127_v29, %v5119_v13 }
0x36a6   :  { %17540 = vtanh.f32 %v18928_v47 }
0x36a9   :  { %v5300_v36 = vpop.permute.xlu1 %5299 }
0x36aa   :  { %v18932_v51 = vadd.f32 %v5300_v36, %v5292_v58 }
0x36ac   :  { %17542 = vtanh.f32 %v18932_v51 }
0x36b0   :  { %v17541_v45 = vpop.eup %17540 }
0x36b1   :  { %5132 = vrot.lane.b32.xlu0 %v17541_v45, %s17789_s7 }
0x36b6   :  { %v17543_v40 = vpop.eup %17542 }
0x36b7   :  { %5305 = vrot.lane.b32.xlu1 %v17543_v40, %s17789_s7 }
0x3723   :  { %v5133_v25 = vpop.permute.xlu0 %5132 }
0x3724   :  { %v5135_v59 = vmul.f32 %v17537_v3, %v5133_v25 }
0x3726   :  { %5137 = vrot.lane.b32.xlu0 %v5135_v59, %s17790_s6 }
0x3729   :  { %v5306_v49 = vpop.permute.xlu1 %5305 }
0x372a   :  { %v5308_v41 = vmul.f32 %v17539_v1, %v5306_v49 }
0x372c   :  { %5310 = vrot.lane.b32.xlu1 %v5308_v41, %s17790_s6 }
0x3798   :  { %v5138_v37 = vpop.permute.xlu0 %5137 }
0x3799   :  { %5140 = vst.msk [vmem:[#allocation2 + $0x90] sm:$0xff] %vm79_vm0, %v5138_v37  ;;  %15327 = vmatmul.mubr.msk.f32.vlgmr.msra.gmra.mrb[58].mxu1 %vm79_vm0, %v5138_v37 }
0x379a   :  { %16668 = vmatpush3.bf16.msra.mxu1 %v18022_v44  ;;  %15348 = vmatprep.mubr.msk.f32.mxu1 %vm17787_vm1, %v21554_v4 }
0x379b   :  { %16669 = vmatprep.subr.bf16.mxu1 %v21556_v0 }
0x379e   :  { %16671 = vmatpush3.bf16.msra.mxu1 %v18028_v46  ;;  %v5311_v56 = vpop.permute.xlu1 %5310 }
0x379f   :  { %16678 = vmatprep.subr.bf16.mxu1 %v21556_v0 }
0x37a1   :  { %15349 = vmatmul.mubr.msk.f32.vlgmr.msra.gmra.mrb[60].mxu1 %vm79_vm0, %v5311_v56 }
0x37a2   :  { %16680 = vmatpush3.bf16.msra.mxu1 %v17974_v17  ;;  %15370 = vmatprep.mubr.msk.f32.mxu1 %vm17787_vm1, %v21554_v4 }
0x37a3   :  { %16681 = vmatprep.subr.bf16.mxu1 %v21556_v0 }
0x37a6   :  { %16683 = vmatpush3.bf16.msra.mxu1 %v17989_v21 }
0x37a7   :  { %16690 = vmatprep.subr.bf16.mxu1 %v21556_v0 }
0x37a9   :  { %15371 = vmatmul.mubr.msk.f32.vlgmr.msra.gmra.mrb[62].mxu1 %vm79_vm0, %v5311_v56 }
0x37aa   :  { %16692 = vmatpush3.bf16.msra.mxu1 %v17942_v5  ;;  %15392 = vmatprep.mubr.msk.f32.mxu1 %vm17787_vm1, %v21554_v4 }
0x37ab   :  { %16693 = vmatprep.subr.bf16.mxu1 %v21556_v0 }
0x37ae   :  { %16695 = vmatpush3.bf16.msra.mxu1 %v17960_v12 }
0x37af   :  { %16702 = vmatprep.subr.bf16.mxu1 %v21556_v0 }
0x386c   :  { %v5209_v39 = vpop.f32.mrb[58].mxu1 }
0x386d   :  { %v15328_v42 = vpop.f32.mrb[59].mxu1 }
0x3874   :  { %v5380_v57 = vpop.f32.mrb[60].mxu1 }
0x3875   :  { %v5381_v43 = vadd.f32 %v5380_v57, %v5209_v39  ;;  %v15350_v34 = vpop.f32.mrb[61].mxu1 }
0x3877   :  { %v5384_v30 = vadd.f32 %v18836_v61, %v5381_v43  ;;  %v385_v43 = vadd.f32 %v18791_v28, %v18283_v7 }
0x3879   :  { %17544 = vtanh.f32 %v5384_v30  ;;  %v13398_v32 = vmul.f32 -1.442695, %v5384_v30 }
0x387c   :  { %v5553_v50 = vpop.f32.mrb[62].mxu1 }
0x387d   :  { %v5557_v8 = vadd.f32 %v5553_v50, %v380_v55  ;;  %v15372_v31 = vpop.f32.mrb[63].mxu1 }
0x387f   :  { %17546 = vtanh.f32 %v5557_v8  ;;  %v13401_v53 = vmul.f32 -1.442695, %v5557_v8 }
0x3880   :  { %17548 = vpow2.f32 %v13398_v32 }
0x3881   :  { %17550 = vpow2.f32 %v13401_v53 }
0x3883   :  { %v17545_v52 = vpop.eup %17544 }
0x3884   :  { %5394 = vrot.lane.b32.xlu0 %v17545_v52, %s17789_s7 }
0x3889   :  { %v17547_v60 = vpop.eup %17546 }
0x388a   :  { %5567 = vrot.lane.b32.xlu1 %v17547_v60, %s17789_s7  ;;  %v17549_v24 = vpop.eup %17548 }
0x388b   :  { %v5388_v33 = vadd.f32 1.0, %v17549_v24  ;;  %v17551_v63 = vpop.eup %17550 }
0x388c   :  { %v5561_v54 = vadd.f32 1.0, %v17551_v63 }
0x388d   :  { %17552 = vrcp.f32 %v5388_v33 }
0x388e   :  { %17554 = vrcp.f32 %v5561_v54 }
0x3897   :  { %v17553_v9 = vpop.eup %17552 }
0x3898   :  { %v17555_v3 = vpop.eup %17554  ;;  %v5392_v1 = vmul.f32 %v17553_v9, %v18928_v47 }
0x3899   :  { %v5565_v13 = vmul.f32 %v17555_v3, %v18932_v51 }
0x38f6   :  { %v5395_v48 = vpop.permute.xlu0 %5394 }
0x38f7   :  { %v5397_v62 = vmul.f32 %v17553_v9, %v5395_v48 }
0x38f9   :  { %5399 = vrot.lane.b32.xlu0 %v5397_v62, %s17789_s7 }
0x38fc   :  { %v5568_v2 = vpop.permute.xlu1 %5567 }
0x38fd   :  { %v5570_v6 = vmul.f32 %v17555_v3, %v5568_v2 }
0x38ff   :  { %5572 = vrot.lane.b32.xlu1 %v5570_v6, %s17789_s7 }
0x396b   :  { %v5400_v38 = vpop.permute.xlu0 %5399 }
0x396c   :  { %v18969_v35 = vadd.f32 %v5400_v38, %v5392_v1 }
0x396e   :  { %17556 = vtanh.f32 %v18969_v35 }
0x3971   :  { %v5573_v29 = vpop.permute.xlu1 %5572 }
0x3972   :  { %v18973_v58 = vadd.f32 %v5573_v29, %v5565_v13 }
0x3974   :  { %17558 = vtanh.f32 %v18973_v58 }
0x3978   :  { %v17557_v36 = vpop.eup %17556 }
0x3979   :  { %5405 = vrot.lane.b32.xlu0 %v17557_v36, %s17789_s7 }
0x397e   :  { %v17559_v45 = vpop.eup %17558 }
0x397f   :  { %5578 = vrot.lane.b32.xlu1 %v17559_v45, %s17789_s7 }
0x39eb   :  { %v5406_v40 = vpop.permute.xlu0 %5405 }
0x39ec   :  { %v5408_v47 = vmul.f32 %v17553_v9, %v5406_v40 }
0x39ee   :  { %5410 = vrot.lane.b32.xlu0 %v5408_v47, %s17790_s6 }
0x39f1   :  { %v5579_v25 = vpop.permute.xlu1 %5578 }
0x39f2   :  { %v5581_v59 = vmul.f32 %v17555_v3, %v5579_v25 }
0x39f4   :  { %5583 = vrot.lane.b32.xlu1 %v5581_v59, %s17790_s6 }
0x3a60   :  { %v5411_v51 = vpop.permute.xlu0 %5410 }
0x3a61   :  { %5413 = vst.msk [vmem:[#allocation2 + $0x98] sm:$0xff] %vm79_vm0, %v5411_v51  ;;  %15360 = vmatmul.mubr.msk.f32.vlgmr.msra.gmra.mrb[78].mxu0 %vm79_vm0, %v5411_v51 }
0x3a62   :  { %16686 = vmatpush3.bf16.msra.mxu0 %v18022_v44  ;;  %15381 = vmatprep.mubr.msk.f32.mxu0 %vm17787_vm1, %v21554_v4 }
0x3a63   :  { %16687 = vmatprep.subr.bf16.mxu0 %v21556_v0 }
0x3a66   :  { %16689 = vmatpush3.bf16.msra.mxu0 %v18028_v46  ;;  %v5584_v49 = vpop.permute.xlu1 %5583 }
0x3a67   :  { %16696 = vmatprep.subr.bf16.mxu0 %v21556_v0 }
0x3a69   :  { %15382 = vmatmul.mubr.msk.f32.vlgmr.msra.gmra.mrb[80].mxu0 %vm79_vm0, %v5584_v49 }
0x3a6a   :  { %16698 = vmatpush3.bf16.msra.mxu0 %v17974_v17  ;;  %15403 = vmatprep.mubr.msk.f32.mxu0 %vm17787_vm1, %v21554_v4 }
0x3a6b   :  { %16699 = vmatprep.subr.bf16.mxu0 %v21556_v0 }
0x3a6e   :  { %16701 = vmatpush3.bf16.msra.mxu0 %v17989_v21 }
0x3a6f   :  { %16708 = vmatprep.subr.bf16.mxu0 %v21556_v0 }
0x3a71   :  { %15404 = vmatmul.mubr.msk.f32.vlgmr.msra.gmra.mrb[82].mxu0 %vm79_vm0, %v5584_v49 }
0x3a72   :  { %16710 = vmatpush3.bf16.msra.mxu0 %v17942_v5  ;;  %15425 = vmatprep.mubr.msk.f32.mxu0 %vm17787_vm1, %v21554_v4 }
0x3a73   :  { %16711 = vmatprep.subr.bf16.mxu0 %v21556_v0 }
0x3a76   :  { %16713 = vmatpush3.bf16.msra.mxu0 %v17960_v12 }
0x3a77   :  { %16720 = vmatprep.subr.bf16.mxu0 %v21556_v0 }
0x3b34   :  { %v5482_v41 = vpop.f32.mrb[78].mxu0 }
0x3b35   :  { %v15361_v37 = vpop.f32.mrb[79].mxu0 }
0x3b3c   :  { %v5653_v56 = vpop.f32.mrb[80].mxu0 }
0x3b3d   :  { %v5654_v39 = vadd.f32 %v5653_v56, %v5482_v41  ;;  %v15383_v42 = vpop.f32.mrb[81].mxu0  ;;  %v390_v56 = vadd.f32 %v18791_v28, %v18294_v11 }
0x3b3f   :  { %v5657_v57 = vadd.f32 %v18836_v61, %v5654_v39 }
0x3b41   :  { %17560 = vtanh.f32 %v5657_v57  ;;  %v13403_v31 = vmul.f32 -1.442695, %v5657_v57 }
0x3b44   :  { %v5826_v34 = vpop.f32.mrb[82].mxu0 }
0x3b45   :  { %v5830_v30 = vadd.f32 %v5826_v34, %v385_v43  ;;  %v15405_v55 = vpop.f32.mrb[83].mxu0 }
0x3b47   :  { %17562 = vtanh.f32 %v5830_v30  ;;  %v13406_v52 = vmul.f32 -1.442695, %v5830_v30 }
0x3b48   :  { %17564 = vpow2.f32 %v13403_v31 }
0x3b49   :  { %17566 = vpow2.f32 %v13406_v52 }
0x3b4b   :  { %v17561_v50 = vpop.eup %17560 }
0x3b4c   :  { %5667 = vrot.lane.b32.xlu0 %v17561_v50, %s17789_s7 }
0x3b51   :  { %v17563_v8 = vpop.eup %17562 }
0x3b52   :  { %5840 = vrot.lane.b32.xlu1 %v17563_v8, %s17789_s7  ;;  %v17565_v60 = vpop.eup %17564 }
0x3b53   :  { %v5661_v32 = vadd.f32 1.0, %v17565_v60  ;;  %v17567_v53 = vpop.eup %17566 }
0x3b54   :  { %v5834_v24 = vadd.f32 1.0, %v17567_v53 }
0x3b55   :  { %17568 = vrcp.f32 %v5661_v32 }
0x3b56   :  { %17570 = vrcp.f32 %v5834_v24 }
0x3b5f   :  { %v17569_v7 = vpop.eup %17568 }
0x3b60   :  { %v17571_v54 = vpop.eup %17570  ;;  %v5665_v62 = vmul.f32 %v17569_v7, %v18969_v35 }
0x3b61   :  { %v5838_v6 = vmul.f32 %v17571_v54, %v18973_v58 }
0x3bbe   :  { %v5668_v33 = vpop.permute.xlu0 %5667 }
0x3bbf   :  { %v5670_v63 = vmul.f32 %v17569_v7, %v5668_v33 }
0x3bc1   :  { %5672 = vrot.lane.b32.xlu0 %v5670_v63, %s17789_s7 }
0x3bc4   :  { %v5841_v9 = vpop.permute.xlu1 %5840 }
0x3bc5   :  { %v5843_v48 = vmul.f32 %v17571_v54, %v5841_v9 }
0x3bc7   :  { %5845 = vrot.lane.b32.xlu1 %v5843_v48, %s17789_s7 }
0x3c33   :  { %v5673_v3 = vpop.permute.xlu0 %5672 }
0x3c34   :  { %v19010_v2 = vadd.f32 %v5673_v3, %v5665_v62 }
0x3c36   :  { %17572 = vtanh.f32 %v19010_v2 }
0x3c39   :  { %v5846_v1 = vpop.permute.xlu1 %5845 }
0x3c3a   :  { %v19014_v38 = vadd.f32 %v5846_v1, %v5838_v6 }
0x3c3c   :  { %17574 = vtanh.f32 %v19014_v38 }
0x3c40   :  { %v17573_v13 = vpop.eup %17572 }
0x3c41   :  { %5678 = vrot.lane.b32.xlu0 %v17573_v13, %s17789_s7 }
0x3c46   :  { %v17575_v29 = vpop.eup %17574 }
0x3c47   :  { %5851 = vrot.lane.b32.xlu1 %v17575_v29, %s17789_s7 }
0x3cb3   :  { %v5679_v36 = vpop.permute.xlu0 %5678 }
0x3cb4   :  { %v5681_v35 = vmul.f32 %v17569_v7, %v5679_v36 }
0x3cb6   :  { %5683 = vrot.lane.b32.xlu0 %v5681_v35, %s17790_s6 }
0x3cb9   :  { %v5852_v45 = vpop.permute.xlu1 %5851 }
0x3cba   :  { %v5854_v40 = vmul.f32 %v17571_v54, %v5852_v45 }
0x3cbc   :  { %5856 = vrot.lane.b32.xlu1 %v5854_v40, %s17790_s6 }
0x3d28   :  { %v5684_v58 = vpop.permute.xlu0 %5683 }
0x3d29   :  { %5686 = vst.msk [vmem:[#allocation2 + $0xa0] sm:$0xff] %vm79_vm0, %v5684_v58  ;;  %15393 = vmatmul.mubr.msk.f32.vlgmr.msra.gmra.mrb[64].mxu1 %vm79_vm0, %v5684_v58 }
0x3d2a   :  { %16704 = vmatpush3.bf16.msra.mxu1 %v18022_v44  ;;  %15414 = vmatprep.mubr.msk.f32.mxu1 %vm17787_vm1, %v21554_v4 }
0x3d2b   :  { %16705 = vmatprep.subr.bf16.mxu1 %v21556_v0 }
0x3d2e   :  { %16707 = vmatpush3.bf16.msra.mxu1 %v18028_v46  ;;  %v5857_v47 = vpop.permute.xlu1 %5856 }
0x3d2f   :  { %16714 = vmatprep.subr.bf16.mxu1 %v21556_v0 }
0x3d31   :  { %15415 = vmatmul.mubr.msk.f32.vlgmr.msra.gmra.mrb[66].mxu1 %vm79_vm0, %v5857_v47 }
0x3d32   :  { %16716 = vmatpush3.bf16.msra.mxu1 %v17974_v17  ;;  %15436 = vmatprep.mubr.msk.f32.mxu1 %vm17787_vm1, %v21554_v4 }
0x3d33   :  { %16717 = vmatprep.subr.bf16.mxu1 %v21556_v0 }
0x3d36   :  { %16719 = vmatpush3.bf16.msra.mxu1 %v17989_v21 }
0x3d37   :  { %16726 = vmatprep.subr.bf16.mxu1 %v21556_v0 }
0x3d39   :  { %15437 = vmatmul.mubr.msk.f32.vlgmr.msra.gmra.mrb[68].mxu1 %vm79_vm0, %v5857_v47 }
0x3d3a   :  { %16728 = vmatpush3.bf16.msra.mxu1 %v17942_v5  ;;  %15458 = vmatprep.mubr.msk.f32.mxu1 %vm17787_vm1, %v21554_v4 }
0x3d3b   :  { %16729 = vmatprep.subr.bf16.mxu1 %v21556_v0 }
0x3d3e   :  { %16731 = vmatpush3.bf16.msra.mxu1 %v17960_v12 }
0x3d3f   :  { %16738 = vmatprep.subr.bf16.mxu1 %v21556_v0 }
0x3dfc   :  { %v5755_v25 = vpop.f32.mrb[64].mxu1 }
0x3dfd   :  { %v15394_v59 = vpop.f32.mrb[65].mxu1 }
0x3dfe   :  { %v395_v59 = vadd.f32 %v18791_v28, %v18292_v10 }
0x3e04   :  { %v5926_v51 = vpop.f32.mrb[66].mxu1 }
0x3e05   :  { %v5927_v49 = vadd.f32 %v5926_v51, %v5755_v25  ;;  %v15416_v41 = vpop.f32.mrb[67].mxu1 }
0x3e07   :  { %v5930_v37 = vadd.f32 %v18836_v61, %v5927_v49 }
0x3e09   :  { %17576 = vtanh.f32 %v5930_v37  ;;  %v13408_v30 = vmul.f32 -1.442695, %v5930_v37 }
0x3e0c   :  { %v6099_v39 = vpop.f32.mrb[68].mxu1 }
0x3e0d   :  { %v6103_v42 = vadd.f32 %v6099_v39, %v390_v56  ;;  %v15438_v57 = vpop.f32.mrb[69].mxu1 }
0x3e0f   :  { %17578 = vtanh.f32 %v6103_v42  ;;  %v13411_v55 = vmul.f32 -1.442695, %v6103_v42 }
0x3e10   :  { %17580 = vpow2.f32 %v13408_v30 }
0x3e11   :  { %17582 = vpow2.f32 %v13411_v55 }
0x3e13   :  { %v17577_v43 = vpop.eup %17576 }
0x3e14   :  { %5940 = vrot.lane.b32.xlu0 %v17577_v43, %s17789_s7 }
0x3e19   :  { %v17579_v34 = vpop.eup %17578 }
0x3e1a   :  { %6113 = vrot.lane.b32.xlu1 %v17579_v34, %s17789_s7  ;;  %v17581_v50 = vpop.eup %17580 }
0x3e1b   :  { %v5934_v8 = vadd.f32 1.0, %v17581_v50  ;;  %v17583_v31 = vpop.eup %17582 }
0x3e1c   :  { %v6107_v52 = vadd.f32 1.0, %v17583_v31 }
0x3e1d   :  { %17584 = vrcp.f32 %v5934_v8 }
0x3e1e   :  { %17586 = vrcp.f32 %v6107_v52 }
0x3e27   :  { %v17585_v11 = vpop.eup %17584 }
0x3e28   :  { %v17587_v53 = vpop.eup %17586  ;;  %v5938_v33 = vmul.f32 %v17585_v11, %v19010_v2 }
0x3e29   :  { %v6111_v9 = vmul.f32 %v17587_v53, %v19014_v38 }
0x3e86   :  { %v5941_v60 = vpop.permute.xlu0 %5940 }
0x3e87   :  { %v5943_v32 = vmul.f32 %v17585_v11, %v5941_v60 }
0x3e89   :  { %5945 = vrot.lane.b32.xlu0 %v5943_v32, %s17789_s7 }
0x3e8c   :  { %v6114_v24 = vpop.permute.xlu1 %6113 }
0x3e8d   :  { %v6116_v7 = vmul.f32 %v17587_v53, %v6114_v24 }
0x3e8f   :  { %6118 = vrot.lane.b32.xlu1 %v6116_v7, %s17789_s7 }
0x3efb   :  { %v5946_v63 = vpop.permute.xlu0 %5945 }
0x3efc   :  { %v19051_v54 = vadd.f32 %v5946_v63, %v5938_v33 }
0x3efe   :  { %17588 = vtanh.f32 %v19051_v54 }
0x3f01   :  { %v6119_v48 = vpop.permute.xlu1 %6118 }
0x3f02   :  { %v19055_v62 = vadd.f32 %v6119_v48, %v6111_v9 }
0x3f04   :  { %17590 = vtanh.f32 %v19055_v62 }
0x3f08   :  { %v17589_v3 = vpop.eup %17588 }
0x3f09   :  { %5951 = vrot.lane.b32.xlu0 %v17589_v3, %s17789_s7 }
0x3f0e   :  { %v17591_v6 = vpop.eup %17590 }
0x3f0f   :  { %6124 = vrot.lane.b32.xlu1 %v17591_v6, %s17789_s7 }
0x3f7b   :  { %v5952_v1 = vpop.permute.xlu0 %5951 }
0x3f7c   :  { %v5954_v2 = vmul.f32 %v17585_v11, %v5952_v1 }
0x3f7e   :  { %5956 = vrot.lane.b32.xlu0 %v5954_v2, %s17790_s6 }
0x3f81   :  { %v6125_v13 = vpop.permute.xlu1 %6124 }
0x3f82   :  { %v6127_v29 = vmul.f32 %v17587_v53, %v6125_v13 }
0x3f84   :  { %6129 = vrot.lane.b32.xlu1 %v6127_v29, %s17790_s6 }
0x3ff0   :  { %v5957_v38 = vpop.permute.xlu0 %5956 }
0x3ff1   :  { %5959 = vst.msk [vmem:[#allocation2 + $0xa8] sm:$0xff] %vm79_vm0, %v5957_v38  ;;  %15426 = vmatmul.mubr.msk.f32.vlgmr.msra.gmra.mrb[84].mxu0 %vm79_vm0, %v5957_v38 }
0x3ff2   :  { %16722 = vmatpush3.bf16.msra.mxu0 %v18022_v44  ;;  %15447 = vmatprep.mubr.msk.f32.mxu0 %vm17787_vm1, %v21554_v4 }
0x3ff3   :  { %16723 = vmatprep.subr.bf16.mxu0 %v21556_v0 }
0x3ff6   :  { %16725 = vmatpush3.bf16.msra.mxu0 %v18028_v46  ;;  %v6130_v36 = vpop.permute.xlu1 %6129 }
0x3ff7   :  { %16732 = vmatprep.subr.bf16.mxu0 %v21556_v0 }
0x3ff9   :  { %15448 = vmatmul.mubr.msk.f32.vlgmr.msra.gmra.mrb[86].mxu0 %vm79_vm0, %v6130_v36 }
0x3ffa   :  { %16734 = vmatpush3.bf16.msra.mxu0 %v17974_v17  ;;  %15469 = vmatprep.mubr.msk.f32.mxu0 %vm17787_vm1, %v21554_v4 }
0x3ffb   :  { %16735 = vmatprep.subr.bf16.mxu0 %v21556_v0 }
0x3ffe   :  { %16737 = vmatpush3.bf16.msra.mxu0 %v17989_v21 }
0x3fff   :  { %16744 = vmatprep.subr.bf16.mxu0 %v21556_v0 }
0x4001   :  { %15470 = vmatmul.mubr.msk.f32.vlgmr.msra.gmra.mrb[88].mxu0 %vm79_vm0, %v6130_v36  ;;  %v19129_v36 = vld [vmem:[%s21613_s3] ss:$0 sm:$0xff] }
0x4002   :  { %16746 = vmatpush3.bf16.msra.mxu0 %v17942_v5  ;;  %15491 = vmatprep.mubr.msk.f32.mxu0 %vm17787_vm1, %v21554_v4 }
0x4003   :  { %16747 = vmatprep.subr.bf16.mxu0 %v21556_v0 }
0x4006   :  { %16749 = vmatpush3.bf16.msra.mxu0 %v17960_v12 }
0x4007   :  { %16756 = vmatprep.subr.bf16.mxu0 %v21556_v0 }
0x40c4   :  { %v6028_v35 = vpop.f32.mrb[84].mxu0 }
0x40c5   :  { %v15427_v45 = vpop.f32.mrb[85].mxu0 }
0x40cc   :  { %v6199_v40 = vpop.f32.mrb[86].mxu0 }
0x40cd   :  { %v6200_v58 = vadd.f32 %v6199_v40, %v6028_v35  ;;  %v15449_v47 = vpop.f32.mrb[87].mxu0  ;;  %v400_v35 = vadd.f32 %v19129_v36, %v18300_v15 }
0x40cf   :  { %v6203_v25 = vadd.f32 %v18836_v61, %v6200_v58 }
0x40d1   :  { %17592 = vtanh.f32 %v6203_v25  ;;  %v13413_v39 = vmul.f32 -1.442695, %v6203_v25 }
0x40d4   :  { %v6372_v51 = vpop.f32.mrb[88].mxu0 }
0x40d5   :  { %v6376_v49 = vadd.f32 %v6372_v51, %v395_v59  ;;  %v15471_v41 = vpop.f32.mrb[89].mxu0 }
0x40d7   :  { %17594 = vtanh.f32 %v6376_v49  ;;  %v13416_v42 = vmul.f32 -1.442695, %v6376_v49 }
0x40d8   :  { %17596 = vpow2.f32 %v13413_v39 }
0x40d9   :  { %17598 = vpow2.f32 %v13416_v42 }
0x40db   :  { %v17593_v37 = vpop.eup %17592 }
0x40dc   :  { %6213 = vrot.lane.b32.xlu0 %v17593_v37, %s17789_s7 }
0x40e1   :  { %v17595_v56 = vpop.eup %17594 }
0x40e2   :  { %6386 = vrot.lane.b32.xlu1 %v17595_v56, %s17789_s7  ;;  %v17597_v57 = vpop.eup %17596 }
0x40e3   :  { %v6207_v43 = vadd.f32 1.0, %v17597_v57  ;;  %v17599_v34 = vpop.eup %17598 }
0x40e4   :  { %v6380_v30 = vadd.f32 1.0, %v17599_v34 }
0x40e5   :  { %17600 = vrcp.f32 %v6207_v43 }
0x40e6   :  { %17602 = vrcp.f32 %v6380_v30 }
0x40ef   :  { %v17601_v10 = vpop.eup %17600 }
0x40f0   :  { %v17603_v50 = vpop.eup %17602  ;;  %v6211_v52 = vmul.f32 %v17601_v10, %v19051_v54 }
0x40f1   :  { %v6384_v32 = vmul.f32 %v17603_v50, %v19055_v62 }
0x414e   :  { %v6214_v28 = vpop.permute.xlu0 %6213 }
0x414f   :  { %v6216_v55 = vmul.f32 %v17601_v10, %v6214_v28 }
0x4151   :  { %6218 = vrot.lane.b32.xlu0 %v6216_v55, %s17789_s7 }
0x4154   :  { %v6387_v8 = vpop.permute.xlu1 %6386 }
0x4155   :  { %v6389_v31 = vmul.f32 %v17603_v50, %v6387_v8 }
0x4157   :  { %6391 = vrot.lane.b32.xlu1 %v6389_v31, %s17789_s7 }
0x41c3   :  { %v6219_v11 = vpop.permute.xlu0 %6218 }
0x41c4   :  { %v19092_v60 = vadd.f32 %v6219_v11, %v6211_v52 }
0x41c6   :  { %17604 = vtanh.f32 %v19092_v60 }
0x41c9   :  { %v6392_v53 = vpop.permute.xlu1 %6391 }
0x41ca   :  { %v19096_v24 = vadd.f32 %v6392_v53, %v6384_v32 }
0x41cc   :  { %17606 = vtanh.f32 %v19096_v24 }
0x41d0   :  { %v17605_v7 = vpop.eup %17604 }
0x41d1   :  { %6224 = vrot.lane.b32.xlu0 %v17605_v7, %s17789_s7 }
0x41d6   :  { %v17607_v33 = vpop.eup %17606 }
0x41d7   :  { %6397 = vrot.lane.b32.xlu1 %v17607_v33, %s17789_s7 }
0x4243   :  { %v6225_v63 = vpop.permute.xlu0 %6224 }
0x4244   :  { %v6227_v54 = vmul.f32 %v17601_v10, %v6225_v63 }
0x4246   :  { %6229 = vrot.lane.b32.xlu0 %v6227_v54, %s17790_s6 }
0x4249   :  { %v6398_v9 = vpop.permute.xlu1 %6397 }
0x424a   :  { %v6400_v48 = vmul.f32 %v17603_v50, %v6398_v9 }
0x424c   :  { %6402 = vrot.lane.b32.xlu1 %v6400_v48, %s17790_s6  ;;  %v19174_v48 = vld [vmem:[%s21615_s14] ss:$0 sm:$0xff] }
0x42b8   :  { %v6230_v62 = vpop.permute.xlu0 %6229 }
0x42b9   :  { %6232 = vst.msk [vmem:[#allocation2 + $0xb0] sm:$0xff] %vm79_vm0, %v6230_v62  ;;  %15459 = vmatmul.mubr.msk.f32.vlgmr.msra.gmra.mrb[70].mxu1 %vm79_vm0, %v6230_v62 }
0x42ba   :  { %16740 = vmatpush3.bf16.msra.mxu1 %v18022_v44  ;;  %15480 = vmatprep.mubr.msk.f32.mxu1 %vm17787_vm1, %v21554_v4 }
0x42bb   :  { %16741 = vmatprep.subr.bf16.mxu1 %v21556_v0 }
0x42be   :  { %16743 = vmatpush3.bf16.msra.mxu1 %v18028_v46  ;;  %v6403_v3 = vpop.permute.xlu1 %6402 }
0x42bf   :  { %16750 = vmatprep.subr.bf16.mxu1 %v21556_v0 }
0x42c1   :  { %15481 = vmatmul.mubr.msk.f32.vlgmr.msra.gmra.mrb[72].mxu1 %vm79_vm0, %v6403_v3 }
0x42c2   :  { %16752 = vmatpush3.bf16.msra.mxu1 %v17974_v17  ;;  %15502 = vmatprep.mubr.msk.f32.mxu1 %vm17787_vm1, %v21554_v4 }
0x42c3   :  { %16753 = vmatprep.subr.bf16.mxu1 %v21556_v0 }
0x42c6   :  { %16755 = vmatpush3.bf16.msra.mxu1 %v17989_v21 }
0x42c7   :  { %16762 = vmatprep.subr.bf16.mxu1 %v21556_v0 }
0x42c9   :  { %15503 = vmatmul.mubr.msk.f32.vlgmr.msra.gmra.mrb[74].mxu1 %vm79_vm0, %v6403_v3  ;;  %v405_v3 = vadd.f32 %v19129_v36, %v18297_v14 }
0x42ca   :  { %16764 = vmatpush3.bf16.msra.mxu1 %v17942_v5  ;;  %15524 = vmatprep.mubr.msk.f32.mxu1 %vm17787_vm1, %v21554_v4 }
0x42cb   :  { %16765 = vmatprep.subr.bf16.mxu1 %v21556_v0 }
0x42ce   :  { %16767 = vmatpush3.bf16.msra.mxu1 %v17960_v12 }
0x42cf   :  { %16774 = vmatprep.subr.bf16.mxu1 %v21556_v0 }
0x438c   :  { %v6301_v6 = vpop.f32.mrb[70].mxu1 }
0x438d   :  { %v15460_v1 = vpop.f32.mrb[71].mxu1 }
0x4394   :  { %v6472_v2 = vpop.f32.mrb[72].mxu1 }
0x4395   :  { %v6473_v13 = vadd.f32 %v6472_v2, %v6301_v6  ;;  %v15482_v29 = vpop.f32.mrb[73].mxu1 }
0x4397   :  { %v6476_v38 = vadd.f32 %v18836_v61, %v6473_v13 }
0x4399   :  { %17608 = vtanh.f32 %v6476_v38  ;;  %v13418_v61 = vmul.f32 -1.442695, %v6476_v38 }
0x439c   :  { %v6645_v45 = vpop.f32.mrb[74].mxu1 }
0x439d   :  { %v6649_v40 = vadd.f32 %v6645_v45, %v400_v35  ;;  %v15504_v58 = vpop.f32.mrb[75].mxu1 }
0x439f   :  { %17610 = vtanh.f32 %v6649_v40  ;;  %v13421_v59 = vmul.f32 -1.442695, %v6649_v40 }
0x43a0   :  { %17612 = vpow2.f32 %v13418_v61 }
0x43a1   :  { %17614 = vpow2.f32 %v13421_v59 }
0x43a3   :  { %v17609_v47 = vpop.eup %17608 }
0x43a4   :  { %6486 = vrot.lane.b32.xlu0 %v17609_v47, %s17789_s7 }
0x43a9   :  { %v17611_v25 = vpop.eup %17610 }
0x43aa   :  { %6659 = vrot.lane.b32.xlu1 %v17611_v25, %s17789_s7  ;;  %v17613_v51 = vpop.eup %17612 }
0x43ab   :  { %v6480_v49 = vadd.f32 1.0, %v17613_v51  ;;  %v17615_v41 = vpop.eup %17614 }
0x43ac   :  { %v6653_v37 = vadd.f32 1.0, %v17615_v41 }
0x43ad   :  { %17616 = vrcp.f32 %v6480_v49 }
0x43ae   :  { %17618 = vrcp.f32 %v6653_v37 }
0x43b7   :  { %v17617_v15 = vpop.eup %17616 }
0x43b8   :  { %v17619_v42 = vpop.eup %17618  ;;  %v6484_v34 = vmul.f32 %v17617_v15, %v19092_v60 }
0x43b9   :  { %v6657_v28 = vmul.f32 %v17619_v42, %v19096_v24 }
0x4416   :  { %v6487_v56 = vpop.permute.xlu0 %6486 }
0x4417   :  { %v6489_v39 = vmul.f32 %v17617_v15, %v6487_v56 }
0x4419   :  { %6491 = vrot.lane.b32.xlu0 %v6489_v39, %s17789_s7 }
0x441c   :  { %v6660_v57 = vpop.permute.xlu1 %6659 }
0x441d   :  { %v6662_v43 = vmul.f32 %v17619_v42, %v6660_v57 }
0x441f   :  { %6664 = vrot.lane.b32.xlu1 %v6662_v43, %s17789_s7 }
0x448b   :  { %v6492_v30 = vpop.permute.xlu0 %6491 }
0x448c   :  { %v19138_v10 = vadd.f32 %v6492_v30, %v6484_v34 }
0x448e   :  { %17620 = vtanh.f32 %v19138_v10 }
0x4491   :  { %v6665_v55 = vpop.permute.xlu1 %6664 }
0x4492   :  { %v19142_v50 = vadd.f32 %v6665_v55, %v6657_v28 }
0x4494   :  { %17622 = vtanh.f32 %v19142_v50 }
0x4498   :  { %v17621_v8 = vpop.eup %17620 }
0x4499   :  { %6497 = vrot.lane.b32.xlu0 %v17621_v8, %s17789_s7 }
0x449e   :  { %v17623_v31 = vpop.eup %17622 }
0x449f   :  { %6670 = vrot.lane.b32.xlu1 %v17623_v31, %s17789_s7 }
0x450b   :  { %v6498_v52 = vpop.permute.xlu0 %6497 }
0x450c   :  { %v6500_v11 = vmul.f32 %v17617_v15, %v6498_v52 }
0x450e   :  { %6502 = vrot.lane.b32.xlu0 %v6500_v11, %s17790_s6 }
0x4511   :  { %v6671_v60 = vpop.permute.xlu1 %6670 }
0x4512   :  { %v6673_v32 = vmul.f32 %v17619_v42, %v6671_v60 }
0x4514   :  { %6675 = vrot.lane.b32.xlu1 %v6673_v32, %s17790_s6 }
0x4580   :  { %v6503_v53 = vpop.permute.xlu0 %6502 }
0x4581   :  { %6505 = vst.msk [vmem:[#allocation2 + $0xb8] sm:$0xff] %vm79_vm0, %v6503_v53  ;;  %15492 = vmatmul.mubr.msk.f32.vlgmr.msra.gmra.mrb[90].mxu0 %vm79_vm0, %v6503_v53  ;;  %v410_v53 = vadd.f32 %v19129_v36, %v18309_v18 }
0x4582   :  { %16758 = vmatpush3.bf16.msra.mxu0 %v18022_v44  ;;  %15513 = vmatprep.mubr.msk.f32.mxu0 %vm17787_vm1, %v21554_v4 }
0x4583   :  { %16759 = vmatprep.subr.bf16.mxu0 %v21556_v0 }
0x4586   :  { %16761 = vmatpush3.bf16.msra.mxu0 %v18028_v46  ;;  %v6676_v24 = vpop.permute.xlu1 %6675 }
0x4587   :  { %16768 = vmatprep.subr.bf16.mxu0 %v21556_v0 }
0x4589   :  { %15514 = vmatmul.mubr.msk.f32.vlgmr.msra.gmra.mrb[92].mxu0 %vm79_vm0, %v6676_v24 }
0x458a   :  { %16770 = vmatpush3.bf16.msra.mxu0 %v17974_v17  ;;  %15535 = vmatprep.mubr.msk.f32.mxu0 %vm17787_vm1, %v21554_v4 }
0x458b   :  { %16771 = vmatprep.subr.bf16.mxu0 %v21556_v0 }
0x458e   :  { %16773 = vmatpush3.bf16.msra.mxu0 %v17989_v21 }
0x458f   :  { %16780 = vmatprep.subr.bf16.mxu0 %v21556_v0 }
0x4591   :  { %15536 = vmatmul.mubr.msk.f32.vlgmr.msra.gmra.mrb[94].mxu0 %vm79_vm0, %v6676_v24 }
0x4592   :  { %16782 = vmatpush3.bf16.msra.mxu0 %v17942_v5  ;;  %15557 = vmatprep.mubr.msk.f32.mxu0 %vm17787_vm1, %v21554_v4 }
0x4593   :  { %16783 = vmatprep.subr.bf16.mxu0 %v21556_v0 }
0x4596   :  { %16785 = vmatpush3.bf16.msra.mxu0 %v17960_v12 }
0x4597   :  { %16792 = vmatprep.subr.bf16.mxu0 %v21556_v0 }
0x4654   :  { %v6574_v7 = vpop.f32.mrb[90].mxu0 }
0x4655   :  { %v15493_v33 = vpop.f32.mrb[91].mxu0 }
0x465c   :  { %v6745_v63 = vpop.f32.mrb[92].mxu0 }
0x465d   :  { %v6746_v54 = vadd.f32 %v6745_v63, %v6574_v7  ;;  %v15515_v9 = vpop.f32.mrb[93].mxu0 }
0x465f   :  { %v6749_v62 = vadd.f32 %v19174_v48, %v6746_v54 }
0x4661   :  { %17624 = vtanh.f32 %v6749_v62  ;;  %v13423_v38 = vmul.f32 -1.442695, %v6749_v62 }
0x4664   :  { %v6918_v6 = vpop.f32.mrb[94].mxu0 }
0x4665   :  { %v6922_v1 = vadd.f32 %v6918_v6, %v405_v3  ;;  %v15537_v2 = vpop.f32.mrb[95].mxu0 }
0x4667   :  { %17626 = vtanh.f32 %v6922_v1  ;;  %v13426_v35 = vmul.f32 -1.442695, %v6922_v1 }
0x4668   :  { %17628 = vpow2.f32 %v13423_v38 }
0x4669   :  { %17630 = vpow2.f32 %v13426_v35 }
0x466b   :  { %v17625_v13 = vpop.eup %17624 }
0x466c   :  { %6759 = vrot.lane.b32.xlu0 %v17625_v13, %s17789_s7 }
0x4671   :  { %v17627_v29 = vpop.eup %17626 }
0x4672   :  { %6932 = vrot.lane.b32.xlu1 %v17627_v29, %s17789_s7  ;;  %v17629_v45 = vpop.eup %17628 }
0x4673   :  { %v6753_v40 = vadd.f32 1.0, %v17629_v45  ;;  %v17631_v58 = vpop.eup %17630 }
0x4674   :  { %v6926_v47 = vadd.f32 1.0, %v17631_v58 }
0x4675   :  { %17632 = vrcp.f32 %v6753_v40 }
0x4676   :  { %17634 = vrcp.f32 %v6926_v47 }
0x467f   :  { %v17633_v14 = vpop.eup %17632 }
0x4680   :  { %v17635_v59 = vpop.eup %17634  ;;  %v6757_v41 = vmul.f32 %v17633_v14, %v19138_v10 }
0x4681   :  { %v6930_v56 = vmul.f32 %v17635_v59, %v19142_v50 }
0x46de   :  { %v6760_v25 = vpop.permute.xlu0 %6759 }
0x46df   :  { %v6762_v61 = vmul.f32 %v17633_v14, %v6760_v25 }
0x46e1   :  { %6764 = vrot.lane.b32.xlu0 %v6762_v61, %s17789_s7 }
0x46e4   :  { %v6933_v51 = vpop.permute.xlu1 %6932 }
0x46e5   :  { %v6935_v49 = vmul.f32 %v17635_v59, %v6933_v51 }
0x46e7   :  { %6937 = vrot.lane.b32.xlu1 %v6935_v49, %s17789_s7 }
0x4753   :  { %v6765_v37 = vpop.permute.xlu0 %6764 }
0x4754   :  { %v19184_v15 = vadd.f32 %v6765_v37, %v6757_v41 }
0x4756   :  { %17636 = vtanh.f32 %v19184_v15 }
0x4759   :  { %v6938_v39 = vpop.permute.xlu1 %6937 }
0x475a   :  { %v19188_v42 = vadd.f32 %v6938_v39, %v6930_v56 }
0x475c   :  { %17638 = vtanh.f32 %v19188_v42 }
0x4760   :  { %v17637_v57 = vpop.eup %17636 }
0x4761   :  { %6770 = vrot.lane.b32.xlu0 %v17637_v57, %s17789_s7 }
0x4766   :  { %v17639_v43 = vpop.eup %17638 }
0x4767   :  { %6943 = vrot.lane.b32.xlu1 %v17639_v43, %s17789_s7 }
0x47d3   :  { %v6771_v34 = vpop.permute.xlu0 %6770 }
0x47d4   :  { %v6773_v30 = vmul.f32 %v17633_v14, %v6771_v34 }
0x47d6   :  { %6775 = vrot.lane.b32.xlu0 %v6773_v30, %s17790_s6 }
0x47d9   :  { %v6944_v10 = vpop.permute.xlu1 %6943 }
0x47da   :  { %v6946_v28 = vmul.f32 %v17635_v59, %v6944_v10 }
0x47dc   :  { %6948 = vrot.lane.b32.xlu1 %v6946_v28, %s17790_s6  ;;  %v415_v28 = vadd.f32 %v19129_v36, %v18306_v16 }
0x4848   :  { %v6776_v55 = vpop.permute.xlu0 %6775 }
0x4849   :  { %6778 = vst.msk [vmem:[#allocation2 + $0xc0] sm:$0xff] %vm79_vm0, %v6776_v55  ;;  %15525 = vmatmul.mubr.msk.f32.vlgmr.msra.gmra.mrb[76].mxu1 %vm79_vm0, %v6776_v55 }
0x484a   :  { %16776 = vmatpush3.bf16.msra.mxu1 %v18022_v44  ;;  %15546 = vmatprep.mubr.msk.f32.mxu1 %vm17787_vm1, %v21554_v4 }
0x484b   :  { %16777 = vmatprep.subr.bf16.mxu1 %v21556_v0 }
0x484e   :  { %16779 = vmatpush3.bf16.msra.mxu1 %v18028_v46  ;;  %v6949_v50 = vpop.permute.xlu1 %6948 }
0x484f   :  { %16786 = vmatprep.subr.bf16.mxu1 %v21556_v0 }
0x4851   :  { %15547 = vmatmul.mubr.msk.f32.vlgmr.msra.gmra.mrb[78].mxu1 %vm79_vm0, %v6949_v50 }
0x4852   :  { %16788 = vmatpush3.bf16.msra.mxu1 %v17974_v17  ;;  %15568 = vmatprep.mubr.msk.f32.mxu1 %vm17787_vm1, %v21554_v4 }
0x4853   :  { %16789 = vmatprep.subr.bf16.mxu1 %v21556_v0 }
0x4856   :  { %16791 = vmatpush3.bf16.msra.mxu1 %v17989_v21 }
0x4857   :  { %16798 = vmatprep.subr.bf16.mxu1 %v21556_v0 }
0x4859   :  { %15569 = vmatmul.mubr.msk.f32.vlgmr.msra.gmra.mrb[80].mxu1 %vm79_vm0, %v6949_v50 }
0x485a   :  { %16800 = vmatpush3.bf16.msra.mxu1 %v17942_v5  ;;  %15590 = vmatprep.mubr.msk.f32.mxu1 %vm17787_vm1, %v21554_v4 }
0x485b   :  { %16801 = vmatprep.subr.bf16.mxu1 %v21556_v0 }
0x485e   :  { %16803 = vmatpush3.bf16.msra.mxu1 %v17960_v12 }
0x485f   :  { %16810 = vmatprep.subr.bf16.mxu1 %v21556_v0 }
0x491c   :  { %v6847_v8 = vpop.f32.mrb[76].mxu1 }
0x491d   :  { %v15526_v31 = vpop.f32.mrb[77].mxu1 }
0x4924   :  { %v7018_v52 = vpop.f32.mrb[78].mxu1 }
0x4925   :  { %v7019_v11 = vadd.f32 %v7018_v52, %v6847_v8  ;;  %v15548_v60 = vpop.f32.mrb[79].mxu1 }
0x4927   :  { %v7022_v32 = vadd.f32 %v19174_v48, %v7019_v11 }
0x4929   :  { %17640 = vtanh.f32 %v7022_v32  ;;  %v13428_v9 = vmul.f32 -1.442695, %v7022_v32 }
0x492c   :  { %v7191_v24 = vpop.f32.mrb[80].mxu1 }
0x492d   :  { %v7195_v7 = vadd.f32 %v7191_v24, %v410_v53  ;;  %v15570_v33 = vpop.f32.mrb[81].mxu1 }
0x492f   :  { %17642 = vtanh.f32 %v7195_v7  ;;  %v13431_v62 = vmul.f32 -1.442695, %v7195_v7 }
0x4930   :  { %17644 = vpow2.f32 %v13428_v9 }
0x4931   :  { %17646 = vpow2.f32 %v13431_v62 }
0x4933   :  { %v17641_v63 = vpop.eup %17640 }
0x4934   :  { %7032 = vrot.lane.b32.xlu0 %v17641_v63, %s17789_s7 }
0x4939   :  { %v17643_v54 = vpop.eup %17642 }
0x493a   :  { %7205 = vrot.lane.b32.xlu1 %v17643_v54, %s17789_s7  ;;  %v17645_v3 = vpop.eup %17644 }
0x493b   :  { %v7026_v6 = vadd.f32 1.0, %v17645_v3  ;;  %v17647_v1 = vpop.eup %17646 }
0x493c   :  { %v7199_v2 = vadd.f32 1.0, %v17647_v1 }
0x493d   :  { %17648 = vrcp.f32 %v7026_v6 }
0x493e   :  { %17650 = vrcp.f32 %v7199_v2 }
0x4947   :  { %v17649_v18 = vpop.eup %17648 }
0x4948   :  { %v17651_v38 = vpop.eup %17650  ;;  %v7030_v40 = vmul.f32 %v17649_v18, %v19184_v15 }
0x4949   :  { %v7203_v14 = vmul.f32 %v17651_v38, %v19188_v42 }
0x49a6   :  { %v7033_v13 = vpop.permute.xlu0 %7032 }
0x49a7   :  { %v7035_v29 = vmul.f32 %v17649_v18, %v7033_v13 }
0x49a9   :  { %7037 = vrot.lane.b32.xlu0 %v7035_v29, %s17789_s7 }
0x49ac   :  { %v7206_v35 = vpop.permute.xlu1 %7205 }
0x49ad   :  { %v7208_v45 = vmul.f32 %v17651_v38, %v7206_v35 }
0x49af   :  { %7210 = vrot.lane.b32.xlu1 %v7208_v45, %s17789_s7 }
0x4a1b   :  { %v7038_v58 = vpop.permute.xlu0 %7037 }
0x4a1c   :  { %v19225_v47 = vadd.f32 %v7038_v58, %v7030_v40 }
0x4a1e   :  { %17652 = vtanh.f32 %v19225_v47 }
0x4a21   :  { %v7211_v25 = vpop.permute.xlu1 %7210 }
0x4a22   :  { %v19229_v61 = vadd.f32 %v7211_v25, %v7203_v14 }
0x4a24   :  { %17654 = vtanh.f32 %v19229_v61 }
0x4a28   :  { %v17653_v59 = vpop.eup %17652 }
0x4a29   :  { %7043 = vrot.lane.b32.xlu0 %v17653_v59, %s17789_s7 }
0x4a2e   :  { %v17655_v51 = vpop.eup %17654 }
0x4a2f   :  { %7216 = vrot.lane.b32.xlu1 %v17655_v51, %s17789_s7 }
0x4a9b   :  { %v7044_v49 = vpop.permute.xlu0 %7043 }
0x4a9c   :  { %v7046_v41 = vmul.f32 %v17649_v18, %v7044_v49 }
0x4a9e   :  { %7048 = vrot.lane.b32.xlu0 %v7046_v41, %s17790_s6 }
0x4aa1   :  { %v7217_v37 = vpop.permute.xlu1 %7216 }
0x4aa2   :  { %v7219_v15 = vmul.f32 %v17651_v38, %v7217_v37  ;;  %v420_v37 = vadd.f32 %v19129_v36, %v18315_v20 }
0x4aa4   :  { %7221 = vrot.lane.b32.xlu1 %v7219_v15, %s17790_s6 }
0x4b10   :  { %v7049_v56 = vpop.permute.xlu0 %7048 }
0x4b11   :  { %7051 = vst.msk [vmem:[#allocation2 + $0xc8] sm:$0xff] %vm79_vm0, %v7049_v56  ;;  %15558 = vmatmul.mubr.msk.f32.vlgmr.msra.gmra.mrb[96].mxu0 %vm79_vm0, %v7049_v56 }
0x4b12   :  { %16794 = vmatpush3.bf16.msra.mxu0 %v18022_v44  ;;  %15579 = vmatprep.mubr.msk.f32.mxu0 %vm17787_vm1, %v21554_v4 }
0x4b13   :  { %16795 = vmatprep.subr.bf16.mxu0 %v21556_v0 }
0x4b16   :  { %16797 = vmatpush3.bf16.msra.mxu0 %v18028_v46  ;;  %v7222_v39 = vpop.permute.xlu1 %7221 }
0x4b17   :  { %16804 = vmatprep.subr.bf16.mxu0 %v21556_v0 }
0x4b19   :  { %15580 = vmatmul.mubr.msk.f32.vlgmr.msra.gmra.mrb[98].mxu0 %vm79_vm0, %v7222_v39 }
0x4b1a   :  { %16806 = vmatpush3.bf16.msra.mxu0 %v17974_v17  ;;  %15601 = vmatprep.mubr.msk.f32.mxu0 %vm17787_vm1, %v21554_v4 }
0x4b1b   :  { %16807 = vmatprep.subr.bf16.mxu0 %v21556_v0 }
0x4b1e   :  { %16809 = vmatpush3.bf16.msra.mxu0 %v17989_v21 }
0x4b1f   :  { %16816 = vmatprep.subr.bf16.mxu0 %v21556_v0 }
0x4b21   :  { %15602 = vmatmul.mubr.msk.f32.vlgmr.msra.gmra.mrb[100].mxu0 %vm79_vm0, %v7222_v39 }
0x4b22   :  { %16818 = vmatpush3.bf16.msra.mxu0 %v17942_v5  ;;  %15623 = vmatprep.mubr.msk.f32.mxu0 %vm17787_vm1, %v21554_v4 }
0x4b23   :  { %16819 = vmatprep.subr.bf16.mxu0 %v21556_v0 }
0x4b26   :  { %16821 = vmatpush3.bf16.msra.mxu0 %v17960_v12 }
0x4b27   :  { %16828 = vmatprep.subr.bf16.mxu0 %v21556_v0 }
0x4be4   :  { %v7120_v42 = vpop.f32.mrb[96].mxu0 }
0x4be5   :  { %v15559_v57 = vpop.f32.mrb[97].mxu0 }
0x4bec   :  { %v7291_v43 = vpop.f32.mrb[98].mxu0 }
0x4bed   :  { %v7292_v34 = vadd.f32 %v7291_v43, %v7120_v42  ;;  %v15581_v30 = vpop.f32.mrb[99].mxu0 }
0x4bef   :  { %v7295_v10 = vadd.f32 %v19174_v48, %v7292_v34 }
0x4bf1   :  { %17656 = vtanh.f32 %v7295_v10  ;;  %v13433_v11 = vmul.f32 -1.442695, %v7295_v10 }
0x4bf4   :  { %v7464_v55 = vpop.f32.mrb[100].mxu0 }
0x4bf5   :  { %v7468_v50 = vadd.f32 %v7464_v55, %v415_v28  ;;  %v15603_v8 = vpop.f32.mrb[101].mxu0 }
0x4bf7   :  { %17658 = vtanh.f32 %v7468_v50  ;;  %v13436_v60 = vmul.f32 -1.442695, %v7468_v50 }
0x4bf8   :  { %17660 = vpow2.f32 %v13433_v11 }
0x4bf9   :  { %17662 = vpow2.f32 %v13436_v60 }
0x4bfb   :  { %v17657_v31 = vpop.eup %17656 }
0x4bfc   :  { %7305 = vrot.lane.b32.xlu0 %v17657_v31, %s17789_s7 }
0x4c01   :  { %v17659_v52 = vpop.eup %17658 }
0x4c02   :  { %7478 = vrot.lane.b32.xlu1 %v17659_v52, %s17789_s7  ;;  %v17661_v32 = vpop.eup %17660 }
0x4c03   :  { %v7299_v53 = vadd.f32 1.0, %v17661_v32  ;;  %v17663_v24 = vpop.eup %17662 }
0x4c04   :  { %v7472_v7 = vadd.f32 1.0, %v17663_v24 }
0x4c05   :  { %17664 = vrcp.f32 %v7299_v53 }
0x4c06   :  { %17666 = vrcp.f32 %v7472_v7 }
0x4c0f   :  { %v17665_v16 = vpop.eup %17664 }
0x4c10   :  { %v17667_v54 = vpop.eup %17666  ;;  %v7303_v3 = vmul.f32 %v17665_v16, %v19225_v47 }
0x4c11   :  { %v7476_v2 = vmul.f32 %v17667_v54, %v19229_v61 }
0x4c6e   :  { %v7306_v33 = vpop.permute.xlu0 %7305 }
0x4c6f   :  { %v7308_v63 = vmul.f32 %v17665_v16, %v7306_v33 }
0x4c71   :  { %7310 = vrot.lane.b32.xlu0 %v7308_v63, %s17789_s7 }
0x4c74   :  { %v7479_v9 = vpop.permute.xlu1 %7478 }
0x4c75   :  { %v7481_v62 = vmul.f32 %v17667_v54, %v7479_v9 }
0x4c77   :  { %7483 = vrot.lane.b32.xlu1 %v7481_v62, %s17789_s7 }
0x4ce3   :  { %v7311_v6 = vpop.permute.xlu0 %7310 }
0x4ce4   :  { %v19266_v1 = vadd.f32 %v7311_v6, %v7303_v3 }
0x4ce6   :  { %17668 = vtanh.f32 %v19266_v1 }
0x4ce9   :  { %v7484_v18 = vpop.permute.xlu1 %7483 }
0x4cea   :  { %v19270_v13 = vadd.f32 %v7484_v18, %v7476_v2 }
0x4cec   :  { %17670 = vtanh.f32 %v19270_v13 }
0x4cf0   :  { %v17669_v29 = vpop.eup %17668 }
0x4cf1   :  { %7316 = vrot.lane.b32.xlu0 %v17669_v29, %s17789_s7 }
0x4cf6   :  { %v17671_v38 = vpop.eup %17670 }
0x4cf7   :  { %7489 = vrot.lane.b32.xlu1 %v17671_v38, %s17789_s7 }
0x4d63   :  { %v7317_v35 = vpop.permute.xlu0 %7316 }
0x4d64   :  { %v7319_v45 = vmul.f32 %v17665_v16, %v7317_v35 }
0x4d66   :  { %7321 = vrot.lane.b32.xlu0 %v7319_v45, %s17790_s6  ;;  %v425_v45 = vadd.f32 %v19129_v36, %v18312_v19 }
0x4d69   :  { %v7490_v40 = vpop.permute.xlu1 %7489 }
0x4d6a   :  { %v7492_v58 = vmul.f32 %v17667_v54, %v7490_v40 }
0x4d6c   :  { %7494 = vrot.lane.b32.xlu1 %v7492_v58, %s17790_s6 }
0x4dd8   :  { %v7322_v47 = vpop.permute.xlu0 %7321 }
0x4dd9   :  { %7324 = vst.msk [vmem:[#allocation2 + $0xd0] sm:$0xff] %vm79_vm0, %v7322_v47  ;;  %15591 = vmatmul.mubr.msk.f32.vlgmr.msra.gmra.mrb[82].mxu1 %vm79_vm0, %v7322_v47 }
0x4dda   :  { %16812 = vmatpush3.bf16.msra.mxu1 %v18022_v44  ;;  %15612 = vmatprep.mubr.msk.f32.mxu1 %vm17787_vm1, %v21554_v4 }
0x4ddb   :  { %16813 = vmatprep.subr.bf16.mxu1 %v21556_v0 }
0x4dde   :  { %16815 = vmatpush3.bf16.msra.mxu1 %v18028_v46  ;;  %v7495_v14 = vpop.permute.xlu1 %7494 }
0x4ddf   :  { %16822 = vmatprep.subr.bf16.mxu1 %v21556_v0 }
0x4de1   :  { %15613 = vmatmul.mubr.msk.f32.vlgmr.msra.gmra.mrb[84].mxu1 %vm79_vm0, %v7495_v14 }
0x4de2   :  { %16824 = vmatpush3.bf16.msra.mxu1 %v17974_v17  ;;  %15634 = vmatprep.mubr.msk.f32.mxu1 %vm17787_vm1, %v21554_v4 }
0x4de3   :  { %16825 = vmatprep.subr.bf16.mxu1 %v21556_v0 }
0x4de6   :  { %16827 = vmatpush3.bf16.msra.mxu1 %v17989_v21 }
0x4de7   :  { %16834 = vmatprep.subr.bf16.mxu1 %v21556_v0 }
0x4de9   :  { %15635 = vmatmul.mubr.msk.f32.vlgmr.msra.gmra.mrb[86].mxu1 %vm79_vm0, %v7495_v14 }
0x4dea   :  { %16836 = vmatpush3.bf16.msra.mxu1 %v17942_v5  ;;  %15656 = vmatprep.mubr.msk.f32.mxu1 %vm17787_vm1, %v21554_v4 }
0x4deb   :  { %16837 = vmatprep.subr.bf16.mxu1 %v21556_v0 }
0x4dee   :  { %16839 = vmatpush3.bf16.msra.mxu1 %v17960_v12 }
0x4def   :  { %16846 = vmatprep.subr.bf16.mxu1 %v21556_v0 }
0x4eac   :  { %v7393_v25 = vpop.f32.mrb[82].mxu1 }
0x4ead   :  { %v15592_v61 = vpop.f32.mrb[83].mxu1 }
0x4eb4   :  { %v7564_v59 = vpop.f32.mrb[84].mxu1 }
0x4eb5   :  { %v7565_v51 = vadd.f32 %v7564_v59, %v7393_v25  ;;  %v15614_v49 = vpop.f32.mrb[85].mxu1 }
0x4eb7   :  { %v7568_v41 = vadd.f32 %v19174_v48, %v7565_v51 }
0x4eb9   :  { %17672 = vtanh.f32 %v7568_v41  ;;  %v13438_v43 = vmul.f32 -1.442695, %v7568_v41 }
0x4ebc   :  { %v7737_v15 = vpop.f32.mrb[86].mxu1 }
0x4ebd   :  { %v7741_v56 = vadd.f32 %v7737_v15, %v420_v37  ;;  %v15636_v39 = vpop.f32.mrb[87].mxu1 }
0x4ebf   :  { %17674 = vtanh.f32 %v7741_v56  ;;  %v13441_v34 = vmul.f32 -1.442695, %v7741_v56 }
0x4ec0   :  { %17676 = vpow2.f32 %v13438_v43 }
0x4ec1   :  { %17678 = vpow2.f32 %v13441_v34 }
0x4ec3   :  { %v17673_v42 = vpop.eup %17672 }
0x4ec4   :  { %7578 = vrot.lane.b32.xlu0 %v17673_v42, %s17789_s7 }
0x4ec9   :  { %v17675_v57 = vpop.eup %17674 }
0x4eca   :  { %7751 = vrot.lane.b32.xlu1 %v17675_v57, %s17789_s7  ;;  %v17677_v30 = vpop.eup %17676 }
0x4ecb   :  { %v7572_v10 = vadd.f32 1.0, %v17677_v30  ;;  %v17679_v28 = vpop.eup %17678 }
0x4ecc   :  { %v7745_v55 = vadd.f32 1.0, %v17679_v28 }
0x4ecd   :  { %17680 = vrcp.f32 %v7572_v10 }
0x4ece   :  { %17682 = vrcp.f32 %v7745_v55 }
0x4ed7   :  { %v17681_v20 = vpop.eup %17680 }
0x4ed8   :  { %v17683_v31 = vpop.eup %17682  ;;  %v7576_v60 = vmul.f32 %v17681_v20, %v19266_v1 }
0x4ed9   :  { %v7749_v24 = vmul.f32 %v17683_v31, %v19270_v13 }
0x4f36   :  { %v7579_v50 = vpop.permute.xlu0 %7578 }
0x4f37   :  { %v7581_v8 = vmul.f32 %v17681_v20, %v7579_v50 }
0x4f39   :  { %7583 = vrot.lane.b32.xlu0 %v7581_v8, %s17789_s7 }
0x4f3c   :  { %v7752_v52 = vpop.permute.xlu1 %7751 }
0x4f3d   :  { %v7754_v11 = vmul.f32 %v17683_v31, %v7752_v52 }
0x4f3f   :  { %7756 = vrot.lane.b32.xlu1 %v7754_v11, %s17789_s7 }
0x4fab   :  { %v7584_v32 = vpop.permute.xlu0 %7583 }
0x4fac   :  { %v19307_v53 = vadd.f32 %v7584_v32, %v7576_v60 }
0x4fae   :  { %17684 = vtanh.f32 %v19307_v53 }
0x4fb1   :  { %v7757_v7 = vpop.permute.xlu1 %7756 }
0x4fb2   :  { %v19311_v16 = vadd.f32 %v7757_v7, %v7749_v24 }
0x4fb4   :  { %17686 = vtanh.f32 %v19311_v16 }
0x4fb8   :  { %v17685_v33 = vpop.eup %17684 }
0x4fb9   :  { %7589 = vrot.lane.b32.xlu0 %v17685_v33, %s17789_s7 }
0x4fbe   :  { %v17687_v63 = vpop.eup %17686 }
0x4fbf   :  { %7762 = vrot.lane.b32.xlu1 %v17687_v63, %s17789_s7 }
0x502b   :  { %v7590_v54 = vpop.permute.xlu0 %7589 }
0x502c   :  { %v7592_v9 = vmul.f32 %v17681_v20, %v7590_v54  ;;  %v430_v54 = vadd.f32 %v19129_v36, %v18319_v23 }
0x502e   :  { %7594 = vrot.lane.b32.xlu0 %v7592_v9, %s17790_s6 }
0x5031   :  { %v7763_v62 = vpop.permute.xlu1 %7762 }
0x5032   :  { %v7765_v3 = vmul.f32 %v17683_v31, %v7763_v62 }
0x5034   :  { %7767 = vrot.lane.b32.xlu1 %v7765_v3, %s17790_s6 }
0x50a0   :  { %v7595_v6 = vpop.permute.xlu0 %7594 }
0x50a1   :  { %7597 = vst.msk [vmem:[#allocation2 + $0xd8] sm:$0xff] %vm79_vm0, %v7595_v6  ;;  %15624 = vmatmul.mubr.msk.f32.vlgmr.msra.gmra.mrb[102].mxu0 %vm79_vm0, %v7595_v6 }
0x50a2   :  { %16830 = vmatpush3.bf16.msra.mxu0 %v18022_v44  ;;  %15645 = vmatprep.mubr.msk.f32.mxu0 %vm17787_vm1, %v21554_v4 }
0x50a3   :  { %16831 = vmatprep.subr.bf16.mxu0 %v21556_v0 }
0x50a6   :  { %16833 = vmatpush3.bf16.msra.mxu0 %v18028_v46  ;;  %v7768_v1 = vpop.permute.xlu1 %7767 }
0x50a7   :  { %16840 = vmatprep.subr.bf16.mxu0 %v21556_v0 }
0x50a9   :  { %15646 = vmatmul.mubr.msk.f32.vlgmr.msra.gmra.mrb[104].mxu0 %vm79_vm0, %v7768_v1 }
0x50aa   :  { %16842 = vmatpush3.bf16.msra.mxu0 %v17974_v17  ;;  %15667 = vmatprep.mubr.msk.f32.mxu0 %vm17787_vm1, %v21554_v4 }
0x50ab   :  { %16843 = vmatprep.subr.bf16.mxu0 %v21556_v0 }
0x50ae   :  { %16845 = vmatpush3.bf16.msra.mxu0 %v17989_v21 }
0x50af   :  { %16852 = vmatprep.subr.bf16.mxu0 %v21556_v0 }
0x50b1   :  { %15668 = vmatmul.mubr.msk.f32.vlgmr.msra.gmra.mrb[106].mxu0 %vm79_vm0, %v7768_v1 }
0x50b2   :  { %16854 = vmatpush3.bf16.msra.mxu0 %v17942_v5  ;;  %15689 = vmatprep.mubr.msk.f32.mxu0 %vm17787_vm1, %v21554_v4 }
0x50b3   :  { %16855 = vmatprep.subr.bf16.mxu0 %v21556_v0 }
0x50b6   :  { %16857 = vmatpush3.bf16.msra.mxu0 %v17960_v12 }
0x50b7   :  { %16864 = vmatprep.subr.bf16.mxu0 %v21556_v0 }
0x5174   :  { %v7666_v2 = vpop.f32.mrb[102].mxu0 }
0x5175   :  { %v15625_v18 = vpop.f32.mrb[103].mxu0 }
0x517c   :  { %v7837_v13 = vpop.f32.mrb[104].mxu0 }
0x517d   :  { %v7838_v29 = vadd.f32 %v7837_v13, %v7666_v2  ;;  %v15647_v38 = vpop.f32.mrb[105].mxu0 }
0x517f   :  { %v7841_v35 = vadd.f32 %v19174_v48, %v7838_v29 }
0x5181   :  { %17688 = vtanh.f32 %v7841_v35  ;;  %v13443_v61 = vmul.f32 -1.442695, %v7841_v35 }
0x5184   :  { %v8010_v40 = vpop.f32.mrb[106].mxu0 }
0x5185   :  { %v8014_v58 = vadd.f32 %v8010_v40, %v425_v45  ;;  %v15669_v47 = vpop.f32.mrb[107].mxu0 }
0x5187   :  { %17690 = vtanh.f32 %v8014_v58  ;;  %v13446_v59 = vmul.f32 -1.442695, %v8014_v58 }
0x5188   :  { %17692 = vpow2.f32 %v13443_v61 }
0x5189   :  { %17694 = vpow2.f32 %v13446_v59 }
0x518b   :  { %v17689_v14 = vpop.eup %17688 }
0x518c   :  { %7851 = vrot.lane.b32.xlu0 %v17689_v14, %s17789_s7 }
0x5191   :  { %v17691_v25 = vpop.eup %17690 }
0x5192   :  { %8024 = vrot.lane.b32.xlu1 %v17691_v25, %s17789_s7  ;;  %v17693_v51 = vpop.eup %17692 }
0x5193   :  { %v7845_v49 = vadd.f32 1.0, %v17693_v51  ;;  %v17695_v41 = vpop.eup %17694 }
0x5194   :  { %v8018_v37 = vadd.f32 1.0, %v17695_v41 }
0x5195   :  { %17696 = vrcp.f32 %v7845_v49 }
0x5196   :  { %17698 = vrcp.f32 %v8018_v37 }
0x519f   :  { %v17697_v19 = vpop.eup %17696 }
0x51a0   :  { %v17699_v39 = vpop.eup %17698  ;;  %v7849_v43 = vmul.f32 %v17697_v19, %v19307_v53 }
0x51a1   :  { %v8022_v10 = vmul.f32 %v17699_v39, %v19311_v16 }
0x51fe   :  { %v7852_v15 = vpop.permute.xlu0 %7851 }
0x51ff   :  { %v7854_v56 = vmul.f32 %v17697_v19, %v7852_v15 }
0x5201   :  { %7856 = vrot.lane.b32.xlu0 %v7854_v56, %s17789_s7 }
0x5204   :  { %v8025_v42 = vpop.permute.xlu1 %8024 }
0x5205   :  { %v8027_v57 = vmul.f32 %v17699_v39, %v8025_v42 }
0x5207   :  { %8029 = vrot.lane.b32.xlu1 %v8027_v57, %s17789_s7 }
0x5273   :  { %v7857_v34 = vpop.permute.xlu0 %7856 }
0x5274   :  { %v19348_v30 = vadd.f32 %v7857_v34, %v7849_v43 }
0x5276   :  { %17700 = vtanh.f32 %v19348_v30 }
0x5279   :  { %v8030_v28 = vpop.permute.xlu1 %8029 }
0x527a   :  { %v19352_v55 = vadd.f32 %v8030_v28, %v8022_v10 }
0x527c   :  { %17702 = vtanh.f32 %v19352_v55 }
0x5280   :  { %v17701_v20 = vpop.eup %17700 }
0x5281   :  { %7862 = vrot.lane.b32.xlu0 %v17701_v20, %s17789_s7 }
0x5286   :  { %v17703_v50 = vpop.eup %17702 }
0x5287   :  { %8035 = vrot.lane.b32.xlu1 %v17703_v50, %s17789_s7  ;;  %v435_v50 = vadd.f32 %v19129_v36, %v18317_v22 }
0x52f3   :  { %v7863_v8 = vpop.permute.xlu0 %7862 }
0x52f4   :  { %v7865_v31 = vmul.f32 %v17697_v19, %v7863_v8 }
0x52f6   :  { %7867 = vrot.lane.b32.xlu0 %v7865_v31, %s17790_s6 }
0x52f9   :  { %v8036_v52 = vpop.permute.xlu1 %8035 }
0x52fa   :  { %v8038_v11 = vmul.f32 %v17699_v39, %v8036_v52 }
0x52fc   :  { %8040 = vrot.lane.b32.xlu1 %v8038_v11, %s17790_s6 }
0x5368   :  { %v7868_v60 = vpop.permute.xlu0 %7867 }
0x5369   :  { %7870 = vst.msk [vmem:[#allocation2 + $0xe0] sm:$0xff] %vm79_vm0, %v7868_v60  ;;  %15657 = vmatmul.mubr.msk.f32.vlgmr.msra.gmra.mrb[88].mxu1 %vm79_vm0, %v7868_v60 }
0x536a   :  { %16848 = vmatpush3.bf16.msra.mxu1 %v18022_v44  ;;  %15678 = vmatprep.mubr.msk.f32.mxu1 %vm17787_vm1, %v21554_v4 }
0x536b   :  { %16849 = vmatprep.subr.bf16.mxu1 %v21556_v0 }
0x536e   :  { %16851 = vmatpush3.bf16.msra.mxu1 %v18028_v46  ;;  %v8041_v32 = vpop.permute.xlu1 %8040 }
0x536f   :  { %16858 = vmatprep.subr.bf16.mxu1 %v21556_v0 }
0x5371   :  { %15679 = vmatmul.mubr.msk.f32.vlgmr.msra.gmra.mrb[90].mxu1 %vm79_vm0, %v8041_v32 }
0x5372   :  { %16860 = vmatpush3.bf16.msra.mxu1 %v17974_v17  ;;  %15700 = vmatprep.mubr.msk.f32.mxu1 %vm17787_vm1, %v21554_v4 }
0x5373   :  { %16861 = vmatprep.subr.bf16.mxu1 %v21556_v0 }
0x5376   :  { %16863 = vmatpush3.bf16.msra.mxu1 %v17989_v21 }
0x5377   :  { %16870 = vmatprep.subr.bf16.mxu1 %v21556_v0 }
0x5379   :  { %15701 = vmatmul.mubr.msk.f32.vlgmr.msra.gmra.mrb[92].mxu1 %vm79_vm0, %v8041_v32 }
0x537a   :  { %16872 = vmatpush3.bf16.msra.mxu1 %v17942_v5  ;;  %15722 = vmatprep.mubr.msk.f32.mxu1 %vm17787_vm1, %v21554_v4 }
0x537b   :  { %16873 = vmatprep.subr.bf16.mxu1 %v21556_v0 }
0x537e   :  { %16875 = vmatpush3.bf16.msra.mxu1 %v17960_v12 }
0x537f   :  { %16882 = vmatprep.subr.bf16.mxu1 %v21556_v0 }
0x543c   :  { %v7939_v53 = vpop.f32.mrb[88].mxu1 }
0x543d   :  { %v15658_v24 = vpop.f32.mrb[89].mxu1 }
0x5444   :  { %v8110_v7 = vpop.f32.mrb[90].mxu1 }
0x5445   :  { %v8111_v16 = vadd.f32 %v8110_v7, %v7939_v53  ;;  %v15680_v33 = vpop.f32.mrb[91].mxu1 }
0x5447   :  { %v8114_v63 = vadd.f32 %v19174_v48, %v8111_v16 }
0x5449   :  { %17704 = vtanh.f32 %v8114_v63  ;;  %v13448_v2 = vmul.f32 -1.442695, %v8114_v63 }
0x544c   :  { %v8283_v9 = vpop.f32.mrb[92].mxu1 }
0x544d   :  { %v8287_v62 = vadd.f32 %v8283_v9, %v430_v54  ;;  %v15702_v3 = vpop.f32.mrb[93].mxu1 }
0x544f   :  { %17706 = vtanh.f32 %v8287_v62  ;;  %v13451_v18 = vmul.f32 -1.442695, %v8287_v62 }
0x5450   :  { %17708 = vpow2.f32 %v13448_v2 }
0x5451   :  { %17710 = vpow2.f32 %v13451_v18 }
0x5453   :  { %v17705_v6 = vpop.eup %17704 }
0x5454   :  { %8124 = vrot.lane.b32.xlu0 %v17705_v6, %s17789_s7 }
0x5459   :  { %v17707_v1 = vpop.eup %17706 }
0x545a   :  { %8297 = vrot.lane.b32.xlu1 %v17707_v1, %s17789_s7  ;;  %v17709_v13 = vpop.eup %17708 }
0x545b   :  { %v8118_v29 = vadd.f32 1.0, %v17709_v13  ;;  %v17711_v38 = vpop.eup %17710 }
0x545c   :  { %v8291_v35 = vadd.f32 1.0, %v17711_v38 }
0x545d   :  { %17712 = vrcp.f32 %v8118_v29 }
0x545e   :  { %17714 = vrcp.f32 %v8291_v35 }
0x5467   :  { %v17713_v23 = vpop.eup %17712 }
0x5468   :  { %v17715_v58 = vpop.eup %17714  ;;  %v8122_v25 = vmul.f32 %v17713_v23, %v19348_v30 }
0x5469   :  { %v8295_v51 = vmul.f32 %v17715_v58, %v19352_v55 }
0x54c6   :  { %v8125_v45 = vpop.permute.xlu0 %8124 }
0x54c7   :  { %v8127_v40 = vmul.f32 %v17713_v23, %v8125_v45 }
0x54c9   :  { %8129 = vrot.lane.b32.xlu0 %v8127_v40, %s17789_s7 }
0x54cc   :  { %v8298_v47 = vpop.permute.xlu1 %8297 }
0x54cd   :  { %v8300_v14 = vmul.f32 %v17715_v58, %v8298_v47 }
0x54cf   :  { %8302 = vrot.lane.b32.xlu1 %v8300_v14, %s17789_s7 }
0x553b   :  { %v8130_v61 = vpop.permute.xlu0 %8129 }
0x553c   :  { %v19389_v59 = vadd.f32 %v8130_v61, %v8122_v25 }
0x553e   :  { %17716 = vtanh.f32 %v19389_v59 }
0x5541   :  { %v8303_v49 = vpop.permute.xlu1 %8302 }
0x5542   :  { %v19393_v41 = vadd.f32 %v8303_v49, %v8295_v51 }
0x5544   :  { %17718 = vtanh.f32 %v19393_v41 }
0x5548   :  { %v17717_v37 = vpop.eup %17716 }
0x5549   :  { %8135 = vrot.lane.b32.xlu0 %v17717_v37, %s17789_s7 }
0x554e   :  { %v17719_v19 = vpop.eup %17718 }
0x554f   :  { %8308 = vrot.lane.b32.xlu1 %v17719_v19, %s17789_s7 }
0x55bb   :  { %v8136_v15 = vpop.permute.xlu0 %8135 }
0x55bc   :  { %v8138_v56 = vmul.f32 %v17713_v23, %v8136_v15 }
0x55be   :  { %8140 = vrot.lane.b32.xlu0 %v8138_v56, %s17790_s6 }
0x55c1   :  { %v8309_v39 = vpop.permute.xlu1 %8308 }
0x55c2   :  { %v8311_v42 = vmul.f32 %v17715_v58, %v8309_v39 }
0x55c4   :  { %8313 = vrot.lane.b32.xlu1 %v8311_v42, %s17790_s6 }
0x5630   :  { %v8141_v57 = vpop.permute.xlu0 %8140 }
0x5631   :  { %8143 = vst.msk [vmem:[#allocation2 + $0xe8] sm:$0xff] %vm79_vm0, %v8141_v57  ;;  %15690 = vmatmul.mubr.msk.f32.vlgmr.msra.gmra.mrb[108].mxu0 %vm79_vm0, %v8141_v57 }
0x5632   :  { %16866 = vmatpush3.bf16.msra.mxu0 %v18022_v44  ;;  %15711 = vmatprep.mubr.msk.f32.mxu0 %vm17787_vm1, %v21554_v4 }
0x5633   :  { %16867 = vmatprep.subr.bf16.mxu0 %v21556_v0 }
0x5636   :  { %16869 = vmatpush3.bf16.msra.mxu0 %v18028_v46  ;;  %v8314_v43 = vpop.permute.xlu1 %8313 }
0x5637   :  { %16876 = vmatprep.subr.bf16.mxu0 %v21556_v0 }
0x5639   :  { %15712 = vmatmul.mubr.msk.f32.vlgmr.msra.gmra.mrb[110].mxu0 %vm79_vm0, %v8314_v43 }
0x563a   :  { %16878 = vmatpush3.bf16.msra.mxu0 %v17974_v17  ;;  %15733 = vmatprep.mubr.msk.f32.mxu0 %vm17787_vm1, %v21554_v4 }
0x563b   :  { %16879 = vmatprep.subr.bf16.mxu0 %v21556_v0 }
0x563e   :  { %16881 = vmatpush3.bf16.msra.mxu0 %v17989_v21 }
0x563f   :  { %16888 = vmatprep.subr.bf16.mxu0 %v21556_v0 }
0x5641   :  { %15734 = vmatmul.mubr.msk.f32.vlgmr.msra.gmra.mrb[112].mxu0 %vm79_vm0, %v8314_v43 }
0x5642   :  { %16890 = vmatpush3.bf16.msra.mxu0 %v17942_v5  ;;  %15755 = vmatprep.mubr.msk.f32.mxu0 %vm17787_vm1, %v21554_v4 }
0x5643   :  { %16891 = vmatprep.subr.bf16.mxu0 %v21556_v0 }
0x5646   :  { %16893 = vmatpush3.bf16.msra.mxu0 %v17960_v12 }
0x5647   :  { %16900 = vmatprep.subr.bf16.mxu0 %v21556_v0 }
0x5704   :  { %v8212_v34 = vpop.f32.mrb[108].mxu0 }
0x5705   :  { %v15691_v30 = vpop.f32.mrb[109].mxu0 }
0x570c   :  { %v8383_v10 = vpop.f32.mrb[110].mxu0 }
0x570d   :  { %v8384_v28 = vadd.f32 %v8383_v10, %v8212_v34  ;;  %v15713_v55 = vpop.f32.mrb[111].mxu0 }
0x570f   :  { %v8387_v20 = vadd.f32 %v19174_v48, %v8384_v28 }
0x5711   :  { %17720 = vtanh.f32 %v8387_v20  ;;  %v13453_v32 = vmul.f32 -1.442695, %v8387_v20 }
0x5714   :  { %v8556_v8 = vpop.f32.mrb[112].mxu0 }
0x5715   :  { %v8560_v31 = vadd.f32 %v8556_v8, %v435_v50  ;;  %v15735_v52 = vpop.f32.mrb[113].mxu0 }
0x5717   :  { %17722 = vtanh.f32 %v8560_v31  ;;  %v13456_v53 = vmul.f32 -1.442695, %v8560_v31 }
0x5718   :  { %17724 = vpow2.f32 %v13453_v32 }
0x5719   :  { %17726 = vpow2.f32 %v13456_v53 }
0x571b   :  { %v17721_v11 = vpop.eup %17720 }
0x571c   :  { %8397 = vrot.lane.b32.xlu0 %v17721_v11, %s17789_s7 }
0x5721   :  { %v17723_v60 = vpop.eup %17722 }
0x5722   :  { %8570 = vrot.lane.b32.xlu1 %v17723_v60, %s17789_s7  ;;  %v17725_v24 = vpop.eup %17724 }
0x5723   :  { %v8391_v7 = vadd.f32 1.0, %v17725_v24  ;;  %v17727_v16 = vpop.eup %17726 }
0x5724   :  { %v8564_v33 = vadd.f32 1.0, %v17727_v16 }
0x5725   :  { %17728 = vrcp.f32 %v8391_v7 }
0x5726   :  { %17730 = vrcp.f32 %v8564_v33 }
0x572f   :  { %v17729_v22 = vpop.eup %17728 }
0x5730   :  { %v17731_v54 = vpop.eup %17730  ;;  %v8395_v3 = vmul.f32 %v17729_v22, %v19389_v59 }
0x5731   :  { %v8568_v2 = vmul.f32 %v17731_v54, %v19393_v41 }
0x578e   :  { %v8398_v36 = vpop.permute.xlu0 %8397 }
0x578f   :  { %v8400_v63 = vmul.f32 %v17729_v22, %v8398_v36 }
0x5791   :  { %8402 = vrot.lane.b32.xlu0 %v8400_v63, %s17789_s7  ;;  %v9241_v63 = vld [vmem:[%s21616_s2 + $0x20] sm:$0xff] }
0x5794   :  { %v8571_v9 = vpop.permute.xlu1 %8570 }
0x5795   :  { %v8573_v62 = vmul.f32 %v17731_v54, %v8571_v9 }
0x5797   :  { %8575 = vrot.lane.b32.xlu1 %v8573_v62, %s17789_s7  ;;  %v9243_v62 = vld [vmem:[%s21616_s2 + $0x30] sm:$0xff] }
0x5803   :  { %v8403_v6 = vpop.permute.xlu0 %8402 }
0x5804   :  { %v19430_v1 = vadd.f32 %v8403_v6, %v8395_v3  ;;  %v9244_v3 = vld [vmem:[%s21616_s2 + $0x38] sm:$0xff] }
0x5805   :  { %v16928_v6 = vpack.c.bf16 %v9244_v3, %v9243_v62 }
0x5806   :  { %17732 = vtanh.f32 %v19430_v1 }
0x5809   :  { %v8576_v18 = vpop.permute.xlu1 %8575 }
0x580a   :  { %v19434_v13 = vadd.f32 %v8576_v18, %v8568_v2  ;;  %v19522_v2 = vld [vmem:[#allocation2 + $0x18] sm:$0xff]  ;;  %v19530_v18 = vld [vmem:[#allocation2 + $0x28] sm:$0xff] }
0x580c   :  { %17734 = vtanh.f32 %v19434_v13 }
0x5810   :  { %v17733_v29 = vpop.eup %17732 }
0x5811   :  { %8408 = vrot.lane.b32.xlu0 %v17733_v29, %s17789_s7  ;;  %v19538_v29 = vld [vmem:[#allocation2 + $0x38] sm:$0xff] }
0x5816   :  { %v17735_v38 = vpop.eup %17734 }
0x5817   :  { %8581 = vrot.lane.b32.xlu1 %v17735_v38, %s17789_s7  ;;  %v19542_v38 = vld [vmem:[#allocation2 + $0x40] sm:$0xff] }
0x5883   :  { %v8409_v35 = vpop.permute.xlu0 %8408 }
0x5884   :  { %v8411_v23 = vmul.f32 %v17729_v22, %v8409_v35  ;;  %v19546_v35 = vld [vmem:[#allocation2 + $0x48] sm:$0xff] }
0x5886   :  { %8413 = vrot.lane.b32.xlu0 %v8411_v23, %s17790_s6  ;;  %v19550_v23 = vld [vmem:[#allocation2 + $0x50] sm:$0xff] }
0x5889   :  { %v8582_v45 = vpop.permute.xlu1 %8581 }
0x588a   :  { %v8584_v40 = vmul.f32 %v17731_v54, %v8582_v45  ;;  %v9242_v54 = vld [vmem:[%s21616_s2 + $0x28] sm:$0xff]  ;;  %v19554_v45 = vld [vmem:[#allocation2 + $0x58] sm:$0xff] }
0x588b   :  { %v16924_v9 = vpack.c.bf16 %v9242_v54, %v9241_v63 }
0x588c   :  { %8586 = vrot.lane.b32.xlu1 %v8584_v40, %s17790_s6  ;;  %v19558_v40 = vld [vmem:[#allocation2 + $0x60] sm:$0xff] }
0x58f8   :  { %v8414_v58 = vpop.permute.xlu0 %8413 }
0x58f9   :  { %8416 = vst.msk [vmem:[#allocation2 + $0xf0] sm:$0xff] %vm79_vm0, %v8414_v58  ;;  %15723 = vmatmul.mubr.msk.f32.vlgmr.msra.gmra.mrb[94].mxu1 %vm79_vm0, %v8414_v58  ;;  %v19562_v58 = vld [vmem:[#allocation2 + $0x68] sm:$0xff] }
0x58fa   :  { %16884 = vmatpush3.bf16.msra.mxu1 %v18022_v44  ;;  %15744 = vmatprep.mubr.msk.f32.mxu1 %vm17787_vm1, %v21554_v4 }
0x58fb   :  { %16885 = vmatprep.subr.bf16.mxu1 %v21556_v0 }
0x58fe   :  { %16887 = vmatpush3.bf16.msra.mxu1 %v18028_v46  ;;  %v8587_v47 = vpop.permute.xlu1 %8586 }
0x58ff   :  { %16894 = vmatprep.subr.bf16.mxu1 %v21556_v0 }
0x5901   :  { %15745 = vmatmul.mubr.msk.f32.vlgmr.msra.gmra.mrb[96].mxu1 %vm79_vm0, %v8587_v47 }
0x5902   :  { %16896 = vmatpush3.bf16.msra.mxu1 %v17974_v17  ;;  %15766 = vmatprep.mubr.msk.f32.mxu1 %vm17787_vm1, %v21554_v4 }
0x5903   :  { %16897 = vmatprep.subr.bf16.mxu1 %v21556_v0 }
0x5906   :  { %16899 = vmatpush3.bf16.msra.mxu1 %v17989_v21 }
0x5907   :  { %16906 = vmatprep.subr.bf16.mxu1 %v21556_v0 }
0x5909   :  { %15767 = vmatmul.mubr.msk.f32.vlgmr.msra.gmra.mrb[98].mxu1 %vm79_vm0, %v8587_v47  ;;  %v19566_v47 = vld [vmem:[#allocation2 + $0x70] sm:$0xff] }
0x590a   :  { %16908 = vmatpush3.bf16.msra.mxu1 %v17942_v5  ;;  %15788 = vmatprep.mubr.msk.f32.mxu1 %vm17787_vm1, %v21554_v4  ;;  %v19467_v5 = vld [vmem:[%s21613_s3] ss:$0 sm:$0xff]  ;;  %s21617_s3 = sld [smem:[#allocation53_spill]] }
0x590b   :  { %16909 = vmatprep.subr.bf16.mxu1 %v21556_v0  ;;  %v440_v41 = vadd.f32 %v19467_v5, %v18323_v27 }
0x590e   :  { %16911 = vmatpush3.bf16.msra.mxu1 %v17960_v12 }
0x590f   :  { %16918 = vmatprep.subr.bf16.mxu1 %v21556_v0 }
0x59cc   :  { %v8485_v14 = vpop.f32.mrb[94].mxu1 }
0x59cd   :  { %v15724_v25 = vpop.f32.mrb[95].mxu1 }
0x59ce   :  { %v19574_v25 = vld [vmem:[#allocation2 + $0x80] sm:$0xff] }
0x59d4   :  { %v8656_v61 = vpop.f32.mrb[96].mxu1 }
0x59d5   :  { %v8657_v59 = vadd.f32 %v8656_v61, %v8485_v14  ;;  %v15746_v51 = vpop.f32.mrb[97].mxu1  ;;  %v19570_v14 = vld [vmem:[#allocation2 + $0x78] sm:$0xff]  ;;  %v19578_v61 = vld [vmem:[#allocation2 + $0x88] sm:$0xff] }
0x59d6   :  { %v19586_v51 = vld [vmem:[#allocation2 + $0x98] sm:$0xff] }
0x59d7   :  { %v8660_v49 = vadd.f32 %v19174_v48, %v8657_v59  ;;  %v19582_v59 = vld [vmem:[#allocation2 + $0x90] sm:$0xff] }
0x59d9   :  { %17736 = vtanh.f32 %v8660_v49  ;;  %v13458_v48 = vmul.f32 -1.442695, %v8660_v49  ;;  %v19590_v49 = vld [vmem:[#allocation2 + $0xa0] sm:$0xff] }
0x59dc   :  { %v8829_v37 = vpop.f32.mrb[98].mxu1 }
0x59dd   :  { %v8833_v12 = vadd.f32 %v8829_v37, %v440_v41  ;;  %v15768_v19 = vpop.f32.mrb[99].mxu1  ;;  %v19594_v41 = vld [vmem:[#allocation2 + $0xa8] sm:$0xff]  ;;  %v19598_v37 = vld [vmem:[#allocation2 + $0xb0] sm:$0xff] }
0x59de   :  { %v19606_v19 = vld [vmem:[#allocation2 + $0xc0] sm:$0xff] }
0x59df   :  { %17738 = vtanh.f32 %v8833_v12  ;;  %v13461_v39 = vmul.f32 -1.442695, %v8833_v12  ;;  %v19602_v12 = vld [vmem:[#allocation2 + $0xb8] sm:$0xff] }
0x59e0   :  { %17740 = vpow2.f32 %v13458_v48  ;;  %v19618_v48 = vld [vmem:[#allocation2 + $0xd8] sm:$0xff] }
0x59e1   :  { %17742 = vpow2.f32 %v13461_v39  ;;  %v19622_v39 = vld [vmem:[#allocation2 + $0xe0] sm:$0xff] }
0x59e3   :  { %v17737_v15 = vpop.eup %17736 }
0x59e4   :  { %8670 = vrot.lane.b32.xlu0 %v17737_v15, %s17789_s7  ;;  %v19610_v15 = vld [vmem:[#allocation2 + $0xc8] sm:$0xff] }
0x59e9   :  { %v17739_v56 = vpop.eup %17738 }
0x59ea   :  { %8843 = vrot.lane.b32.xlu1 %v17739_v56, %s17789_s7  ;;  %v17741_v42 = vpop.eup %17740  ;;  %v19614_v56 = vld [vmem:[#allocation2 + $0xd0] sm:$0xff] }
0x59eb   :  { %v8664_v57 = vadd.f32 1.0, %v17741_v42  ;;  %v17743_v43 = vpop.eup %17742  ;;  %v19626_v42 = vld [vmem:[#allocation2 + $0xe8] sm:$0xff] }
0x59ec   :  { %v8837_v34 = vadd.f32 1.0, %v17743_v43 }
0x59ed   :  { %17744 = vrcp.f32 %v8664_v57  ;;  %v19630_v57 = vld [vmem:[#allocation2 + $0xf0] sm:$0xff] }
0x59ee   :  { %17746 = vrcp.f32 %v8837_v34 }
0x59f7   :  { %v17745_v27 = vpop.eup %17744 }
0x59f8   :  { %v17747_v28 = vpop.eup %17746  ;;  %v8668_v50 = vmul.f32 %v17745_v27, %v19430_v1  ;;  %v19513_v1 = vld [vmem:[#allocation2 + $0x8] sm:$0xff] }
0x59f9   :  { %v8841_v52 = vmul.f32 %v17747_v28, %v19434_v13  ;;  %v19534_v13 = vld [vmem:[#allocation2 + $0x30] sm:$0xff] }
0x5a56   :  { %v8671_v30 = vpop.permute.xlu0 %8670 }
0x5a57   :  { %v8673_v10 = vmul.f32 %v17745_v27, %v8671_v30 }
0x5a59   :  { %8675 = vrot.lane.b32.xlu0 %v8673_v10, %s17789_s7 }
0x5a5c   :  { %v8844_v55 = vpop.permute.xlu1 %8843 }
0x5a5d   :  { %v8846_v20 = vmul.f32 %v17747_v28, %v8844_v55  ;;  %v19641_v55 = vld [vmem:[%s21615_s14] ss:$0 sm:$0xff] }
0x5a5f   :  { %8848 = vrot.lane.b32.xlu1 %v8846_v20, %s17789_s7 }
0x5acb   :  { %v8676_v8 = vpop.permute.xlu0 %8675 }
0x5acc   :  { %v19476_v31 = vadd.f32 %v8676_v8, %v8668_v50  ;;  %v445_v50 = vadd.f32 %v19467_v5, %v18321_v26 }
0x5ace   :  { %17748 = vtanh.f32 %v19476_v31 }
0x5ad1   :  { %v8849_v11 = vpop.permute.xlu1 %8848 }
0x5ad2   :  { %v19480_v60 = vadd.f32 %v8849_v11, %v8841_v52 }
0x5ad4   :  { %17750 = vtanh.f32 %v19480_v60 }
0x5ad8   :  { %v17749_v32 = vpop.eup %17748 }
0x5ad9   :  { %8681 = vrot.lane.b32.xlu0 %v17749_v32, %s17789_s7 }
0x5ade   :  { %v17751_v53 = vpop.eup %17750 }
0x5adf   :  { %8854 = vrot.lane.b32.xlu1 %v17751_v53, %s17789_s7 }
0x5b4b   :  { %v8682_v24 = vpop.permute.xlu0 %8681 }
0x5b4c   :  { %v8684_v7 = vmul.f32 %v17745_v27, %v8682_v24 }
0x5b4e   :  { %8686 = vrot.lane.b32.xlu0 %v8684_v7, %s17790_s6 }
0x5b51   :  { %v8855_v16 = vpop.permute.xlu1 %8854 }
0x5b52   :  { %v8857_v33 = vmul.f32 %v17747_v28, %v8855_v16 }
0x5b54   :  { %8859 = vrot.lane.b32.xlu1 %v8857_v33, %s17790_s6 }
0x5bc0   :  { %v8687_v22 = vpop.permute.xlu0 %8686 }
0x5bc1   :  { %8689 = vst.msk [vmem:[#allocation2 + $0xf8] sm:$0xff] %vm79_vm0, %v8687_v22  ;;  %15756 = vmatmul.mubr.msk.f32.vlgmr.msra.gmra.mrb[114].mxu0 %vm79_vm0, %v8687_v22 }
0x5bc2   :  { %16902 = vmatpush3.bf16.msra.mxu0 %v18022_v44  ;;  %15777 = vmatprep.mubr.msk.f32.mxu0 %vm17787_vm1, %v21554_v4 }
0x5bc3   :  { %16903 = vmatprep.subr.bf16.mxu0 %v21556_v0 }
0x5bc6   :  { %16905 = vmatpush3.bf16.msra.mxu0 %v18028_v46  ;;  %v8860_v36 = vpop.permute.xlu1 %8859 }
0x5bc7   :  { %16912 = vmatprep.subr.bf16.mxu0 %v21556_v0 }
0x5bc8   :  { %v19634_v43 = vld [vmem:[#allocation2 + $0xf8] sm:$0xff] }
0x5bc9   :  { %15778 = vmatmul.mubr.msk.f32.vlgmr.msra.gmra.mrb[116].mxu0 %vm79_vm0, %v8860_v36 }
0x5bca   :  { %16914 = vmatpush3.bf16.msra.mxu0 %v17974_v17  ;;  %15799 = vmatprep.mubr.msk.f32.mxu0 %vm17787_vm1, %v21554_v4  ;;  %v19518_v17 = vld [vmem:[#allocation2 + $0x10] sm:$0xff] }
0x5bcb   :  { %16915 = vmatprep.subr.bf16.mxu0 %v21556_v0 }
0x5bce   :  { %16917 = vmatpush3.bf16.msra.mxu0 %v17989_v21  ;;  %v19526_v21 = vld [vmem:[#allocation2 + $0x20] sm:$0xff] }
0x5bcf   :  { %16925 = vmatprep.subr.bf16.mxu0 %v16924_v9 }
0x5bd1   :  { %15800 = vmatmul.mubr.msk.f32.vlgmr.msra.gmra.mrb[118].mxu0 %vm79_vm0, %v8860_v36 }
0x5bd2   :  { %16927 = vmatpush3.bf16.msra.mxu0 %v16924_v9  ;;  %15821 = vmatprep.mubr.msk.f32.mxu0 %vm79_vm0, %v19513_v1 }
0x5bd3   :  { %16929 = vmatprep.subr.bf16.mxu0 %v16928_v6 }
0x5bd6   :  { %16931 = vmatpush3.bf16.msra.mxu0 %v16928_v6 }
0x5bd9   :  { %15822 = vmatmul.mubr.msk.f32.vlgmr.msra.gmra.mrb[120].mxu0 %vm79_vm0, %v19518_v17 }
0x5bda   :  { %15824 = vmatprep.mubr.msk.f32.mxu0 %vm79_vm0, %v19522_v2 }
0x5bdd   :  { %15825 = vmatmul.mubr.msk.f32.gmra.mrb[122].mxu0 %vm79_vm0, %v19526_v21 }
0x5bde   :  { %15827 = vmatprep.mubr.msk.f32.mxu0 %vm79_vm0, %v19530_v18 }
0x5be1   :  { %15828 = vmatmul.mubr.msk.f32.gmra.mrb[124].mxu0 %vm79_vm0, %v19534_v13 }
0x5be2   :  { %15830 = vmatprep.mubr.msk.f32.mxu0 %vm79_vm0, %v19538_v29 }
0x5be5   :  { %15831 = vmatmul.mubr.msk.f32.gmra.mrb[126].mxu0 %vm79_vm0, %v19542_v38 }
0x5be6   :  { %15833 = vmatprep.mubr.msk.f32.mxu0 %vm79_vm0, %v19546_v35 }
0x5be9   :  { %15834 = vmatmul.mubr.msk.f32.gmra.mrb[128].mxu0 %vm79_vm0, %v19550_v23 }
0x5bea   :  { %15836 = vmatprep.mubr.msk.f32.mxu0 %vm79_vm0, %v19554_v45 }
0x5bed   :  { %15837 = vmatmul.mubr.msk.f32.gmra.mrb[130].mxu0 %vm79_vm0, %v19558_v40 }
0x5bee   :  { %15839 = vmatprep.mubr.msk.f32.mxu0 %vm79_vm0, %v19562_v58 }
0x5bf1   :  { %15840 = vmatmul.mubr.msk.f32.gmra.mrb[132].mxu0 %vm79_vm0, %v19566_v47 }
0x5bf2   :  { %15842 = vmatprep.mubr.msk.f32.mxu0 %vm79_vm0, %v19570_v14 }
0x5bf5   :  { %15843 = vmatmul.mubr.msk.f32.gmra.mrb[134].mxu0 %vm79_vm0, %v19574_v25 }
0x5bf6   :  { %15845 = vmatprep.mubr.msk.f32.mxu0 %vm79_vm0, %v19578_v61 }
0x5bf9   :  { %15846 = vmatmul.mubr.msk.f32.gmra.mrb[136].mxu0 %vm79_vm0, %v19582_v59 }
0x5bfa   :  { %15848 = vmatprep.mubr.msk.f32.mxu0 %vm79_vm0, %v19586_v51 }
0x5bfd   :  { %15849 = vmatmul.mubr.msk.f32.gmra.mrb[138].mxu0 %vm79_vm0, %v19590_v49 }
0x5bfe   :  { %15851 = vmatprep.mubr.msk.f32.mxu0 %vm79_vm0, %v19594_v41 }
0x5c01   :  { %15852 = vmatmul.mubr.msk.f32.gmra.mrb[140].mxu0 %vm79_vm0, %v19598_v37 }
0x5c02   :  { %15854 = vmatprep.mubr.msk.f32.mxu0 %vm79_vm0, %v19602_v12 }
0x5c05   :  { %15855 = vmatmul.mubr.msk.f32.gmra.mrb[142].mxu0 %vm79_vm0, %v19606_v19 }
0x5c06   :  { %15857 = vmatprep.mubr.msk.f32.mxu0 %vm79_vm0, %v19610_v15 }
0x5c09   :  { %15858 = vmatmul.mubr.msk.f32.gmra.mrb[144].mxu0 %vm79_vm0, %v19614_v56 }
0x5c0a   :  { %15860 = vmatprep.mubr.msk.f32.mxu0 %vm79_vm0, %v19618_v48 }
0x5c0d   :  { %15861 = vmatmul.mubr.msk.f32.gmra.mrb[146].mxu0 %vm79_vm0, %v19622_v39 }
0x5c0e   :  { %15863 = vmatprep.mubr.msk.f32.mxu0 %vm79_vm0, %v19626_v42 }
0x5c11   :  { %15864 = vmatmul.mubr.msk.f32.gmra.mrb[148].mxu0 %vm79_vm0, %v19630_v57 }
0x5c12   :  { %15866 = vmatprep.mubr.msk.f32.mxu0 %vm79_vm0, %v19634_v43 }
0x5c94   :  { %v8758_v34 = vpop.f32.mrb[114].mxu0 }
0x5c95   :  { %v15757_v27 = vpop.f32.mrb[115].mxu0 }
0x5c9c   :  { %v8929_v30 = vpop.f32.mrb[116].mxu0 }
0x5c9d   :  { %v8930_v10 = vadd.f32 %v8929_v30, %v8758_v34  ;;  %v15779_v28 = vpop.f32.mrb[117].mxu0 }
0x5c9f   :  { %v8933_v20 = vadd.f32 %v19641_v55, %v8930_v10 }
0x5ca1   :  { %17752 = vtanh.f32 %v8933_v20  ;;  %v13463_v24 = vmul.f32 -1.442695, %v8933_v20 }
0x5ca4   :  { %v9102_v8 = vpop.f32.mrb[118].mxu0 }
0x5ca5   :  { %v9106_v52 = vadd.f32 %v9102_v8, %v445_v50  ;;  %v15801_v11 = vpop.f32.mrb[119].mxu0 }
0x5ca7   :  { %17754 = vtanh.f32 %v9106_v52  ;;  %v13466_v7 = vmul.f32 -1.442695, %v9106_v52 }
0x5ca8   :  { %17756 = vpow2.f32 %v13463_v24 }
0x5ca9   :  { %17758 = vpow2.f32 %v13466_v7 }
0x5cab   :  { %v17753_v32 = vpop.eup %17752 }
0x5cac   :  { %8943 = vrot.lane.b32.xlu0 %v17753_v32, %s17789_s7 }
0x5cb1   :  { %v17755_v53 = vpop.eup %17754 }
0x5cb2   :  { %9116 = vrot.lane.b32.xlu1 %v17755_v53, %s17789_s7  ;;  %v17757_v16 = vpop.eup %17756 }
0x5cb3   :  { %v8937_v33 = vadd.f32 1.0, %v17757_v16  ;;  %v17759_v22 = vpop.eup %17758 }
0x5cb4   :  { %v9110_v36 = vadd.f32 1.0, %v17759_v22 }
0x5cb5   :  { %17760 = vrcp.f32 %v8937_v33 }
0x5cb6   :  { %17762 = vrcp.f32 %v9110_v36 }
0x5cbf   :  { %v17761_v26 = vpop.eup %17760 }
0x5cc0   :  { %v17763_v54 = vpop.eup %17762  ;;  %v8941_v3 = vmul.f32 %v17761_v26, %v19476_v31 }
0x5cc1   :  { %v9114_v27 = vmul.f32 %v17763_v54, %v19480_v60 }
0x5d1e   :  { %v8944_v5 = vpop.permute.xlu0 %8943 }
0x5d1f   :  { %v8946_v63 = vmul.f32 %v17761_v26, %v8944_v5 }
0x5d21   :  { %8948 = vrot.lane.b32.xlu0 %v8946_v63, %s17789_s7 }
0x5d24   :  { %v9117_v9 = vpop.permute.xlu1 %9116 }
0x5d25   :  { %v9119_v62 = vmul.f32 %v17763_v54, %v9117_v9 }
0x5d27   :  { %9121 = vrot.lane.b32.xlu1 %v9119_v62, %s17789_s7 }
0x5d93   :  { %v8949_v6 = vpop.permute.xlu0 %8948 }
0x5d94   :  { %v8951_v34 = vadd.f32 %v8949_v6, %v8941_v3  ;;  %v17791_v6 = vmov 0  }
0x5d95   :  { %17263 = vset.pattern.permute.xlu1 %v17791_v6  ;;  %17262 = vset.pattern.permute.xlu0 %v17791_v6  ;;  %v10393_v6 = vld [vmem:[%s21617_s3 + $0xf0] sm:$0xff] }
0x5d96   :  { %17764 = vtanh.f32 %v8951_v34 }
0x5d99   :  { %v9122_v30 = vpop.permute.xlu1 %9121 }
0x5d9a   :  { %v9124_v10 = vadd.f32 %v9122_v30, %v9114_v27  ;;  %v10364_v27 = vld [vmem:[%s21617_s3 + $0x8] sm:$0xff]  ;;  %v10367_v30 = vld [vmem:[%s21617_s3 + $0x20] sm:$0xff] }
0x5d9c   :  { %17766 = vtanh.f32 %v9124_v10  ;;  %v10371_v10 = vld [vmem:[%s21617_s3 + $0x40] sm:$0xff] }
0x5da0   :  { %v17765_v28 = vpop.eup %17764 }
0x5da1   :  { %8954 = vrot.lane.b32.xlu0 %v17765_v28, %s17789_s7  ;;  %v10373_v28 = vld [vmem:[%s21617_s3 + $0x50] sm:$0xff] }
0x5da6   :  { %v17767_v20 = vpop.eup %17766 }
0x5da7   :  { %9127 = vrot.lane.b32.xlu1 %v17767_v20, %s17789_s7  ;;  %v10375_v20 = vld [vmem:[%s21617_s3 + $0x60] sm:$0xff] }
0x5e13   :  { %v8955_v50 = vpop.permute.xlu0 %8954 }
0x5e14   :  { %v8957_v8 = vmul.f32 %v17761_v26, %v8955_v50  ;;  %v9237_v50 = vld [vmem:[%s21616_s2] sm:$0xff] }
0x5e16   :  { %8959 = vrot.lane.b32.xlu0 %v8957_v8, %s17790_s6  ;;  %v9238_v8 = vld [vmem:[%s21616_s2 + $0x8] sm:$0xff] }
0x5e19   :  { %v9128_v52 = vpop.permute.xlu1 %9127 }
0x5e1a   :  { %v9130_v31 = vmul.f32 %v17763_v54, %v9128_v52  ;;  %v16932_v52 = vpack.c.bf16 %v9238_v8, %v9237_v50  ;;  %v12269_v50 = vld [vmem:[%s21618_s27 + $0x8] sm:$0xff] }
0x5e1b   :  { %v10384_v8 = vld [vmem:[%s21617_s3 + $0xa8] sm:$0xff] }
0x5e1c   :  { %9132 = vrot.lane.b32.xlu1 %v9130_v31, %s17790_s6  ;;  %v10377_v31 = vld [vmem:[%s21617_s3 + $0x70] sm:$0xff]  ;;  %16933 = vmatprep.subr.bf16.mxu0 %v16932_v52 }
0x5e1d   :  { %16935 = vmatpush3.bf16.msra.mxu0 %v16932_v52  ;;  %v12509_v52 = vld [vmem:[%s21528_s13 + $0x88] sm:$0xff] }
0x5e88   :  { %v8960_v11 = vpop.permute.xlu0 %8959 }
0x5e89   :  { %8962 = vst.msk [vmem:[#allocation2 + $0x100] sm:$0xff] %vm79_vm0, %v8960_v11  ;;  %15789 = vmatmul.mubr.msk.f32.vlgmr.msra.gmra.mrb[100].mxu1 %vm79_vm0, %v8960_v11  ;;  %v9239_v11 = vld [vmem:[%s21616_s2 + $0x10] sm:$0xff] }
0x5e8a   :  { %16920 = vmatpush3.bf16.msra.mxu1 %v18022_v44  ;;  %15810 = vmatprep.mubr.msk.f32.mxu1 %vm17787_vm1, %v21554_v4  ;;  %v20895_v4 = vld [vmem:[%s21534_s16 + $0xd8] sm:$0xff] }
0x5e8b   :  { %16921 = vmatprep.subr.bf16.mxu1 %v21556_v0  ;;  %21641 = vst [vmem:[#allocation26_spill] sm:$0xff] %v20895_v4  ;;  %v20900_v0 = vld [vmem:[%s21534_s16 + $0xe0] sm:$0xff] }
0x5e8c   :  { %21642 = vst [vmem:[#allocation27_spill] sm:$0xff] %v20900_v0 }
0x5e8e   :  { %16923 = vmatpush3.bf16.msra.mxu1 %v18028_v46  ;;  %v9133_v60 = vpop.permute.xlu1 %9132 }
0x5e90   :  { %v19663_v32 = vld [vmem:[#allocation2 + $0x100] sm:$0xff] }
0x5e91   :  { %15811 = vmatmul.mubr.msk.f32.vlgmr.msra.gmra.mrb[102].mxu1 %vm79_vm0, %v9133_v60  ;;  %15867 = vmatmul.mubr.msk.f32.gmra.mrb[150].mxu0 %vm79_vm0, %v19663_v32  ;;  %v9240_v60 = vld [vmem:[%s21616_s2 + $0x18] sm:$0xff] }
0x5f5c   :  { %v9031_v53 = vpop.f32.mrb[100].mxu1 }
0x5f5d   :  { %v15790_v24 = vpop.f32.mrb[101].mxu1 }
0x5f5e   :  { %v10379_v24 = vld [vmem:[%s21617_s3 + $0x80] sm:$0xff] }
0x5f64   :  { %v9202_v7 = vpop.f32.mrb[102].mxu1 }
0x5f65   :  { %v9203_v16 = vadd.f32 %v9202_v7, %v9031_v53  ;;  %v15812_v44 = vpop.f32.mrb[103].mxu1  ;;  %v16936_v53 = vpack.c.bf16 %v9240_v60, %v9239_v11  ;;  %v12493_v11 = vld [vmem:[%s21528_s13 + $0x8] sm:$0xff] }
0x5f66   :  { %v10388_v60 = vld [vmem:[%s21617_s3 + $0xc8] sm:$0xff] }
0x5f67   :  { %v9206_v33 = vadd.f32 %v19641_v55, %v9203_v16  ;;  %16937 = vmatprep.subr.bf16.mxu0 %v16936_v53  ;;  %v10381_v16 = vld [vmem:[%s21617_s3 + $0x90] sm:$0xff] }
0x5f68   :  { %16939 = vmatpush3.bf16.msra.mxu0 %v16936_v53  ;;  %v12287_v53 = vld [vmem:[%s21618_s27 + $0x98] sm:$0xff] }
0x5f69   :  { %17768 = vtanh.f32 %v9206_v33  ;;  %v13468_v46 = vmul.f32 -1.442695, %v9206_v33  ;;  %v10365_v33 = vld [vmem:[%s21617_s3 + $0x10] sm:$0xff] }
0x5f6b   :  { %17770 = vpow2.f32 %v13468_v46  ;;  %v10366_v46 = vld [vmem:[%s21617_s3 + $0x18] sm:$0xff] }
0x5f73   :  { %v17769_v22 = vpop.eup %17768 }
0x5f74   :  { %9216 = vrot.lane.b32.xlu0 %v17769_v22, %s17789_s7  ;;  %v10383_v22 = vld [vmem:[%s21617_s3 + $0xa0] sm:$0xff] }
0x5f75   :  { %v17771_v36 = vpop.eup %17770 }
0x5f76   :  { %v9210_v26 = vadd.f32 1.0, %v17771_v36  ;;  %v10385_v36 = vld [vmem:[%s21617_s3 + $0xb0] sm:$0xff] }
0x5f78   :  { %17772 = vrcp.f32 %v9210_v26  ;;  %v10368_v26 = vld [vmem:[%s21617_s3 + $0x28] sm:$0xff] }
0x5f82   :  { %v17773_v5 = vpop.eup %17772 }
0x5f83   :  { %v9214_v9 = vmul.f32 %v17773_v5, %v8951_v34  ;;  %v10369_v34 = vld [vmem:[%s21617_s3 + $0x30] sm:$0xff] }
0x5fe6   :  { %v9217_v63 = vpop.permute.xlu0 %9216 }
0x5fe7   :  { %v9219_v54 = vmul.f32 %v17773_v5, %v9217_v63  ;;  %v10370_v63 = vld [vmem:[%s21617_s3 + $0x38] sm:$0xff] }
0x5fe9   :  { %9221 = vrot.lane.b32.xlu1 %v9219_v54, %s17789_s7  ;;  %v10389_v54 = vld [vmem:[%s21617_s3 + $0xd0] sm:$0xff] }
0x605b   :  { %v9222_v62 = vpop.permute.xlu1 %9221 }
0x605c   :  { %v9224_v3 = vadd.f32 %v9222_v62, %v9214_v9  ;;  %v10372_v9 = vld [vmem:[%s21617_s3 + $0x48] sm:$0xff]  ;;  %v10391_v62 = vld [vmem:[%s21617_s3 + $0xe0] sm:$0xff] }
0x605e   :  { %17774 = vtanh.f32 %v9224_v3  ;;  %v10374_v3 = vld [vmem:[%s21617_s3 + $0x58] sm:$0xff] }
0x6068   :  { %v17775_v55 = vpop.eup %17774 }
0x6069   :  { %9227 = vrot.lane.b32.xlu0 %v17775_v55, %s17789_s7  ;;  %v10376_v55 = vld [vmem:[%s21617_s3 + $0x68] sm:$0xff] }
0x606d   :  { %10404 = vperm.xlu0 %17262, %v10364_v27   ;;  %v10395_v27 = vld [vmem:[%s21617_s3 + $0x100] sm:$0xff] }
0x6071   :  { %10419 = vperm.xlu0 %17262, %v10367_v30   ;;  %v10378_v30 = vld [vmem:[%s21617_s3 + $0x78] sm:$0xff] }
0x6075   :  { %10429 = vperm.xlu0 %17262, %v10369_v34   ;;  %v10396_v34 = vld [vmem:[%s21617_s3 + $0x108] sm:$0xff] }
0x6079   :  { %10439 = vperm.xlu0 %17262, %v10371_v10   ;;  %v10380_v10 = vld [vmem:[%s21617_s3 + $0x88] sm:$0xff] }
0x607d   :  { %10449 = vperm.xlu0 %17262, %v10373_v28   ;;  %v12285_v28 = vld [vmem:[%s21618_s27 + $0x88] sm:$0xff] }
0x6081   :  { %10459 = vperm.xlu0 %17262, %v10375_v20   ;;  %v10382_v20 = vld [vmem:[%s21617_s3 + $0x98] sm:$0xff] }
0x6085   :  { %10469 = vperm.xlu0 %17262, %v10377_v31   ;;  %v10386_v31 = vld [vmem:[%s21617_s3 + $0xb8] sm:$0xff] }
0x6089   :  { %10479 = vperm.xlu0 %17262, %v10379_v24   ;;  %v10390_v24 = vld [vmem:[%s21617_s3 + $0xd8] sm:$0xff] }
0x608d   :  { %10489 = vperm.xlu0 %17262, %v10381_v16   ;;  %v10392_v16 = vld [vmem:[%s21617_s3 + $0xe8] sm:$0xff] }
0x6091   :  { %10499 = vperm.xlu0 %17262, %v10383_v22  }
0x6095   :  { %10509 = vperm.xlu0 %17262, %v10385_v36   ;;  %v10394_v36 = vld [vmem:[%s21617_s3 + $0xf8] sm:$0xff] }
0x60db   :  { %v9228_v7 = vpop.permute.xlu0 %9227 }
0x60dc   :  { %v9230_v44 = vmul.f32 %v17773_v5, %v9228_v7  ;;  %v10387_v5 = vld [vmem:[%s21617_s3 + $0xc0] sm:$0xff]  ;;  %v12271_v7 = vld [vmem:[%s21618_s27 + $0x18] sm:$0xff] }
0x60dd   :  { %10519 = vperm.xlu0 %17262, %v10387_v5   ;;  %v10363_v5 = vld [vmem:[%s21617_s3] sm:$0xff] }
0x60de   :  { %9232 = vrot.lane.b32.xlu1 %v9230_v44, %s17790_s6  ;;  %v9245_v44 = vld [vmem:[%s21616_s2 + $0x40] sm:$0xff] }
0x60e1   :  { %10529 = vperm.xlu0 %17262, %v10389_v54   ;;  %v12284_v54 = vld [vmem:[%s21618_s27 + $0x80] sm:$0xff] }
0x60e2   :  { %10409 = vperm.xlu1 %17263, %v10365_v33   ;;  %v9246_v33 = vld [vmem:[%s21616_s2 + $0x48] sm:$0xff] }
0x60e3   :  { %v19805_v22 = vpack.c.bf16 %v9246_v33, %v9245_v44  ;;  %v12496_v44 = vld [vmem:[%s21528_s13 + $0x20] sm:$0xff] }
0x60e5   :  { %10539 = vperm.xlu0 %17262, %v10391_v62   ;;  %16941 = vmatprep.subr.bf16.mxu0 %v19805_v22  ;;  %v12268_v62 = vld [vmem:[%s21618_s27] sm:$0xff] }
0x60e6   :  { %10414 = vperm.xlu1 %17263, %v10366_v46   ;;  %v12511_v46 = vld [vmem:[%s21528_s13 + $0x98] sm:$0xff] }
0x60e9   :  { %10549 = vperm.xlu0 %17262, %v10393_v6   ;;  %v12508_v6 = vld [vmem:[%s21528_s13 + $0x80] sm:$0xff] }
0x60ea   :  { %10424 = vperm.xlu1 %17263, %v10368_v26   ;;  %v12495_v26 = vld [vmem:[%s21528_s13 + $0x18] sm:$0xff] }
0x60ed   :  { %10559 = vperm.xlu0 %17262, %v10395_v27   ;;  %v12492_v27 = vld [vmem:[%s21528_s13] sm:$0xff] }
0x60ee   :  { %10434 = vperm.xlu1 %17263, %v10370_v63   ;;  %v12289_v63 = vld [vmem:[%s21618_s27 + $0xa8] sm:$0xff] }
0x60f1   :  { %10564 = vperm.xlu0 %17262, %v10396_v34   ;;  %v12286_v34 = vld [vmem:[%s21618_s27 + $0x90] sm:$0xff] }
0x60f2   :  { %10444 = vperm.xlu1 %17263, %v10372_v9   ;;  %v12273_v9 = vld [vmem:[%s21618_s27 + $0x28] sm:$0xff] }
0x60f5   :  { %12387 = vperm.xlu0 %17262, %v12285_v28   ;;  %v12270_v28 = vld [vmem:[%s21618_s27 + $0x10] sm:$0xff] }
0x60f6   :  { %10454 = vperm.xlu1 %17263, %v10374_v3   ;;  %v12513_v3 = vld [vmem:[%s21528_s13 + $0xa8] sm:$0xff] }
0x60f9   :  { %12307 = vperm.xlu0 %17262, %v12269_v50   ;;  %v12510_v50 = vld [vmem:[%s21528_s13 + $0x90] sm:$0xff] }
0x60fa   :  { %10464 = vperm.xlu1 %17263, %v10376_v55   ;;  %v12497_v55 = vld [vmem:[%s21528_s13 + $0x28] sm:$0xff] }
0x60fd   :  { %12611 = vperm.xlu0 %17262, %v12509_v52   ;;  %v12494_v52 = vld [vmem:[%s21528_s13 + $0x10] sm:$0xff] }
0x60fe   :  { %10474 = vperm.xlu1 %17263, %v10378_v30   ;;  %v12291_v30 = vld [vmem:[%s21618_s27 + $0xb8] sm:$0xff] }
0x6101   :  { %12531 = vperm.xlu0 %17262, %v12493_v11   ;;  %v12288_v11 = vld [vmem:[%s21618_s27 + $0xa0] sm:$0xff] }
0x6102   :  { %10484 = vperm.xlu1 %17263, %v10380_v10   ;;  %v12275_v10 = vld [vmem:[%s21618_s27 + $0x38] sm:$0xff] }
0x6105   :  { %12397 = vperm.xlu0 %17262, %v12287_v53   ;;  %v12272_v53 = vld [vmem:[%s21618_s27 + $0x20] sm:$0xff] }
0x6106   :  { %10494 = vperm.xlu1 %17263, %v10382_v20   ;;  %v12515_v20 = vld [vmem:[%s21528_s13 + $0xb8] sm:$0xff] }
0x6109   :  { %12317 = vperm.xlu0 %17262, %v12271_v7   ;;  %v12512_v7 = vld [vmem:[%s21528_s13 + $0xa0] sm:$0xff] }
0x610a   :  { %10504 = vperm.xlu1 %17263, %v10384_v8   ;;  %v12499_v8 = vld [vmem:[%s21528_s13 + $0x38] sm:$0xff] }
0x610d   :  { %12621 = vperm.xlu0 %17262, %v12511_v46   ;;  %v12295_v46 = vld [vmem:[%s21618_s27 + $0xd8] sm:$0xff] }
0x610e   :  { %10514 = vperm.xlu1 %17263, %v10386_v31   ;;  %v12293_v31 = vld [vmem:[%s21618_s27 + $0xc8] sm:$0xff] }
0x6111   :  { %12541 = vperm.xlu0 %17262, %v12495_v26   ;;  %v12279_v26 = vld [vmem:[%s21618_s27 + $0x58] sm:$0xff] }
0x6112   :  { %10524 = vperm.xlu1 %17263, %v10388_v60   ;;  %v12277_v60 = vld [vmem:[%s21618_s27 + $0x48] sm:$0xff] }
0x6115   :  { %12407 = vperm.xlu0 %17262, %v12289_v63   ;;  %v12274_v63 = vld [vmem:[%s21618_s27 + $0x30] sm:$0xff] }
0x6116   :  { %10534 = vperm.xlu1 %17263, %v10390_v24   ;;  %v12517_v24 = vld [vmem:[%s21528_s13 + $0xc8] sm:$0xff] }
0x6119   :  { %12327 = vperm.xlu0 %17262, %v12273_v9   ;;  %v9273_v9 = vld [vmem:[#allocation2] sm:$0xff] }
0x611a   :  { %10544 = vperm.xlu1 %17263, %v10392_v16   ;;  %v12501_v16 = vld [vmem:[%s21528_s13 + $0x48] sm:$0xff] }
0x611d   :  { %12631 = vperm.xlu0 %17262, %v12513_v3   ;;  %v9247_v3 = vld [vmem:[%s21616_s2 + $0x50] sm:$0xff] }
0x611e   :  { %10554 = vperm.xlu1 %17263, %v10394_v36   ;;  %v12290_v36 = vld [vmem:[%s21618_s27 + $0xb0] sm:$0xff] }
0x6121   :  { %12551 = vperm.xlu0 %17262, %v12497_v55   ;;  %v12514_v55 = vld [vmem:[%s21528_s13 + $0xb0] sm:$0xff] }
0x6122   :  { %10399 = vperm.xlu1 %17263, %v10363_v5   ;;  %v19910_v5 = vld [vmem:[#allocation2 + $0x110] sm:$0xff] }
0x6125   :  { %12417 = vperm.xlu0 %17262, %v12291_v30   ;;  %v12503_v30 = vld [vmem:[%s21528_s13 + $0x58] sm:$0xff] }
0x6126   :  { %12382 = vperm.xlu1 %17263, %v12284_v54  }
0x6129   :  { %12337 = vperm.xlu0 %17262, %v12275_v10   ;;  %v12297_v10 = vld [vmem:[%s21618_s27 + $0xe8] sm:$0xff] }
0x612a   :  { %12302 = vperm.xlu1 %17263, %v12268_v62   ;;  %v12519_v62 = vld [vmem:[%s21528_s13 + $0xd8] sm:$0xff] }
0x612d   :  { %12641 = vperm.xlu0 %17262, %v12515_v20   ;;  %v12521_v20 = vld [vmem:[%s21528_s13 + $0xe8] sm:$0xff] }
0x612e   :  { %12606 = vperm.xlu1 %17263, %v12508_v6   ;;  %v9248_v6 = vld [vmem:[%s21616_s2 + $0x58] sm:$0xff] }
0x6131   :  { %12561 = vperm.xlu0 %17262, %v12499_v8   ;;  %v12505_v8 = vld [vmem:[%s21528_s13 + $0x68] sm:$0xff] }
0x6132   :  { %12526 = vperm.xlu1 %17263, %v12492_v27   ;;  %v16944_v27 = vpack.c.bf16 %v9248_v6, %v9247_v3  ;;  %v12298_v3 = vld [vmem:[%s21618_s27 + $0xf0] sm:$0xff] }
0x6135   :  { %12427 = vperm.xlu0 %17262, %v12293_v31   ;;  %v12299_v31 = vld [vmem:[%s21618_s27 + $0xf8] sm:$0xff] }
0x6136   :  { %12392 = vperm.xlu1 %17263, %v12286_v34   ;;  %v12498_v34 = vld [vmem:[%s21528_s13 + $0x30] sm:$0xff] }
0x6139   :  { %12347 = vperm.xlu0 %17262, %v12277_v60   ;;  %v12283_v60 = vld [vmem:[%s21618_s27 + $0x78] sm:$0xff] }
0x613a   :  { %12312 = vperm.xlu1 %17263, %v12270_v28   ;;  %v12276_v28 = vld [vmem:[%s21618_s27 + $0x40] sm:$0xff] }
0x613d   :  { %12651 = vperm.xlu0 %17262, %v12517_v24   ;;  %v12523_v24 = vld [vmem:[%s21528_s13 + $0xf8] sm:$0xff] }
0x613e   :  { %12616 = vperm.xlu1 %17263, %v12510_v50   ;;  %v12516_v50 = vld [vmem:[%s21528_s13 + $0xc0] sm:$0xff] }
0x6141   :  { %12571 = vperm.xlu0 %17262, %v12501_v16   ;;  %v12507_v16 = vld [vmem:[%s21528_s13 + $0x78] sm:$0xff] }
0x6142   :  { %12536 = vperm.xlu1 %17263, %v12494_v52   ;;  %v12500_v52 = vld [vmem:[%s21528_s13 + $0x40] sm:$0xff] }
0x6145   :  { %12437 = vperm.xlu0 %17262, %v12295_v46   ;;  %v12296_v46 = vld [vmem:[%s21618_s27 + $0xe0] sm:$0xff] }
0x6146   :  { %12402 = vperm.xlu1 %17263, %v12288_v11   ;;  %v12294_v11 = vld [vmem:[%s21618_s27 + $0xd0] sm:$0xff] }
0x6149   :  { %12357 = vperm.xlu0 %17262, %v12279_v26   ;;  %v12520_v26 = vld [vmem:[%s21528_s13 + $0xe0] sm:$0xff] }
0x614a   :  { %12322 = vperm.xlu1 %17263, %v12272_v53   ;;  %v12278_v53 = vld [vmem:[%s21618_s27 + $0x50] sm:$0xff] }
0x614d   :  { %12661 = vperm.xlu0 %17262, %v12519_v62   ;;  %v9258_v62 = vld [vmem:[%s21530_s10 + $0x48] sm:$0xff] }
0x614e   :  { %12626 = vperm.xlu1 %17263, %v12512_v7   ;;  %v12518_v7 = vld [vmem:[%s21528_s13 + $0xd0] sm:$0xff] }
0x6150   :  { %v19892_v33 = vpop.permute.xlu1 %9232 }
0x6151   :  { %21619 = vst [vmem:[#allocation4_spill] sm:$0xff] %v19892_v33  ;;  %9235 = vst.msk [vmem:[#allocation2 + $0x108] sm:$0xff] %vm79_vm0, %v19892_v33  ;;  %12581 = vperm.xlu0 %17262, %v12503_v30   ;;  %v12506_v30 = vld [vmem:[%s21528_s13 + $0x70] sm:$0xff] }
0x6152   :  { %9236 = vst.msk [vmem:[%s21529_s24] sm:$0xff] %vm79_vm0, %v19892_v33  ;;  %12546 = vperm.xlu1 %17263, %v12496_v44   ;;  %v12502_v44 = vld [vmem:[%s21528_s13 + $0x50] sm:$0xff]  ;;  %v20909_v33 = vld [vmem:[%s21534_s16 + $0xe8] sm:$0xff] }
0x6153   :  { %21643 = vst [vmem:[#allocation28_spill] sm:$0xff] %v20909_v33 }
0x6155   :  { %12447 = vperm.xlu0 %17262, %v12297_v10  }
0x6156   :  { %12412 = vperm.xlu1 %17263, %v12290_v36   ;;  %v12280_v36 = vld [vmem:[%s21618_s27 + $0x60] sm:$0xff] }
0x6158   :  { %v19915_v54 = vld [vmem:[#allocation2 + $0x108] sm:$0xff] }
0x6159   :  { %15869 = vmatprep.mubr.msk.f32.mxu0 %vm79_vm0, %v19915_v54 }
0x615a   :  { %15870 = vmatmul.mubr.msk.f32.gmra.mrb[152].mxu0 %vm79_vm0, %v19910_v5  ;;  %12332 = vperm.xlu1 %17263, %v12274_v63   ;;  %v12504_v63 = vld [vmem:[%s21528_s13 + $0x60] sm:$0xff] }
0x615b   :  { %15880 = vmatprep.mubr.msk.f32.mxu0 %vm79_vm0, %v9273_v9  ;;  %v9257_v9 = vld [vmem:[%s21530_s10 + $0x40] sm:$0xff] }
0x615c   :  { %v16948_v6 = vpack.c.bf16 %v9258_v62, %v9257_v9 }
0x615e   :  { %15881 = vmatmul.mubr.msk.f32.vlgmr.msra.gmra.mrb[120].mxu0 %vm79_vm0, %v19513_v1  ;;  %12636 = vperm.xlu1 %17263, %v12514_v55   ;;  %v12292_v1 = vld [vmem:[%s21618_s27 + $0xc0] sm:$0xff]  ;;  %v12282_v55 = vld [vmem:[%s21618_s27 + $0x70] sm:$0xff] }
0x615f   :  { %15883 = vmatprep.mubr.msk.f32.mxu0 %vm79_vm0, %v19518_v17  ;;  %16943 = vmatpush3.bf16.msra.mxu0 %v19805_v22  ;;  %v12281_v22 = vld [vmem:[%s21618_s27 + $0x68] sm:$0xff] }
0x6160   :  { %16945 = vmatprep.subr.bf16.mxu0 %v16944_v27  ;;  %12367 = vperm.xlu0 %17262, %v12281_v22   ;;  %v9252_v22 = vld [vmem:[%s21530_s10 + $0x18] sm:$0xff] }
0x6161   :  { %16949 = vmatprep.subr.bf16.mxu1 %v16948_v6 }
0x6162   :  { %15884 = vmatmul.mubr.msk.f32.gmra.mrb[122].mxu0 %vm79_vm0, %v19522_v2  ;;  %12556 = vperm.xlu1 %17263, %v12498_v34  }
0x6163   :  { %15886 = vmatprep.mubr.msk.f32.mxu0 %vm79_vm0, %v19526_v21  ;;  %16947 = vmatpush3.bf16.msra.mxu0 %v16944_v27  ;;  %v12522_v27 = vld [vmem:[%s21528_s13 + $0xf0] sm:$0xff] }
0x6164   :  { %12671 = vperm.xlu0 %17262, %v12521_v20   ;;  %16951 = vmatpush3.bf16.msra.mxu1 %v16948_v6 }
0x6166   :  { %15887 = vmatmul.mubr.msk.f32.gmra.mrb[124].mxu0 %vm79_vm0, %v19530_v18  ;;  %12422 = vperm.xlu1 %17263, %v12292_v1   ;;  %v9251_v1 = vld [vmem:[%s21530_s10 + $0x10] sm:$0xff] }
0x6167   :  { %15889 = vmatprep.mubr.msk.f32.mxu0 %vm79_vm0, %v19534_v13 }
0x6168   :  { %12591 = vperm.xlu0 %17262, %v12505_v8  }
0x616a   :  { %15890 = vmatmul.mubr.msk.f32.gmra.mrb[126].mxu0 %vm79_vm0, %v19538_v29  ;;  %12342 = vperm.xlu1 %17263, %v12276_v28  }
0x616b   :  { %15892 = vmatprep.mubr.msk.f32.mxu0 %vm79_vm0, %v19542_v38 }
0x616c   :  { %12457 = vperm.xlu0 %17262, %v12299_v31  }
0x616e   :  { %15893 = vmatmul.mubr.msk.f32.gmra.mrb[128].mxu0 %vm79_vm0, %v19546_v35  ;;  %12646 = vperm.xlu1 %17263, %v12516_v50  }
0x616f   :  { %15895 = vmatprep.mubr.msk.f32.mxu0 %vm79_vm0, %v19550_v23 }
0x6170   :  { %12377 = vperm.xlu0 %17262, %v12283_v60  }
0x6172   :  { %15896 = vmatmul.mubr.msk.f32.gmra.mrb[130].mxu0 %vm79_vm0, %v19554_v45  ;;  %12566 = vperm.xlu1 %17263, %v12500_v52  }
0x6173   :  { %15898 = vmatprep.mubr.msk.f32.mxu0 %vm79_vm0, %v19558_v40 }
0x6174   :  { %12681 = vperm.xlu0 %17262, %v12523_v24  }
0x6176   :  { %15899 = vmatmul.mubr.msk.f32.gmra.mrb[132].mxu0 %vm79_vm0, %v19562_v58  ;;  %12432 = vperm.xlu1 %17263, %v12294_v11  }
0x6177   :  { %15901 = vmatprep.mubr.msk.f32.mxu0 %vm79_vm0, %v19566_v47 }
0x6178   :  { %12601 = vperm.xlu0 %17262, %v12507_v16   ;;  %v9253_v16 = vld [vmem:[%s21530_s10 + $0x20] sm:$0xff] }
0x617a   :  { %15902 = vmatmul.mubr.msk.f32.gmra.mrb[134].mxu0 %vm79_vm0, %v19570_v14  ;;  %12352 = vperm.xlu1 %17263, %v12278_v53   ;;  %v16968_v53 = vpack.c.bf16 %v9252_v22, %v9251_v1 }
0x617b   :  { %15904 = vmatprep.mubr.msk.f32.mxu0 %vm79_vm0, %v19574_v25 }
0x617e   :  { %15905 = vmatmul.mubr.msk.f32.gmra.mrb[136].mxu0 %vm79_vm0, %v19578_v61  ;;  %12656 = vperm.xlu1 %17263, %v12518_v7  }
0x617f   :  { %15907 = vmatprep.mubr.msk.f32.mxu0 %vm79_vm0, %v19582_v59 }
0x6182   :  { %15908 = vmatmul.mubr.msk.f32.gmra.mrb[138].mxu0 %vm79_vm0, %v19586_v51  ;;  %12576 = vperm.xlu1 %17263, %v12502_v44   ;;  %v9254_v44 = vld [vmem:[%s21530_s10 + $0x28] sm:$0xff] }
0x6183   :  { %15910 = vmatprep.mubr.msk.f32.mxu0 %vm79_vm0, %v19590_v49 }
0x6186   :  { %15911 = vmatmul.mubr.msk.f32.gmra.mrb[140].mxu0 %vm79_vm0, %v19594_v41  ;;  %12442 = vperm.xlu1 %17263, %v12296_v46  }
0x6187   :  { %15913 = vmatprep.mubr.msk.f32.mxu0 %vm79_vm0, %v19598_v37 }
0x618a   :  { %15914 = vmatmul.mubr.msk.f32.gmra.mrb[142].mxu0 %vm79_vm0, %v19602_v12  ;;  %12362 = vperm.xlu1 %17263, %v12280_v36  }
0x618b   :  { %15916 = vmatprep.mubr.msk.f32.mxu0 %vm79_vm0, %v19606_v19 }
0x618e   :  { %15917 = vmatmul.mubr.msk.f32.gmra.mrb[144].mxu0 %vm79_vm0, %v19610_v15  ;;  %12666 = vperm.xlu1 %17263, %v12520_v26  }
0x618f   :  { %15919 = vmatprep.mubr.msk.f32.mxu0 %vm79_vm0, %v19614_v56 }
0x6192   :  { %15920 = vmatmul.mubr.msk.f32.gmra.mrb[146].mxu0 %vm79_vm0, %v19618_v48  ;;  %12586 = vperm.xlu1 %17263, %v12504_v63  }
0x6193   :  { %15922 = vmatprep.mubr.msk.f32.mxu0 %vm79_vm0, %v19622_v39 }
0x6196   :  { %15923 = vmatmul.mubr.msk.f32.gmra.mrb[148].mxu0 %vm79_vm0, %v19626_v42  ;;  %12452 = vperm.xlu1 %17263, %v12298_v3   ;;  %v16972_v3 = vpack.c.bf16 %v9254_v44, %v9253_v16 }
0x6197   :  { %15925 = vmatprep.mubr.msk.f32.mxu0 %vm79_vm0, %v19630_v57 }
0x619a   :  { %15926 = vmatmul.mubr.msk.f32.gmra.mrb[150].mxu0 %vm79_vm0, %v19634_v43  ;;  %12372 = vperm.xlu1 %17263, %v12282_v55  }
0x619b   :  { %15928 = vmatprep.mubr.msk.f32.mxu0 %vm79_vm0, %v19663_v32 }
0x619e   :  { %15929 = vmatmul.mubr.msk.f32.gmra.mrb[152].mxu0 %vm79_vm0, %v19915_v54  ;;  %12676 = vperm.xlu1 %17263, %v12522_v27  }
0x619f   :  { %15939 = vmatprep.mubr.msk.f32.mxu0 %vm79_vm0, %v19518_v17  ;;  %v9916_v17 = vld [vmem:[#allocation2 + $0x118] sm:$0xff] }
0x61a2   :  { %15940 = vmatmul.mubr.msk.f32.vlgmr.msra.gmra.mrb[120].mxu0 %vm79_vm0, %v19522_v2  ;;  %12596 = vperm.xlu1 %17263, %v12506_v30   ;;  %v9259_v2 = vld [vmem:[%s21530_s10 + $0x50] sm:$0xff] }
0x61a3   :  { %15942 = vmatprep.mubr.msk.f32.mxu0 %vm79_vm0, %v19526_v21  ;;  %v9260_v21 = vld [vmem:[%s21530_s10 + $0x58] sm:$0xff]  ;;  %v9255_v30 = vld [vmem:[%s21530_s10 + $0x30] sm:$0xff] }
0x61a6   :  { %15943 = vmatmul.mubr.msk.f32.gmra.mrb[122].mxu0 %vm79_vm0, %v19530_v18  ;;  %v16952_v18 = vpack.c.bf16 %v9260_v21, %v9259_v2 }
0x61a7   :  { %15945 = vmatprep.mubr.msk.f32.mxu0 %vm79_vm0, %v19534_v13  ;;  %v9261_v13 = vld [vmem:[%s21530_s10 + $0x60] sm:$0xff] }
0x61a8   :  { %16953 = vmatprep.subr.bf16.mxu1 %v16952_v18 }
0x61a9   :  { %16955 = vmatpush3.bf16.msra.mxu1 %v16952_v18 }
0x61aa   :  { %15946 = vmatmul.mubr.msk.f32.gmra.mrb[124].mxu0 %vm79_vm0, %v19538_v29  ;;  %v9262_v29 = vld [vmem:[%s21530_s10 + $0x68] sm:$0xff] }
0x61ab   :  { %15948 = vmatprep.mubr.msk.f32.mxu0 %vm79_vm0, %v19542_v38  ;;  %v16956_v38 = vpack.c.bf16 %v9262_v29, %v9261_v13 }
0x61ad   :  { %16957 = vmatprep.subr.bf16.mxu1 %v16956_v38 }
0x61ae   :  { %15949 = vmatmul.mubr.msk.f32.gmra.mrb[126].mxu0 %vm79_vm0, %v19546_v35  ;;  %16959 = vmatpush3.bf16.msra.mxu1 %v16956_v38  ;;  %v9263_v35 = vld [vmem:[%s21530_s10 + $0x70] sm:$0xff] }
0x61af   :  { %15951 = vmatprep.mubr.msk.f32.mxu0 %vm79_vm0, %v19550_v23  ;;  %v9264_v23 = vld [vmem:[%s21530_s10 + $0x78] sm:$0xff] }
0x61b2   :  { %15952 = vmatmul.mubr.msk.f32.gmra.mrb[128].mxu0 %vm79_vm0, %v19554_v45  ;;  %v16960_v45 = vpack.c.bf16 %v9264_v23, %v9263_v35 }
0x61b3   :  { %15954 = vmatprep.mubr.msk.f32.mxu0 %vm79_vm0, %v19558_v40  ;;  %v9249_v40 = vld [vmem:[%s21530_s10] sm:$0xff] }
0x61b4   :  { %16961 = vmatprep.subr.bf16.mxu1 %v16960_v45 }
0x61b5   :  { %16963 = vmatpush3.bf16.msra.mxu1 %v16960_v45 }
0x61b6   :  { %15955 = vmatmul.mubr.msk.f32.gmra.mrb[130].mxu0 %vm79_vm0, %v19562_v58  ;;  %v9250_v58 = vld [vmem:[%s21530_s10 + $0x8] sm:$0xff] }
0x61b7   :  { %15957 = vmatprep.mubr.msk.f32.mxu0 %vm79_vm0, %v19566_v47  ;;  %v16964_v47 = vpack.c.bf16 %v9250_v58, %v9249_v40  ;;  %v9265_v58 = vld [vmem:[%s21530_s10 + $0x80] sm:$0xff] }
0x61b9   :  { %16965 = vmatprep.subr.bf16.mxu1 %v16964_v47 }
0x61ba   :  { %15958 = vmatmul.mubr.msk.f32.gmra.mrb[132].mxu0 %vm79_vm0, %v19570_v14  ;;  %v10410_v14 = vpop.permute.xlu1 %10409 }
0x61bb   :  { %15960 = vmatprep.mubr.msk.f32.mxu0 %vm79_vm0, %v19574_v25  ;;  %v10405_v25 = vpop.permute.xlu0 %10404 }
0x61be   :  { %15961 = vmatmul.mubr.msk.f32.gmra.mrb[134].mxu0 %vm79_vm0, %v19578_v61  ;;  %v10415_v61 = vpop.permute.xlu1 %10414 }
0x61bf   :  { %15963 = vmatprep.mubr.msk.f32.mxu0 %vm79_vm0, %v19582_v59  ;;  %v10420_v59 = vpop.permute.xlu0 %10419 }
0x61c2   :  { %15964 = vmatmul.mubr.msk.f32.gmra.mrb[136].mxu0 %vm79_vm0, %v19586_v51  ;;  %v10425_v51 = vpop.permute.xlu1 %10424 }
0x61c3   :  { %15966 = vmatprep.mubr.msk.f32.mxu0 %vm79_vm0, %v19590_v49  ;;  %v10430_v49 = vpop.permute.xlu0 %10429 }
0x61c6   :  { %15967 = vmatmul.mubr.msk.f32.gmra.mrb[138].mxu0 %vm79_vm0, %v19594_v41  ;;  %v10435_v41 = vpop.permute.xlu1 %10434 }
0x61c7   :  { %15969 = vmatprep.mubr.msk.f32.mxu0 %vm79_vm0, %v19598_v37  ;;  %v20176_v37 = vpop.permute.xlu0 %10439 }
0x61ca   :  { %15970 = vmatmul.mubr.msk.f32.gmra.mrb[140].mxu0 %vm79_vm0, %v19602_v12  ;;  %v20178_v12 = vpop.permute.xlu1 %10444 }
0x61cb   :  { %15972 = vmatprep.mubr.msk.f32.mxu0 %vm79_vm0, %v19606_v19  ;;  %v20183_v19 = vld [vmem:[%s21531_s9] ss:$0 sm:$0xff] }
0x61ce   :  { %15973 = vmatmul.mubr.msk.f32.gmra.mrb[142].mxu0 %vm79_vm0, %v19610_v15 }
0x61cf   :  { %15975 = vmatprep.mubr.msk.f32.mxu0 %vm79_vm0, %v19614_v56 }
0x61d2   :  { %15976 = vmatmul.mubr.msk.f32.gmra.mrb[144].mxu0 %vm79_vm0, %v19618_v48 }
0x61d3   :  { %15978 = vmatprep.mubr.msk.f32.mxu0 %vm79_vm0, %v19622_v39  ;;  %v20188_v39 = vpop.permute.xlu0 %10449 }
0x61d6   :  { %15979 = vmatmul.mubr.msk.f32.gmra.mrb[146].mxu0 %vm79_vm0, %v19626_v42 }
0x61d7   :  { %15981 = vmatprep.mubr.msk.f32.mxu0 %vm79_vm0, %v19630_v57  ;;  %v20190_v57 = vpop.permute.xlu1 %10454  ;;  %v20204_v50 = vpop.permute.xlu0 %10459 }
0x61da   :  { %15982 = vmatmul.mubr.msk.f32.gmra.mrb[148].mxu0 %vm79_vm0, %v19634_v43 }
0x61db   :  { %15984 = vmatprep.mubr.msk.f32.mxu0 %vm79_vm0, %v19663_v32  ;;  %v20207_v31 = vpop.permute.xlu1 %10464  ;;  %v20228_v6 = vpop.permute.xlu0 %10469 }
0x61de   :  { %15985 = vmatmul.mubr.msk.f32.gmra.mrb[150].mxu0 %vm79_vm0, %v19915_v54 }
0x61df   :  { %15987 = vmatprep.mubr.msk.f32.mxu0 %vm79_vm0, %v19910_v5  ;;  %v20238_v2 = vpop.permute.xlu1 %10474 }
0x61e2   :  { %15988 = vmatmul.mubr.msk.f32.gmra.mrb[152].mxu0 %vm79_vm0, %v9916_v17  ;;  %v9256_v17 = vld [vmem:[%s21530_s10 + $0x38] sm:$0xff] }
0x61e3   :  { %v16976_v23 = vpack.c.bf16 %v9256_v17, %v9255_v30 }
0x6275   :  { %v15941_v15 = vpop.f32.mrb[120].mxu0 }
0x6276   :  { %v10296_v56 = vadd.f32 %v15941_v15, %v20183_v19  ;;  %v20186_v48 = vpop.f32.mrb[121].mxu0 }
0x6278   :  { %v10330_v42 = vmax.f32 %v10296_v56, 0.0 }
0x6279   :  { %v15944_v43 = vpop.f32.mrb[122].mxu0 }
0x627a   :  { %v20192_v32 = vmul.f32 %v10405_v25, %v10330_v42  ;;  %v10298_v5 = vadd.f32 %v15944_v43, %v20183_v19  ;;  %v10095_v54 = vpop.f32.mrb[123].mxu0 }
0x627b   :  { %v10297_v34 = vadd.f32 %v20183_v19, %v10095_v54 }
0x627c   :  { %v10332_v10 = vmax.f32 %v10298_v5, 0.0  ;;  %16006 = vmatprep.mubr.msk.f32.mxu1 %vm10601_vm2, %v20192_v32 }
0x627d   :  { %v10331_v28 = vmax.f32 %v10297_v34, 0.0  ;;  %v15947_v20 = vpop.f32.mrb[124].mxu0 }
0x627e   :  { %v10300_v8 = vadd.f32 %v15947_v20, %v20183_v19  ;;  %v10105_v52 = vpop.f32.mrb[125].mxu0  ;;  %v20212_v24 = vmul.f32 %v10415_v61, %v10332_v10  ;;  %v10480_v61 = vpop.permute.xlu0 %10479 }
0x627f   :  { %v20209_v11 = vmul.f32 %v10410_v14, %v10331_v28  ;;  %v10299_v60 = vadd.f32 %v20183_v19, %v10105_v52 }
0x6280   :  { %v10334_v7 = vmax.f32 %v10300_v8, 0.0 }
0x6281   :  { %v10333_v46 = vmax.f32 %v10299_v60, 0.0  ;;  %v15950_v36 = vpop.f32.mrb[126].mxu0  ;;  %16007 = vmatmul.mubr.msk.f32.vlgmr.msra.gmra.mrb[104].mxu1 %vm10601_vm2, %v20209_v11 }
0x6282   :  { %v10302_v26 = vadd.f32 %v15950_v36, %v20183_v19  ;;  %v10115_v63 = vpop.f32.mrb[127].mxu0  ;;  %16009 = vmatprep.mubr.msk.f32.mxu1 %vm10601_vm2, %v20212_v24  ;;  %16967 = vmatpush3.bf16.msra.mxu1 %v16964_v47  ;;  %v20230_v55 = vmul.f32 %v10425_v51, %v10334_v7  ;;  %v9266_v47 = vld [vmem:[%s21530_s10 + $0x88] sm:$0xff] }
0x6283   :  { %v20225_v9 = vmul.f32 %v10420_v59, %v10333_v46  ;;  %v10301_v62 = vadd.f32 %v20183_v19, %v10115_v63  ;;  %16969 = vmatprep.subr.bf16.mxu1 %v16968_v53  ;;  %v20265_v56 = vpack.c.bf16 %v9266_v47, %v9265_v58 }
0x6284   :  { %v10336_v27 = vmax.f32 %v10302_v26, 0.0 }
0x6285   :  { %v10335_v21 = vmax.f32 %v10301_v62, 0.0  ;;  %v15953_v18 = vpop.f32.mrb[128].mxu0  ;;  %16010 = vmatmul.mubr.msk.f32.gmra.mrb[106].mxu1 %vm10601_vm2, %v20225_v9 }
0x6286   :  { %v10304_v13 = vadd.f32 %v15953_v18, %v20183_v19  ;;  %v10125_v29 = vpop.f32.mrb[129].mxu0  ;;  %16012 = vmatprep.mubr.msk.f32.mxu1 %vm10601_vm2, %v20230_v55  ;;  %16971 = vmatpush3.bf16.msra.mxu1 %v16968_v53  ;;  %v20248_v45 = vmul.f32 %v10435_v41, %v10336_v27 }
0x6287   :  { %v20245_v38 = vmul.f32 %v10430_v49, %v10335_v21  ;;  %v10303_v35 = vadd.f32 %v20183_v19, %v10125_v29  ;;  %16973 = vmatprep.subr.bf16.mxu1 %v16972_v3  ;;  %v10485_v49 = vpop.permute.xlu1 %10484 }
0x6288   :  { %v10338_v40 = vmax.f32 %v10304_v13, 0.0 }
0x6289   :  { %v10337_v14 = vmax.f32 %v10303_v35, 0.0  ;;  %v15956_v25 = vpop.f32.mrb[130].mxu0  ;;  %16013 = vmatmul.mubr.msk.f32.gmra.mrb[108].mxu1 %vm10601_vm2, %v20245_v38 }
0x628a   :  { %v10306_v59 = vadd.f32 %v15956_v25, %v20183_v19  ;;  %v10135_v51 = vpop.f32.mrb[131].mxu0  ;;  %16015 = vmatprep.mubr.msk.f32.mxu1 %vm10601_vm2, %v20248_v45  ;;  %16975 = vmatpush3.bf16.msra.mxu1 %v16972_v3  ;;  %v20268_v42 = vmul.f32 %v20178_v12, %v10338_v40  ;;  %v10490_v12 = vpop.permute.xlu0 %10489 }
0x628b   :  { %v20262_v41 = vmul.f32 %v20176_v37, %v10337_v14  ;;  %v10305_v15 = vadd.f32 %v20183_v19, %v10135_v51  ;;  %16977 = vmatprep.subr.bf16.mxu1 %v16976_v23  ;;  %v10495_v20 = vpop.permute.xlu1 %10494 }
0x628c   :  { %v10340_v43 = vmax.f32 %v10306_v59, 0.0 }
0x628d   :  { %v10339_v5 = vmax.f32 %v10305_v15, 0.0  ;;  %v15959_v54 = vpop.f32.mrb[132].mxu0  ;;  %16016 = vmatmul.mubr.msk.f32.gmra.mrb[110].mxu1 %vm10601_vm2, %v20262_v41 }
0x628e   :  { %v10308_v34 = vadd.f32 %v15959_v54, %v20183_v19  ;;  %v10145_v10 = vpop.f32.mrb[133].mxu0  ;;  %16018 = vmatprep.mubr.msk.f32.mxu1 %vm10601_vm2, %v20268_v42  ;;  %16979 = vmatpush3.bf16.msra.mxu1 %v16976_v23  ;;  %v20281_v22 = vmul.f32 %v20190_v57, %v10340_v43  ;;  %v10500_v36 = vpop.permute.xlu0 %10499 }
0x628f   :  { %v20276_v37 = vmul.f32 %v20188_v39, %v10339_v5  ;;  %v10307_v1 = vadd.f32 %v20183_v19, %v10145_v10  ;;  %16981 = vmatprep.subr.bf16.mxu1 %v20265_v56 }
0x6290   :  { %v10342_v28 = vmax.f32 %v10308_v34, 0.0 }
0x6291   :  { %v10341_v8 = vmax.f32 %v10307_v1, 0.0  ;;  %v15962_v52 = vpop.f32.mrb[134].mxu0  ;;  %16019 = vmatmul.mubr.msk.f32.gmra.mrb[112].mxu1 %vm10601_vm2, %v20276_v37 }
0x6292   :  { %v10310_v60 = vadd.f32 %v15962_v52, %v20183_v19  ;;  %v10155_v53 = vpop.f32.mrb[135].mxu0  ;;  %16021 = vmatprep.mubr.msk.f32.mxu1 %vm10601_vm2, %v20281_v22  ;;  %v20293_v57 = vmul.f32 %v20207_v31, %v10342_v28  ;;  %v10510_v29 = vpop.permute.xlu0 %10509 }
0x6293   :  { %v20289_v39 = vmul.f32 %v20204_v50, %v10341_v8  ;;  %v10309_v7 = vadd.f32 %v20183_v19, %v10155_v53  ;;  %v10505_v50 = vpop.permute.xlu1 %10504 }
0x6294   :  { %v10344_v16 = vmax.f32 %v10310_v60, 0.0 }
0x6295   :  { %v10343_v44 = vmax.f32 %v10309_v7, 0.0  ;;  %v15965_v46 = vpop.f32.mrb[136].mxu0  ;;  %16022 = vmatmul.mubr.msk.f32.gmra.mrb[114].mxu1 %vm10601_vm2, %v20289_v39 }
0x6296   :  { %v10312_v26 = vadd.f32 %v15965_v46, %v20183_v19  ;;  %v10165_v63 = vpop.f32.mrb[137].mxu0  ;;  %16024 = vmatprep.mubr.msk.f32.mxu1 %vm10601_vm2, %v20293_v57  ;;  %v20305_v3 = vmul.f32 %v20238_v2, %v10344_v16  ;;  %v10520_v43 = vpop.permute.xlu0 %10519 }
0x6297   :  { %v20301_v62 = vmul.f32 %v20228_v6, %v10343_v44  ;;  %v10311_v31 = vadd.f32 %v20183_v19, %v10165_v63  ;;  %v10515_v23 = vpop.permute.xlu1 %10514 }
0x6298   :  { %v10346_v27 = vmax.f32 %v10312_v26, 0.0 }
0x6299   :  { %v10345_v30 = vmax.f32 %v10311_v31, 0.0  ;;  %v15968_v17 = vpop.f32.mrb[138].mxu0  ;;  %16025 = vmatmul.mubr.msk.f32.gmra.mrb[116].mxu1 %vm10601_vm2, %v20301_v62 }
0x629a   :  { %v10314_v21 = vadd.f32 %v15968_v17, %v20183_v19  ;;  %v10175_v18 = vpop.f32.mrb[139].mxu0  ;;  %16027 = vmatprep.mubr.msk.f32.mxu1 %vm10601_vm2, %v20305_v3  ;;  %v20315_v35 = vmul.f32 %v10485_v49, %v10346_v27  ;;  %v10530_v16 = vpop.permute.xlu0 %10529 }
0x629b   :  { %v20312_v13 = vmul.f32 %v10480_v61, %v10345_v30  ;;  %v10313_v6 = vadd.f32 %v20183_v19, %v10175_v18  ;;  %v10525_v34 = vpop.permute.xlu1 %10524 }
0x629c   :  { %v10348_v2 = vmax.f32 %v10314_v21, 0.0 }
0x629d   :  { %v10347_v40 = vmax.f32 %v10313_v6, 0.0  ;;  %v15971_v58 = vpop.f32.mrb[140].mxu0  ;;  %16028 = vmatmul.mubr.msk.f32.gmra.mrb[118].mxu1 %vm10601_vm2, %v20312_v13 }
0x629e   :  { %v10316_v47 = vadd.f32 %v15971_v58, %v20183_v19  ;;  %v10185_v14 = vpop.f32.mrb[141].mxu0  ;;  %16030 = vmatprep.mubr.msk.f32.mxu1 %vm10601_vm2, %v20315_v35  ;;  %v20325_v59 = vmul.f32 %v10495_v20, %v10348_v2 }
0x629f   :  { %v20322_v25 = vmul.f32 %v10490_v12, %v10347_v40  ;;  %v10315_v61 = vadd.f32 %v20183_v19, %v10185_v14 }
0x62a0   :  { %v10350_v51 = vmax.f32 %v10316_v47, 0.0 }
0x62a1   :  { %v10349_v49 = vmax.f32 %v10315_v61, 0.0  ;;  %v15974_v15 = vpop.f32.mrb[142].mxu0  ;;  %16031 = vmatmul.mubr.msk.f32.gmra.mrb[120].mxu1 %vm10601_vm2, %v20322_v25 }
0x62a2   :  { %v10318_v5 = vadd.f32 %v15974_v15, %v20183_v19  ;;  %v10195_v54 = vpop.f32.mrb[143].mxu0  ;;  %16033 = vmatprep.mubr.msk.f32.mxu1 %vm10601_vm2, %v20325_v59  ;;  %v20335_v12 = vmul.f32 %v10505_v50, %v10350_v51 }
0x62a3   :  { %v20332_v10 = vmul.f32 %v10500_v36, %v10349_v49  ;;  %v10317_v1 = vadd.f32 %v20183_v19, %v10195_v54  ;;  %v10535_v36 = vpop.permute.xlu1 %10534 }
0x62a4   :  { %v10352_v28 = vmax.f32 %v10318_v5, 0.0 }
0x62a5   :  { %v10351_v20 = vmax.f32 %v10317_v1, 0.0  ;;  %v15977_v8 = vpop.f32.mrb[144].mxu0  ;;  %16034 = vmatmul.mubr.msk.f32.gmra.mrb[122].mxu1 %vm10601_vm2, %v20332_v10  ;;  %v10295_v1 = vadd.f32 %v20183_v19, %v20186_v48 }
0x62a6   :  { %v10320_v52 = vadd.f32 %v15977_v8, %v20183_v19  ;;  %v10205_v60 = vpop.f32.mrb[145].mxu0  ;;  %16036 = vmatprep.mubr.msk.f32.mxu1 %vm10601_vm2, %v20335_v12  ;;  %v20345_v44 = vmul.f32 %v10515_v23, %v10352_v28 }
0x62a7   :  { %v20342_v53 = vmul.f32 %v10510_v29, %v10351_v20  ;;  %v10319_v7 = vadd.f32 %v20183_v19, %v10205_v60  ;;  %v10540_v29 = vpop.permute.xlu0 %10539  ;;  %v10545_v40 = vpop.permute.xlu1 %10544 }
0x62a8   :  { %v10354_v46 = vmax.f32 %v10320_v52, 0.0 }
0x62a9   :  { %v10353_v26 = vmax.f32 %v10319_v7, 0.0  ;;  %v15980_v63 = vpop.f32.mrb[146].mxu0  ;;  %16037 = vmatmul.mubr.msk.f32.gmra.mrb[124].mxu1 %vm10601_vm2, %v20342_v53 }
0x62aa   :  { %v10322_v50 = vadd.f32 %v15980_v63, %v20183_v19  ;;  %v10215_v31 = vpop.f32.mrb[147].mxu0  ;;  %16039 = vmatprep.mubr.msk.f32.mxu1 %vm10601_vm2, %v20345_v44  ;;  %v20355_v17 = vmul.f32 %v10525_v34, %v10354_v46 }
0x62ab   :  { %v20352_v27 = vmul.f32 %v10520_v43, %v10353_v26  ;;  %v10321_v30 = vadd.f32 %v20183_v19, %v10215_v31  ;;  %v10550_v34 = vpop.permute.xlu0 %10549  ;;  %v10555_v8 = vpop.permute.xlu1 %10554 }
0x62ac   :  { %v10356_v21 = vmax.f32 %v10322_v50, 0.0 }
0x62ad   :  { %v10355_v18 = vmax.f32 %v10321_v30, 0.0  ;;  %v15983_v6 = vpop.f32.mrb[148].mxu0  ;;  %16040 = vmatmul.mubr.msk.f32.gmra.mrb[126].mxu1 %vm10601_vm2, %v20352_v27 }
0x62ae   :  { %v10324_v2 = vadd.f32 %v15983_v6, %v20183_v19  ;;  %v10225_v23 = vpop.f32.mrb[149].mxu0  ;;  %16042 = vmatprep.mubr.msk.f32.mxu1 %vm10601_vm2, %v20355_v17  ;;  %v20365_v14 = vmul.f32 %v10535_v36, %v10356_v21  ;;  %v10329_v36 = vmax.f32 %v10295_v1, 0.0  ;;  %v9267_v21 = vld [vmem:[%s21530_s10 + $0x90] sm:$0xff] }
0x62af   :  { %v20362_v58 = vmul.f32 %v10530_v16, %v10355_v18  ;;  %v10323_v47 = vadd.f32 %v20183_v19, %v10225_v23  ;;  %v10560_v63 = vpop.permute.xlu0 %10559  ;;  %v10400_v50 = vpop.permute.xlu1 %10399  ;;  %v9268_v18 = vld [vmem:[%s21530_s10 + $0x98] sm:$0xff] }
0x62b0   :  { %v10358_v61 = vmax.f32 %v10324_v2, 0.0  ;;  %v10567_v30 = vmul.f32 %v10400_v50, %v10329_v36  ;;  %v16984_v6 = vpack.c.bf16 %v9268_v18, %v9267_v21  ;;  %v9270_v2 = vld [vmem:[%s21530_s10 + $0xa8] sm:$0xff] }
0x62b1   :  { %v10357_v51 = vmax.f32 %v10323_v47, 0.0  ;;  %v15986_v49 = vpop.f32.mrb[150].mxu0  ;;  %16043 = vmatmul.mubr.msk.f32.gmra.mrb[128].mxu1 %vm10601_vm2, %v20362_v58  ;;  %v9272_v47 = vld [vmem:[%s21530_s10 + $0xb8] sm:$0xff] }
0x62b2   :  { %v10326_v15 = vadd.f32 %v15986_v49, %v20183_v19  ;;  %v10235_v43 = vpop.f32.mrb[151].mxu0  ;;  %16045 = vmatprep.mubr.msk.f32.mxu1 %vm10601_vm2, %v20365_v14  ;;  %v20377_v28 = vmul.f32 %v10545_v40, %v10358_v61  ;;  %v9271_v40 = vld [vmem:[%s21530_s10 + $0xb0] sm:$0xff] }
0x62b3   :  { %v20372_v5 = vmul.f32 %v10540_v29, %v10357_v51  ;;  %v10325_v54 = vadd.f32 %v20183_v19, %v10235_v43  ;;  %v9269_v29 = vld [vmem:[%s21530_s10 + $0xa0] sm:$0xff] }
0x62b4   :  { %v10360_v20 = vmax.f32 %v10326_v15, 0.0  ;;  %v16988_v23 = vpack.c.bf16 %v9270_v2, %v9269_v29 }
0x62b5   :  { %v10359_v52 = vmax.f32 %v10325_v54, 0.0  ;;  %v20379_v60 = vpop.f32.mrb[152].mxu0  ;;  %16046 = vmatmul.mubr.msk.f32.gmra.mrb[130].mxu1 %vm10601_vm2, %v20372_v5 }
0x62b6   :  { %v10245_v7 = vpop.f32.mrb[153].mxu0  ;;  %16048 = vmatprep.mubr.msk.f32.mxu1 %vm10601_vm2, %v20377_v28  ;;  %v20388_v48 = vmul.f32 %v10555_v8, %v10360_v20 }
0x62b7   :  { %v20385_v16 = vmul.f32 %v10550_v34, %v10359_v52  ;;  %v10327_v46 = vadd.f32 %v20183_v19, %v10245_v7 }
0x62b9   :  { %v10361_v26 = vmax.f32 %v10327_v46, 0.0  ;;  %16049 = vmatmul.mubr.msk.f32.gmra.mrb[132].mxu1 %vm10601_vm2, %v20385_v16 }
0x62ba   :  { %16051 = vmatprep.mubr.msk.f32.mxu1 %vm10601_vm2, %v20388_v48 }
0x62bb   :  { %v20394_v31 = vmul.f32 %v10560_v63, %v10361_v26 }
0x62bd   :  { %16052 = vmatmul.mubr.msk.f32.gmra.mrb[134].mxu1 %vm10601_vm2, %v20394_v31 }
0x62be   :  { %16070 = vmatprep.mubr.msk.f32.mxu1 %vm10601_vm2, %v10567_v30 }
0x62c1   :  { %16071 = vmatmul.mubr.msk.f32.vlgmr.msra.gmra.mrb[104].mxu1 %vm10601_vm2, %v20192_v32  ;;  %v16992_v32 = vpack.c.bf16 %v9272_v47, %v9271_v40 }
0x62c2   :  { %16073 = vmatprep.mubr.msk.f32.mxu1 %vm10601_vm2, %v20209_v11  ;;  %16983 = vmatpush3.bf16.msra.mxu1 %v20265_v56 }
0x62c3   :  { %16985 = vmatprep.subr.bf16.mxu1 %v16984_v6 }
0x62c5   :  { %16074 = vmatmul.mubr.msk.f32.gmra.mrb[106].mxu1 %vm10601_vm2, %v20212_v24 }
0x62c6   :  { %16076 = vmatprep.mubr.msk.f32.mxu1 %vm10601_vm2, %v20225_v9  ;;  %16987 = vmatpush3.bf16.msra.mxu1 %v16984_v6 }
0x62c7   :  { %16989 = vmatprep.subr.bf16.mxu1 %v16988_v23 }
0x62c9   :  { %16077 = vmatmul.mubr.msk.f32.gmra.mrb[108].mxu1 %vm10601_vm2, %v20230_v55 }
0x62ca   :  { %16079 = vmatprep.mubr.msk.f32.mxu1 %vm10601_vm2, %v20245_v38  ;;  %16991 = vmatpush3.bf16.msra.mxu1 %v16988_v23 }
0x62cb   :  { %16993 = vmatprep.subr.bf16.mxu1 %v16992_v32 }
0x62cd   :  { %16080 = vmatmul.mubr.msk.f32.gmra.mrb[110].mxu1 %vm10601_vm2, %v20248_v45 }
0x62ce   :  { %16082 = vmatprep.mubr.msk.f32.mxu1 %vm10601_vm2, %v20262_v41  ;;  %16995 = vmatpush3.bf16.msra.mxu1 %v16992_v32 }
0x62d1   :  { %16083 = vmatmul.mubr.msk.f32.gmra.mrb[112].mxu1 %vm10601_vm2, %v20268_v42 }
0x62d2   :  { %16085 = vmatprep.mubr.msk.f32.mxu1 %vm10601_vm2, %v20276_v37 }
0x62d5   :  { %16086 = vmatmul.mubr.msk.f32.gmra.mrb[114].mxu1 %vm10601_vm2, %v20281_v22 }
0x62d6   :  { %16088 = vmatprep.mubr.msk.f32.mxu1 %vm10601_vm2, %v20289_v39 }
0x62d9   :  { %16089 = vmatmul.mubr.msk.f32.gmra.mrb[116].mxu1 %vm10601_vm2, %v20293_v57 }
0x62da   :  { %16091 = vmatprep.mubr.msk.f32.mxu1 %vm10601_vm2, %v20301_v62 }
0x62dd   :  { %16092 = vmatmul.mubr.msk.f32.gmra.mrb[118].mxu1 %vm10601_vm2, %v20305_v3 }
0x62de   :  { %16094 = vmatprep.mubr.msk.f32.mxu1 %vm10601_vm2, %v20312_v13 }
0x62e1   :  { %16095 = vmatmul.mubr.msk.f32.gmra.mrb[120].mxu1 %vm10601_vm2, %v20315_v35 }
0x62e2   :  { %16097 = vmatprep.mubr.msk.f32.mxu1 %vm10601_vm2, %v20322_v25 }
0x62e5   :  { %16098 = vmatmul.mubr.msk.f32.gmra.mrb[122].mxu1 %vm10601_vm2, %v20325_v59 }
0x62e6   :  { %16100 = vmatprep.mubr.msk.f32.mxu1 %vm10601_vm2, %v20332_v10 }
0x62e9   :  { %16101 = vmatmul.mubr.msk.f32.gmra.mrb[124].mxu1 %vm10601_vm2, %v20335_v12 }
0x62ea   :  { %16103 = vmatprep.mubr.msk.f32.mxu1 %vm10601_vm2, %v20342_v53 }
0x62ed   :  { %16104 = vmatmul.mubr.msk.f32.gmra.mrb[126].mxu1 %vm10601_vm2, %v20345_v44 }
0x62ee   :  { %16106 = vmatprep.mubr.msk.f32.mxu1 %vm10601_vm2, %v20352_v27 }
0x62f1   :  { %16107 = vmatmul.mubr.msk.f32.gmra.mrb[128].mxu1 %vm10601_vm2, %v20355_v17 }
0x62f2   :  { %16109 = vmatprep.mubr.msk.f32.mxu1 %vm10601_vm2, %v20362_v58 }
0x62f5   :  { %16110 = vmatmul.mubr.msk.f32.gmra.mrb[130].mxu1 %vm10601_vm2, %v20365_v14 }
0x62f6   :  { %16112 = vmatprep.mubr.msk.f32.mxu1 %vm10601_vm2, %v20372_v5 }
0x62f9   :  { %16113 = vmatmul.mubr.msk.f32.gmra.mrb[132].mxu1 %vm10601_vm2, %v20377_v28 }
0x62fa   :  { %16115 = vmatprep.mubr.msk.f32.mxu1 %vm10601_vm2, %v20385_v16 }
0x62fd   :  { %16116 = vmatmul.mubr.msk.f32.gmra.mrb[134].mxu1 %vm10601_vm2, %v20388_v48 }
0x62fe   :  { %16134 = vmatprep.mubr.msk.f32.mxu1 %vm10601_vm2, %v20209_v11  ;;  %v10328_v11 = vadd.f32 %v20379_v60, %v20183_v19  ;;  %v20548_v19 = vld [vmem:[%s21532_s15 + $0x8] sm:$0xff] }
0x6301   :  { %16135 = vmatmul.mubr.msk.f32.vlgmr.msra.gmra.mrb[104].mxu1 %vm10601_vm2, %v20212_v24  ;;  %v10362_v24 = vmax.f32 %v10328_v11, 0.0 }
0x6302   :  { %16137 = vmatprep.mubr.msk.f32.mxu1 %vm10601_vm2, %v20225_v9  ;;  %v10565_v9 = vpop.permute.xlu0 %10564 }
0x6305   :  { %16138 = vmatmul.mubr.msk.f32.gmra.mrb[106].mxu1 %vm10601_vm2, %v20230_v55  ;;  %v10600_v55 = vmul.f32 %v10565_v9, %v10362_v24 }
0x6306   :  { %16140 = vmatprep.mubr.msk.f32.mxu1 %vm10601_vm2, %v20245_v38 }
0x6309   :  { %16141 = vmatmul.mubr.msk.f32.gmra.mrb[108].mxu1 %vm10601_vm2, %v20248_v45 }
0x630a   :  { %16143 = vmatprep.mubr.msk.f32.mxu1 %vm10601_vm2, %v20262_v41 }
0x630d   :  { %16144 = vmatmul.mubr.msk.f32.gmra.mrb[110].mxu1 %vm10601_vm2, %v20268_v42 }
0x630e   :  { %16146 = vmatprep.mubr.msk.f32.mxu1 %vm10601_vm2, %v20276_v37 }
0x6311   :  { %16147 = vmatmul.mubr.msk.f32.gmra.mrb[112].mxu1 %vm10601_vm2, %v20281_v22 }
0x6312   :  { %16149 = vmatprep.mubr.msk.f32.mxu1 %vm10601_vm2, %v20289_v39 }
0x6315   :  { %16150 = vmatmul.mubr.msk.f32.gmra.mrb[114].mxu1 %vm10601_vm2, %v20293_v57 }
0x6316   :  { %16152 = vmatprep.mubr.msk.f32.mxu1 %vm10601_vm2, %v20301_v62 }
0x6319   :  { %16153 = vmatmul.mubr.msk.f32.gmra.mrb[116].mxu1 %vm10601_vm2, %v20305_v3 }
0x631a   :  { %16155 = vmatprep.mubr.msk.f32.mxu1 %vm10601_vm2, %v20312_v13 }
0x631d   :  { %16156 = vmatmul.mubr.msk.f32.gmra.mrb[118].mxu1 %vm10601_vm2, %v20315_v35 }
0x631e   :  { %16158 = vmatprep.mubr.msk.f32.mxu1 %vm10601_vm2, %v20322_v25 }
0x6321   :  { %16159 = vmatmul.mubr.msk.f32.gmra.mrb[120].mxu1 %vm10601_vm2, %v20325_v59 }
0x6322   :  { %16161 = vmatprep.mubr.msk.f32.mxu1 %vm10601_vm2, %v20332_v10 }
0x6325   :  { %16162 = vmatmul.mubr.msk.f32.gmra.mrb[122].mxu1 %vm10601_vm2, %v20335_v12  ;;  %v20562_v12 = vld [vmem:[%s21533_s11] ss:$0 sm:$0xff] }
0x6326   :  { %16164 = vmatprep.mubr.msk.f32.mxu1 %vm10601_vm2, %v20342_v53 }
0x6329   :  { %16165 = vmatmul.mubr.msk.f32.gmra.mrb[124].mxu1 %vm10601_vm2, %v20345_v44 }
0x632a   :  { %16167 = vmatprep.mubr.msk.f32.mxu1 %vm10601_vm2, %v20352_v27 }
0x632d   :  { %16168 = vmatmul.mubr.msk.f32.gmra.mrb[126].mxu1 %vm10601_vm2, %v20355_v17 }
0x632e   :  { %16170 = vmatprep.mubr.msk.f32.mxu1 %vm10601_vm2, %v20362_v58 }
0x6331   :  { %16171 = vmatmul.mubr.msk.f32.gmra.mrb[128].mxu1 %vm10601_vm2, %v20365_v14 }
0x6332   :  { %16173 = vmatprep.mubr.msk.f32.mxu1 %vm10601_vm2, %v20372_v5 }
0x6335   :  { %16174 = vmatmul.mubr.msk.f32.gmra.mrb[130].mxu1 %vm10601_vm2, %v20377_v28 }
0x6336   :  { %16176 = vmatprep.mubr.msk.f32.mxu1 %vm10601_vm2, %v20385_v16 }
0x6339   :  { %16177 = vmatmul.mubr.msk.f32.gmra.mrb[132].mxu1 %vm10601_vm2, %v20388_v48 }
0x633a   :  { %16179 = vmatprep.mubr.msk.f32.mxu1 %vm10601_vm2, %v20394_v31 }
0x633d   :  { %16180 = vmatmul.mubr.msk.f32.gmra.mrb[134].mxu1 %vm10601_vm2, %v10600_v55 }
0x633e   :  { %11548 = vmatprep.mubr.f32.mxu1 %v20548_v19 }
0x63d4   :  { %v16136_v38 = vpop.f32.mrb[104].mxu1 }
0x63d5   :  { %v11220_v45 = vpop.f32.mrb[105].mxu1  ;;  %v20565_v44 = vadd.f32 %v16136_v38, %v20562_v12 }
0x63d6   :  { %v20568_v27 = vadd.f32 %v20562_v12, %v11220_v45 }
0x63d8   :  { %v16139_v41 = vpop.f32.mrb[106].mxu1  ;;  %v16998_v49 = vpack.c.bf16 %v20565_v44, %v20568_v27 }
0x63d9   :  { %v11230_v56 = vpop.f32.mrb[107].mxu1  ;;  %v20581_v15 = vadd.f32 %v16139_v41, %v20562_v12 }
0x63da   :  { %v20584_v43 = vadd.f32 %v20562_v12, %v11230_v56 }
0x63dc   :  { %v16142_v42 = vpop.f32.mrb[108].mxu1  ;;  %v17002_v20 = vpack.c.bf16 %v20581_v15, %v20584_v43 }
0x63dd   :  { %v11240_v37 = vpop.f32.mrb[109].mxu1  ;;  %v20597_v8 = vadd.f32 %v16142_v42, %v20562_v12 }
0x63de   :  { %v20600_v52 = vadd.f32 %v20562_v12, %v11240_v37 }
0x63e0   :  { %v16145_v22 = vpop.f32.mrb[110].mxu1  ;;  %v17006_v48 = vpack.c.bf16 %v20597_v8, %v20600_v52 }
0x63e1   :  { %v11250_v39 = vpop.f32.mrb[111].mxu1  ;;  %v20613_v26 = vadd.f32 %v16145_v22, %v20562_v12 }
0x63e2   :  { %v20616_v63 = vadd.f32 %v20562_v12, %v11250_v39 }
0x63e4   :  { %v16148_v57 = vpop.f32.mrb[112].mxu1  ;;  %v17010_v6 = vpack.c.bf16 %v20613_v26, %v20616_v63 }
0x63e5   :  { %v11260_v62 = vpop.f32.mrb[113].mxu1  ;;  %v20629_v29 = vadd.f32 %v16148_v57, %v20562_v12 }
0x63e6   :  { %v20632_v2 = vadd.f32 %v20562_v12, %v11260_v62 }
0x63e8   :  { %v16151_v3 = vpop.f32.mrb[114].mxu1  ;;  %v17014_v24 = vpack.c.bf16 %v20629_v29, %v20632_v2 }
0x63e9   :  { %v11270_v13 = vpop.f32.mrb[115].mxu1  ;;  %v20645_v9 = vadd.f32 %v16151_v3, %v20562_v12 }
0x63ea   :  { %v20648_v55 = vadd.f32 %v20562_v12, %v11270_v13 }
0x63ec   :  { %v20551_v35 = vpop.f32.mrb[116].mxu1  ;;  %v17018_v37 = vpack.c.bf16 %v20645_v9, %v20648_v55 }
0x63ed   :  { %v20553_v25 = vpop.f32.mrb[117].mxu1  ;;  %v20662_v22 = vadd.f32 %v20551_v35, %v20562_v12 }
0x63ee   :  { %v20666_v39 = vadd.f32 %v20562_v12, %v20553_v25 }
0x63f0   :  { %v20555_v59 = vpop.f32.mrb[118].mxu1  ;;  %v17022_v35 = vpack.c.bf16 %v20662_v22, %v20666_v39 }
0x63f1   :  { %v20557_v10 = vpop.f32.mrb[119].mxu1  ;;  %v20680_v25 = vadd.f32 %v20555_v59, %v20562_v12 }
0x63f4   :  { %v16160_v53 = vpop.f32.mrb[120].mxu1 }
0x63f5   :  { %v20571_v17 = vadd.f32 %v16160_v53, %v20562_v12  ;;  %v11300_v58 = vpop.f32.mrb[121].mxu1 }
0x63f6   :  { %v20574_v14 = vadd.f32 %v20562_v12, %v11300_v58  ;;  %v20684_v58 = vadd.f32 %v20562_v12, %v20557_v10  ;;  %v20699_v10 = vld [vmem:[%s21532_s15] sm:$0xff] }
0x63f7   :  { %21620 = vst [vmem:[#allocation5_spill] sm:$0xff] %v20699_v10 }
0x63f8   :  { %v16996_v61 = vpack.c.bf16 %v20571_v17, %v20574_v14  ;;  %v16163_v51 = vpop.f32.mrb[122].mxu1  ;;  %v17026_v59 = vpack.c.bf16 %v20680_v25, %v20684_v58 }
0x63f9   :  { %v20587_v5 = vadd.f32 %v16163_v51, %v20562_v12  ;;  %v11310_v54 = vpop.f32.mrb[123].mxu1 }
0x63fa   :  { %v20590_v34 = vadd.f32 %v20562_v12, %v11310_v54  ;;  %16997 = vmatprep.subr.bf16.mxu1 %v16996_v61 }
0x63fb   :  { %16999 = vmatpush3.bf16.msra.mxu1 %v16998_v49 }
0x63fc   :  { %v17000_v1 = vpack.c.bf16 %v20587_v5, %v20590_v34  ;;  %v16166_v28 = vpop.f32.mrb[124].mxu1 }
0x63fd   :  { %v20603_v60 = vadd.f32 %v16166_v28, %v20562_v12  ;;  %v11320_v7 = vpop.f32.mrb[125].mxu1 }
0x63fe   :  { %v20606_v16 = vadd.f32 %v20562_v12, %v11320_v7  ;;  %17001 = vmatprep.subr.bf16.mxu1 %v17000_v1  ;;  %v20713_v7 = vld [vmem:[%s21534_s16 + $0x8] sm:$0xff] }
0x63ff   :  { %17003 = vmatpush3.bf16.msra.mxu1 %v17002_v20 }
0x6400   :  { %v17004_v46 = vpack.c.bf16 %v20603_v60, %v20606_v16  ;;  %v16169_v36 = vpop.f32.mrb[126].mxu1 }
0x6401   :  { %v20619_v50 = vadd.f32 %v16169_v36, %v20562_v12  ;;  %v11330_v31 = vpop.f32.mrb[127].mxu1  ;;  %v20727_v36 = vld [vmem:[%s21534_s16 + $0x18] sm:$0xff] }
0x6402   :  { %v20622_v30 = vadd.f32 %v20562_v12, %v11330_v31  ;;  %17005 = vmatprep.subr.bf16.mxu1 %v17004_v46  ;;  %v20718_v46 = vld [vmem:[%s21534_s16 + $0x10] sm:$0xff]  ;;  %v20741_v31 = vld [vmem:[%s21534_s16 + $0x28] sm:$0xff] }
0x6403   :  { %17007 = vmatpush3.bf16.msra.mxu1 %v17006_v48  ;;  %v20732_v48 = vld [vmem:[%s21534_s16 + $0x20] sm:$0xff] }
0x6404   :  { %v17008_v21 = vpack.c.bf16 %v20619_v50, %v20622_v30  ;;  %v16172_v18 = vpop.f32.mrb[128].mxu1 }
0x6405   :  { %v20635_v23 = vadd.f32 %v16172_v18, %v20562_v12  ;;  %v11340_v40 = vpop.f32.mrb[129].mxu1  ;;  %v20755_v18 = vld [vmem:[%s21534_s16 + $0x38] sm:$0xff] }
0x6406   :  { %v20638_v47 = vadd.f32 %v20562_v12, %v11340_v40  ;;  %17009 = vmatprep.subr.bf16.mxu1 %v17008_v21  ;;  %v20746_v21 = vld [vmem:[%s21534_s16 + $0x30] sm:$0xff]  ;;  %21621 = vst [vmem:[#allocation6_spill] sm:$0xff] %v20755_v18  ;;  %v20769_v40 = vld [vmem:[%s21534_s16 + $0x48] sm:$0xff] }
0x6407   :  { %17011 = vmatpush3.bf16.msra.mxu1 %v17010_v6  ;;  %v20760_v6 = vld [vmem:[%s21534_s16 + $0x40] sm:$0xff]  ;;  %21623 = vst [vmem:[#allocation8_spill] sm:$0xff] %v20769_v40 }
0x6408   :  { %v17012_v32 = vpack.c.bf16 %v20635_v23, %v20638_v47  ;;  %v16175_v11 = vpop.f32.mrb[130].mxu1  ;;  %21622 = vst [vmem:[#allocation7_spill] sm:$0xff] %v20760_v6 }
0x6409   :  { %v20651_v38 = vadd.f32 %v16175_v11, %v20562_v12  ;;  %v11350_v45 = vpop.f32.mrb[131].mxu1  ;;  %v20783_v11 = vld [vmem:[%s21534_s16 + $0x58] sm:$0xff] }
0x640a   :  { %v20654_v41 = vadd.f32 %v20562_v12, %v11350_v45  ;;  %17013 = vmatprep.subr.bf16.mxu1 %v17012_v32  ;;  %v20774_v32 = vld [vmem:[%s21534_s16 + $0x50] sm:$0xff]  ;;  %21625 = vst [vmem:[#allocation10_spill] sm:$0xff] %v20783_v11  ;;  %v20797_v45 = vld [vmem:[%s21534_s16 + $0x68] sm:$0xff] }
0x640b   :  { %17015 = vmatpush3.bf16.msra.mxu1 %v17014_v24  ;;  %21624 = vst [vmem:[#allocation9_spill] sm:$0xff] %v20774_v32  ;;  %v20788_v24 = vld [vmem:[%s21534_s16 + $0x60] sm:$0xff]  ;;  %21627 = vst [vmem:[#allocation12_spill] sm:$0xff] %v20797_v45 }
0x640c   :  { %v17016_v56 = vpack.c.bf16 %v20651_v38, %v20654_v41  ;;  %v16178_v42 = vpop.f32.mrb[132].mxu1  ;;  %21626 = vst [vmem:[#allocation11_spill] sm:$0xff] %v20788_v24 }
0x640d   :  { %v20669_v57 = vadd.f32 %v16178_v42, %v20562_v12  ;;  %v11360_v62 = vpop.f32.mrb[133].mxu1  ;;  %v20811_v42 = vld [vmem:[%s21534_s16 + $0x78] sm:$0xff] }
0x640e   :  { %v20672_v3 = vadd.f32 %v20562_v12, %v11360_v62  ;;  %17017 = vmatprep.subr.bf16.mxu1 %v17016_v56  ;;  %v20802_v56 = vld [vmem:[%s21534_s16 + $0x70] sm:$0xff]  ;;  %21629 = vst [vmem:[#allocation14_spill] sm:$0xff] %v20811_v42  ;;  %v20825_v62 = vld [vmem:[%s21534_s16 + $0x88] sm:$0xff] }
0x640f   :  { %17019 = vmatpush3.bf16.msra.mxu1 %v17018_v37  ;;  %21628 = vst [vmem:[#allocation13_spill] sm:$0xff] %v20802_v56  ;;  %v20816_v37 = vld [vmem:[%s21534_s16 + $0x80] sm:$0xff]  ;;  %21631 = vst [vmem:[#allocation16_spill] sm:$0xff] %v20825_v62 }
0x6410   :  { %v17020_v13 = vpack.c.bf16 %v20669_v57, %v20672_v3  ;;  %v16181_v53 = vpop.f32.mrb[134].mxu1  ;;  %21630 = vst [vmem:[#allocation15_spill] sm:$0xff] %v20816_v37 }
0x6411   :  { %v20687_v61 = vadd.f32 %v16181_v53, %v20562_v12  ;;  %v11370_v51 = vpop.f32.mrb[135].mxu1  ;;  %v20839_v53 = vld [vmem:[%s21534_s16 + $0x98] sm:$0xff] }
0x6412   :  { %v20690_v49 = vadd.f32 %v20562_v12, %v11370_v51  ;;  %17021 = vmatprep.subr.bf16.mxu1 %v17020_v13  ;;  %v20706_v12 = vld [vmem:[%s21534_s16] sm:$0xff]  ;;  %v20830_v13 = vld [vmem:[%s21534_s16 + $0x90] sm:$0xff]  ;;  %21633 = vst [vmem:[#allocation18_spill] sm:$0xff] %v20839_v53  ;;  %v20853_v51 = vld [vmem:[%s21534_s16 + $0xa8] sm:$0xff] }
0x6413   :  { %17023 = vmatpush3.bf16.msra.mxu1 %v17022_v35  ;;  %16184 = vmatprep.mubr.msk.f32.mxu0 %vm11554_vm3, %v20706_v12  ;;  %21632 = vst [vmem:[#allocation17_spill] sm:$0xff] %v20830_v13  ;;  %v20844_v35 = vld [vmem:[%s21534_s16 + $0xa0] sm:$0xff]  ;;  %21635 = vst [vmem:[#allocation20_spill] sm:$0xff] %v20853_v51 }
0x6414   :  { %v17024_v54 = vpack.c.bf16 %v20687_v61, %v20690_v49  ;;  %21634 = vst [vmem:[#allocation19_spill] sm:$0xff] %v20844_v35 }
0x6416   :  { %17025 = vmatprep.subr.bf16.mxu1 %v17024_v54  ;;  %v20858_v54 = vld [vmem:[%s21534_s16 + $0xb0] sm:$0xff] }
0x6417   :  { %17027 = vmatpush3.bf16.msra.mxu1 %v17026_v59  ;;  %21636 = vst [vmem:[#allocation21_spill] sm:$0xff] %v20858_v54  ;;  %v20867_v59 = vld [vmem:[%s21534_s16 + $0xb8] sm:$0xff] }
0x6418   :  { %21637 = vst [vmem:[#allocation22_spill] sm:$0xff] %v20867_v59 }
0x641a   :  { %11549 = vmatmul.mubr.f32.vlgmr.msra.gmra.mrb[136].mxu1 %v20699_v10 }
0x641b   :  { %12004 = vmatprep.mubr.f32.mxu1 %v20548_v19 }
0x64ed   :  { %v14531_v1 = vpop.f32.mrb[136].mxu1 }
0x64ee   :  { %v14532_v28 = vpop.f32.mrb[137].mxu1 }
0x64ef   :  { %v14533_v20 = vadd.f32 %v14532_v28, %v14531_v1  ;;  %v20872_v1 = vld [vmem:[%s21534_s16 + $0xc0] sm:$0xff]  ;;  %v20881_v28 = vld [vmem:[%s21534_s16 + $0xc8] sm:$0xff] }
0x64f0   :  { %21638 = vst [vmem:[#allocation23_spill] sm:$0xff] %v20872_v1  ;;  %21639 = vst [vmem:[#allocation24_spill] sm:$0xff] %v20881_v28 }
0x64f1   :  { %16182 = vmatprep.subr.mxu0 %v14533_v20 }
0x64f2   :  { %16183 = vmatpush3.msra.mxu0 %v14533_v20  ;;  %v20886_v20 = vld [vmem:[%s21534_s16 + $0xd0] sm:$0xff] }
0x64f3   :  { %16185 = vmatmul.mubr.msk.f32.vlgmr.msra.gmra.mrb[154].mxu0 %vm11554_vm3, %v20713_v7  ;;  %21640 = vst [vmem:[#allocation25_spill] sm:$0xff] %v20886_v20 }
0x64f4   :  { %16187 = vmatprep.mubr.msk.f32.mxu0 %vm11554_vm3, %v20718_v46 }
0x64f7   :  { %16188 = vmatmul.mubr.msk.f32.gmra.mrb[156].mxu0 %vm11554_vm3, %v20727_v36 }
0x64f8   :  { %16190 = vmatprep.mubr.msk.f32.mxu0 %vm11554_vm3, %v20732_v48 }
0x64fb   :  { %16191 = vmatmul.mubr.msk.f32.gmra.mrb[158].mxu0 %vm11554_vm3, %v20741_v31 }
0x64fc   :  { %16193 = vmatprep.mubr.msk.f32.mxu0 %vm11554_vm3, %v20746_v21 }
0x64ff   :  { %16194 = vmatmul.mubr.msk.f32.gmra.mrb[160].mxu0 %vm11554_vm3, %v20755_v18 }
0x6500   :  { %16196 = vmatprep.mubr.msk.f32.mxu0 %vm11554_vm3, %v20760_v6 }
0x6503   :  { %16197 = vmatmul.mubr.msk.f32.gmra.mrb[162].mxu0 %vm11554_vm3, %v20769_v40 }
0x6504   :  { %16199 = vmatprep.mubr.msk.f32.mxu0 %vm11554_vm3, %v20774_v32 }
0x6507   :  { %16200 = vmatmul.mubr.msk.f32.gmra.mrb[164].mxu0 %vm11554_vm3, %v20783_v11 }
0x6508   :  { %16202 = vmatprep.mubr.msk.f32.mxu0 %vm11554_vm3, %v20788_v24 }
0x650b   :  { %16203 = vmatmul.mubr.msk.f32.gmra.mrb[166].mxu0 %vm11554_vm3, %v20797_v45 }
0x650c   :  { %16205 = vmatprep.mubr.msk.f32.mxu0 %vm11554_vm3, %v20802_v56 }
0x650f   :  { %16206 = vmatmul.mubr.msk.f32.gmra.mrb[168].mxu0 %vm11554_vm3, %v20811_v42 }
0x6510   :  { %16208 = vmatprep.mubr.msk.f32.mxu0 %vm11554_vm3, %v20816_v37 }
0x6513   :  { %16209 = vmatmul.mubr.msk.f32.gmra.mrb[170].mxu0 %vm11554_vm3, %v20825_v62 }
0x6514   :  { %16211 = vmatprep.mubr.msk.f32.mxu0 %vm11554_vm3, %v20830_v13 }
0x6517   :  { %16212 = vmatmul.mubr.msk.f32.gmra.mrb[172].mxu0 %vm11554_vm3, %v20839_v53 }
0x6518   :  { %16214 = vmatprep.mubr.msk.f32.mxu0 %vm11554_vm3, %v20844_v35 }
0x651b   :  { %16215 = vmatmul.mubr.msk.f32.gmra.mrb[174].mxu0 %vm11554_vm3, %v20853_v51 }
0x651c   :  { %16217 = vmatprep.mubr.msk.f32.mxu0 %vm11554_vm3, %v20858_v54 }
0x651f   :  { %16218 = vmatmul.mubr.msk.f32.gmra.mrb[176].mxu0 %vm11554_vm3, %v20867_v59 }
0x6520   :  { %16220 = vmatprep.mubr.msk.f32.mxu0 %vm11554_vm3, %v20872_v1 }
0x6523   :  { %16221 = vmatmul.mubr.msk.f32.gmra.mrb[178].mxu0 %vm11554_vm3, %v20881_v28 }
0x6524   :  { %16223 = vmatprep.mubr.msk.f32.mxu0 %vm11554_vm3, %v20886_v20  ;;  %v20914_v20 = vld [vmem:[%s21534_s16 + $0xf0] sm:$0xff] }
0x6525   :  { %21644 = vst [vmem:[#allocation29_spill] sm:$0xff] %v20914_v20 }
0x6527   :  { %16224 = vmatmul.mubr.msk.f32.gmra.mrb[180].mxu0 %vm11554_vm3, %v20895_v4 }
0x6528   :  { %16226 = vmatprep.mubr.msk.f32.mxu0 %vm11554_vm3, %v20900_v0  ;;  %v20923_v0 = vld [vmem:[%s21534_s16 + $0xf8] sm:$0xff] }
0x6529   :  { %21645 = vst [vmem:[#allocation30_spill] sm:$0xff] %v20923_v0 }
0x652b   :  { %16227 = vmatmul.mubr.msk.f32.gmra.mrb[182].mxu0 %vm11554_vm3, %v20909_v33 }
0x652c   :  { %16229 = vmatprep.mubr.msk.f32.mxu0 %vm11554_vm3, %v20914_v20 }
0x652f   :  { %16230 = vmatmul.mubr.msk.f32.gmra.mrb[184].mxu0 %vm11554_vm3, %v20923_v0 }
0x6530   :  { %12780 = vmatprep.mubr.f32.mxu0 %v20548_v19 }
0x65c6   :  { %v16186_v4 = vpop.f32.mrb[154].mxu0 }
0x65c7   :  { %v11717_v28 = vpop.f32.mrb[155].mxu0  ;;  %v20939_v56 = vsub.f32 %v20565_v44, %v16186_v4 }
0x65c8   :  { %v20942_v45 = vsub.f32 %v20568_v27, %v11717_v28 }
0x65c9   :  { %v11909_v40 = vmul.f32 %v20939_v56, %v20939_v56 }
0x65ca   :  { %v16189_v1 = vpop.f32.mrb[156].mxu0  ;;  %v11908_v18 = vmul.f32 %v20942_v45, %v20942_v45 }
0x65cb   :  { %v11727_v59 = vpop.f32.mrb[157].mxu0  ;;  %v20955_v4 = vsub.f32 %v20581_v15, %v16189_v1 }
0x65cc   :  { %v20958_v44 = vsub.f32 %v20584_v43, %v11727_v59  ;;  %v17030_v1 = vpack.c.bf16 %v11909_v40, %v11908_v18 }
0x65ce   :  { %v16192_v54 = vpop.f32.mrb[158].mxu0 }
0x65cf   :  { %v11737_v51 = vpop.f32.mrb[159].mxu0  ;;  %v20965_v28 = vsub.f32 %v20597_v8, %v16192_v54 }
0x65d0   :  { %v20971_v15 = vsub.f32 %v20600_v52, %v11737_v51 }
0x65d2   :  { %v16195_v33 = vpop.f32.mrb[160].mxu0  ;;  %v11912_v40 = vmul.f32 %v20971_v15, %v20971_v15 }
0x65d3   :  { %v11747_v35 = vpop.f32.mrb[161].mxu0  ;;  %v20992_v51 = vsub.f32 %v20613_v26, %v16195_v33 }
0x65d5   :  { %v11915_v26 = vmul.f32 %v20992_v51, %v20992_v51 }
0x65d6   :  { %v16198_v53 = vpop.f32.mrb[162].mxu0 }
0x65d7   :  { %v11757_v20 = vpop.f32.mrb[163].mxu0 }
0x65da   :  { %v16201_v13 = vpop.f32.mrb[164].mxu0 }
0x65db   :  { %v20928_v62 = vpop.f32.mrb[165].mxu0 }
0x65de   :  { %v20930_v37 = vpop.f32.mrb[166].mxu0 }
0x65df   :  { %v20932_v42 = vpop.f32.mrb[167].mxu0 }
0x65e2   :  { %v20934_v0 = vpop.f32.mrb[168].mxu0 }
0x65e3   :  { %v20936_v19 = vpop.f32.mrb[169].mxu0 }
0x65e6   :  { %v16210_v24 = vpop.f32.mrb[170].mxu0 }
0x65e7   :  { %v20945_v11 = vsub.f32 %v20571_v17, %v16210_v24  ;;  %v11797_v32 = vpop.f32.mrb[171].mxu0 }
0x65e8   :  { %v20950_v6 = vsub.f32 %v20574_v14, %v11797_v32 }
0x65e9   :  { %21646 = vst [vmem:[#allocation31_spill] sm:$0xff] %v20945_v11  ;;  %v11925_v27 = vmul.f32 %v20945_v11, %v20945_v11  ;;  %v11911_v11 = vmul.f32 %v20955_v4, %v20955_v4 }
0x65ea   :  { %21647 = vst [vmem:[#allocation32_spill] sm:$0xff] %v20950_v6  ;;  %v11924_v17 = vmul.f32 %v20950_v6, %v20950_v6  ;;  %v16213_v24 = vpop.f32.mrb[172].mxu0  ;;  %v11910_v6 = vmul.f32 %v20958_v44, %v20958_v44 }
0x65eb   :  { %v20968_v14 = vsub.f32 %v20587_v5, %v16213_v24  ;;  %v11807_v32 = vpop.f32.mrb[173].mxu0 }
0x65ec   :  { %v20974_v43 = vsub.f32 %v20590_v34, %v11807_v32  ;;  %v17028_v59 = vpack.c.bf16 %v11925_v27, %v11924_v17  ;;  %v11913_v34 = vmul.f32 %v20965_v28, %v20965_v28  ;;  %v17034_v24 = vpack.c.bf16 %v11911_v11, %v11910_v6 }
0x65ed   :  { %v11927_v8 = vmul.f32 %v20968_v14, %v20968_v14  ;;  %v20998_v32 = vsub.f32 %v20616_v63, %v11747_v35  ;;  %v21015_v35 = vsub.f32 %v20629_v29, %v16198_v53  ;;  %v21032_v29 = vsub.f32 %v20648_v55, %v20928_v62 }
0x65ee   :  { %v11926_v5 = vmul.f32 %v20974_v43, %v20974_v43  ;;  %v16216_v54 = vpop.f32.mrb[174].mxu0  ;;  %17029 = vmatprep.subr.bf16.mxu1 %v17028_v59 }
0x65ef   :  { %v20987_v52 = vsub.f32 %v20603_v60, %v16216_v54  ;;  %v11817_v18 = vpop.f32.mrb[175].mxu0  ;;  %17031 = vmatpush3.bf16.msra.mxu1 %v17030_v1  ;;  %v11914_v11 = vmul.f32 %v20998_v32, %v20998_v32 }
0x65f0   :  { %v20995_v27 = vsub.f32 %v20606_v16, %v11817_v18  ;;  %v17032_v17 = vpack.c.bf16 %v11927_v8, %v11926_v5  ;;  %v17038_v16 = vpack.c.bf16 %v11913_v34, %v11912_v40  ;;  %v21018_v8 = vsub.f32 %v20632_v2, %v11757_v20 }
0x65f1   :  { %21648 = vst [vmem:[#allocation33_spill] sm:$0xff] %v20987_v52  ;;  %v11929_v60 = vmul.f32 %v20987_v52, %v20987_v52  ;;  %v17042_v20 = vpack.c.bf16 %v11915_v26, %v11914_v11  ;;  %v21061_v26 = vsub.f32 %v20666_v39, %v20932_v42 }
0x65f2   :  { %21649 = vst [vmem:[#allocation34_spill] sm:$0xff] %v20995_v27  ;;  %v11928_v59 = vmul.f32 %v20995_v27, %v20995_v27  ;;  %v16219_v1 = vpop.f32.mrb[176].mxu0  ;;  %17033 = vmatprep.subr.bf16.mxu1 %v17032_v17  ;;  %v11917_v17 = vmul.f32 %v21015_v35, %v21015_v35 }
0x65f3   :  { %v21005_v54 = vsub.f32 %v20619_v50, %v16219_v1  ;;  %v11827_v33 = vpop.f32.mrb[177].mxu0  ;;  %17035 = vmatpush3.bf16.msra.mxu1 %v17034_v24 }
0x65f4   :  { %v21010_v63 = vsub.f32 %v20622_v30, %v11827_v33  ;;  %v17036_v6 = vpack.c.bf16 %v11929_v60, %v11928_v59  ;;  %v21025_v30 = vsub.f32 %v20645_v9, %v16201_v13  ;;  %v11916_v9 = vmul.f32 %v21018_v8, %v21018_v8 }
0x65f5   :  { %21650 = vst [vmem:[#allocation35_spill] sm:$0xff] %v21005_v54  ;;  %v11931_v50 = vmul.f32 %v21005_v54, %v21005_v54  ;;  %v11918_v60 = vmul.f32 %v21032_v29, %v21032_v29  ;;  %v21054_v59 = vsub.f32 %v20662_v22, %v20930_v37 }
0x65f6   :  { %21651 = vst [vmem:[#allocation36_spill] sm:$0xff] %v21010_v63  ;;  %v11930_v5 = vmul.f32 %v21010_v63, %v21010_v63  ;;  %v16222_v34 = vpop.f32.mrb[178].mxu0  ;;  %17037 = vmatprep.subr.bf16.mxu1 %v17036_v6 }
0x65f7   :  { %v21028_v18 = vsub.f32 %v20635_v23, %v16222_v34  ;;  %v11837_v40 = vpop.f32.mrb[179].mxu0  ;;  %17039 = vmatpush3.bf16.msra.mxu1 %v17038_v16  ;;  %v17046_v16 = vpack.c.bf16 %v11917_v17, %v11916_v9  ;;  %v21079_v34 = vsub.f32 %v20680_v25, %v20934_v0 }
0x65f8   :  { %v21035_v2 = vsub.f32 %v20638_v47, %v11837_v40  ;;  %v17040_v53 = vpack.c.bf16 %v11931_v50, %v11930_v5  ;;  %v11919_v47 = vmul.f32 %v21025_v30, %v21025_v30  ;;  %v11921_v50 = vmul.f32 %v21054_v59, %v21054_v59 }
0x65f9   :  { %21652 = vst [vmem:[#allocation37_spill] sm:$0xff] %v21028_v18  ;;  %v11933_v23 = vmul.f32 %v21028_v18, %v21028_v18  ;;  %v11920_v5 = vmul.f32 %v21061_v26, %v21061_v26 }
0x65fa   :  { %21653 = vst [vmem:[#allocation38_spill] sm:$0xff] %v21035_v2  ;;  %v11932_v13 = vmul.f32 %v21035_v2, %v21035_v2  ;;  %v16225_v24 = vpop.f32.mrb[180].mxu0  ;;  %17041 = vmatprep.subr.bf16.mxu1 %v17040_v53 }
0x65fb   :  { %v21048_v55 = vsub.f32 %v20651_v38, %v16225_v24  ;;  %v11847_v62 = vpop.f32.mrb[181].mxu0  ;;  %17043 = vmatpush3.bf16.msra.mxu1 %v17042_v20  ;;  %v17054_v9 = vpack.c.bf16 %v11921_v50, %v11920_v5  ;;  %v21673_v50 = vld [vmem:[#allocation19_spill] sm:$0xff]  ;;  %v21675_v5 = vld [vmem:[#allocation21_spill] sm:$0xff] }
0x65fc   :  { %v21057_v1 = vsub.f32 %v20654_v41, %v11847_v62  ;;  %v17044_v33 = vpack.c.bf16 %v11933_v23, %v11932_v13  ;;  %v17050_v41 = vpack.c.bf16 %v11919_v47, %v11918_v60 }
0x65fd   :  { %21654 = vst [vmem:[#allocation39_spill] sm:$0xff] %v21048_v55  ;;  %v11935_v38 = vmul.f32 %v21048_v55, %v21048_v55 }
0x65fe   :  { %21655 = vst [vmem:[#allocation40_spill] sm:$0xff] %v21057_v1  ;;  %v11934_v6 = vmul.f32 %v21057_v1, %v21057_v1  ;;  %v16228_v11 = vpop.f32.mrb[182].mxu0  ;;  %17045 = vmatprep.subr.bf16.mxu1 %v17044_v33 }
0x65ff   :  { %v21068_v22 = vsub.f32 %v20669_v57, %v16228_v11  ;;  %v11857_v37 = vpop.f32.mrb[183].mxu0  ;;  %17047 = vmatpush3.bf16.msra.mxu1 %v17046_v16  ;;  %v21083_v57 = vsub.f32 %v20684_v58, %v20936_v19  ;;  %v11923_v58 = vmul.f32 %v21079_v34, %v21079_v34  ;;  %v21661_v16 = vld [vmem:[#allocation7_spill] sm:$0xff]  ;;  %v21670_v11 = vld [vmem:[#allocation16_spill] sm:$0xff] }
0x6600   :  { %v21073_v39 = vsub.f32 %v20672_v3, %v11857_v37  ;;  %v17048_v42 = vpack.c.bf16 %v11935_v38, %v11934_v6  ;;  %v21668_v38 = vld [vmem:[#allocation14_spill] sm:$0xff]  ;;  %v21669_v6 = vld [vmem:[#allocation15_spill] sm:$0xff]  ;;  %v21671_v37 = vld [vmem:[#allocation17_spill] sm:$0xff] }
0x6601   :  { %21656 = vst [vmem:[#allocation41_spill] sm:$0xff] %v21068_v22  ;;  %v11937_v40 = vmul.f32 %v21068_v22, %v21068_v22  ;;  %v11922_v19 = vmul.f32 %v21083_v57, %v21083_v57 }
0x6602   :  { %21657 = vst [vmem:[#allocation42_spill] sm:$0xff] %v21073_v39  ;;  %v11936_v53 = vmul.f32 %v21073_v39, %v21073_v39  ;;  %v16231_v3 = vpop.f32.mrb[184].mxu0  ;;  %17049 = vmatprep.subr.bf16.mxu1 %v17048_v42  ;;  %v21674_v42 = vld [vmem:[#allocation20_spill] sm:$0xff] }
0x6603   :  { %v21090_v20 = vsub.f32 %v20687_v61, %v16231_v3  ;;  %v11867_v17 = vpop.f32.mrb[185].mxu0  ;;  %17051 = vmatpush3.bf16.msra.mxu1 %v17050_v41  ;;  %v17058_v24 = vpack.c.bf16 %v11923_v58, %v11922_v19  ;;  %v21672_v41 = vld [vmem:[#allocation18_spill] sm:$0xff]  ;;  %v21678_v3 = vld [vmem:[#allocation24_spill] sm:$0xff]  ;;  %v21164_v19 = vpop.permute.xlu0 %12387 }
0x6604   :  { %v21093_v0 = vsub.f32 %v20690_v49, %v11867_v17  ;;  %v17052_v25 = vpack.c.bf16 %v11937_v40, %v11936_v53  ;;  %v21676_v40 = vld [vmem:[#allocation22_spill] sm:$0xff]  ;;  %v21677_v53 = vld [vmem:[#allocation23_spill] sm:$0xff]  ;;  %v21679_v17 = vld [vmem:[#allocation25_spill] sm:$0xff] }
0x6605   :  { %21658 = vst [vmem:[#allocation43_spill] sm:$0xff] %v21090_v20  ;;  %v11939_v23 = vmul.f32 %v21090_v20, %v21090_v20  ;;  %v21682_v58 = vld [vmem:[#allocation28_spill] sm:$0xff] }
0x6606   :  { %21659 = vst [vmem:[#allocation44_spill] sm:$0xff] %v21093_v0  ;;  %v11938_v61 = vmul.f32 %v21093_v0, %v21093_v0  ;;  %17053 = vmatprep.subr.bf16.mxu1 %v17052_v25  ;;  %v21680_v25 = vld [vmem:[#allocation26_spill] sm:$0xff] }
0x6607   :  { %17055 = vmatpush3.bf16.msra.mxu1 %v17054_v9  ;;  %v21681_v9 = vld [vmem:[#allocation27_spill] sm:$0xff] }
0x6608   :  { %v17056_v13 = vpack.c.bf16 %v11939_v23, %v11938_v61  ;;  %v21683_v23 = vld [vmem:[#allocation29_spill] sm:$0xff]  ;;  %v21168_v61 = vpop.permute.xlu1 %12382 }
0x660a   :  { %17057 = vmatprep.subr.bf16.mxu1 %v17056_v13  ;;  %v21684_v13 = vld [vmem:[#allocation30_spill] sm:$0xff] }
0x660b   :  { %17059 = vmatpush3.bf16.msra.mxu1 %v17058_v24  ;;  %v12308_v24 = vpop.permute.xlu0 %12307 }
0x660e   :  { %12005 = vmatmul.mubr.f32.vlgmr.msra.gmra.mrb[138].mxu1 %v20699_v10 }
0x660f   :  { %16234 = vmatprep.mubr.msk.f32.mxu1 %vm11554_vm3, %v20706_v12  ;;  %v21660_v12 = vld [vmem:[#allocation6_spill] sm:$0xff] }
0x66e1   :  { %v14599_v49 = vpop.f32.mrb[138].mxu1 }
0x66e2   :  { %v14600_v47 = vpop.f32.mrb[139].mxu1 }
0x66e3   :  { %v14601_v62 = vadd.f32 %v14600_v47, %v14599_v49  ;;  %v12303_v49 = vpop.permute.xlu1 %12302  ;;  %v21172_v47 = vpop.permute.xlu0 %12611 }
0x66e5   :  { %v12007_v60 = vadd.f32 1e-05, %v14601_v62 }
0x66e7   :  { %17776 = vrsqrt.f32 %v12007_v60  ;;  %v21174_v62 = vpop.permute.xlu1 %12606  ;;  %v12532_v60 = vpop.permute.xlu0 %12531 }
0x66f1   :  { %v17777_v33 = vpop.eup %17776 }
0x66f2   :  { %16232 = vmatprep.subr.mxu1 %v17777_v33 }
0x66f3   :  { %16233 = vmatpush3.msra.mxu1 %v17777_v33  ;;  %v12527_v33 = vpop.permute.xlu1 %12526 }
0x66f4   :  { %16235 = vmatmul.mubr.msk.f32.vlgmr.msra.gmra.mrb[140].mxu1 %vm11554_vm3, %v20713_v7  ;;  %v21662_v7 = vld [vmem:[#allocation8_spill] sm:$0xff] }
0x66f5   :  { %16237 = vmatprep.mubr.msk.f32.mxu1 %vm11554_vm3, %v20718_v46  ;;  %v21663_v46 = vld [vmem:[#allocation9_spill] sm:$0xff] }
0x66f8   :  { %16238 = vmatmul.mubr.msk.f32.gmra.mrb[142].mxu1 %vm11554_vm3, %v20727_v36  ;;  %v21664_v36 = vld [vmem:[#allocation10_spill] sm:$0xff] }
0x66f9   :  { %16240 = vmatprep.mubr.msk.f32.mxu1 %vm11554_vm3, %v20732_v48  ;;  %v21665_v48 = vld [vmem:[#allocation11_spill] sm:$0xff] }
0x66fc   :  { %16241 = vmatmul.mubr.msk.f32.gmra.mrb[144].mxu1 %vm11554_vm3, %v20741_v31  ;;  %v21666_v31 = vld [vmem:[#allocation12_spill] sm:$0xff] }
0x66fd   :  { %16243 = vmatprep.mubr.msk.f32.mxu1 %vm11554_vm3, %v20746_v21  ;;  %v21667_v21 = vld [vmem:[#allocation13_spill] sm:$0xff] }
0x6700   :  { %16244 = vmatmul.mubr.msk.f32.gmra.mrb[146].mxu1 %vm11554_vm3, %v21660_v12  ;;  %v21176_v12 = vpop.permute.xlu0 %12397 }
0x6701   :  { %16246 = vmatprep.mubr.msk.f32.mxu1 %vm11554_vm3, %v21661_v16  ;;  %v21178_v16 = vpop.permute.xlu1 %12392 }
0x6704   :  { %16247 = vmatmul.mubr.msk.f32.gmra.mrb[148].mxu1 %vm11554_vm3, %v21662_v7  ;;  %v12318_v7 = vpop.permute.xlu0 %12317 }
0x6705   :  { %16249 = vmatprep.mubr.msk.f32.mxu1 %vm11554_vm3, %v21663_v46  ;;  %v12313_v46 = vpop.permute.xlu1 %12312 }
0x6708   :  { %16250 = vmatmul.mubr.msk.f32.gmra.mrb[150].mxu1 %vm11554_vm3, %v21664_v36  ;;  %v21180_v36 = vpop.permute.xlu0 %12621 }
0x6709   :  { %16252 = vmatprep.mubr.msk.f32.mxu1 %vm11554_vm3, %v21665_v48  ;;  %21685 = vst [vmem:[#allocation6_spill] sm:$0xff] %v21180_v36  ;;  %v21182_v48 = vpop.permute.xlu1 %12616 }
0x670a   :  { %21686 = vst [vmem:[#allocation7_spill] sm:$0xff] %v21182_v48 }
0x670c   :  { %16253 = vmatmul.mubr.msk.f32.gmra.mrb[152].mxu1 %vm11554_vm3, %v21666_v31  ;;  %v12542_v31 = vpop.permute.xlu0 %12541 }
0x670d   :  { %16255 = vmatprep.mubr.msk.f32.mxu1 %vm11554_vm3, %v21667_v21  ;;  %v12537_v21 = vpop.permute.xlu1 %12536 }
0x6710   :  { %16256 = vmatmul.mubr.msk.f32.gmra.mrb[154].mxu1 %vm11554_vm3, %v21668_v38  ;;  %v21184_v38 = vpop.permute.xlu0 %12407 }
0x6711   :  { %16258 = vmatprep.mubr.msk.f32.mxu1 %vm11554_vm3, %v21669_v6  ;;  %21687 = vst [vmem:[#allocation8_spill] sm:$0xff] %v21184_v38  ;;  %v21186_v6 = vpop.permute.xlu1 %12402 }
0x6712   :  { %21688 = vst [vmem:[#allocation9_spill] sm:$0xff] %v21186_v6 }
0x6714   :  { %16259 = vmatmul.mubr.msk.f32.gmra.mrb[156].mxu1 %vm11554_vm3, %v21670_v11  ;;  %v12328_v11 = vpop.permute.xlu0 %12327 }
0x6715   :  { %16261 = vmatprep.mubr.msk.f32.mxu1 %vm11554_vm3, %v21671_v37  ;;  %v12323_v37 = vpop.permute.xlu1 %12322 }
0x6718   :  { %16262 = vmatmul.mubr.msk.f32.gmra.mrb[158].mxu1 %vm11554_vm3, %v21672_v41  ;;  %v21188_v41 = vpop.permute.xlu0 %12631 }
0x6719   :  { %16264 = vmatprep.mubr.msk.f32.mxu1 %vm11554_vm3, %v21673_v50  ;;  %21689 = vst [vmem:[#allocation10_spill] sm:$0xff] %v21188_v41  ;;  %v21190_v50 = vpop.permute.xlu1 %12626 }
0x671a   :  { %21690 = vst [vmem:[#allocation11_spill] sm:$0xff] %v21190_v50 }
0x671c   :  { %16265 = vmatmul.mubr.msk.f32.gmra.mrb[160].mxu1 %vm11554_vm3, %v21674_v42  ;;  %v12552_v42 = vpop.permute.xlu0 %12551 }
0x671d   :  { %16267 = vmatprep.mubr.msk.f32.mxu1 %vm11554_vm3, %v21675_v5  ;;  %v12547_v5 = vpop.permute.xlu1 %12546 }
0x6720   :  { %16268 = vmatmul.mubr.msk.f32.gmra.mrb[162].mxu1 %vm11554_vm3, %v21676_v40  ;;  %v21192_v40 = vpop.permute.xlu0 %12417 }
0x6721   :  { %16270 = vmatprep.mubr.msk.f32.mxu1 %vm11554_vm3, %v21677_v53  ;;  %21691 = vst [vmem:[#allocation12_spill] sm:$0xff] %v21192_v40  ;;  %v21194_v53 = vpop.permute.xlu1 %12412 }
0x6722   :  { %21692 = vst [vmem:[#allocation13_spill] sm:$0xff] %v21194_v53 }
0x6724   :  { %16271 = vmatmul.mubr.msk.f32.gmra.mrb[164].mxu1 %vm11554_vm3, %v21678_v3  ;;  %v12338_v3 = vpop.permute.xlu0 %12337 }
0x6725   :  { %16273 = vmatprep.mubr.msk.f32.mxu1 %vm11554_vm3, %v21679_v17  ;;  %v21196_v17 = vpop.permute.xlu1 %12332 }
0x6728   :  { %16274 = vmatmul.mubr.msk.f32.gmra.mrb[166].mxu1 %vm11554_vm3, %v21680_v25  ;;  %v21198_v25 = vpop.permute.xlu0 %12641 }
0x6729   :  { %16276 = vmatprep.mubr.msk.f32.mxu1 %vm11554_vm3, %v21681_v9  ;;  %21693 = vst [vmem:[#allocation14_spill] sm:$0xff] %v21198_v25  ;;  %v21200_v9 = vpop.permute.xlu1 %12636 }
0x672a   :  { %21694 = vst [vmem:[#allocation15_spill] sm:$0xff] %v21200_v9 }
0x672c   :  { %16277 = vmatmul.mubr.msk.f32.gmra.mrb[168].mxu1 %vm11554_vm3, %v21682_v58  ;;  %v12562_v58 = vpop.permute.xlu0 %12561 }
0x672d   :  { %16279 = vmatprep.mubr.msk.f32.mxu1 %vm11554_vm3, %v21683_v23  ;;  %v21202_v23 = vpop.permute.xlu1 %12556 }
0x6730   :  { %16280 = vmatmul.mubr.msk.f32.gmra.mrb[170].mxu1 %vm11554_vm3, %v21684_v13  ;;  %v21204_v13 = vpop.permute.xlu0 %12427 }
0x6731   :  { %21695 = vst [vmem:[#allocation16_spill] sm:$0xff] %v21204_v13  ;;  %v21206_v10 = vpop.permute.xlu1 %12422 }
0x6732   :  { %21696 = vst [vmem:[#allocation17_spill] sm:$0xff] %v21206_v10 }
0x6734   :  { %v21208_v0 = vpop.permute.xlu0 %12347 }
0x6735   :  { %v21210_v20 = vpop.permute.xlu1 %12342 }
0x6738   :  { %v21212_v39 = vpop.permute.xlu0 %12651 }
0x6739   :  { %21697 = vst [vmem:[#allocation18_spill] sm:$0xff] %v21212_v39  ;;  %v21214_v22 = vpop.permute.xlu1 %12646 }
0x673a   :  { %21698 = vst [vmem:[#allocation19_spill] sm:$0xff] %v21214_v22 }
0x673c   :  { %v21216_v1 = vpop.permute.xlu0 %12571 }
0x673d   :  { %v21218_v55 = vpop.permute.xlu1 %12566 }
0x6740   :  { %v21220_v2 = vpop.permute.xlu0 %12437 }
0x6741   :  { %21699 = vst [vmem:[#allocation20_spill] sm:$0xff] %v21220_v2  ;;  %v21222_v9 = vpop.permute.xlu1 %12432 }
0x6742   :  { %21700 = vst [vmem:[#allocation21_spill] sm:$0xff] %v21222_v9 }
0x6744   :  { %v21224_v18 = vpop.permute.xlu0 %12357 }
0x6745   :  { %v21226_v13 = vpop.permute.xlu1 %12352 }
0x6748   :  { %v21228_v10 = vpop.permute.xlu0 %12661 }
0x6749   :  { %21701 = vst [vmem:[#allocation22_spill] sm:$0xff] %v21228_v10  ;;  %v21230_v25 = vpop.permute.xlu1 %12656 }
0x674a   :  { %21702 = vst [vmem:[#allocation23_spill] sm:$0xff] %v21230_v25 }
0x674c   :  { %v21232_v53 = vpop.permute.xlu0 %12581 }
0x674d   :  { %v21234_v39 = vpop.permute.xlu1 %12576 }
0x6750   :  { %v21236_v22 = vpop.permute.xlu0 %12447 }
0x6751   :  { %21703 = vst [vmem:[#allocation24_spill] sm:$0xff] %v21236_v22  ;;  %v21238_v40 = vpop.permute.xlu1 %12442 }
0x6752   :  { %21704 = vst [vmem:[#allocation25_spill] sm:$0xff] %v21238_v40 }
0x6754   :  { %v21240_v63 = vpop.permute.xlu0 %12367 }
0x6755   :  { %v21242_v2 = vpop.permute.xlu1 %12362 }
0x6758   :  { %v21245_v41 = vpop.permute.xlu0 %12671 }
0x6759   :  { %21705 = vst [vmem:[#allocation26_spill] sm:$0xff] %v21245_v41  ;;  %v21248_v10 = vpop.permute.xlu1 %12666 }
0x675a   :  { %21706 = vst [vmem:[#allocation27_spill] sm:$0xff] %v21248_v10 }
0x675d   :  { %v12587_v10 = vpop.permute.xlu1 %12586 }
0x67c7   :  { %v16236_v9 = vpop.f32.mrb[140].mxu1 }
0x67c8   :  { %v12237_v50 = vmul.f32 %v16236_v9, %v20939_v56  ;;  %v12077_v54 = vpop.f32.mrb[141].mxu1  ;;  %v12592_v9 = vpop.permute.xlu0 %12591 }
0x67c9   :  { %v12236_v25 = vmul.f32 %v12077_v54, %v20942_v45 }
0x67ca   :  { %v12461_v6 = vmul.f32 %v12308_v24, %v12237_v50 }
0x67cb   :  { %v12460_v38 = vmul.f32 %v12303_v49, %v12236_v25  ;;  %v16239_v27 = vpop.f32.mrb[142].mxu1 }
0x67cc   :  { %v21250_v22 = vadd.f32 %v12532_v60, %v12461_v6  ;;  %v12239_v40 = vmul.f32 %v16239_v27, %v20955_v4  ;;  %v12087_v48 = vpop.f32.mrb[143].mxu1 }
0x67cd   :  { %v21253_v52 = vadd.f32 %v12527_v33, %v12460_v38  ;;  %v12238_v36 = vmul.f32 %v12087_v48, %v20958_v44 }
0x67ce   :  { %v12463_v56 = vmul.f32 %v12318_v7, %v12239_v40 }
0x67cf   :  { %v17062_v41 = vpack.c.bf16 %v21250_v22, %v21253_v52  ;;  %v12462_v45 = vmul.f32 %v12313_v46, %v12238_v36  ;;  %v16242_v54 = vpop.f32.mrb[144].mxu1  ;;  %v21720_v52 = vld [vmem:[#allocation13_spill] sm:$0xff] }
0x67d0   :  { %v21258_v24 = vadd.f32 %v12542_v31, %v12463_v56  ;;  %v12241_v49 = vmul.f32 %v16242_v54, %v20965_v28  ;;  %v12097_v60 = vpop.f32.mrb[145].mxu1  ;;  %v21269_v31 = vpop.permute.xlu0 %12457 }
0x67d1   :  { %v21261_v6 = vadd.f32 %v12537_v21, %v12462_v45  ;;  %v12240_v4 = vmul.f32 %v12097_v60, %v20971_v15  ;;  %v21274_v21 = vpop.permute.xlu1 %12452 }
0x67d2   :  { %v12465_v27 = vmul.f32 %v12328_v11, %v12241_v49 }
0x67d3   :  { %v17066_v44 = vpack.c.bf16 %v21258_v24, %v21261_v6  ;;  %v12464_v33 = vmul.f32 %v12323_v37, %v12240_v4  ;;  %v16245_v7 = vpop.f32.mrb[146].mxu1  ;;  %v21726_v24 = vld [vmem:[#allocation17_spill] sm:$0xff] }
0x67d4   :  { %v21266_v48 = vadd.f32 %v12552_v42, %v12465_v27  ;;  %v12243_v46 = vmul.f32 %v16245_v7, %v20992_v51  ;;  %v12107_v36 = vpop.f32.mrb[147].mxu1  ;;  %v12378_v56 = vpop.permute.xlu0 %12377 }
0x67d5   :  { %v21271_v38 = vadd.f32 %v12547_v5, %v12464_v33  ;;  %v12242_v28 = vmul.f32 %v12107_v36, %v20998_v32  ;;  %v12373_v54 = vpop.permute.xlu1 %12372 }
0x67d6   :  { %v12467_v15 = vmul.f32 %v12338_v3, %v12243_v46 }
0x67d7   :  { %v17070_v11 = vpack.c.bf16 %v21266_v48, %v21271_v38  ;;  %v12466_v37 = vmul.f32 %v21196_v17, %v12242_v28  ;;  %v16248_v50 = vpop.f32.mrb[148].mxu1  ;;  %v21732_v48 = vld [vmem:[#allocation21_spill] sm:$0xff] }
0x67d8   :  { %v21279_v42 = vadd.f32 %v12562_v58, %v12467_v15  ;;  %v12245_v51 = vmul.f32 %v16248_v50, %v21015_v35  ;;  %v12117_v40 = vpop.f32.mrb[149].mxu1  ;;  %v21306_v33 = vpop.permute.xlu0 %12681 }
0x67d9   :  { %v21283_v25 = vadd.f32 %v21202_v23, %v12466_v37  ;;  %v12244_v5 = vmul.f32 %v12117_v40, %v21018_v8 }
0x67da   :  { %v12469_v32 = vmul.f32 %v21208_v0, %v12245_v51 }
0x67db   :  { %v17074_v3 = vpack.c.bf16 %v21279_v42, %v21283_v25  ;;  %v12468_v45 = vmul.f32 %v21210_v20, %v12244_v5  ;;  %v16251_v17 = vpop.f32.mrb[150].mxu1  ;;  %v21738_v42 = vld [vmem:[#allocation25_spill] sm:$0xff] }
0x67dc   :  { %v21291_v58 = vadd.f32 %v21216_v1, %v12469_v32  ;;  %v12247_v35 = vmul.f32 %v16251_v17, %v21025_v30  ;;  %v12127_v49 = vpop.f32.mrb[151].mxu1  ;;  %v12602_v37 = vpop.permute.xlu0 %12601 }
0x67dd   :  { %v21295_v23 = vadd.f32 %v21218_v55, %v12468_v45  ;;  %v12246_v8 = vmul.f32 %v12127_v49, %v21032_v29 }
0x67de   :  { %v12471_v0 = vmul.f32 %v21224_v18, %v12247_v35  ;;  %v21312_v18 = vpop.permute.xlu1 %12676 }
0x67df   :  { %v17078_v60 = vpack.c.bf16 %v21291_v58, %v21295_v23  ;;  %v12470_v20 = vmul.f32 %v21226_v13, %v12246_v8  ;;  %v16254_v4 = vpop.f32.mrb[152].mxu1 }
0x67e0   :  { %v21303_v27 = vadd.f32 %v21232_v53, %v12471_v0  ;;  %v12249_v1 = vmul.f32 %v16254_v4, %v21054_v59  ;;  %v12137_v30 = vpop.f32.mrb[153].mxu1 }
0x67e1   :  { %v21309_v55 = vadd.f32 %v21234_v39, %v12470_v20  ;;  %v12248_v29 = vmul.f32 %v12137_v30, %v21061_v26 }
0x67e2   :  { %v12473_v7 = vmul.f32 %v21240_v63, %v12249_v1  ;;  %v12597_v40 = vpop.permute.xlu1 %12596 }
0x67e3   :  { %v17082_v13 = vpack.c.bf16 %v21303_v27, %v21309_v55  ;;  %v12472_v53 = vmul.f32 %v21242_v2, %v12248_v29  ;;  %v16257_v46 = vpop.f32.mrb[154].mxu1  ;;  %v21707_v2 = vld [vmem:[#allocation31_spill] sm:$0xff]  ;;  %v21709_v29 = vld [vmem:[#allocation6_spill] sm:$0xff]  ;;  %v12791_v27 = vld [vmem:[%s21535_s19 + $0x8] sm:$0xff] }
0x67e4   :  { %v21318_v36 = vadd.f32 %v12592_v9, %v12473_v7  ;;  %v12251_v59 = vmul.f32 %v16257_v46, %v21079_v34  ;;  %v12147_v28 = vpop.f32.mrb[155].mxu1  ;;  %v21708_v34 = vld [vmem:[#allocation32_spill] sm:$0xff]  ;;  %v21744_v55 = vld [vmem:[#allocation5_spill] sm:$0xff] }
0x67e5   :  { %v21321_v15 = vadd.f32 %v12587_v10, %v12472_v53  ;;  %v12250_v39 = vmul.f32 %v12147_v28, %v21083_v57  ;;  %v21710_v53 = vld [vmem:[#allocation33_spill] sm:$0xff]  ;;  %v21712_v28 = vld [vmem:[#allocation34_spill] sm:$0xff] }
0x67e6   :  { %v12475_v26 = vmul.f32 %v12378_v56, %v12251_v59  ;;  %v21711_v59 = vld [vmem:[#allocation7_spill] sm:$0xff] }
0x67e7   :  { %v17086_v63 = vpack.c.bf16 %v21318_v36, %v21321_v15  ;;  %v12474_v50 = vmul.f32 %v12373_v54, %v12250_v39  ;;  %v16260_v51 = vpop.f32.mrb[156].mxu1  ;;  %v21713_v39 = vld [vmem:[#allocation8_spill] sm:$0xff]  ;;  %v12793_v36 = vld [vmem:[%s21535_s19 + $0x18] sm:$0xff] }
0x67e8   :  { %v21326_v5 = vadd.f32 %v12602_v37, %v12475_v26  ;;  %v12253_v9 = vmul.f32 %v16260_v51, %v21707_v2  ;;  %v12157_v32 = vpop.f32.mrb[157].mxu1  ;;  %v21715_v37 = vld [vmem:[#allocation10_spill] sm:$0xff]  ;;  %v21716_v51 = vld [vmem:[#allocation35_spill] sm:$0xff] }
0x67e9   :  { %v21329_v45 = vadd.f32 %v12597_v40, %v12474_v50  ;;  %v12252_v10 = vmul.f32 %v12157_v32, %v21708_v34  ;;  %v21718_v34 = vld [vmem:[#allocation36_spill] sm:$0xff] }
0x67ea   :  { %v12477_v17 = vmul.f32 %v21164_v19, %v12253_v9  ;;  %v21717_v9 = vld [vmem:[#allocation11_spill] sm:$0xff] }
0x67eb   :  { %v17090_v57 = vpack.c.bf16 %v21326_v5, %v21329_v45  ;;  %v12476_v56 = vmul.f32 %v21168_v61, %v12252_v10  ;;  %v16263_v35 = vpop.f32.mrb[158].mxu1  ;;  %v12787_v5 = vld [vmem:[%s21536_s18 + $0x8] sm:$0xff] }
0x67ec   :  { %v12701_v54 = vadd.f32 %v21172_v47, %v12477_v17  ;;  %v12255_v49 = vmul.f32 %v16263_v35, %v20968_v14  ;;  %v12167_v8 = vpop.f32.mrb[159].mxu1  ;;  %v21719_v17 = vld [vmem:[#allocation12_spill] sm:$0xff] }
0x67ed   :  { %v12700_v0 = vadd.f32 %v21174_v62, %v12476_v56  ;;  %v12254_v20 = vmul.f32 %v12167_v8, %v20974_v43  ;;  %v21714_v43 = vld [vmem:[#allocation9_spill] sm:$0xff] }
0x67ee   :  { %v12479_v4 = vmul.f32 %v21176_v12, %v12255_v49  ;;  %v21722_v8 = vld [vmem:[#allocation37_spill] sm:$0xff] }
0x67ef   :  { %v12478_v1 = vmul.f32 %v21178_v16, %v12254_v20  ;;  %v16266_v19 = vpop.f32.mrb[160].mxu1  ;;  %v17060_v30 = vpack.c.bf16 %v12701_v54, %v12700_v0  ;;  %v21721_v54 = vld [vmem:[#allocation14_spill] sm:$0xff] }
0x67f0   :  { %v12703_v7 = vadd.f32 %v21709_v29, %v12479_v4  ;;  %v12257_v61 = vmul.f32 %v16266_v19, %v21710_v53  ;;  %v12177_v46 = vpop.f32.mrb[161].mxu1  ;;  %v21723_v4 = vld [vmem:[#allocation15_spill] sm:$0xff]  ;;  %v21724_v19 = vld [vmem:[#allocation38_spill] sm:$0xff]  ;;  %v21725_v29 = vld [vmem:[#allocation16_spill] sm:$0xff] }
0x67f1   :  { %v12702_v47 = vadd.f32 %v21711_v59, %v12478_v1  ;;  %v12256_v14 = vmul.f32 %v12177_v46, %v21712_v28  ;;  %17061 = vmatprep.subr.bf16.mxu0 %v17060_v30  ;;  %v21728_v59 = vld [vmem:[#allocation39_spill] sm:$0xff] }
0x67f2   :  { %v12481_v62 = vmul.f32 %v21713_v39, %v12257_v61  ;;  %17063 = vmatpush3.bf16.msra.mxu0 %v17062_v41  ;;  %v21727_v61 = vld [vmem:[#allocation18_spill] sm:$0xff] }
0x67f3   :  { %v12480_v12 = vmul.f32 %v21714_v43, %v12256_v14  ;;  %v16269_v16 = vpop.f32.mrb[162].mxu1  ;;  %v17064_v26 = vpack.c.bf16 %v12703_v7, %v12702_v47  ;;  %v21729_v14 = vld [vmem:[#allocation19_spill] sm:$0xff] }
0x67f4   :  { %v12705_v50 = vadd.f32 %v21715_v37, %v12481_v62  ;;  %v12259_v40 = vmul.f32 %v16269_v16, %v21716_v51  ;;  %v12187_v2 = vpop.f32.mrb[163].mxu1  ;;  %v21730_v62 = vld [vmem:[#allocation40_spill] sm:$0xff]  ;;  %v21733_v37 = vld [vmem:[#allocation22_spill] sm:$0xff]  ;;  %v21734_v51 = vld [vmem:[#allocation41_spill] sm:$0xff] }
0x67f5   :  { %v12704_v32 = vadd.f32 %v21717_v9, %v12480_v12  ;;  %v12258_v10 = vmul.f32 %v12187_v2, %v21718_v34  ;;  %17065 = vmatprep.subr.bf16.mxu0 %v17064_v26  ;;  %v21731_v12 = vld [vmem:[#allocation20_spill] sm:$0xff]  ;;  %v21735_v9 = vld [vmem:[#allocation23_spill] sm:$0xff]  ;;  %v21736_v34 = vld [vmem:[#allocation42_spill] sm:$0xff] }
0x67f6   :  { %v12483_v56 = vmul.f32 %v21719_v17, %v12259_v40  ;;  %17067 = vmatpush3.bf16.msra.mxu0 %v17066_v44  ;;  %v21737_v17 = vld [vmem:[#allocation24_spill] sm:$0xff] }
0x67f7   :  { %v12482_v22 = vmul.f32 %v21720_v52, %v12258_v10  ;;  %v16272_v41 = vpop.f32.mrb[164].mxu1  ;;  %v17068_v35 = vpack.c.bf16 %v12705_v50, %v12704_v32 }
0x67f8   :  { %v12707_v49 = vadd.f32 %v21721_v54, %v12483_v56  ;;  %v12261_v0 = vmul.f32 %v16272_v41, %v21722_v8  ;;  %v12197_v20 = vpop.f32.mrb[165].mxu1  ;;  %v21741_v8 = vld [vmem:[#allocation27_spill] sm:$0xff] }
0x67f9   :  { %v12706_v1 = vadd.f32 %v21723_v4, %v12482_v22  ;;  %v12260_v30 = vmul.f32 %v12197_v20, %v21724_v19  ;;  %17069 = vmatprep.subr.bf16.mxu0 %v17068_v35  ;;  %v21739_v22 = vld [vmem:[#allocation26_spill] sm:$0xff]  ;;  %v21740_v35 = vld [vmem:[#allocation43_spill] sm:$0xff]  ;;  %v21742_v20 = vld [vmem:[#allocation44_spill] sm:$0xff] }
0x67fa   :  { %v12485_v7 = vmul.f32 %v21725_v29, %v12261_v0  ;;  %17071 = vmatpush3.bf16.msra.mxu0 %v17070_v11 }
0x67fb   :  { %v12484_v6 = vmul.f32 %v21726_v24, %v12260_v30  ;;  %v16275_v44 = vpop.f32.mrb[166].mxu1  ;;  %v17072_v53 = vpack.c.bf16 %v12707_v49, %v12706_v1  ;;  %v12788_v24 = vld [vmem:[%s21536_s18 + $0x10] sm:$0xff] }
0x67fc   :  { %v12709_v46 = vadd.f32 %v21727_v61, %v12485_v7  ;;  %v12263_v47 = vmul.f32 %v16275_v44, %v21728_v59  ;;  %v12207_v28 = vpop.f32.mrb[167].mxu1  ;;  %v12955_v44 = vld [vmem:[%s21537_s20] sm:$0xff] }
0x67fd   :  { %v12708_v39 = vadd.f32 %v21729_v14, %v12484_v6  ;;  %v12262_v43 = vmul.f32 %v12207_v28, %v21730_v62  ;;  %17073 = vmatprep.subr.bf16.mxu0 %v17072_v53  ;;  %v12789_v6 = vld [vmem:[%s21536_s18 + $0x18] sm:$0xff]  ;;  %v12956_v53 = vld [vmem:[%s21537_s20 + $0x8] sm:$0xff]  ;;  %v21746_v59 = vld [vmem:[#allocation4_spill] sm:$0xff] }
0x67fe   :  { %v12487_v16 = vmul.f32 %v21731_v12, %v12263_v47  ;;  %17075 = vmatpush3.bf16.msra.mxu0 %v17074_v3  ;;  %v17102_v61 = vpack.c.bf16 %v12789_v6, %v12788_v24  ;;  %v12957_v47 = vld [vmem:[%s21537_s20 + $0x10] sm:$0xff]  ;;  %v12958_v28 = vld [vmem:[%s21537_s20 + $0x18] sm:$0xff]  ;;  %v12952_v62 = vld [vmem:[%s21538_s1 + $0x8] sm:$0xff] }
0x67ff   :  { %v12486_v38 = vmul.f32 %v21732_v48, %v12262_v43  ;;  %v16278_v11 = vpop.f32.mrb[168].mxu1  ;;  %v17076_v26 = vpack.c.bf16 %v12709_v46, %v12708_v39  ;;  %v17104_v46 = vpack.c.bf16 %v12956_v53, %v12955_v44  ;;  %v17108_v14 = vpack.c.bf16 %v12958_v28, %v12957_v47  ;;  %v12951_v39 = vld [vmem:[%s21538_s1] sm:$0xff]  ;;  %v12953_v43 = vld [vmem:[%s21538_s1 + $0x10] sm:$0xff]  ;;  %v12954_v12 = vld [vmem:[%s21538_s1 + $0x18] sm:$0xff] }
0x6800   :  { %v12711_v50 = vadd.f32 %v21733_v37, %v12487_v16  ;;  %v12265_v40 = vmul.f32 %v16278_v11, %v21734_v51  ;;  %v12217_v2 = vpop.f32.mrb[169].mxu1  ;;  %v12947_v16 = vld [vmem:[%s21539_s17] sm:$0xff]  ;;  %v13159_v11 = vld [vmem:[%s21540_s22 + $0x10] sm:$0xff]  ;;  %v13160_v37 = vld [vmem:[%s21540_s22 + $0x18] sm:$0xff] }
0x6801   :  { %v12710_v32 = vadd.f32 %v21735_v9, %v12486_v38  ;;  %v12264_v10 = vmul.f32 %v12217_v2, %v21736_v34  ;;  %17077 = vmatprep.subr.bf16.mxu0 %v17076_v26  ;;  %v13157_v48 = vld [vmem:[%s21540_s22] sm:$0xff]  ;;  %v13158_v38 = vld [vmem:[%s21540_s22 + $0x8] sm:$0xff] }
0x6802   :  { %v12489_v56 = vmul.f32 %v21737_v17, %v12265_v40  ;;  %17079 = vmatpush3.bf16.msra.mxu0 %v17078_v60  ;;  %v17112_v26 = vpack.c.bf16 %v13158_v38, %v13157_v48  ;;  %v13735_v9 = vld [vmem:[%s21541_s21] ss:$0 sm:$0xff]  ;;  %v12948_v17 = vld [vmem:[%s21539_s17 + $0x8] sm:$0xff] }
0x6803   :  { %v12488_v25 = vmul.f32 %v21738_v42, %v12264_v10  ;;  %v16281_v3 = vpop.f32.mrb[170].mxu1  ;;  %v17080_v52 = vpack.c.bf16 %v12711_v50, %v12710_v32  ;;  %v17116_v50 = vpack.c.bf16 %v13160_v37, %v13159_v11  ;;  %v12950_v42 = vld [vmem:[%s21539_s17 + $0x18] sm:$0xff] }
0x6804   :  { %v12713_v41 = vadd.f32 %v21739_v22, %v12489_v56  ;;  %v12267_v54 = vmul.f32 %v16281_v3, %v21740_v35  ;;  %v12227_v49 = vpop.f32.mrb[171].mxu1  ;;  %17113 = vmatprep.subr.bf16.mxu1 %v17112_v26  ;;  %v12949_v56 = vld [vmem:[%s21539_s17 + $0x10] sm:$0xff] }
0x6805   :  { %v12712_v0 = vadd.f32 %v21741_v8, %v12488_v25  ;;  %v12266_v4 = vmul.f32 %v12227_v49, %v21742_v20  ;;  %17081 = vmatprep.subr.bf16.mxu0 %v17080_v52  ;;  %17115 = vmatpush3.bf16.msra.mxu1 %v17112_v26  ;;  %v13744_v8 = vld [vmem:[%s21542_s23] ss:$0 sm:$0xff] }
0x6806   :  { %v12491_v1 = vmul.f32 %v21269_v31, %v12267_v54  ;;  %17083 = vmatpush3.bf16.msra.mxu0 %v17082_v13  ;;  %v12790_v31 = vld [vmem:[%s21535_s19] sm:$0xff]  ;;  %v12792_v13 = vld [vmem:[%s21535_s19 + $0x10] sm:$0xff]  ;;  %17117 = vmatprep.subr.bf16.mxu1 %v17116_v50 }
0x6807   :  { %v12490_v58 = vmul.f32 %v21274_v21, %v12266_v4  ;;  %v17084_v23 = vpack.c.bf16 %v12713_v41, %v12712_v0  ;;  %v17093_v21 = vpack.c.bf16 %v12791_v27, %v12790_v31  ;;  %v17096_v15 = vpack.c.bf16 %v12793_v36, %v12792_v13 }
0x6808   :  { %v12715_v60 = vadd.f32 %v21306_v33, %v12491_v1  ;;  %v21743_v33 = vmov 0.0|0.0  }
0x6809   :  { %v12714_v19 = vadd.f32 %v21312_v18, %v12490_v58  ;;  %17085 = vmatprep.subr.bf16.mxu0 %v17084_v23  ;;  %v21745_v18 = vmov 0.0   ;;  %17119 = vmatpush3.bf16.msra.mxu1 %v17116_v50 }
0x680a   :  { %17087 = vmatpush3.bf16.msra.mxu0 %v17086_v63  ;;  %v12786_v63 = vld [vmem:[%s21536_s18] sm:$0xff] }
0x680b   :  { %v17088_v30 = vpack.c.bf16 %v12715_v60, %v12714_v19  ;;  %v17099_v29 = vpack.c.bf16 %v12787_v5, %v12786_v63 }
0x680d   :  { %17089 = vmatprep.subr.bf16.mxu0 %v17088_v30 }
0x680e   :  { %17091 = vmatpush3.bf16.msra.mxu0 %v17090_v57 }
0x680f   :  { %17092 = vmatprep.subr.bf16.mxu0 %v21743_v33 }
0x6811   :  { %12781 = vmatmul.mubr.f32.vlgmr.msra.gmra.mrb[186].mxu0 %v21744_v55 }
0x6812   :  { %17094 = vmatpush3.bf16.msra.mxu0 %v17093_v21  ;;  %16290 = vmatprep.mubr.msk.f32.mxu0 %vm17787_vm1, %v21745_v18 }
0x6813   :  { %17095 = vmatprep.subr.bf16.mxu0 %v21743_v33 }
0x6816   :  { %17097 = vmatpush3.bf16.msra.mxu0 %v17096_v15 }
0x6817   :  { %17098 = vmatprep.subr.bf16.mxu0 %v21743_v33 }
0x68e4   :  { %v14667_v45 = vpop.f32.mrb[186].mxu0 }
0x68e5   :  { %v14668_v57 = vpop.f32.mrb[187].mxu0 }
0x68e6   :  { %v14669_v7 = vadd.f32 %v14668_v57, %v14667_v45 }
0x68e8   :  { %16291 = vmatmul.mubr.msk.f32.vlgmr.msra.gmra.mrb[188].mxu0 %vm79_vm0, %v14669_v7 }
0x68e9   :  { %17100 = vmatpush3.bf16.msra.mxu0 %v17099_v29  ;;  %16301 = vmatprep.mubr.msk.f32.mxu0 %vm17787_vm1, %v21745_v18 }
0x68ea   :  { %17101 = vmatprep.subr.bf16.mxu0 %v21743_v33 }
0x68ed   :  { %17103 = vmatpush3.bf16.msra.mxu0 %v17102_v61 }
0x68ee   :  { %17105 = vmatprep.subr.bf16.mxu0 %v17104_v46 }
0x68f0   :  { %16302 = vmatmul.mubr.msk.f32.vlgmr.msra.gmra.mrb[190].mxu0 %vm79_vm0, %v21746_v59 }
0x68f1   :  { %17107 = vmatpush3.bf16.msra.mxu0 %v17104_v46  ;;  %16312 = vmatprep.mubr.msk.f32.mxu0 %vm79_vm0, %v12951_v39 }
0x68f2   :  { %17109 = vmatprep.subr.bf16.mxu0 %v17108_v14 }
0x68f5   :  { %17111 = vmatpush3.bf16.msra.mxu0 %v17108_v14 }
0x68f8   :  { %16313 = vmatmul.mubr.msk.f32.vlgmr.msra.gmra.mrb[192].mxu0 %vm79_vm0, %v12952_v62 }
0x68f9   :  { %16315 = vmatprep.mubr.msk.f32.mxu0 %vm79_vm0, %v12953_v43 }
0x68fc   :  { %16316 = vmatmul.mubr.msk.f32.gmra.mrb[194].mxu0 %vm79_vm0, %v12954_v12 }
0x68fd   :  { %16320 = vmatprep.mubr.msk.f32.mxu0 %vm11554_vm3, %v12947_v16 }
0x69bb   :  { %v12863_v51 = vpop.f32.mrb[188].mxu0 }
0x69bc   :  { %v16292_v40 = vpop.f32.mrb[189].mxu0 }
0x69c3   :  { %v12935_v2 = vpop.f32.mrb[190].mxu0 }
0x69c4   :  { %v12936_v32 = vadd.f32 %v12935_v2, %v12863_v51  ;;  %v16303_v34 = vpop.f32.mrb[191].mxu0 }
0x69c6   :  { %v12946_v10 = vadd.f32 %v13735_v9, %v12936_v32 }
0x69c8   :  { %16318 = vmatprep.subr.mxu0 %v12946_v10 }
0x69c9   :  { %16319 = vmatpush3.msra.mxu0 %v12946_v10 }
0x69ca   :  { %16321 = vmatmul.mubr.msk.f32.vlgmr.msra.gmra.mrb[192].mxu0 %vm11554_vm3, %v12948_v17 }
0x69cb   :  { %16323 = vmatprep.mubr.msk.f32.mxu0 %vm11554_vm3, %v12949_v56 }
0x69ce   :  { %16324 = vmatmul.mubr.msk.f32.gmra.mrb[194].mxu0 %vm11554_vm3, %v12950_v42 }
0x6a9d   :  { %v16322_v25 = vpop.f32.mrb[192].mxu0 }
0x6a9e   :  { %v13134_v3 = vpop.f32.mrb[193].mxu0  ;;  %v13154_v22 = vmax.f32 %v16322_v25, 0.0 }
0x6a9f   :  { %v13153_v52 = vmax.f32 %v13134_v3, 0.0 }
0x6aa1   :  { %v16325_v41 = vpop.f32.mrb[194].mxu0  ;;  %16334 = vmatprep.mubr.msk.f32.mxu1 %vm79_vm0, %v13153_v52 }
0x6aa2   :  { %v13144_v35 = vpop.f32.mrb[195].mxu0  ;;  %16335 = vmatmul.mubr.msk.f32.vlgmr.msra.gmra.mrb[172].mxu1 %vm79_vm0, %v13154_v22  ;;  %v13156_v49 = vmax.f32 %v16325_v41, 0.0 }
0x6aa3   :  { %v13155_v54 = vmax.f32 %v13144_v35, 0.0 }
0x6aa5   :  { %16337 = vmatprep.mubr.msk.f32.mxu1 %vm79_vm0, %v13155_v54 }
0x6aa6   :  { %16338 = vmatmul.mubr.msk.f32.gmra.mrb[174].mxu1 %vm79_vm0, %v13156_v49 }
0x6b75   :  { %v16336_v0 = vpop.f32.mrb[172].mxu1 }
0x6b76   :  { %v13252_v20 = vadd.f32 %v16336_v0, %v13744_v8  ;;  %v13246_v4 = vpop.f32.mrb[173].mxu1 }
0x6b77   :  { %v13247_v1 = vadd.f32 %v13744_v8, %v13246_v4 }
0x6b78   :  { %13266 = vst [vmem:[%s21543_s25 + $0x8] sm:$0xff] %v13252_v20 }
0x6b79   :  { %13265 = vst [vmem:[%s21543_s25] sm:$0xff] %v13247_v1  ;;  %v16339_v58 = vpop.f32.mrb[174].mxu1 }
0x6b7a   :  { %v13262_v23 = vadd.f32 %v16339_v58, %v13744_v8  ;;  %v13256_v60 = vpop.f32.mrb[175].mxu1 }
0x6b7b   :  { %v13257_v19 = vadd.f32 %v13744_v8, %v13256_v60 }
0x6b7c   :  { %13268 = vst [vmem:[%s21543_s25 + $0x18] sm:$0xff] %v13262_v23 }
0x6b7d   :  { %13267 = vst [vmem:[%s21543_s25 + $0x10] sm:$0xff] %v13257_v19 }

</bundles_post_ra>
